<compile_context>
chip_gen: v6e
topology: v6e:2x2x1
jax: 0.10.0
libtpu: 0.0.40
codegen_flags: <defaults>
</compile_context>

<pallas_src>
import jax
import jax.numpy as jnp
from jax.experimental import pallas as pl
from jax.experimental.pallas import tpu as pltpu

# ---- logical model dims (match the PyTorch module) -------------------------
D_IN = 28 * 28        # 784
D_HID = 7000
D_OUT = 10
NEG_SLOPE = 0.01      # F.leaky_relu default

# ---- padded / tiled dims ----------------------------------------------------
def _round_up(x, m):
    return (x + m - 1) // m * m

D_IN_AUG = 800                      # 784 weight rows + 1 bias row, padded to x32
D_HID_P = 7168                      # 56 * 128
D_OUT_P = 16                        # 10 -> 16 lanes (== full array dim; no 128 pad)
TILE_H = 3584                       # 28 * 128 ; int8 W1 tile ~2.9 MB
N_TILES = D_HID_P // TILE_H         # 2
assert N_TILES * TILE_H == D_HID_P


def _elm_kernel(x_ref, w1_ref, w2_ref, o_ref):
    """One hidden tile of: leaky_relu(x @ W1q) @ (scale-folded W2), accumulated."""
    @pl.when(pl.program_id(0) == 0)
    def _():
        o_ref[...] = jnp.zeros_like(o_ref)

    # int8 weight tile -> bf16 for the MXU (no dequant multiply: the per-column
    # scales were folded into W2 at pack time).
    w1 = w1_ref[...].astype(jnp.bfloat16)
    # fc1 (bias folded in as the last real input row) -> f32 accumulate
    h = jnp.dot(x_ref[...], w1, preferred_element_type=jnp.float32)
    # LeakyReLU (negative_slope = 0.01); positively homogeneous, so the quant
    # scale commutes through it.
    a = jnp.where(h > 0, h, NEG_SLOPE * h).astype(jnp.bfloat16)
    # fc2 partial contraction over this hidden tile
    o_ref[...] += jnp.dot(a, w2_ref[...], preferred_element_type=jnp.float32)


def pack_params(w1t, b1, w2t):
    """One-time packing of logical f32 params into the kernel layout.

    w1t: (784, 7000)   b1: (7000,)   w2t: (7000, 10)
    Returns:
      w1q: (N_TILES, 800, TILE_H) int8, tile-major.  Rows 0..783 = round(W1^T/s_j),
           row 784 = round(b1/s_j) with per-hidden-column scale s_j.
      w2p: (7168, 16) bf16.  Row j, cols 0..9 = s_j * W2^T[j, :], rest zero.
    """
    w1aug = jnp.zeros((D_IN_AUG, D_HID_P), jnp.float32)
    w1aug = w1aug.at[:D_IN, :D_HID].set(w1t.astype(jnp.float32))
    w1aug = w1aug.at[D_IN, :D_HID].set(b1.astype(jnp.float32))

    # symmetric per-hidden-column int8 quantization
    col_max = jnp.max(jnp.abs(w1aug), axis=0)                     # (D_HID_P,)
    scale = jnp.where(col_max > 0, col_max / 127.0, 1.0)
    w1q = jnp.clip(jnp.round(w1aug / scale), -127.0, 127.0).astype(jnp.int8)
    # tile-major contiguous layout: one contiguous DMA stream per grid step
    w1q = w1q.reshape(D_IN_AUG, N_TILES, TILE_H).transpose(1, 0, 2)

    # fold scales into W2 rows (exact: leaky_relu(s*h) = s*leaky_relu(h), s>0)
    w2p = jnp.zeros((D_HID_P, D_OUT_P), jnp.float32)
    w2p = w2p.at[:D_HID, :D_OUT].set(w2t.astype(jnp.float32))
    w2p = (w2p * scale[:, None]).astype(jnp.bfloat16)
    return w1q, w2p


@jax.jit
def elm_forward(x, w1q, w2p):
    """x: (B, 1, 28, 28) -> logits (B, 10) float32."""
    B = x.shape[0]
    Bp = max(_round_up(B, 16), 16)       # bf16 sublane granularity

    # Flatten exactly like x.view(-1, 784) (NCHW row-major); only x is padded
    # per call (weights are pre-packed).  Column 784 = 1.0 drives the folded bias.
    x2d = x.reshape(B, -1).astype(jnp.bfloat16)
    xp = jnp.zeros((Bp, D_IN_AUG), jnp.bfloat16)
    xp = xp.at[:B, :D_IN].set(x2d)
    xp = xp.at[:B, D_IN].set(1.0)

    cost = pl.CostEstimate(
        flops=2 * Bp * D_IN_AUG * D_HID_P + 2 * Bp * D_HID_P * D_OUT_P,
        transcendentals=0,
        bytes_accessed=(D_IN_AUG * D_HID_P            # int8 W1
                        + D_HID_P * D_OUT_P * 2       # bf16 W2 (scale-folded)
                        + Bp * D_IN_AUG * 2           # bf16 x
                        + Bp * D_OUT_P * 4),          # f32 out
    )

    out_p = pl.pallas_call(
        _elm_kernel,
        out_shape=jax.ShapeDtypeStruct((Bp, D_OUT_P), jnp.float32),
        grid_spec=pltpu.PrefetchScalarGridSpec(
            num_scalar_prefetch=0,
            grid=(N_TILES,),
            in_specs=[
                # x: tiny, VMEM-resident across the whole grid
                pl.BlockSpec((Bp, D_IN_AUG), lambda h: (0, 0)),
                # W1 tile (tile-major leading axis -> contiguous DMA per step)
                pl.BlockSpec((None, D_IN_AUG, TILE_H), lambda h: (h, 0, 0)),
                # matching scale-folded W2 tile (16-lane last dim == full dim)
                pl.BlockSpec((TILE_H, D_OUT_P), lambda h: (h, 0)),
            ],
            # resident f32 accumulator across the hidden-tile reduction axis
            out_specs=pl.BlockSpec((Bp, D_OUT_P), lambda h: (0, 0)),
        ),
        compiler_params=pltpu.CompilerParams(
            dimension_semantics=("arbitrary",),     # reduction axis
            vmem_limit_bytes=32 * 1024 * 1024,      # covers v5e's 16 MiB default
        ),
        cost_estimate=cost,
    )(xp, w1q, w2p)

    return out_p[:B, :D_OUT]


def init_params(key):
    """PyTorch-Linear-style init (U[-1/sqrt(fan_in), 1/sqrt(fan_in)]), pre-packed."""
    k1, k2, k3 = jax.random.split(key, 3)
    bound1 = 1.0 / (D_IN ** 0.5)
    bound2 = 1.0 / (D_HID ** 0.5)
    w1t = jax.random.uniform(k1, (D_IN, D_HID), jnp.float32, -bound1, bound1)
    b1 = jax.random.uniform(k2, (D_HID,), jnp.float32, -bound1, bound1)
    w2t = jax.random.uniform(k3, (D_HID, D_OUT), jnp.float32, -bound2, bound2)
    return pack_params(w1t, b1, w2t)


if __name__ == "__main__":
    key = jax.random.PRNGKey(0)
    kx, kp = jax.random.split(key)

    B = 8
    x = jax.random.normal(kx, (B, 1, 28, 28), jnp.float32)  # MNIST-shaped input
    w1q, w2p = init_params(kp)

    out = elm_forward(x, w1q, w2p)
    out = jax.block_until_ready(out)

    # pure-JAX reference using the SAME quantized params / bf16 activations
    w1_flat = w1q.transpose(1, 0, 2).reshape(D_IN_AUG, D_HID_P).astype(jnp.float32)
    w2_f = w2p.astype(jnp.float32)
    x_q = x.reshape(B, -1).astype(jnp.bfloat16).astype(jnp.float32)
    x_aug = jnp.concatenate([x_q, jnp.ones((B, 1), jnp.float32)], axis=1)
    h_ref = x_aug @ w1_flat[:D_IN + 1]
    a_ref = jnp.where(h_ref > 0, h_ref, NEG_SLOPE * h_ref)
    a_ref = a_ref.astype(jnp.bfloat16).astype(jnp.float32)
    ref = (a_ref @ w2_f)[:, :D_OUT]

    assert out.shape == (B, D_OUT)
    assert jnp.allclose(out, ref, atol=2e-2, rtol=2e-2), "mismatch vs reference"

    print("KERNEL_OK")
</pallas_src>

<mosaic_0001>
module attributes {stable_mosaic.version = 11 : i64} {
  func.func @_elm_kernel(%arg0: i32, %arg1: memref<16x800xbf16, #tpu.memory_space<vmem>>, %arg2: memref<1x800x3584xi8, #tpu.memory_space<vmem>>, %arg3: memref<3584x16xbf16, #tpu.memory_space<vmem>>, %arg4: memref<16x16xf32, #tpu.memory_space<vmem>>) attributes {dimension_semantics = [#tpu.dimension_semantics<arbitrary>], iteration_bounds = array<i64: 2>, scalar_prefetch = 0 : i64, scratch_operands = 0 : i64, tpu.core_type = #tpu.core_type<tc>, window_params = [{pipeline_mode = #tpu.pipeline_mode<synchronous>, transform_indices = @transform_0, window_bounds = array<i64: 16, 800>}, {transform_indices = @transform_1, window_bounds = array<i64: 1, 800, 3584>}, {transform_indices = @transform_2, window_bounds = array<i64: 3584, 16>}, {pipeline_mode = #tpu.pipeline_mode<synchronous>, transform_indices = @transform_3, window_bounds = array<i64: 16, 16>}]} {
    %c0_i32 = arith.constant 0 : i32
    %0 = arith.cmpi eq, %arg0, %c0_i32 : i32
    %1 = arith.extui %0 : i1 to i32
    %c0_i32_0 = arith.constant 0 : i32
    %2 = arith.cmpi ne, %1, %c0_i32_0 : i32
    scf.if %2 {
      %cst_14 = arith.constant 0.000000e+00 : f32
      %19 = vector.broadcast %cst_14 : f32 to vector<16x16xf32>
      %c0_15 = arith.constant 0 : index
      %c0_16 = arith.constant 0 : index
      %20 = vector.load %arg4[%c0_15, %c0_16] : memref<16x16xf32, #tpu.memory_space<vmem>>, vector<16x16xf32>
      tpu.vector_store %arg4[%c0_15, %c0_16], %19 {strides = array<i32>} : memref<16x16xf32, #tpu.memory_space<vmem>>, vector<16x16xf32>,
    } else {
    }
    %c0 = arith.constant 0 : index
    %c0_1 = arith.constant 0 : index
    %c0_2 = arith.constant 0 : index
    %3 = vector.load %arg2[%c0, %c0_1, %c0_2] : memref<1x800x3584xi8, #tpu.memory_space<vmem>>, vector<1x800x3584xi8>
    %4 = vector.shape_cast %3 : vector<1x800x3584xi8> to vector<800x3584xi8>
    %5 = arith.sitofp %4 : vector<800x3584xi8> to vector<800x3584xbf16>
    %c0_3 = arith.constant 0 : index
    %c0_4 = arith.constant 0 : index
    %6 = vector.load %arg1[%c0_3, %c0_4] : memref<16x800xbf16, #tpu.memory_space<vmem>>, vector<16x800xbf16>
    %cst = arith.constant dense<0.000000e+00> : vector<16x3584xf32>
    %7 = tpu.matmul %6, %5, %cst {dimension_numbers = #tpu.dot_dimension_numbers<[1], [0], [0], [1], [0, 0, 1, 1], [], []>} : vector<16x800xbf16>, vector<800x3584xbf16>, vector<16x3584xf32> -> vector<16x3584xf32>
    %cst_5 = arith.constant 0.000000e+00 : f32
    %8 = vector.broadcast %cst_5 : f32 to vector<16x3584xf32>
    %9 = arith.cmpf ogt, %7, %8 : vector<16x3584xf32>
    %cst_6 = arith.constant 0.00999999977 : f32
    %10 = vector.broadcast %cst_6 : f32 to vector<16x3584xf32>
    %11 = arith.mulf %10, %7 : vector<16x3584xf32>
    %12 = arith.select %9, %7, %11 : vector<16x3584xi1>, vector<16x3584xf32>
    %13 = arith.truncf %12 : vector<16x3584xf32> to vector<16x3584xbf16>
    %c0_7 = arith.constant 0 : index
    %c0_8 = arith.constant 0 : index
    %14 = vector.load %arg4[%c0_7, %c0_8] : memref<16x16xf32, #tpu.memory_space<vmem>>, vector<16x16xf32>
    %c0_9 = arith.constant 0 : index
    %c0_10 = arith.constant 0 : index
    %15 = vector.load %arg3[%c0_9, %c0_10] : memref<3584x16xbf16, #tpu.memory_space<vmem>>, vector<3584x16xbf16>
    %cst_11 = arith.constant dense<0.000000e+00> : vector<16x16xf32>
    %16 = tpu.matmul %13, %15, %cst_11 {dimension_numbers = #tpu.dot_dimension_numbers<[1], [0], [0], [1], [0, 0, 1, 1], [], []>} : vector<16x3584xbf16>, vector<3584x16xbf16>, vector<16x16xf32> -> vector<16x16xf32>
    %17 = arith.addf %14, %16 : vector<16x16xf32>
    %c0_12 = arith.constant 0 : index
    %c0_13 = arith.constant 0 : index
    %18 = vector.load %arg4[%c0_12, %c0_13] : memref<16x16xf32, #tpu.memory_space<vmem>>, vector<16x16xf32>
    tpu.vector_store %arg4[%c0_12, %c0_13], %17 {strides = array<i32>} : memref<16x16xf32, #tpu.memory_space<vmem>>, vector<16x16xf32>,
    return
  }
  func.func @transform_0(%arg0: i32) -> (i32, i32) {
    %c0_i32 = arith.constant 0 : i32
    %c0_i32_0 = arith.constant 0 : i32
    %c0_i32_1 = arith.constant 0 : i32
    return %c0_i32, %c0_i32_0 : i32, i32
  }
  func.func @transform_1(%arg0: i32) -> (i32, i32, i32) {
    %c0_i32 = arith.constant 0 : i32
    %c0_i32_0 = arith.constant 0 : i32
    %c0_i32_1 = arith.constant 0 : i32
    return %arg0, %c0_i32, %c0_i32_0 : i32, i32, i32
  }
  func.func @transform_2(%arg0: i32) -> (i32, i32) {
    %c0_i32 = arith.constant 0 : i32
    %c0_i32_0 = arith.constant 0 : i32
    return %arg0, %c0_i32 : i32, i32
  }
  func.func @transform_3(%arg0: i32) -> (i32, i32) {
    %c0_i32 = arith.constant 0 : i32
    %c0_i32_0 = arith.constant 0 : i32
    %c0_i32_1 = arith.constant 0 : i32
    return %c0_i32, %c0_i32_0 : i32, i32
  }
}

</mosaic_0001>

<bundles_post_ra>
// kernel: elm_forward.1
= control target key start
LH: loop header
LB: loop body
LE: loop exit
PB: predicated region body
PF: predicated region fallthrough
CT: control target
= control target key end

     0   :  { %8 = vsyncpa [#allocation3], 0  ;;  %s10423_s0 = inlined_call_operand.vmem [shape: bf16[16,800], index: 0, kind: input, shape index: {}]   ;;  %s10424_s1 = inlined_call_operand.hbm [shape: s8[2,800,3584], index: 1, kind: input, shape index: {}]   ;;  %s10425_s2 = inlined_call_operand.vmem [shape: bf16[7168,16], index: 2, kind: input, shape index: {}]   ;;  %s10426_s3 = inlined_call_operand.vmem [shape: f32[16,16], index: 3, kind: output, shape index: {}]  }
   0x1   :  { %10 = vsyncpa [#allocation3 + $0x1], 0  ;;  %s8357_s12 = smov 0   ;;  %s8359_s13 = smov 0  }
   0x2   :  { %s8361_s14 = smov 0   ;;  %s8363_s15 = smov 0  }
   0x3 LB: > { %s8376_s16 = sadd.s32 4294967295, %s8330_s15   ;;  %s8379_s17 = sadd.s32 1, %s8330_s15   ;;  %s8330_s15 = sphi %s8363_s15, %s10571_s15   ;;  %s8326_s14 = sphi %s8361_s14, %s10570_s14   ;;  %s8322_s13 = sphi %s8359_s13, %s10569_s13   ;;  %s8318_s12 = sphi %s8357_s12, %s10568_s12  }
   0x4   : > { %s41_s18 = ssub.s32 %s8330_s15, %s8379_s17  ;;  %s44_s19 = sadd.s32 1, %s8326_s14 }
   0x5   : > { %p42_p0 = scmp.eq.s32.totalorder %s41_s18, 0  ;;  %p51_p1 = scmp.ne.s32.totalorder %s8326_s14, %s8322_s13 }
   0x6   : > { %p52_p2 = scmp.eq.s32.totalorder %s8330_s15, 0  ;;  %p57_p3 = scmp.ne.s32.totalorder %s8322_s13, %s8318_s12 }
   0x7   : > { %s8389_s20 = scalar_select %p42_p0, %s8326_s14, %s44_s19  }
   0x8   : > { %p53_p4 = por %p52_p2, %p51_p1  ;;  %p58_p5 = scmp.eq.s32.totalorder %s8376_s16, 0 }
   0x9   : > { %p7952_p6 = scmp.lt.s32.totalorder %s8330_s15, 2  ;;  %s131_s22 = sand.u32 1, %s8326_s14  }
   0xa   : > { %p8393_p7 = por %p58_p5, %p57_p3  ;;  %s7943_s23 = smul.u32 5600, %s131_s22 }
   0xb   : > { %s7944_s24 = smul.u32 89600, %s8330_s15  ;;  %p8399_p8 = pnand %p7952_p6, %p53_p4 }
   0xc   : > { %s10429_s21 = scalar_select %p8393_p7, 1, 0 }
   0xd   : > { %s8406_s28 = scalar_lea.hbm %s10424_s1, %s7944_s24  ;;  %s135_s29 = scalar_lea.vmem [#allocation2], %s7943_s23 }
   0xe   : > { %s142_s30 = sshll.u32 %s135_s29, 4  ;;  %s8411_s4 = scalar_lea.sflag [#allocation3], %s131_s22  ;;  %s8408_s30 = int_to_ptr.vmem [resolvable:$true] %s142_s30 }
   0xf   : > { %s8268_s5 = scalar_lea.hbm %s8406_s28, 89600  ;;  %p8270_p11 = pneg %p8399_p8 }
  0x10   : > { %p8269_p10 = scmp.ne.s32.totalorder %s8406_s28, %s8268_s5  ;;  %s8273_s8 = scalar_lea.hbm %s10424_s1, 179200 }
  0x11   : > { %p8274_p0 = scmp.lt.s32.totalorder %s8406_s28, %s10424_s1  ;;  %p8275_p1 = scmp.lt.s32.totalorder %s8273_s8, %s8268_s5 }
  0x12   : > { %p8271_p12 = pnand %p8270_p11, %p8269_p10 }
  0x13   : > { %p8276_p2 = por %p8275_p1, %p8274_p0 }
  0x14   : > { %p8272_p13 = pneg %p8271_p12 }
  0x16   : > { %p8277_p3 = pnand %p8276_p2, %p8272_p13 }
  0x18   : > { %8280 = shalt.err (!%p8277_p3)
}
  0x19   : > { %s8281_s11 = scalar_lea.vmem %s8408_s30, 89600  ;;  %s8332_s12 = smov [#allocation2]  }
  0x1a   : > { %p8282_p4 = scmp.ne.s32.totalorder %s8408_s30, %s8281_s11  ;;  %s8286_s18 = sshll.u32 %s8332_s12, 4  ;;  %s8287_s18 = int_to_ptr.vmem [resolvable:$false] %s8286_s18 }
  0x1b   : > { %s8288_s19 = scalar_lea.vmem %s8287_s18, 179200  ;;  %p8289_p10 = scmp.lt.s32.totalorder %s8408_s30, %s8287_s18 }
  0x1c   : > { %p8284_p5 = pnand %p8282_p4, %p8270_p11  ;;  %p8290_p12 = scmp.lt.s32.totalorder %s8288_s19, %s8281_s11 }
  0x1e   : > { %p8285_p6 = pneg %p8284_p5  ;;  %p8291_p9 = por %p8290_p12, %p8289_p10 }
  0x20   : > { %p8292_p7 = pnand %p8291_p9, %p8285_p6 }
  0x22   : > { %8295 = shalt.err (!%p8292_p7)
}
  0x23   : > { %s8333_s22 = smov 3584   ;;  %s8334_s23 = smov 224  }
  0x24   : > { %7951 = dma.hbm_to_vmem [thread:$0]  (!%p8399_p8), %s8406_s28, 89600, %s8408_s30, %s8411_s4, %s8333_s22, %s8333_s22, %s8334_s23  }
  0x25   : > { %p159_p11 = scmp.lt.s32.totalorder %s8330_s15, 3  ;;  %p10431_p13 = scmp.ge.s32.totalorder %s8330_s15, 1 }
  0x27   : > { %p160_p0 = pnand %p10431_p13, %p159_p11 }
  0x29   : > { %163 = sbr.rel (%p160_p0) target bundleno = 1895 (0x767), region = 32 }
  0x2e   : > { %s165_s24 = sand.u32 1, %s8322_s13   ;;  %p10432_p7 = scmp.ne.s32.totalorder %s10429_s21, 0 }
  0x2f   : > { %s7945_s26 = smul.u32 5600, %s165_s24  ;;  %s166_s27 = scalar_lea.sflag [#allocation3], %s165_s24 }
  0x31   : > { %s8436_s29 = scalar_lea.vmem [#allocation2], %s7945_s26 }
  0x32   : > { %8313 = dma.done.wait (%p10432_p7), %s166_s27, 89600  }
  0x33   : > { %8315 = vsyncadd (%p10432_p7), %s166_s27, 4294877696  ;;  %s192_s5 = smul.u32 448, %s8376_s16  ;;  %p7387_p8 = scmp.ne.s32.totalorder %s8376_s16, 0 }
  0x35   : > { %p193_p9 = scmp.lt.s32.totalorder %s192_s5, 895  ;;  %202 = sbr.rel (%p7387_p8) target bundleno = 60 (0x3c), region = 40 }
  0x37   : > { %s10573_s5 = smov (!%p193_p9, %s192_s5), 895 }
  0x38   : > { %s7386_s25 = sshll.u32 %s10573_s5, 2 }
  0x39   : > { %s8446_s30 = scalar_lea.vmem %s10425_s2, %s7386_s25 }
  0x3a   : > { %vm203_vm0 = vcmask 130048   ;;  %v8335_v0 = vmov 0.0  }
  0x3b   : > { %204 = vst.msk [vmem:[%s10426_s3] sm:$0xff] %vm203_vm0, %v8335_v0  ;;  %205 = vst.msk [vmem:[%s10426_s3 + $0x8] sm:$0xff] %vm203_vm0, %v8335_v0 }
  0x3c PF: > { %v291_v1 = vld [vmem:[%s8436_s29 + $0x2a8] sm:$0xff]  ;;  %v290_v3 = vld [vmem:[%s8436_s29 + $0x2a0] sm:$0xff]  ;;  %vm2349_vm1 = vcmask 261120  }
  0x3d   : > { %v515_v2 = vld [vmem:[%s8436_s29 + $0x9a8] sm:$0xff]  ;;  %v1075_v4 = vunpack.c.l.s8.bf16 %v291_v1  ;;  %v1103_v5 = vunpack.c.h.s8.bf16 %v291_v1  ;;  %v514_v8 = vld [vmem:[%s8436_s29 + $0x9a0] sm:$0xff]  ;;  %v1102_v9 = vunpack.c.h.s8.bf16 %v290_v3  ;;  %v1074_v13 = vunpack.c.l.s8.bf16 %v290_v3 }
  0x3e   : > { %v1523_v6 = vunpack.c.l.s8.bf16 %v515_v2  ;;  %v1551_v7 = vunpack.c.h.s8.bf16 %v515_v2  ;;  %v1550_v10 = vunpack.c.h.s8.bf16 %v514_v8  ;;  %v263_v11 = vld [vmem:[%s8436_s29 + $0x1c8] sm:$0xff]  ;;  %v1522_v14 = vunpack.c.l.s8.bf16 %v514_v8  ;;  %v262_v17 = vld [vmem:[%s8436_s29 + $0x1c0] sm:$0xff] }
  0x3f   : > { %v487_v12 = vld [vmem:[%s8436_s29 + $0x8c8] sm:$0xff]  ;;  %2353 = vmatprep.subr.bf16.mxu0 %v1103_v5  ;;  %v1047_v15 = vunpack.c.h.s8.bf16 %v263_v11  ;;  %v486_v18 = vld [vmem:[%s8436_s29 + $0x8c0] sm:$0xff]  ;;  %v1046_v19 = vunpack.c.h.s8.bf16 %v262_v17  ;;  %v1019_v21 = vunpack.c.l.s8.bf16 %v263_v11  ;;  %v1018_v26 = vunpack.c.l.s8.bf16 %v262_v17 }
  0x40   : > { %2396 = vmatprep.subr.bf16.mxu1 %v1551_v7  ;;  %2354 = vmatpush1.bf16.msra.mxu0 %v1102_v9  ;;  %v1495_v16 = vunpack.c.h.s8.bf16 %v487_v12  ;;  %v1494_v20 = vunpack.c.h.s8.bf16 %v486_v18  ;;  %v1467_v22 = vunpack.c.l.s8.bf16 %v487_v12  ;;  %v235_v23 = vld [vmem:[%s8436_s29 + $0xe8] sm:$0xff]  ;;  %v8468_v25 = vld [vmem:[%s10423_s0 + $0x4] ss:$28 sps:$4 sm:$0xff]   ;;  %v1466_v27 = vunpack.c.l.s8.bf16 %v486_v18 }
  0x41   : > { %2397 = vmatpush1.bf16.msra.mxu1 %v1550_v10  ;;  %2355 = vmatprep.subr.bf16.mxu0 %v1075_v4  ;;  %v459_v24 = vld [vmem:[%s8436_s29 + $0x7e8] sm:$0xff]  ;;  %v991_v29 = vunpack.c.h.s8.bf16 %v235_v23  ;;  %v234_v31 = vld [vmem:[%s8436_s29 + $0xe0] sm:$0xff]  ;;  %v963_v35 = vunpack.c.l.s8.bf16 %v235_v23 }
  0x42   : > { %2398 = vmatprep.subr.bf16.mxu1 %v1523_v6  ;;  %v7991_v28 = vld [vmem:[%s10423_s0 + $0xc] ss:$28 sps:$4 sm:$0xff]   ;;  %v1439_v30 = vunpack.c.h.s8.bf16 %v459_v24  ;;  %v458_v32 = vld [vmem:[%s8436_s29 + $0x7e0] sm:$0xff]  ;;  %2385 = vmatprep.mubr.bf16.mxu0 %v8468_v25  ;;  %v990_v33 = vunpack.c.h.s8.bf16 %v234_v31  ;;  %v1411_v36 = vunpack.c.l.s8.bf16 %v459_v24  ;;  %v962_v39 = vunpack.c.l.s8.bf16 %v234_v31 }
  0x43   : > { %2428 = vmatprep.mubr.bf16.mxu1 %v7991_v28  ;;  %v1438_v34 = vunpack.c.h.s8.bf16 %v458_v32  ;;  %v207_v37 = vld [vmem:[%s8436_s29 + $0x8] sm:$0xff]  ;;  %v1410_v40 = vunpack.c.l.s8.bf16 %v458_v32  ;;  %v206_v43 = vld [vmem:[%s8436_s29] sm:$0xff] }
  0x44   : > { %2356 = vmatpush1.bf16.msra.mxu0 %v1074_v13  ;;  %v431_v38 = vld [vmem:[%s8436_s29 + $0x708] sm:$0xff]  ;;  %v935_v41 = vunpack.c.h.s8.bf16 %v207_v37  ;;  %v430_v44 = vld [vmem:[%s8436_s29 + $0x700] sm:$0xff]  ;;  %v934_v45 = vunpack.c.h.s8.bf16 %v206_v43  ;;  %v907_v47 = vunpack.c.l.s8.bf16 %v207_v37  ;;  %v906_v51 = vunpack.c.l.s8.bf16 %v206_v43 }
  0x45   : > { %2399 = vmatpush1.bf16.msra.mxu1 %v1522_v14  ;;  %2357 = vmatprep.subr.bf16.mxu0 %v1047_v15  ;;  %v1383_v42 = vunpack.c.h.s8.bf16 %v431_v38  ;;  %v1382_v46 = vunpack.c.h.s8.bf16 %v430_v44  ;;  %v1355_v48 = vunpack.c.l.s8.bf16 %v431_v38  ;;  %v403_v49 = vld [vmem:[%s8436_s29 + $0x628] sm:$0xff]  ;;  %v1354_v52 = vunpack.c.l.s8.bf16 %v430_v44  ;;  %v402_v55 = vld [vmem:[%s8436_s29 + $0x620] sm:$0xff] }
  0x46   : > { %2400 = vmatprep.subr.bf16.mxu1 %v1495_v16  ;;  %v627_v50 = vld [vmem:[%s8436_s29 + $0xd28] sm:$0xff]  ;;  %v1327_v53 = vunpack.c.h.s8.bf16 %v403_v49  ;;  %v626_v56 = vld [vmem:[%s8436_s29 + $0xd20] sm:$0xff]  ;;  %v1326_v57 = vunpack.c.h.s8.bf16 %v402_v55  ;;  %v1299_v59 = vunpack.c.l.s8.bf16 %v403_v49  ;;  %v1298_v1 = vunpack.c.l.s8.bf16 %v402_v55  ;;  %v293_v49 = vld [vmem:[%s8436_s29 + $0x2b8] sm:$0xff] }
  0x47   : > { %v1775_v54 = vunpack.c.h.s8.bf16 %v627_v50  ;;  %v1774_v58 = vunpack.c.h.s8.bf16 %v626_v56  ;;  %v1747_v60 = vunpack.c.l.s8.bf16 %v627_v50  ;;  %v375_v61 = vld [vmem:[%s8436_s29 + $0x548] sm:$0xff]  ;;  %v374_v63 = vld [vmem:[%s8436_s29 + $0x540] sm:$0xff]  ;;  %v1746_v2 = vunpack.c.l.s8.bf16 %v626_v56  ;;  %v8513_v50 = vld [vmem:[%s10423_s0 + $0x14] ss:$28 sps:$4 sm:$0xff]  }
  0x48   : > { %2358 = vmatpush1.bf16.msra.mxu0 %v1046_v19  ;;  %v599_v62 = vld [vmem:[%s8436_s29 + $0xc48] sm:$0xff]  ;;  %v598_v0 = vld [vmem:[%s8436_s29 + $0xc40] sm:$0xff]  ;;  %v1271_v3 = vunpack.c.h.s8.bf16 %v375_v61  ;;  %v1270_v5 = vunpack.c.h.s8.bf16 %v374_v63  ;;  %v1243_v7 = vunpack.c.l.s8.bf16 %v375_v61  ;;  %v1242_v13 = vunpack.c.l.s8.bf16 %v374_v63  ;;  %v7995_v56 = vld [vmem:[%s10423_s0 + $0x18] ss:$28 sps:$4 sm:$0xff]  }
  0x49   : > { %2401 = vmatpush1.bf16.msra.mxu1 %v1494_v20  ;;  %2359 = vmatprep.subr.bf16.mxu0 %v1019_v21  ;;  %v1719_v4 = vunpack.c.h.s8.bf16 %v599_v62  ;;  %v1718_v6 = vunpack.c.h.s8.bf16 %v598_v0  ;;  %v1691_v8 = vunpack.c.l.s8.bf16 %v599_v62  ;;  %v347_v9 = vld [vmem:[%s8436_s29 + $0x468] sm:$0xff]  ;;  %v346_v11 = vld [vmem:[%s8436_s29 + $0x460] sm:$0xff]  ;;  %v1690_v14 = vunpack.c.l.s8.bf16 %v598_v0  ;;  %v265_v0 = vld [vmem:[%s8436_s29 + $0x1d8] sm:$0xff] }
  0x4a   : > { %2402 = vmatprep.subr.bf16.mxu1 %v1467_v22  ;;  %v571_v10 = vld [vmem:[%s8436_s29 + $0xb68] sm:$0xff]  ;;  %v570_v12 = vld [vmem:[%s8436_s29 + $0xb60] sm:$0xff]  ;;  %v1215_v15 = vunpack.c.h.s8.bf16 %v347_v9  ;;  %v1214_v17 = vunpack.c.h.s8.bf16 %v346_v11  ;;  %v1187_v19 = vunpack.c.l.s8.bf16 %v347_v9  ;;  %v1077_v62 = vunpack.c.l.s8.bf16 %v293_v49 }
  0x4b   : > { %v1663_v16 = vunpack.c.h.s8.bf16 %v571_v10  ;;  %v1662_v18 = vunpack.c.h.s8.bf16 %v570_v12  ;;  %v1635_v20 = vunpack.c.l.s8.bf16 %v571_v10  ;;  %v319_v21 = vld [vmem:[%s8436_s29 + $0x388] sm:$0xff]  ;;  %v318_v23 = vld [vmem:[%s8436_s29 + $0x380] sm:$0xff]  ;;  %v1021_v10 = vunpack.c.l.s8.bf16 %v265_v0 }
  0x4c   : > { %2360 = vmatpush1.bf16.msra.mxu0 %v1018_v26  ;;  %v543_v22 = vld [vmem:[%s8436_s29 + $0xa88] sm:$0xff]  ;;  %v542_v24 = vld [vmem:[%s8436_s29 + $0xa80] sm:$0xff]  ;;  %v1186_v26 = vunpack.c.l.s8.bf16 %v346_v11  ;;  %v1159_v28 = vunpack.c.h.s8.bf16 %v319_v21  ;;  %v1131_v32 = vunpack.c.l.s8.bf16 %v319_v21  ;;  %v1130_v38 = vunpack.c.l.s8.bf16 %v318_v23 }
  0x4d   : > { %2403 = vmatpush1.bf16.msra.mxu1 %v1466_v27  ;;  %2361 = vmatprep.subr.bf16.mxu0 %v991_v29  ;;  %v1634_v27 = vunpack.c.l.s8.bf16 %v570_v12  ;;  %v1607_v29 = vunpack.c.h.s8.bf16 %v543_v22  ;;  %v1606_v31 = vunpack.c.h.s8.bf16 %v542_v24  ;;  %v878_v37 = vld [vmem:[%s8436_s29 + $0x1500] sm:$0xff]  ;;  %v683_v63 = vld [vmem:[%s8436_s29 + $0xee8] sm:$0xff]  ;;  %v237_v12 = vld [vmem:[%s8436_s29 + $0xf8] sm:$0xff] }
  0x4e   : > { %2404 = vmatprep.subr.bf16.mxu1 %v1439_v30  ;;  %v1158_v30 = vunpack.c.h.s8.bf16 %v318_v23  ;;  %v1859_v9 = vunpack.c.l.s8.bf16 %v683_v63  ;;  %v655_v11 = vld [vmem:[%s8436_s29 + $0xe08] sm:$0xff]  ;;  %v965_v21 = vunpack.c.l.s8.bf16 %v237_v12  ;;  %v209_v23 = vld [vmem:[%s8436_s29 + $0x18] sm:$0xff] }
  0x50   : > { %2362 = vmatpush1.bf16.msra.mxu0 %v990_v33  ;;  %v1579_v33 = vunpack.c.l.s8.bf16 %v543_v22  ;;  %v851_v22 = vld [vmem:[%s8436_s29 + $0x1428] sm:$0xff] }
  0x51   : > { %2405 = vmatpush1.bf16.msra.mxu1 %v1438_v34  ;;  %2363 = vmatprep.subr.bf16.mxu0 %v963_v35  ;;  %v739_v34 = vld [vmem:[%s8436_s29 + $0x10a8] sm:$0xff] }
  0x52   : > { %2406 = vmatprep.subr.bf16.mxu1 %v1411_v36  ;;  %v879_v35 = vld [vmem:[%s8436_s29 + $0x1508] sm:$0xff]  ;;  %v738_v36 = vld [vmem:[%s8436_s29 + $0x10a0] sm:$0xff] }
  0x53   : > { %v2279_v43 = vunpack.c.h.s8.bf16 %v879_v35  ;;  %v1998_v44 = vunpack.c.h.s8.bf16 %v738_v36 }
  0x54   : > { %2364 = vmatpush1.bf16.msra.mxu0 %v962_v39  ;;  %v1578_v39 = vunpack.c.l.s8.bf16 %v542_v24  ;;  %v850_v24 = vld [vmem:[%s8436_s29 + $0x1420] sm:$0xff] }
  0x55   : > { %2407 = vmatpush1.bf16.msra.mxu1 %v1410_v40  ;;  %2365 = vmatprep.subr.bf16.mxu0 %v935_v41  ;;  %v8503_v40 = vld [vmem:[%s10423_s0] ss:$28 sps:$4 sm:$0xff]   ;;  %v7994_v41 = vld [vmem:[%s10423_s0 + $0x8] ss:$28 sps:$4 sm:$0xff]  }
  0x56   : > { %2408 = vmatprep.subr.bf16.mxu1 %v1383_v42  ;;  %v1999_v42 = vunpack.c.h.s8.bf16 %v739_v34 }
  0x58   : > { %2366 = vmatpush1.bf16.msra.mxu0 %v934_v45  ;;  %v2278_v45 = vunpack.c.h.s8.bf16 %v878_v37 }
  0x59   : > { %2409 = vmatpush1.bf16.msra.mxu1 %v1382_v46  ;;  %2367 = vmatprep.subr.bf16.mxu0 %v907_v47  ;;  %v711_v46 = vld [vmem:[%s8436_s29 + $0xfc8] sm:$0xff]  ;;  %v1971_v47 = vunpack.c.l.s8.bf16 %v739_v34  ;;  %v909_v34 = vunpack.c.l.s8.bf16 %v209_v23 }
  0x5a   : > { %2410 = vmatprep.subr.bf16.mxu1 %v1355_v48  ;;  %v2251_v48 = vunpack.c.l.s8.bf16 %v879_v35  ;;  %v1943_v55 = vunpack.c.h.s8.bf16 %v711_v46  ;;  %v1915_v61 = vunpack.c.l.s8.bf16 %v711_v46  ;;  %v823_v35 = vld [vmem:[%s8436_s29 + $0x1348] sm:$0xff] }
  0x5b   : > { %v2139_v46 = vunpack.c.l.s8.bf16 %v823_v35 }
  0x5c   : > { %2368 = vmatpush1.bf16.msra.mxu0 %v906_v51  ;;  %v710_v51 = vld [vmem:[%s8436_s29 + $0xfc0] sm:$0xff] }
  0x5d   : > { %2411 = vmatpush1.bf16.msra.mxu1 %v1354_v52  ;;  %2369 = vmatprep.subr.bf16.mxu0 %v1327_v53  ;;  %v292_v52 = vld [vmem:[%s8436_s29 + $0x2b0] sm:$0xff]  ;;  %v1970_v53 = vunpack.c.l.s8.bf16 %v738_v36  ;;  %v405_v36 = vld [vmem:[%s8436_s29 + $0x638] sm:$0xff] }
  0x5e   : > { %2412 = vmatprep.subr.bf16.mxu1 %v1775_v54  ;;  %v2250_v54 = vunpack.c.l.s8.bf16 %v878_v37  ;;  %v822_v37 = vld [vmem:[%s8436_s29 + $0x1340] sm:$0xff] }
  0x60   : > { %2370 = vmatpush2.bf16.msra.mxu0 %v1326_v57  ;;  %v1105_v57 = vunpack.c.h.s8.bf16 %v293_v49  ;;  %v377_v49 = vld [vmem:[%s8436_s29 + $0x558] sm:$0xff] }
  0x61   : > { %2413 = vmatpush2.bf16.msra.mxu1 %v1774_v58  ;;  %2371 = vmatprep.subr.bf16.mxu0 %v1299_v59  ;;  %v10428_v58 = vmov 0   ;;  %v1942_v59 = vunpack.c.h.s8.bf16 %v710_v51 }
  0x62   : > { %2414 = vmatprep.subr.bf16.mxu1 %v1747_v60  ;;  %v1104_v60 = vunpack.c.h.s8.bf16 %v292_v52 }
  0x64   : > { %2372 = vmatpush2.bf16.msra.mxu0 %v1298_v1  ;;  %v682_v1 = vld [vmem:[%s8436_s29 + $0xee0] sm:$0xff] }
  0x65   : > { %2415 = vmatpush2.bf16.msra.mxu1 %v1746_v2  ;;  %2373 = vmatprep.subr.bf16.mxu0 %v1271_v3  ;;  %v264_v2 = vld [vmem:[%s8436_s29 + $0x1d0] sm:$0xff]  ;;  %v1914_v3 = vunpack.c.l.s8.bf16 %v710_v51  ;;  %v794_v51 = vld [vmem:[%s8436_s29 + $0x1260] sm:$0xff] }
  0x66   : > { %2416 = vmatprep.subr.bf16.mxu1 %v1719_v4  ;;  %v1076_v4 = vunpack.c.l.s8.bf16 %v292_v52  ;;  %v376_v52 = vld [vmem:[%s8436_s29 + $0x550] sm:$0xff] }
  0x68   : > { %2374 = vmatpush2.bf16.msra.mxu0 %v1270_v5  ;;  %v1887_v5 = vunpack.c.h.s8.bf16 %v683_v63  ;;  %v349_v63 = vld [vmem:[%s8436_s29 + $0x478] sm:$0xff] }
  0x69   : > { %2417 = vmatpush2.bf16.msra.mxu1 %v1718_v6  ;;  %2375 = vmatprep.subr.bf16.mxu0 %v1243_v7  ;;  %v1049_v6 = vunpack.c.h.s8.bf16 %v265_v0  ;;  %v1886_v7 = vunpack.c.h.s8.bf16 %v682_v1  ;;  %v766_v0 = vld [vmem:[%s8436_s29 + $0x1180] sm:$0xff] }
  0x6a   : > { %2418 = vmatprep.subr.bf16.mxu1 %v1691_v8  ;;  %v1048_v8 = vunpack.c.h.s8.bf16 %v264_v2 }
  0x6c   : > { %2376 = vmatpush2.bf16.msra.mxu0 %v1242_v13  ;;  %v654_v13 = vld [vmem:[%s8436_s29 + $0xe00] sm:$0xff] }
  0x6d   : > { %2419 = vmatpush2.bf16.msra.mxu1 %v1690_v14  ;;  %2377 = vmatprep.subr.bf16.mxu0 %v1215_v15  ;;  %v236_v14 = vld [vmem:[%s8436_s29 + $0xf0] sm:$0xff]  ;;  %v1858_v15 = vunpack.c.l.s8.bf16 %v682_v1 }
  0x6e   : > { %2420 = vmatprep.subr.bf16.mxu1 %v1663_v16  ;;  %v1020_v16 = vunpack.c.l.s8.bf16 %v264_v2  ;;  %v348_v1 = vld [vmem:[%s8436_s29 + $0x470] sm:$0xff]  ;;  %v2082_v2 = vunpack.c.l.s8.bf16 %v794_v51 }
  0x70   : > { %2378 = vmatpush2.bf16.msra.mxu0 %v1214_v17  ;;  %v993_v17 = vunpack.c.h.s8.bf16 %v237_v12  ;;  %v320_v12 = vld [vmem:[%s8436_s29 + $0x390] sm:$0xff] }
  0x71   : > { %2421 = vmatpush2.bf16.msra.mxu1 %v1662_v18  ;;  %2379 = vmatprep.subr.bf16.mxu0 %v1187_v19  ;;  %v1830_v18 = vunpack.c.h.s8.bf16 %v654_v13  ;;  %v992_v19 = vunpack.c.h.s8.bf16 %v236_v14 }
  0x72   : > { %2422 = vmatprep.subr.bf16.mxu1 %v1635_v20  ;;  %v1803_v20 = vunpack.c.l.s8.bf16 %v655_v11 }
  0x74   : > { %2380 = vmatpush2.bf16.msra.mxu0 %v1186_v26  ;;  %v208_v26 = vld [vmem:[%s8436_s29 + $0x10] sm:$0xff] }
  0x75   : > { %2423 = vmatpush2.bf16.msra.mxu1 %v1634_v27  ;;  %2381 = vmatprep.subr.bf16.mxu0 %v1159_v28  ;;  %v1802_v27 = vunpack.c.l.s8.bf16 %v654_v13  ;;  %v964_v28 = vunpack.c.l.s8.bf16 %v236_v14  ;;  %v516_v13 = vld [vmem:[%s8436_s29 + $0x9b0] sm:$0xff]  ;;  %v2026_v14 = vunpack.c.l.s8.bf16 %v766_v0 }
  0x76   : > { %2424 = vmatprep.subr.bf16.mxu1 %v1607_v29  ;;  %v2223_v29 = vunpack.c.h.s8.bf16 %v851_v22 }
  0x78   : > { %2382 = vmatpush2.bf16.msra.mxu0 %v1158_v30  ;;  %v937_v30 = vunpack.c.h.s8.bf16 %v209_v23  ;;  %v741_v23 = vld [vmem:[%s8436_s29 + $0x10b8] sm:$0xff] }
  0x79   : > { %2425 = vmatpush2.bf16.msra.mxu1 %v1606_v31  ;;  %2383 = vmatprep.subr.bf16.mxu0 %v1131_v32  ;;  %v2222_v31 = vunpack.c.h.s8.bf16 %v850_v24  ;;  %v936_v32 = vunpack.c.h.s8.bf16 %v208_v26 }
  0x7a   : > { %2426 = vmatprep.subr.bf16.mxu1 %v1579_v33  ;;  %v2195_v33 = vunpack.c.l.s8.bf16 %v851_v22  ;;  %v489_v22 = vld [vmem:[%s8436_s29 + $0x8d8] sm:$0xff] }
  0x7c   : > { %2384 = vmatpush2.bf16.msra.mxu0 %v1130_v38  ;;  %v404_v38 = vld [vmem:[%s8436_s29 + $0x630] sm:$0xff] }
  0x7d   : > { %2427 = vmatpush2.bf16.msra.mxu1 %v1578_v39  ;;  %2439 = vmatprep.subr.bf16.mxu0 %v1999_v42  ;;  %v2194_v39 = vunpack.c.l.s8.bf16 %v850_v24  ;;  %v2167_v42 = vunpack.c.h.s8.bf16 %v823_v35  ;;  %v488_v24 = vld [vmem:[%s8436_s29 + $0x8d0] sm:$0xff]  ;;  %v1973_v35 = vunpack.c.l.s8.bf16 %v741_v23 }
  0x7e   : > { %2494 = vmatprep.subr.bf16.mxu1 %v2279_v43  ;;  %v1329_v43 = vunpack.c.h.s8.bf16 %v405_v36 }
  0x7f   : > { %2386 = vmatmul.mubr.bf16.vlgmr.msra.gmra.mxu0 %v8503_v40 }
  0x80   : > { %2429 = vmatmul.mubr.bf16.vlgmr.msra.gmra.mxu1 %v7994_v41  ;;  %2440 = vmatpush1.bf16.msra.mxu0 %v1998_v44  ;;  %v908_v41 = vunpack.c.l.s8.bf16 %v208_v26  ;;  %v2166_v44 = vunpack.c.h.s8.bf16 %v822_v37  ;;  %v740_v26 = vld [vmem:[%s8436_s29 + $0x10b0] sm:$0xff] }
  0x81   : > { %2495 = vmatpush1.bf16.msra.mxu1 %v2278_v45  ;;  %2441 = vmatprep.subr.bf16.mxu0 %v1971_v47  ;;  %v1328_v45 = vunpack.c.h.s8.bf16 %v404_v38  ;;  %v1301_v47 = vunpack.c.l.s8.bf16 %v405_v36  ;;  %v461_v36 = vld [vmem:[%s8436_s29 + $0x7f8] sm:$0xff] }
  0x82   : > { %2496 = vmatprep.subr.bf16.mxu1 %v2251_v48  ;;  %2514 = vmatprep.mubr.bf16.mxu1 %v10428_v58  ;;  %v795_v48 = vld [vmem:[%s8436_s29 + $0x1268] sm:$0xff] }
  0x83   : > { %2471 = vmatprep.mubr.bf16.mxu0 %v8513_v50 }
  0x84   : > { %2442 = vmatpush1.bf16.msra.mxu0 %v1970_v53  ;;  %v2138_v53 = vunpack.c.l.s8.bf16 %v822_v37  ;;  %v713_v37 = vld [vmem:[%s8436_s29 + $0xfd8] sm:$0xff] }
  0x85   : > { %2497 = vmatpush1.bf16.msra.mxu1 %v2250_v54  ;;  %2443 = vmatprep.subr.bf16.mxu0 %v1943_v55  ;;  %v1300_v54 = vunpack.c.l.s8.bf16 %v404_v38  ;;  %v2111_v55 = vunpack.c.h.s8.bf16 %v795_v48  ;;  %v460_v38 = vld [vmem:[%s8436_s29 + $0x7f0] sm:$0xff] }
  0x86   : > { %2525 = vmatprep.subr.bf16.mxu1 %v1105_v57  ;;  %v2110_v57 = vunpack.c.h.s8.bf16 %v794_v51  ;;  %v432_v51 = vld [vmem:[%s8436_s29 + $0x710] sm:$0xff] }
  0x88   : > { %7395 = vmatmul.mubr.msk.bf16.vlgmr.msra.gmra.mxu1 %vm2349_vm1, %v7995_v56  ;;  %2444 = vmatpush1.bf16.msra.mxu0 %v1942_v59  ;;  %v1273_v56 = vunpack.c.h.s8.bf16 %v377_v49  ;;  %v1272_v59 = vunpack.c.h.s8.bf16 %v376_v52 }
  0x89   : > { %2526 = vmatpush1.bf16.msra.mxu1 %v1104_v60  ;;  %2445 = vmatprep.subr.bf16.mxu0 %v1915_v61  ;;  %v2083_v60 = vunpack.c.l.s8.bf16 %v795_v48  ;;  %v1245_v61 = vunpack.c.l.s8.bf16 %v377_v49  ;;  %v433_v48 = vld [vmem:[%s8436_s29 + $0x718] sm:$0xff] }
  0x8a   : > { %2527 = vmatprep.subr.bf16.mxu1 %v1077_v62  ;;  %2557 = vmatprep.mubr.bf16.mxu1 %v8468_v25  ;;  %v1831_v25 = vunpack.c.h.s8.bf16 %v655_v11  ;;  %v767_v62 = vld [vmem:[%s8436_s29 + $0x1188] sm:$0xff]  ;;  %v517_v11 = vld [vmem:[%s8436_s29 + $0x9b8] sm:$0xff] }
  0x8b   : > { %v685_v49 = vld [vmem:[%s8436_s29 + $0xef8] sm:$0xff] }
  0x8c   : > { %2446 = vmatpush1.bf16.msra.mxu0 %v1914_v3  ;;  %v1244_v3 = vunpack.c.l.s8.bf16 %v376_v52  ;;  %v684_v52 = vld [vmem:[%s8436_s29 + $0xef0] sm:$0xff] }
  0x8d   : > { %2528 = vmatpush1.bf16.msra.mxu1 %v1076_v4  ;;  %2447 = vmatprep.subr.bf16.mxu0 %v1887_v5  ;;  %v2055_v4 = vunpack.c.h.s8.bf16 %v767_v62  ;;  %v1217_v5 = vunpack.c.h.s8.bf16 %v349_v63 }
  0x8e   : > { %2529 = vmatprep.subr.bf16.mxu1 %v1049_v6  ;;  %v2054_v6 = vunpack.c.h.s8.bf16 %v766_v0  ;;  %v656_v0 = vld [vmem:[%s8436_s29 + $0xe10] sm:$0xff] }
  0x90   : > { %2448 = vmatpush1.bf16.msra.mxu0 %v1886_v7  ;;  %v1216_v7 = vunpack.c.h.s8.bf16 %v348_v1 }
  0x91   : > { %2530 = vmatpush1.bf16.msra.mxu1 %v1048_v8  ;;  %2449 = vmatprep.subr.bf16.mxu0 %v1859_v9  ;;  %v2027_v8 = vunpack.c.l.s8.bf16 %v767_v62  ;;  %v1189_v9 = vunpack.c.l.s8.bf16 %v349_v63  ;;  %v657_v62 = vld [vmem:[%s8436_s29 + $0xe18] sm:$0xff]  ;;  %v628_v63 = vld [vmem:[%s8436_s29 + $0xd30] sm:$0xff] }
  0x92   : > { %2531 = vmatprep.subr.bf16.mxu1 %v1021_v10  ;;  %v321_v10 = vld [vmem:[%s8436_s29 + $0x398] sm:$0xff] }
  0x94   : > { %2450 = vmatpush1.bf16.msra.mxu0 %v1858_v15  ;;  %v1188_v15 = vunpack.c.l.s8.bf16 %v348_v1  ;;  %v1356_v1 = vunpack.c.l.s8.bf16 %v432_v51 }
  0x95   : > { %2532 = vmatpush1.bf16.msra.mxu1 %v1020_v16  ;;  %2451 = vmatprep.subr.bf16.mxu0 %v1831_v25  ;;  %v8556_v16 = vld [vmem:[%s10423_s0 + $0x10] ss:$28 sps:$4 sm:$0xff]   ;;  %v1161_v25 = vunpack.c.h.s8.bf16 %v321_v10 }
  0x96   : > { %2533 = vmatprep.subr.bf16.mxu1 %v993_v17  ;;  %v1553_v17 = vunpack.c.h.s8.bf16 %v517_v11 }
  0x98   : > { %2452 = vmatpush1.bf16.msra.mxu0 %v1830_v18  ;;  %v1160_v18 = vunpack.c.h.s8.bf16 %v320_v12 }
  0x99   : > { %2534 = vmatpush1.bf16.msra.mxu1 %v992_v19  ;;  %2453 = vmatprep.subr.bf16.mxu0 %v1803_v20  ;;  %v1552_v19 = vunpack.c.h.s8.bf16 %v516_v13  ;;  %v1133_v20 = vunpack.c.l.s8.bf16 %v321_v10  ;;  %v853_v10 = vld [vmem:[%s8436_s29 + $0x1438] sm:$0xff] }
  0x9a   : > { %2535 = vmatprep.subr.bf16.mxu1 %v965_v21  ;;  %v1525_v21 = vunpack.c.l.s8.bf16 %v517_v11  ;;  %v600_v11 = vld [vmem:[%s8436_s29 + $0xc50] sm:$0xff] }
  0x9c   : > { %2454 = vmatpush1.bf16.msra.mxu0 %v1802_v27  ;;  %v1132_v27 = vunpack.c.l.s8.bf16 %v320_v12  ;;  %v852_v12 = vld [vmem:[%s8436_s29 + $0x1430] sm:$0xff] }
  0x9d   : > { %2536 = vmatpush1.bf16.msra.mxu1 %v964_v28  ;;  %2455 = vmatprep.subr.bf16.mxu0 %v2223_v29  ;;  %v1524_v28 = vunpack.c.l.s8.bf16 %v516_v13  ;;  %v1497_v29 = vunpack.c.h.s8.bf16 %v489_v22  ;;  %v1748_v13 = vunpack.c.l.s8.bf16 %v628_v63 }
  0x9e   : > { %2537 = vmatprep.subr.bf16.mxu1 %v937_v30  ;;  %v2001_v30 = vunpack.c.h.s8.bf16 %v741_v23  ;;  %v572_v23 = vld [vmem:[%s8436_s29 + $0xb70] sm:$0xff] }
  0xa0   : > { %2456 = vmatpush2.bf16.msra.mxu0 %v2222_v31  ;;  %v8566_v31 = vld [vmem:[%s10423_s0 + $0xc] ss:$28 sps:$4 sm:$0xff]  }
  0xa1   : > { %2538 = vmatpush1.bf16.msra.mxu1 %v936_v32  ;;  %2457 = vmatprep.subr.bf16.mxu0 %v2195_v33  ;;  %v1496_v32 = vunpack.c.h.s8.bf16 %v488_v24  ;;  %v2000_v33 = vunpack.c.h.s8.bf16 %v740_v26 }
  0xa2   : > { %2539 = vmatprep.subr.bf16.mxu1 %v909_v34  ;;  %v1469_v34 = vunpack.c.l.s8.bf16 %v489_v22  ;;  %v825_v22 = vld [vmem:[%s8436_s29 + $0x1358] sm:$0xff] }
  0xa4   : > { %2458 = vmatpush2.bf16.msra.mxu0 %v2194_v39  ;;  %v712_v39 = vld [vmem:[%s8436_s29 + $0xfd0] sm:$0xff] }
  0xa5   : > { %2540 = vmatpush1.bf16.msra.mxu1 %v908_v41  ;;  %2459 = vmatprep.subr.bf16.mxu0 %v2167_v42  ;;  %v1468_v41 = vunpack.c.l.s8.bf16 %v488_v24  ;;  %v1972_v42 = vunpack.c.l.s8.bf16 %v740_v26  ;;  %v824_v24 = vld [vmem:[%s8436_s29 + $0x1350] sm:$0xff]  ;;  %v1692_v26 = vunpack.c.l.s8.bf16 %v600_v11 }
  0xa6   : > { %2541 = vmatprep.subr.bf16.mxu1 %v1329_v43  ;;  %v1441_v43 = vunpack.c.h.s8.bf16 %v461_v36 }
  0xa8   : > { %2460 = vmatpush2.bf16.msra.mxu0 %v2166_v44  ;;  %v1945_v44 = vunpack.c.h.s8.bf16 %v713_v37 }
  0xa9   : > { %2542 = vmatpush2.bf16.msra.mxu1 %v1328_v45  ;;  %2461 = vmatprep.subr.bf16.mxu0 %v2139_v46  ;;  %v1440_v45 = vunpack.c.h.s8.bf16 %v460_v38  ;;  %v1413_v46 = vunpack.c.l.s8.bf16 %v461_v36  ;;  %v797_v36 = vld [vmem:[%s8436_s29 + $0x1278] sm:$0xff] }
  0xaa   : > { %2543 = vmatprep.subr.bf16.mxu1 %v1301_v47  ;;  %v1917_v47 = vunpack.c.l.s8.bf16 %v713_v37  ;;  %v544_v37 = vld [vmem:[%s8436_s29 + $0xa90] sm:$0xff] }
  0xac   : > { %2462 = vmatpush2.bf16.msra.mxu0 %v2138_v53  ;;  %v1412_v53 = vunpack.c.l.s8.bf16 %v460_v38  ;;  %v796_v38 = vld [vmem:[%s8436_s29 + $0x1270] sm:$0xff] }
  0xad   : > { %2544 = vmatpush2.bf16.msra.mxu1 %v1300_v54  ;;  %2463 = vmatprep.subr.bf16.mxu0 %v2111_v55  ;;  %v1916_v54 = vunpack.c.l.s8.bf16 %v712_v39  ;;  %v1889_v55 = vunpack.c.h.s8.bf16 %v685_v49 }
  0xae   : > { %2545 = vmatprep.subr.bf16.mxu1 %v1273_v56  ;;  %v1384_v56 = vunpack.c.h.s8.bf16 %v432_v51  ;;  %v880_v51 = vld [vmem:[%s8436_s29 + $0x1510] sm:$0xff] }
  0xb0   : > { %2464 = vmatpush2.bf16.msra.mxu0 %v2110_v57  ;;  %v1888_v57 = vunpack.c.h.s8.bf16 %v684_v52 }
  0xb1   : > { %2546 = vmatpush2.bf16.msra.mxu1 %v1272_v59  ;;  %2465 = vmatprep.subr.bf16.mxu0 %v2083_v60  ;;  %v1357_v59 = vunpack.c.l.s8.bf16 %v433_v48  ;;  %v1861_v60 = vunpack.c.l.s8.bf16 %v685_v49  ;;  %v768_v49 = vld [vmem:[%s8436_s29 + $0x1190] sm:$0xff] }
  0xb2   : > { %2547 = vmatprep.subr.bf16.mxu1 %v1245_v61  ;;  %v629_v61 = vld [vmem:[%s8436_s29 + $0xd38] sm:$0xff] }
  0xb4   : > { %2466 = vmatpush2.bf16.msra.mxu0 %v2082_v2  ;;  %v1860_v2 = vunpack.c.l.s8.bf16 %v684_v52  ;;  %v1580_v52 = vunpack.c.l.s8.bf16 %v544_v37 }
  0xb5   : > { %2548 = vmatpush2.bf16.msra.mxu1 %v1244_v3  ;;  %2467 = vmatprep.subr.bf16.mxu0 %v2055_v4  ;;  %v1777_v3 = vunpack.c.h.s8.bf16 %v629_v61  ;;  %v1833_v4 = vunpack.c.h.s8.bf16 %v657_v62 }
  0xb6   : > { %2549 = vmatprep.subr.bf16.mxu1 %v1217_v5  ;;  %v1776_v5 = vunpack.c.h.s8.bf16 %v628_v63  ;;  %v294_v63 = vld [vmem:[%s8436_s29 + $0x2c0] sm:$0xff] }
  0xb8   : > { %2468 = vmatpush2.bf16.msra.mxu0 %v2054_v6  ;;  %v1832_v6 = vunpack.c.h.s8.bf16 %v656_v0 }
  0xb9   : > { %2550 = vmatpush2.bf16.msra.mxu1 %v1216_v7  ;;  %2469 = vmatprep.subr.bf16.mxu0 %v2027_v8  ;;  %v1749_v7 = vunpack.c.l.s8.bf16 %v629_v61  ;;  %v1805_v8 = vunpack.c.l.s8.bf16 %v657_v62  ;;  %v519_v61 = vld [vmem:[%s8436_s29 + $0x9c8] sm:$0xff] }
  0xba   : > { %2551 = vmatprep.subr.bf16.mxu1 %v1189_v9  ;;  %v601_v9 = vld [vmem:[%s8436_s29 + $0xc58] sm:$0xff]  ;;  %v8604_v62 = vld [vmem:[%s10423_s0 + $0x8] ss:$28 sps:$4 sm:$0xff]  }
  0xbc   : > { %2470 = vmatpush2.bf16.msra.mxu0 %v2026_v14  ;;  %v1804_v14 = vunpack.c.l.s8.bf16 %v656_v0  ;;  %v518_v0 = vld [vmem:[%s8436_s29 + $0x9c0] sm:$0xff] }
  0xbd   : > { %2552 = vmatpush2.bf16.msra.mxu1 %v1188_v15  ;;  %2568 = vmatprep.subr.bf16.mxu0 %v1553_v17  ;;  %v1721_v15 = vunpack.c.h.s8.bf16 %v601_v9  ;;  %v1720_v17 = vunpack.c.h.s8.bf16 %v600_v11  ;;  %v8616_v11 = vld [vmem:[%s10423_s0 + $0x18] ss:$28 sps:$4 sm:$0xff]  }
  0xbe   : > { %2553 = vmatprep.subr.bf16.mxu1 %v1161_v25  ;;  %v2225_v25 = vunpack.c.h.s8.bf16 %v853_v10 }
  0xbf   : > { %2472 = vmatmul.mubr.bf16.vlgmr.msra.gmra.mxu0 %v8556_v16 }
  0xc0   : > { %2569 = vmatpush1.bf16.msra.mxu0 %v1552_v19  ;;  %2600 = vmatprep.mubr.bf16.mxu0 %v8566_v31  ;;  %v1693_v19 = vunpack.c.l.s8.bf16 %v601_v9  ;;  %v267_v9 = vld [vmem:[%s8436_s29 + $0x1e8] sm:$0xff] }
  0xc1   : > { %2554 = vmatpush2.bf16.msra.mxu1 %v1160_v18  ;;  %2570 = vmatprep.subr.bf16.mxu0 %v1525_v21  ;;  %v2224_v18 = vunpack.c.h.s8.bf16 %v852_v12  ;;  %v573_v21 = vld [vmem:[%s8436_s29 + $0xb78] sm:$0xff] }
  0xc2   : > { %2555 = vmatprep.subr.bf16.mxu1 %v1133_v20  ;;  %v2197_v20 = vunpack.c.l.s8.bf16 %v853_v10  ;;  %v491_v10 = vld [vmem:[%s8436_s29 + $0x8e8] sm:$0xff] }
  0xc4   : > { %2571 = vmatpush1.bf16.msra.mxu0 %v1524_v28  ;;  %v1665_v28 = vunpack.c.h.s8.bf16 %v573_v21 }
  0xc5   : > { %2556 = vmatpush2.bf16.msra.mxu1 %v1132_v27  ;;  %2572 = vmatprep.subr.bf16.mxu0 %v1497_v29  ;;  %v2196_v27 = vunpack.c.l.s8.bf16 %v852_v12  ;;  %v2169_v29 = vunpack.c.h.s8.bf16 %v825_v22  ;;  %v266_v12 = vld [vmem:[%s8436_s29 + $0x1e0] sm:$0xff] }
  0xc6   : > { %2611 = vmatprep.subr.bf16.mxu1 %v2001_v30  ;;  %v1664_v30 = vunpack.c.h.s8.bf16 %v572_v23 }
  0xc8   : > { %2558 = vmatmul.mubr.bf16.vlgmr.msra.gmra.mxu1 %v8503_v40  ;;  %2573 = vmatpush1.bf16.msra.mxu0 %v1496_v32  ;;  %v1944_v40 = vunpack.c.h.s8.bf16 %v712_v39  ;;  %v2168_v32 = vunpack.c.h.s8.bf16 %v824_v24  ;;  %v1636_v39 = vunpack.c.l.s8.bf16 %v572_v23  ;;  %v463_v23 = vld [vmem:[%s8436_s29 + $0x808] sm:$0xff] }
  0xc9   : > { %2612 = vmatpush1.bf16.msra.mxu1 %v2000_v33  ;;  %2574 = vmatprep.subr.bf16.mxu0 %v1469_v34  ;;  %v1637_v33 = vunpack.c.l.s8.bf16 %v573_v21  ;;  %v2141_v34 = vunpack.c.l.s8.bf16 %v825_v22  ;;  %v1471_v21 = vunpack.c.l.s8.bf16 %v491_v10  ;;  %v239_v22 = vld [vmem:[%s8436_s29 + $0x108] sm:$0xff] }
  0xca   : > { %2613 = vmatprep.subr.bf16.mxu1 %v1973_v35  ;;  %2643 = vmatprep.mubr.bf16.mxu1 %v8513_v50  ;;  %v1385_v50 = vunpack.c.h.s8.bf16 %v433_v48  ;;  %v545_v35 = vld [vmem:[%s8436_s29 + $0xa98] sm:$0xff] }
  0xcb   : > { %v881_v48 = vld [vmem:[%s8436_s29 + $0x1518] sm:$0xff] }
  0xcc   : > { %2575 = vmatpush1.bf16.msra.mxu0 %v1468_v41  ;;  %v2140_v41 = vunpack.c.l.s8.bf16 %v824_v24  ;;  %v1022_v24 = vunpack.c.l.s8.bf16 %v266_v12 }
  0xcd   : > { %2614 = vmatpush1.bf16.msra.mxu1 %v1972_v42  ;;  %2576 = vmatprep.subr.bf16.mxu0 %v1441_v43  ;;  %v1609_v42 = vunpack.c.h.s8.bf16 %v545_v35  ;;  %v2113_v43 = vunpack.c.h.s8.bf16 %v797_v36 }
  0xce   : > { %2615 = vmatprep.subr.bf16.mxu1 %v1945_v44  ;;  %v1608_v44 = vunpack.c.h.s8.bf16 %v544_v37 }
  0xd0   : > { %2577 = vmatpush1.bf16.msra.mxu0 %v1440_v45  ;;  %v2112_v45 = vunpack.c.h.s8.bf16 %v796_v38 }
  0xd1   : > { %2616 = vmatpush1.bf16.msra.mxu1 %v1944_v40  ;;  %2578 = vmatprep.subr.bf16.mxu0 %v1413_v46  ;;  %v1581_v40 = vunpack.c.l.s8.bf16 %v545_v35  ;;  %v2085_v46 = vunpack.c.l.s8.bf16 %v797_v36  ;;  %v211_v35 = vld [vmem:[%s8436_s29 + $0x28] sm:$0xff] }
  0xd2   : > { %2617 = vmatprep.subr.bf16.mxu1 %v1917_v47  ;;  %v769_v47 = vld [vmem:[%s8436_s29 + $0x1198] sm:$0xff]  ;;  %v435_v36 = vld [vmem:[%s8436_s29 + $0x728] sm:$0xff] }
  0xd4   : > { %2579 = vmatpush1.bf16.msra.mxu0 %v1412_v53  ;;  %v2084_v53 = vunpack.c.l.s8.bf16 %v796_v38 }
  0xd5   : > { %2618 = vmatpush1.bf16.msra.mxu1 %v1916_v54  ;;  %2580 = vmatprep.subr.bf16.mxu0 %v1385_v50  ;;  %v2057_v54 = vunpack.c.h.s8.bf16 %v769_v47  ;;  %v2281_v50 = vunpack.c.h.s8.bf16 %v881_v48 }
  0xd6   : > { %2619 = vmatprep.subr.bf16.mxu1 %v1889_v55  ;;  %v2056_v55 = vunpack.c.h.s8.bf16 %v768_v49 }
  0xd8   : > { %2581 = vmatpush1.bf16.msra.mxu0 %v1384_v56  ;;  %v2280_v56 = vunpack.c.h.s8.bf16 %v880_v51 }
  0xd9   : > { %2620 = vmatpush1.bf16.msra.mxu1 %v1888_v57  ;;  %2582 = vmatprep.subr.bf16.mxu0 %v1357_v59  ;;  %v2029_v57 = vunpack.c.l.s8.bf16 %v769_v47  ;;  %v2253_v59 = vunpack.c.l.s8.bf16 %v881_v48  ;;  %v407_v47 = vld [vmem:[%s8436_s29 + $0x648] sm:$0xff] }
  0xda   : > { %2621 = vmatprep.subr.bf16.mxu1 %v1861_v60  ;;  %v295_v60 = vld [vmem:[%s8436_s29 + $0x2c8] sm:$0xff] }
  0xdb   : > { %v631_v48 = vld [vmem:[%s8436_s29 + $0xd48] sm:$0xff] }
  0xdc   : > { %2583 = vmatpush1.bf16.msra.mxu0 %v1356_v1  ;;  %v2028_v1 = vunpack.c.l.s8.bf16 %v768_v49 }
  0xdd   : > { %2622 = vmatpush1.bf16.msra.mxu1 %v1860_v2  ;;  %2584 = vmatprep.subr.bf16.mxu0 %v1777_v3  ;;  %v2252_v2 = vunpack.c.l.s8.bf16 %v880_v51  ;;  %v1107_v3 = vunpack.c.h.s8.bf16 %v295_v60 }
  0xde   : > { %2623 = vmatprep.subr.bf16.mxu1 %v1833_v4  ;;  %v1555_v4 = vunpack.c.h.s8.bf16 %v519_v61 }
  0xe0   : > { %2585 = vmatpush2.bf16.msra.mxu0 %v1776_v5  ;;  %v1106_v5 = vunpack.c.h.s8.bf16 %v294_v63 }
  0xe1   : > { %2624 = vmatpush1.bf16.msra.mxu1 %v1832_v6  ;;  %2586 = vmatprep.subr.bf16.mxu0 %v1749_v7  ;;  %v1554_v6 = vunpack.c.h.s8.bf16 %v518_v0  ;;  %v1079_v7 = vunpack.c.l.s8.bf16 %v295_v60  ;;  %v379_v60 = vld [vmem:[%s8436_s29 + $0x568] sm:$0xff] }
  0xe2   : > { %2625 = vmatprep.subr.bf16.mxu1 %v1805_v8  ;;  %v1527_v8 = vunpack.c.l.s8.bf16 %v519_v61  ;;  %v603_v61 = vld [vmem:[%s8436_s29 + $0xc68] sm:$0xff] }
  0xe4   : > { %2587 = vmatpush2.bf16.msra.mxu0 %v1748_v13  ;;  %v490_v13 = vld [vmem:[%s8436_s29 + $0x8e0] sm:$0xff] }
  0xe5   : > { %2626 = vmatpush1.bf16.msra.mxu1 %v1804_v14  ;;  %2588 = vmatprep.subr.bf16.mxu0 %v1721_v15  ;;  %v1078_v14 = vunpack.c.l.s8.bf16 %v294_v63  ;;  %v1526_v15 = vunpack.c.l.s8.bf16 %v518_v0 }
  0xe6   : > { %2627 = vmatprep.subr.bf16.mxu1 %v2225_v25  ;;  %v1051_v25 = vunpack.c.h.s8.bf16 %v267_v9 }
  0xe8   : > { %2589 = vmatpush2.bf16.msra.mxu0 %v1720_v17  ;;  %v8625_v17 = vld [vmem:[%s10423_s0 + $0x4] ss:$28 sps:$4 sm:$0xff]  }
  0xe9   : > { %2628 = vmatpush2.bf16.msra.mxu1 %v2224_v18  ;;  %2590 = vmatprep.subr.bf16.mxu0 %v1693_v19  ;;  %v1050_v18 = vunpack.c.h.s8.bf16 %v266_v12  ;;  %v1498_v19 = vunpack.c.h.s8.bf16 %v490_v13 }
  0xea   : > { %2629 = vmatprep.subr.bf16.mxu1 %v2197_v20  ;;  %v1023_v20 = vunpack.c.l.s8.bf16 %v267_v9  ;;  %v351_v9 = vld [vmem:[%s8436_s29 + $0x488] sm:$0xff] }
  0xec   : > { %2591 = vmatpush2.bf16.msra.mxu0 %v1692_v26  ;;  %v1470_v26 = vunpack.c.l.s8.bf16 %v490_v13 }
  0xed   : > { %2630 = vmatpush2.bf16.msra.mxu1 %v2196_v27  ;;  %2592 = vmatprep.subr.bf16.mxu0 %v1665_v28  ;;  %v1443_v27 = vunpack.c.h.s8.bf16 %v463_v23  ;;  %v238_v28 = vld [vmem:[%s8436_s29 + $0x100] sm:$0xff] }
  0xee   : > { %2631 = vmatprep.subr.bf16.mxu1 %v2169_v29  ;;  %v462_v29 = vld [vmem:[%s8436_s29 + $0x800] sm:$0xff]  ;;  %v966_v37 = vunpack.c.l.s8.bf16 %v238_v28 }
  0xef   : > { %v1414_v38 = vunpack.c.l.s8.bf16 %v462_v29 }
  0xf0   : > { %2593 = vmatpush2.bf16.msra.mxu0 %v1664_v30  ;;  %v994_v30 = vunpack.c.h.s8.bf16 %v238_v28  ;;  %v322_v28 = vld [vmem:[%s8436_s29 + $0x3a0] sm:$0xff] }
  0xf1   : > { %2632 = vmatpush2.bf16.msra.mxu1 %v2168_v32  ;;  %2594 = vmatprep.subr.bf16.mxu0 %v1637_v33  ;;  %v1442_v32 = vunpack.c.h.s8.bf16 %v462_v29  ;;  %v967_v33 = vunpack.c.l.s8.bf16 %v239_v22  ;;  %v546_v29 = vld [vmem:[%s8436_s29 + $0xaa0] sm:$0xff] }
  0xf2   : > { %2633 = vmatprep.subr.bf16.mxu1 %v2141_v34  ;;  %v1415_v34 = vunpack.c.l.s8.bf16 %v463_v23  ;;  %v547_v23 = vld [vmem:[%s8436_s29 + $0xaa8] sm:$0xff] }
  0xf4   : > { %2595 = vmatpush2.bf16.msra.mxu0 %v1636_v39  ;;  %v939_v39 = vunpack.c.h.s8.bf16 %v211_v35 }
  0xf5   : > { %2634 = vmatpush2.bf16.msra.mxu1 %v2140_v41  ;;  %2596 = vmatprep.subr.bf16.mxu0 %v1609_v42  ;;  %v1387_v41 = vunpack.c.h.s8.bf16 %v435_v36  ;;  %v210_v42 = vld [vmem:[%s8436_s29 + $0x20] sm:$0xff] }
  0xf6   : > { %2635 = vmatprep.subr.bf16.mxu1 %v2113_v43  ;;  %v434_v43 = vld [vmem:[%s8436_s29 + $0x720] sm:$0xff]  ;;  %v910_v49 = vunpack.c.l.s8.bf16 %v210_v42 }
  0xf7   : > { %v1358_v51 = vunpack.c.l.s8.bf16 %v434_v43 }
  0xf8   : > { %2597 = vmatpush2.bf16.msra.mxu0 %v1608_v44  ;;  %v938_v44 = vunpack.c.h.s8.bf16 %v210_v42  ;;  %v742_v42 = vld [vmem:[%s8436_s29 + $0x10c0] sm:$0xff] }
  0xf9   : > { %2636 = vmatpush2.bf16.msra.mxu1 %v2112_v45  ;;  %2598 = vmatprep.subr.bf16.mxu0 %v1581_v40  ;;  %v1386_v45 = vunpack.c.h.s8.bf16 %v434_v43  ;;  %v911_v40 = vunpack.c.l.s8.bf16 %v211_v35  ;;  %v743_v35 = vld [vmem:[%s8436_s29 + $0x10c8] sm:$0xff]  ;;  %v882_v43 = vld [vmem:[%s8436_s29 + $0x1520] sm:$0xff] }
  0xfa   : > { %2637 = vmatprep.subr.bf16.mxu1 %v2085_v46  ;;  %v1359_v46 = vunpack.c.l.s8.bf16 %v435_v36  ;;  %v883_v36 = vld [vmem:[%s8436_s29 + $0x1528] sm:$0xff] }
  0xfc   : > { %2599 = vmatpush2.bf16.msra.mxu0 %v1580_v52  ;;  %v1331_v52 = vunpack.c.h.s8.bf16 %v407_v47 }
  0xfd   : > { %2638 = vmatpush2.bf16.msra.mxu1 %v2084_v53  ;;  %2666 = vmatprep.subr.bf16.mxu0 %v2281_v50  ;;  %v1779_v53 = vunpack.c.h.s8.bf16 %v631_v48  ;;  %v630_v50 = vld [vmem:[%s8436_s29 + $0xd40] sm:$0xff] }
  0xfe   : > { %2639 = vmatprep.subr.bf16.mxu1 %v2057_v54  ;;  %v406_v54 = vld [vmem:[%s8436_s29 + $0x640] sm:$0xff]  ;;  %v1750_v0 = vunpack.c.l.s8.bf16 %v630_v50 }
  0xff   : > { %2601 = vmatmul.mubr.bf16.vlgmr.msra.gmra.mxu0 %v8604_v62  ;;  %v1302_v63 = vunpack.c.l.s8.bf16 %v406_v54 }
 0x100   : > { %2667 = vmatpush1.bf16.msra.mxu0 %v2280_v56  ;;  %2686 = vmatprep.mubr.bf16.mxu0 %v10428_v58  ;;  %v1778_v56 = vunpack.c.h.s8.bf16 %v630_v50  ;;  %v714_v50 = vld [vmem:[%s8436_s29 + $0xfe0] sm:$0xff] }
 0x101   : > { %2640 = vmatpush2.bf16.msra.mxu1 %v2056_v55  ;;  %2668 = vmatprep.subr.bf16.mxu0 %v2253_v59  ;;  %v1330_v55 = vunpack.c.h.s8.bf16 %v406_v54  ;;  %v1751_v59 = vunpack.c.l.s8.bf16 %v631_v48  ;;  %v297_v48 = vld [vmem:[%s8436_s29 + $0x2d8] sm:$0xff] }
 0x102   : > { %2641 = vmatprep.subr.bf16.mxu1 %v2029_v57  ;;  %v1303_v57 = vunpack.c.l.s8.bf16 %v407_v47  ;;  %v715_v47 = vld [vmem:[%s8436_s29 + $0xfe8] sm:$0xff]  ;;  %v1109_v54 = vunpack.c.h.s8.bf16 %v297_v48 }
 0x104   : > { %2669 = vmatpush1.bf16.msra.mxu0 %v2252_v2  ;;  %v1723_v2 = vunpack.c.h.s8.bf16 %v603_v61 }
 0x105   : > { %2642 = vmatpush2.bf16.msra.mxu1 %v2028_v1  ;;  %2697 = vmatprep.subr.bf16.mxu0 %v1107_v3  ;;  %v1275_v1 = vunpack.c.h.s8.bf16 %v379_v60  ;;  %v378_v3 = vld [vmem:[%s8436_s29 + $0x560] sm:$0xff] }
 0x106   : > { %2740 = vmatprep.subr.bf16.mxu1 %v1555_v4  ;;  %v602_v4 = vld [vmem:[%s8436_s29 + $0xc60] sm:$0xff]  ;;  %v1246_v12 = vunpack.c.l.s8.bf16 %v378_v3 }
 0x107   : > { %7396 = vmatmul.mubr.msk.bf16.vlgmr.msra.gmra.mxu0 %vm2349_vm1, %v8616_v11  ;;  %v1694_v13 = vunpack.c.l.s8.bf16 %v602_v4 }
 0x108   : > { %2644 = vmatmul.mubr.bf16.vlgmr.msra.gmra.mxu1 %v8556_v16  ;;  %2698 = vmatpush1.bf16.msra.mxu0 %v1106_v5  ;;  %v1499_v16 = vunpack.c.h.s8.bf16 %v491_v10  ;;  %v1274_v5 = vunpack.c.h.s8.bf16 %v378_v3  ;;  %v575_v10 = vld [vmem:[%s8436_s29 + $0xb88] sm:$0xff] }
 0x109   : > { %2741 = vmatpush1.bf16.msra.mxu1 %v1554_v6  ;;  %2699 = vmatprep.subr.bf16.mxu0 %v1079_v7  ;;  %v1722_v6 = vunpack.c.h.s8.bf16 %v602_v4  ;;  %v1247_v7 = vunpack.c.l.s8.bf16 %v379_v60  ;;  %v1081_v60 = vunpack.c.l.s8.bf16 %v297_v48  ;;  %v686_v4 = vld [vmem:[%s8436_s29 + $0xf00] sm:$0xff] }
 0x10a   : > { %2742 = vmatprep.subr.bf16.mxu1 %v1527_v8  ;;  %2729 = vmatprep.mubr.bf16.mxu0 %v8625_v17  ;;  %v1695_v8 = vunpack.c.l.s8.bf16 %v603_v61  ;;  %v687_v61 = vld [vmem:[%s8436_s29 + $0xf08] sm:$0xff] }
 0x10b   : > { %2772 = vmatprep.mubr.bf16.mxu1 %v8566_v31  ;;  %v995_v31 = vunpack.c.h.s8.bf16 %v239_v22  ;;  %v323_v22 = vld [vmem:[%s8436_s29 + $0x3a8] sm:$0xff] }
 0x10c   : > { %2700 = vmatpush1.bf16.msra.mxu0 %v1078_v14  ;;  %v1219_v14 = vunpack.c.h.s8.bf16 %v351_v9 }
 0x10d   : > { %2743 = vmatpush1.bf16.msra.mxu1 %v1526_v15  ;;  %2701 = vmatprep.subr.bf16.mxu0 %v1051_v25  ;;  %v1667_v15 = vunpack.c.h.s8.bf16 %v575_v10  ;;  %v350_v25 = vld [vmem:[%s8436_s29 + $0x480] sm:$0xff] }
 0x10e   : > { %2744 = vmatprep.subr.bf16.mxu1 %v1499_v16  ;;  %v574_v16 = vld [vmem:[%s8436_s29 + $0xb80] sm:$0xff] }
 0x110   : > { %2702 = vmatpush1.bf16.msra.mxu0 %v1050_v18  ;;  %v1218_v18 = vunpack.c.h.s8.bf16 %v350_v25 }
 0x111   : > { %2745 = vmatpush1.bf16.msra.mxu1 %v1498_v19  ;;  %2703 = vmatprep.subr.bf16.mxu0 %v1023_v20  ;;  %v1666_v19 = vunpack.c.h.s8.bf16 %v574_v16  ;;  %v1191_v20 = vunpack.c.l.s8.bf16 %v351_v9  ;;  %v659_v9 = vld [vmem:[%s8436_s29 + $0xe28] sm:$0xff] }
 0x112   : > { %2746 = vmatprep.subr.bf16.mxu1 %v1471_v21  ;;  %v1639_v21 = vunpack.c.l.s8.bf16 %v575_v10  ;;  %v241_v10 = vld [vmem:[%s8436_s29 + $0x118] sm:$0xff] }
 0x114   : > { %2704 = vmatpush1.bf16.msra.mxu0 %v1022_v24  ;;  %v1190_v24 = vunpack.c.l.s8.bf16 %v350_v25  ;;  %v240_v25 = vld [vmem:[%s8436_s29 + $0x110] sm:$0xff] }
 0x115   : > { %2747 = vmatpush1.bf16.msra.mxu1 %v1470_v26  ;;  %2705 = vmatprep.subr.bf16.mxu0 %v995_v31  ;;  %v1638_v26 = vunpack.c.l.s8.bf16 %v574_v16  ;;  %v1163_v31 = vunpack.c.h.s8.bf16 %v323_v22 }
 0x116   : > { %2748 = vmatprep.subr.bf16.mxu1 %v1443_v27  ;;  %v1611_v27 = vunpack.c.h.s8.bf16 %v547_v23 }
 0x118   : > { %2706 = vmatpush1.bf16.msra.mxu0 %v994_v30  ;;  %v1162_v30 = vunpack.c.h.s8.bf16 %v322_v28 }
 0x119   : > { %2749 = vmatpush1.bf16.msra.mxu1 %v1442_v32  ;;  %2707 = vmatprep.subr.bf16.mxu0 %v967_v33  ;;  %v1610_v32 = vunpack.c.h.s8.bf16 %v546_v29  ;;  %v1135_v33 = vunpack.c.l.s8.bf16 %v323_v22  ;;  %v213_v22 = vld [vmem:[%s8436_s29 + $0x38] sm:$0xff] }
 0x11a   : > { %2750 = vmatprep.subr.bf16.mxu1 %v1415_v34  ;;  %v1583_v34 = vunpack.c.l.s8.bf16 %v547_v23 }
 0x11c   : > { %2708 = vmatpush1.bf16.msra.mxu0 %v966_v37  ;;  %v1134_v37 = vunpack.c.l.s8.bf16 %v322_v28  ;;  %v212_v28 = vld [vmem:[%s8436_s29 + $0x30] sm:$0xff] }
 0x11d   : > { %2751 = vmatpush1.bf16.msra.mxu1 %v1414_v38  ;;  %2709 = vmatprep.subr.bf16.mxu0 %v939_v39  ;;  %v1582_v38 = vunpack.c.l.s8.bf16 %v546_v29  ;;  %v2003_v39 = vunpack.c.h.s8.bf16 %v743_v35 }
 0x11e   : > { %2752 = vmatprep.subr.bf16.mxu1 %v1387_v41  ;;  %v2283_v41 = vunpack.c.h.s8.bf16 %v883_v36 }
 0x120   : > { %2710 = vmatpush1.bf16.msra.mxu0 %v938_v44  ;;  %v2002_v44 = vunpack.c.h.s8.bf16 %v742_v42 }
 0x121   : > { %2753 = vmatpush1.bf16.msra.mxu1 %v1386_v45  ;;  %2711 = vmatprep.subr.bf16.mxu0 %v911_v40  ;;  %v2282_v45 = vunpack.c.h.s8.bf16 %v882_v43  ;;  %v1975_v40 = vunpack.c.l.s8.bf16 %v743_v35  ;;  %v409_v35 = vld [vmem:[%s8436_s29 + $0x658] sm:$0xff] }
 0x122   : > { %2754 = vmatprep.subr.bf16.mxu1 %v1359_v46  ;;  %v2255_v46 = vunpack.c.l.s8.bf16 %v883_v36 }
 0x124   : > { %2712 = vmatpush1.bf16.msra.mxu0 %v910_v49  ;;  %v8662_v49 = vld [vmem:[%s10423_s0] ss:$28 sps:$4 sm:$0xff]  }
 0x125   : > { %2755 = vmatpush1.bf16.msra.mxu1 %v1358_v51  ;;  %2713 = vmatprep.subr.bf16.mxu0 %v1331_v52  ;;  %v1974_v51 = vunpack.c.l.s8.bf16 %v742_v42  ;;  %v2254_v52 = vunpack.c.l.s8.bf16 %v882_v43  ;;  %v408_v42 = vld [vmem:[%s8436_s29 + $0x650] sm:$0xff] }
 0x126   : > { %2756 = vmatprep.subr.bf16.mxu1 %v1779_v53  ;;  %v1947_v53 = vunpack.c.h.s8.bf16 %v715_v47 }
 0x128   : > { %2714 = vmatpush2.bf16.msra.mxu0 %v1330_v55  ;;  %v296_v55 = vld [vmem:[%s8436_s29 + $0x2d0] sm:$0xff] }
 0x129   : > { %2757 = vmatpush2.bf16.msra.mxu1 %v1778_v56  ;;  %2715 = vmatprep.subr.bf16.mxu0 %v1303_v57  ;;  %v8672_v56 = vld [vmem:[%s10423_s0 + $0x14] ss:$28 sps:$4 sm:$0xff]   ;;  %v1108_v57 = vunpack.c.h.s8.bf16 %v296_v55 }
 0x12a   : > { %2758 = vmatprep.subr.bf16.mxu1 %v1751_v59  ;;  %v1919_v59 = vunpack.c.l.s8.bf16 %v715_v47  ;;  %v381_v47 = vld [vmem:[%s8436_s29 + $0x578] sm:$0xff] }
 0x12c   : > { %2716 = vmatpush2.bf16.msra.mxu0 %v1302_v63  ;;  %v269_v63 = vld [vmem:[%s8436_s29 + $0x1f8] sm:$0xff] }
 0x12d   : > { %2759 = vmatpush2.bf16.msra.mxu1 %v1750_v0  ;;  %2717 = vmatprep.subr.bf16.mxu0 %v1275_v1  ;;  %v1918_v0 = vunpack.c.l.s8.bf16 %v714_v50  ;;  %v1080_v1 = vunpack.c.l.s8.bf16 %v296_v55  ;;  %v1053_v3 = vunpack.c.h.s8.bf16 %v269_v63 }
 0x12e   : > { %2760 = vmatprep.subr.bf16.mxu1 %v1723_v2  ;;  %v1891_v2 = vunpack.c.h.s8.bf16 %v687_v61 }
 0x130   : > { %2718 = vmatpush2.bf16.msra.mxu0 %v1274_v5  ;;  %v268_v5 = vld [vmem:[%s8436_s29 + $0x1f0] sm:$0xff] }
 0x131   : > { %2761 = vmatpush2.bf16.msra.mxu1 %v1722_v6  ;;  %2719 = vmatprep.subr.bf16.mxu0 %v1247_v7  ;;  %v1890_v6 = vunpack.c.h.s8.bf16 %v686_v4  ;;  %v1052_v7 = vunpack.c.h.s8.bf16 %v268_v5 }
 0x132   : > { %2762 = vmatprep.subr.bf16.mxu1 %v1695_v8  ;;  %v1025_v8 = vunpack.c.l.s8.bf16 %v269_v63 }
 0x134   : > { %2720 = vmatpush2.bf16.msra.mxu0 %v1246_v12  ;;  %v1862_v12 = vunpack.c.l.s8.bf16 %v686_v4  ;;  %v352_v4 = vld [vmem:[%s8436_s29 + $0x490] sm:$0xff] }
 0x135   : > { %2763 = vmatpush2.bf16.msra.mxu1 %v1694_v13  ;;  %2721 = vmatprep.subr.bf16.mxu0 %v1219_v14  ;;  %v1024_v13 = vunpack.c.l.s8.bf16 %v268_v5  ;;  %v997_v14 = vunpack.c.h.s8.bf16 %v241_v10 }
 0x136   : > { %2764 = vmatprep.subr.bf16.mxu1 %v1667_v15  ;;  %v658_v15 = vld [vmem:[%s8436_s29 + $0xe20] sm:$0xff] }
 0x137   : > { %v1834_v16 = vunpack.c.h.s8.bf16 %v658_v15  ;;  %v1806_v23 = vunpack.c.l.s8.bf16 %v658_v15  ;;  %v520_v15 = vld [vmem:[%s8436_s29 + $0x9d0] sm:$0xff] }
 0x138   : > { %2722 = vmatpush2.bf16.msra.mxu0 %v1218_v18  ;;  %v996_v18 = vunpack.c.h.s8.bf16 %v240_v25 }
 0x139   : > { %2765 = vmatpush2.bf16.msra.mxu1 %v1666_v19  ;;  %2723 = vmatprep.subr.bf16.mxu0 %v1191_v20  ;;  %v1807_v19 = vunpack.c.l.s8.bf16 %v659_v9  ;;  %v969_v20 = vunpack.c.l.s8.bf16 %v241_v10 }
 0x13a   : > { %2766 = vmatprep.subr.bf16.mxu1 %v1639_v21  ;;  %v855_v21 = vld [vmem:[%s8436_s29 + $0x1448] sm:$0xff] }
 0x13c   : > { %2724 = vmatpush2.bf16.msra.mxu0 %v1190_v24  ;;  %v968_v24 = vunpack.c.l.s8.bf16 %v240_v25 }
 0x13d   : > { %2767 = vmatpush2.bf16.msra.mxu1 %v1638_v26  ;;  %2725 = vmatprep.subr.bf16.mxu0 %v1163_v31  ;;  %v2227_v26 = vunpack.c.h.s8.bf16 %v855_v21  ;;  %v941_v31 = vunpack.c.h.s8.bf16 %v213_v22 }
 0x13e   : > { %2768 = vmatprep.subr.bf16.mxu1 %v1611_v27  ;;  %v854_v27 = vld [vmem:[%s8436_s29 + $0x1440] sm:$0xff] }
 0x13f   : > { %v2226_v29 = vunpack.c.h.s8.bf16 %v854_v27  ;;  %v2198_v36 = vunpack.c.l.s8.bf16 %v854_v27  ;;  %v492_v27 = vld [vmem:[%s8436_s29 + $0x8f0] sm:$0xff] }
 0x140   : > { %2726 = vmatpush2.bf16.msra.mxu0 %v1162_v30  ;;  %v940_v30 = vunpack.c.h.s8.bf16 %v212_v28 }
 0x141   : > { %2769 = vmatpush2.bf16.msra.mxu1 %v1610_v32  ;;  %2727 = vmatprep.subr.bf16.mxu0 %v1135_v33  ;;  %v2199_v32 = vunpack.c.l.s8.bf16 %v855_v21  ;;  %v913_v33 = vunpack.c.l.s8.bf16 %v213_v22  ;;  %v745_v21 = vld [vmem:[%s8436_s29 + $0x10d8] sm:$0xff]  ;;  %v8711_v22 = vld [vmem:[%s10423_s0 + $0x10] ss:$28 sps:$4 sm:$0xff]  }
 0x142   : > { %2770 = vmatprep.subr.bf16.mxu1 %v1583_v34  ;;  %v827_v34 = vld [vmem:[%s8436_s29 + $0x1368] sm:$0xff] }
 0x144   : > { %2728 = vmatpush2.bf16.msra.mxu0 %v1134_v37  ;;  %v912_v37 = vunpack.c.l.s8.bf16 %v212_v28  ;;  %v744_v28 = vld [vmem:[%s8436_s29 + $0x10d0] sm:$0xff] }
 0x145   : > { %2771 = vmatpush2.bf16.msra.mxu1 %v1582_v38  ;;  %2783 = vmatprep.subr.bf16.mxu0 %v2003_v39  ;;  %v2171_v38 = vunpack.c.h.s8.bf16 %v827_v34  ;;  %v1333_v39 = vunpack.c.h.s8.bf16 %v409_v35 }
 0x146   : > { %2838 = vmatprep.subr.bf16.mxu1 %v2283_v41  ;;  %v826_v41 = vld [vmem:[%s8436_s29 + $0x1360] sm:$0xff] }
 0x147   : > { %2730 = vmatmul.mubr.bf16.vlgmr.msra.gmra.mxu0 %v8662_v49  ;;  %v2170_v43 = vunpack.c.h.s8.bf16 %v826_v41  ;;  %v2142_v48 = vunpack.c.l.s8.bf16 %v826_v41 }
 0x148   : > { %2773 = vmatmul.mubr.bf16.vlgmr.msra.gmra.mxu1 %v8604_v62  ;;  %2784 = vmatpush1.bf16.msra.mxu0 %v2002_v44  ;;  %v1946_v62 = vunpack.c.h.s8.bf16 %v714_v50  ;;  %v1332_v44 = vunpack.c.h.s8.bf16 %v408_v42  ;;  %v380_v50 = vld [vmem:[%s8436_s29 + $0x570] sm:$0xff] }
 0x149   : > { %2839 = vmatpush1.bf16.msra.mxu1 %v2282_v45  ;;  %2785 = vmatprep.subr.bf16.mxu0 %v1975_v40  ;;  %v2143_v45 = vunpack.c.l.s8.bf16 %v827_v34  ;;  %v1305_v40 = vunpack.c.l.s8.bf16 %v409_v35  ;;  %v1977_v34 = vunpack.c.l.s8.bf16 %v745_v21  ;;  %v465_v35 = vld [vmem:[%s8436_s29 + $0x818] sm:$0xff] }
 0x14a   : > { %2840 = vmatprep.subr.bf16.mxu1 %v2255_v46  ;;  %2858 = vmatprep.mubr.bf16.mxu1 %v10428_v58  ;;  %v799_v46 = vld [vmem:[%s8436_s29 + $0x1288] sm:$0xff] }
 0x14b   : > { %2815 = vmatprep.mubr.bf16.mxu0 %v8672_v56 }
 0x14c   : > { %2786 = vmatpush1.bf16.msra.mxu0 %v1974_v51  ;;  %v1304_v51 = vunpack.c.l.s8.bf16 %v408_v42  ;;  %v464_v42 = vld [vmem:[%s8436_s29 + $0x810] sm:$0xff] }
 0x14d   : > { %2841 = vmatpush1.bf16.msra.mxu1 %v2254_v52  ;;  %2787 = vmatprep.subr.bf16.mxu0 %v1947_v53  ;;  %v2115_v52 = vunpack.c.h.s8.bf16 %v799_v46  ;;  %v1277_v53 = vunpack.c.h.s8.bf16 %v381_v47 }
 0x14e   : > { %2869 = vmatprep.subr.bf16.mxu1 %v1109_v54  ;;  %v798_v54 = vld [vmem:[%s8436_s29 + $0x1280] sm:$0xff] }
 0x14f   : > { %v2114_v55 = vunpack.c.h.s8.bf16 %v798_v54  ;;  %v2086_v63 = vunpack.c.l.s8.bf16 %v798_v54  ;;  %v688_v54 = vld [vmem:[%s8436_s29 + $0xf10] sm:$0xff] }
 0x150   : > { %7397 = vmatmul.mubr.msk.bf16.vlgmr.msra.gmra.mxu1 %vm2349_vm1, %v8616_v11  ;;  %2788 = vmatpush1.bf16.msra.mxu0 %v1946_v62  ;;  %v1863_v11 = vunpack.c.l.s8.bf16 %v687_v61  ;;  %v1276_v62 = vunpack.c.h.s8.bf16 %v380_v50  ;;  %v353_v61 = vld [vmem:[%s8436_s29 + $0x498] sm:$0xff] }
 0x151   : > { %2870 = vmatpush1.bf16.msra.mxu1 %v1108_v57  ;;  %2789 = vmatprep.subr.bf16.mxu0 %v1919_v59  ;;  %v2087_v57 = vunpack.c.l.s8.bf16 %v799_v46  ;;  %v1249_v59 = vunpack.c.l.s8.bf16 %v381_v47  ;;  %v437_v46 = vld [vmem:[%s8436_s29 + $0x738] sm:$0xff] }
 0x152   : > { %2871 = vmatprep.subr.bf16.mxu1 %v1081_v60  ;;  %2901 = vmatprep.mubr.bf16.mxu1 %v8625_v17  ;;  %v1835_v17 = vunpack.c.h.s8.bf16 %v659_v9  ;;  %v771_v60 = vld [vmem:[%s8436_s29 + $0x11a8] sm:$0xff]  ;;  %v521_v9 = vld [vmem:[%s8436_s29 + $0x9d8] sm:$0xff] }
 0x153   : > { %v689_v47 = vld [vmem:[%s8436_s29 + $0xf18] sm:$0xff] }
 0x154   : > { %2790 = vmatpush1.bf16.msra.mxu0 %v1918_v0  ;;  %v1248_v0 = vunpack.c.l.s8.bf16 %v380_v50 }
 0x155   : > { %2872 = vmatpush1.bf16.msra.mxu1 %v1080_v1  ;;  %2791 = vmatprep.subr.bf16.mxu0 %v1891_v2  ;;  %v2059_v1 = vunpack.c.h.s8.bf16 %v771_v60  ;;  %v1221_v2 = vunpack.c.h.s8.bf16 %v353_v61 }
 0x156   : > { %2873 = vmatprep.subr.bf16.mxu1 %v1053_v3  ;;  %v770_v3 = vld [vmem:[%s8436_s29 + $0x11a0] sm:$0xff] }
 0x157   : > { %v2058_v5 = vunpack.c.h.s8.bf16 %v770_v3  ;;  %v2030_v10 = vunpack.c.l.s8.bf16 %v770_v3  ;;  %v660_v3 = vld [vmem:[%s8436_s29 + $0xe30] sm:$0xff] }
 0x158   : > { %2792 = vmatpush1.bf16.msra.mxu0 %v1890_v6  ;;  %v1220_v6 = vunpack.c.h.s8.bf16 %v352_v4 }
 0x159   : > { %2874 = vmatpush1.bf16.msra.mxu1 %v1052_v7  ;;  %2793 = vmatprep.subr.bf16.mxu0 %v1863_v11  ;;  %v2031_v7 = vunpack.c.l.s8.bf16 %v771_v60  ;;  %v1193_v11 = vunpack.c.l.s8.bf16 %v353_v61  ;;  %v661_v60 = vld [vmem:[%s8436_s29 + $0xe38] sm:$0xff] }
 0x15a   : > { %2875 = vmatprep.subr.bf16.mxu1 %v1025_v8  ;;  %v325_v8 = vld [vmem:[%s8436_s29 + $0x3b8] sm:$0xff] }
 0x15c   : > { %2794 = vmatpush1.bf16.msra.mxu0 %v1862_v12  ;;  %v1192_v12 = vunpack.c.l.s8.bf16 %v352_v4 }
 0x15d   : > { %2876 = vmatpush1.bf16.msra.mxu1 %v1024_v13  ;;  %2795 = vmatprep.subr.bf16.mxu0 %v1835_v17  ;;  %v1165_v13 = vunpack.c.h.s8.bf16 %v325_v8  ;;  %v1557_v17 = vunpack.c.h.s8.bf16 %v521_v9 }
 0x15e   : > { %2877 = vmatprep.subr.bf16.mxu1 %v997_v14  ;;  %v324_v14 = vld [vmem:[%s8436_s29 + $0x3b0] sm:$0xff] }
 0x15f   : > { %v1164_v25 = vunpack.c.h.s8.bf16 %v324_v14 }
 0x160   : > { %2796 = vmatpush1.bf16.msra.mxu0 %v1834_v16  ;;  %v1556_v16 = vunpack.c.h.s8.bf16 %v520_v15 }
 0x161   : > { %2878 = vmatpush1.bf16.msra.mxu1 %v996_v18  ;;  %2797 = vmatprep.subr.bf16.mxu0 %v1807_v19  ;;  %v1137_v18 = vunpack.c.l.s8.bf16 %v325_v8  ;;  %v1529_v19 = vunpack.c.l.s8.bf16 %v521_v9  ;;  %v857_v8 = vld [vmem:[%s8436_s29 + $0x1458] sm:$0xff] }
 0x162   : > { %2879 = vmatprep.subr.bf16.mxu1 %v969_v20  ;;  %v493_v20 = vld [vmem:[%s8436_s29 + $0x8f8] sm:$0xff] }
 0x164   : > { %2798 = vmatpush1.bf16.msra.mxu0 %v1806_v23  ;;  %v1136_v23 = vunpack.c.l.s8.bf16 %v324_v14  ;;  %v856_v14 = vld [vmem:[%s8436_s29 + $0x1450] sm:$0xff] }
 0x165   : > { %2880 = vmatpush1.bf16.msra.mxu1 %v968_v24  ;;  %2799 = vmatprep.subr.bf16.mxu0 %v2227_v26  ;;  %v1528_v24 = vunpack.c.l.s8.bf16 %v520_v15  ;;  %v1501_v26 = vunpack.c.h.s8.bf16 %v493_v20 }
 0x166   : > { %2881 = vmatprep.subr.bf16.mxu1 %v941_v31  ;;  %v2005_v31 = vunpack.c.h.s8.bf16 %v745_v21 }
 0x168   : > { %2800 = vmatpush2.bf16.msra.mxu0 %v2226_v29  ;;  %v8719_v29 = vld [vmem:[%s10423_s0 + $0xc] ss:$28 sps:$4 sm:$0xff]  }
 0x169   : > { %2882 = vmatpush1.bf16.msra.mxu1 %v940_v30  ;;  %2801 = vmatprep.subr.bf16.mxu0 %v2199_v32  ;;  %v1500_v30 = vunpack.c.h.s8.bf16 %v492_v27  ;;  %v2004_v32 = vunpack.c.h.s8.bf16 %v744_v28 }
 0x16a   : > { %2883 = vmatprep.subr.bf16.mxu1 %v913_v33  ;;  %v1473_v33 = vunpack.c.l.s8.bf16 %v493_v20  ;;  %v829_v20 = vld [vmem:[%s8436_s29 + $0x1378] sm:$0xff] }
 0x16c   : > { %2802 = vmatpush2.bf16.msra.mxu0 %v2198_v36  ;;  %v717_v36 = vld [vmem:[%s8436_s29 + $0xff8] sm:$0xff] }
 0x16d   : > { %2884 = vmatpush1.bf16.msra.mxu1 %v912_v37  ;;  %2803 = vmatprep.subr.bf16.mxu0 %v2171_v38  ;;  %v1472_v37 = vunpack.c.l.s8.bf16 %v492_v27  ;;  %v1976_v38 = vunpack.c.l.s8.bf16 %v744_v28  ;;  %v1949_v41 = vunpack.c.h.s8.bf16 %v717_v36  ;;  %v828_v27 = vld [vmem:[%s8436_s29 + $0x1370] sm:$0xff] }
 0x16e   : > { %2885 = vmatprep.subr.bf16.mxu1 %v1333_v39  ;;  %v1445_v39 = vunpack.c.h.s8.bf16 %v465_v35 }
 0x170   : > { %2804 = vmatpush2.bf16.msra.mxu0 %v2170_v43  ;;  %v716_v43 = vld [vmem:[%s8436_s29 + $0xff0] sm:$0xff] }
 0x171   : > { %2886 = vmatpush2.bf16.msra.mxu1 %v1332_v44  ;;  %2805 = vmatprep.subr.bf16.mxu0 %v2143_v45  ;;  %v1444_v44 = vunpack.c.h.s8.bf16 %v464_v42  ;;  %v1948_v45 = vunpack.c.h.s8.bf16 %v716_v43 }
 0x172   : > { %2887 = vmatprep.subr.bf16.mxu1 %v1305_v40  ;;  %v1921_v40 = vunpack.c.l.s8.bf16 %v717_v36 }
 0x174   : > { %2806 = vmatpush2.bf16.msra.mxu0 %v2142_v48  ;;  %v1416_v48 = vunpack.c.l.s8.bf16 %v464_v42  ;;  %v800_v42 = vld [vmem:[%s8436_s29 + $0x1290] sm:$0xff] }
 0x175   : > { %2888 = vmatpush2.bf16.msra.mxu1 %v1304_v51  ;;  %2807 = vmatprep.subr.bf16.mxu0 %v2115_v52  ;;  %v1920_v51 = vunpack.c.l.s8.bf16 %v716_v43  ;;  %v1893_v52 = vunpack.c.h.s8.bf16 %v689_v47 }
 0x176   : > { %2889 = vmatprep.subr.bf16.mxu1 %v1277_v53  ;;  %v436_v53 = vld [vmem:[%s8436_s29 + $0x730] sm:$0xff] }
 0x177   : > { %v1388_v50 = vunpack.c.h.s8.bf16 %v436_v53  ;;  %v1360_v61 = vunpack.c.l.s8.bf16 %v436_v53  ;;  %v884_v53 = vld [vmem:[%s8436_s29 + $0x1530] sm:$0xff] }
 0x178   : > { %2808 = vmatpush2.bf16.msra.mxu0 %v2114_v55  ;;  %v1892_v55 = vunpack.c.h.s8.bf16 %v688_v54 }
 0x179   : > { %2890 = vmatpush2.bf16.msra.mxu1 %v1276_v62  ;;  %2809 = vmatprep.subr.bf16.mxu0 %v2087_v57  ;;  %v1361_v62 = vunpack.c.l.s8.bf16 %v437_v46  ;;  %v1865_v57 = vunpack.c.l.s8.bf16 %v689_v47 }
 0x17a   : > { %2891 = vmatprep.subr.bf16.mxu1 %v1249_v59  ;;  %v633_v59 = vld [vmem:[%s8436_s29 + $0xd58] sm:$0xff] }
 0x17c   : > { %2810 = vmatpush2.bf16.msra.mxu0 %v2086_v63  ;;  %v1864_v63 = vunpack.c.l.s8.bf16 %v688_v54 }
 0x17d   : > { %2892 = vmatpush2.bf16.msra.mxu1 %v1248_v0  ;;  %2811 = vmatprep.subr.bf16.mxu0 %v2059_v1  ;;  %v1781_v0 = vunpack.c.h.s8.bf16 %v633_v59  ;;  %v1837_v1 = vunpack.c.h.s8.bf16 %v661_v60 }
 0x17e   : > { %2893 = vmatprep.subr.bf16.mxu1 %v1221_v2  ;;  %v632_v2 = vld [vmem:[%s8436_s29 + $0xd50] sm:$0xff] }
 0x17f   : > { %v1780_v4 = vunpack.c.h.s8.bf16 %v632_v2  ;;  %v1752_v9 = vunpack.c.l.s8.bf16 %v632_v2  ;;  %v298_v2 = vld [vmem:[%s8436_s29 + $0x2e0] sm:$0xff] }
 0x180   : > { %2812 = vmatpush2.bf16.msra.mxu0 %v2058_v5  ;;  %v1836_v5 = vunpack.c.h.s8.bf16 %v660_v3 }
 0x181   : > { %2894 = vmatpush2.bf16.msra.mxu1 %v1220_v6  ;;  %2813 = vmatprep.subr.bf16.mxu0 %v2031_v7  ;;  %v1753_v6 = vunpack.c.l.s8.bf16 %v633_v59  ;;  %v1809_v7 = vunpack.c.l.s8.bf16 %v661_v60  ;;  %v523_v59 = vld [vmem:[%s8436_s29 + $0x9e8] sm:$0xff] }
 0x182   : > { %2895 = vmatprep.subr.bf16.mxu1 %v1193_v11  ;;  %v605_v11 = vld [vmem:[%s8436_s29 + $0xc78] sm:$0xff]  ;;  %v8757_v60 = vld [vmem:[%s10423_s0 + $0x8] ss:$28 sps:$4 sm:$0xff]  }
 0x184   : > { %2814 = vmatpush2.bf16.msra.mxu0 %v2030_v10  ;;  %v1808_v10 = vunpack.c.l.s8.bf16 %v660_v3  ;;  %v522_v3 = vld [vmem:[%s8436_s29 + $0x9e0] sm:$0xff] }
 0x185   : > { %2896 = vmatpush2.bf16.msra.mxu1 %v1192_v12  ;;  %2912 = vmatprep.subr.bf16.mxu0 %v1557_v17  ;;  %v1725_v12 = vunpack.c.h.s8.bf16 %v605_v11  ;;  %v604_v17 = vld [vmem:[%s8436_s29 + $0xc70] sm:$0xff] }
 0x186   : > { %2897 = vmatprep.subr.bf16.mxu1 %v1165_v13  ;;  %v2229_v13 = vunpack.c.h.s8.bf16 %v857_v8  ;;  %v1724_v15 = vunpack.c.h.s8.bf16 %v604_v17  ;;  %v1696_v21 = vunpack.c.l.s8.bf16 %v604_v17 }
 0x187   : > { %2816 = vmatmul.mubr.bf16.vlgmr.msra.gmra.mxu0 %v8711_v22 }
 0x188   : > { %2913 = vmatpush1.bf16.msra.mxu0 %v1556_v16  ;;  %2944 = vmatprep.mubr.bf16.mxu0 %v8719_v29  ;;  %v1697_v16 = vunpack.c.l.s8.bf16 %v605_v11  ;;  %v271_v11 = vld [vmem:[%s8436_s29 + $0x208] sm:$0xff] }
 0x189   : > { %2898 = vmatpush2.bf16.msra.mxu1 %v1164_v25  ;;  %2914 = vmatprep.subr.bf16.mxu0 %v1529_v19  ;;  %v2228_v25 = vunpack.c.h.s8.bf16 %v856_v14  ;;  %v577_v19 = vld [vmem:[%s8436_s29 + $0xb98] sm:$0xff] }
 0x18a   : > { %2899 = vmatprep.subr.bf16.mxu1 %v1137_v18  ;;  %v2201_v18 = vunpack.c.l.s8.bf16 %v857_v8  ;;  %v495_v8 = vld [vmem:[%s8436_s29 + $0x908] sm:$0xff] }
 0x18b   : > { %v1503_v17 = vunpack.c.h.s8.bf16 %v495_v8 }
 0x18c   : > { %2915 = vmatpush1.bf16.msra.mxu0 %v1528_v24  ;;  %v1669_v24 = vunpack.c.h.s8.bf16 %v577_v19 }
 0x18d   : > { %2900 = vmatpush2.bf16.msra.mxu1 %v1136_v23  ;;  %2916 = vmatprep.subr.bf16.mxu0 %v1501_v26  ;;  %v2200_v23 = vunpack.c.l.s8.bf16 %v856_v14  ;;  %v2173_v26 = vunpack.c.h.s8.bf16 %v829_v20  ;;  %v270_v14 = vld [vmem:[%s8436_s29 + $0x200] sm:$0xff] }
 0x18e   : > { %2955 = vmatprep.subr.bf16.mxu1 %v2005_v31  ;;  %v576_v31 = vld [vmem:[%s8436_s29 + $0xb90] sm:$0xff] }
 0x18f   : > { %v1668_v28 = vunpack.c.h.s8.bf16 %v576_v31  ;;  %v1640_v36 = vunpack.c.l.s8.bf16 %v576_v31  ;;  %v242_v31 = vld [vmem:[%s8436_s29 + $0x120] sm:$0xff] }
 0x190   : > { %2902 = vmatmul.mubr.bf16.vlgmr.msra.gmra.mxu1 %v8662_v49  ;;  %2917 = vmatpush1.bf16.msra.mxu0 %v1500_v30  ;;  %v1417_v49 = vunpack.c.l.s8.bf16 %v465_v35  ;;  %v2172_v30 = vunpack.c.h.s8.bf16 %v828_v27  ;;  %v801_v35 = vld [vmem:[%s8436_s29 + $0x1298] sm:$0xff] }
 0x191   : > { %2956 = vmatpush1.bf16.msra.mxu1 %v2004_v32  ;;  %2918 = vmatprep.subr.bf16.mxu0 %v1473_v33  ;;  %v1641_v32 = vunpack.c.l.s8.bf16 %v577_v19  ;;  %v2145_v33 = vunpack.c.l.s8.bf16 %v829_v20  ;;  %v1475_v19 = vunpack.c.l.s8.bf16 %v495_v8  ;;  %v243_v20 = vld [vmem:[%s8436_s29 + $0x128] sm:$0xff] }
 0x192   : > { %2957 = vmatprep.subr.bf16.mxu1 %v1977_v34  ;;  %2987 = vmatprep.mubr.bf16.mxu1 %v8672_v56  ;;  %v1389_v56 = vunpack.c.h.s8.bf16 %v437_v46  ;;  %v549_v34 = vld [vmem:[%s8436_s29 + $0xab8] sm:$0xff]  ;;  %v579_v8 = vld [vmem:[%s8436_s29 + $0xba8] sm:$0xff] }
 0x193   : > { %v885_v46 = vld [vmem:[%s8436_s29 + $0x1538] sm:$0xff] }
 0x194   : > { %2919 = vmatpush1.bf16.msra.mxu0 %v1472_v37  ;;  %v2144_v37 = vunpack.c.l.s8.bf16 %v828_v27  ;;  %v466_v27 = vld [vmem:[%s8436_s29 + $0x820] sm:$0xff] }
 0x195   : > { %2958 = vmatpush1.bf16.msra.mxu1 %v1976_v38  ;;  %2920 = vmatprep.subr.bf16.mxu0 %v1445_v39  ;;  %v1613_v38 = vunpack.c.h.s8.bf16 %v549_v34  ;;  %v2117_v39 = vunpack.c.h.s8.bf16 %v801_v35 }
 0x196   : > { %2959 = vmatprep.subr.bf16.mxu1 %v1949_v41  ;;  %v548_v41 = vld [vmem:[%s8436_s29 + $0xab0] sm:$0xff] }
 0x197   : > { %v1612_v43 = vunpack.c.h.s8.bf16 %v548_v41  ;;  %v1584_v47 = vunpack.c.l.s8.bf16 %v548_v41  ;;  %v214_v41 = vld [vmem:[%s8436_s29 + $0x40] sm:$0xff] }
 0x198   : > { %2921 = vmatpush1.bf16.msra.mxu0 %v1444_v44  ;;  %v2116_v44 = vunpack.c.h.s8.bf16 %v800_v42 }
 0x199   : > { %2960 = vmatpush1.bf16.msra.mxu1 %v1948_v45  ;;  %2922 = vmatprep.subr.bf16.mxu0 %v1417_v49  ;;  %v1585_v45 = vunpack.c.l.s8.bf16 %v549_v34  ;;  %v2089_v49 = vunpack.c.l.s8.bf16 %v801_v35  ;;  %v215_v34 = vld [vmem:[%s8436_s29 + $0x48] sm:$0xff] }
 0x19a   : > { %2961 = vmatprep.subr.bf16.mxu1 %v1921_v40  ;;  %v773_v40 = vld [vmem:[%s8436_s29 + $0x11b8] sm:$0xff]  ;;  %v439_v35 = vld [vmem:[%s8436_s29 + $0x748] sm:$0xff] }
 0x19c   : > { %2923 = vmatpush1.bf16.msra.mxu0 %v1416_v48  ;;  %v2088_v48 = vunpack.c.l.s8.bf16 %v800_v42  ;;  %v438_v42 = vld [vmem:[%s8436_s29 + $0x740] sm:$0xff] }
 0x19d   : > { %2962 = vmatpush1.bf16.msra.mxu1 %v1920_v51  ;;  %2924 = vmatprep.subr.bf16.mxu0 %v1389_v56  ;;  %v2061_v51 = vunpack.c.h.s8.bf16 %v773_v40  ;;  %v2285_v56 = vunpack.c.h.s8.bf16 %v885_v46 }
 0x19e   : > { %2963 = vmatprep.subr.bf16.mxu1 %v1893_v52  ;;  %v772_v52 = vld [vmem:[%s8436_s29 + $0x11b0] sm:$0xff] }
 0x19f   : > { %v2060_v54 = vunpack.c.h.s8.bf16 %v772_v52 }
 0x1a0   : > { %2925 = vmatpush1.bf16.msra.mxu0 %v1388_v50  ;;  %v2284_v50 = vunpack.c.h.s8.bf16 %v884_v53 }
 0x1a1   : > { %2964 = vmatpush1.bf16.msra.mxu1 %v1892_v55  ;;  %2926 = vmatprep.subr.bf16.mxu0 %v1361_v62  ;;  %v2033_v55 = vunpack.c.l.s8.bf16 %v773_v40  ;;  %v2257_v62 = vunpack.c.l.s8.bf16 %v885_v46  ;;  %v411_v40 = vld [vmem:[%s8436_s29 + $0x668] sm:$0xff] }
 0x1a2   : > { %2965 = vmatprep.subr.bf16.mxu1 %v1865_v57  ;;  %v299_v57 = vld [vmem:[%s8436_s29 + $0x2e8] sm:$0xff] }
 0x1a3   : > { %v635_v46 = vld [vmem:[%s8436_s29 + $0xd68] sm:$0xff] }
 0x1a4   : > { %2927 = vmatpush1.bf16.msra.mxu0 %v1360_v61  ;;  %v2032_v61 = vunpack.c.l.s8.bf16 %v772_v52  ;;  %v410_v52 = vld [vmem:[%s8436_s29 + $0x660] sm:$0xff] }
 0x1a5   : > { %2966 = vmatpush1.bf16.msra.mxu1 %v1864_v63  ;;  %2928 = vmatprep.subr.bf16.mxu0 %v1781_v0  ;;  %v2256_v63 = vunpack.c.l.s8.bf16 %v884_v53  ;;  %v1111_v0 = vunpack.c.h.s8.bf16 %v299_v57  ;;  %v634_v53 = vld [vmem:[%s8436_s29 + $0xd60] sm:$0xff] }
 0x1a6   : > { %2967 = vmatprep.subr.bf16.mxu1 %v1837_v1  ;;  %v1559_v1 = vunpack.c.h.s8.bf16 %v523_v59 }
 0x1a8   : > { %2929 = vmatpush2.bf16.msra.mxu0 %v1780_v4  ;;  %v1110_v4 = vunpack.c.h.s8.bf16 %v298_v2 }
 0x1a9   : > { %2968 = vmatpush1.bf16.msra.mxu1 %v1836_v5  ;;  %2930 = vmatprep.subr.bf16.mxu0 %v1753_v6  ;;  %v1558_v5 = vunpack.c.h.s8.bf16 %v522_v3  ;;  %v1083_v6 = vunpack.c.l.s8.bf16 %v299_v57  ;;  %v383_v57 = vld [vmem:[%s8436_s29 + $0x588] sm:$0xff] }
 0x1aa   : > { %2969 = vmatprep.subr.bf16.mxu1 %v1809_v7  ;;  %v1531_v7 = vunpack.c.l.s8.bf16 %v523_v59  ;;  %v607_v59 = vld [vmem:[%s8436_s29 + $0xc88] sm:$0xff] }
 0x1ac   : > { %2931 = vmatpush2.bf16.msra.mxu0 %v1752_v9  ;;  %v8769_v9 = vld [vmem:[%s10423_s0 + $0x18] ss:$28 sps:$4 sm:$0xff]  }
 0x1ad   : > { %2970 = vmatpush1.bf16.msra.mxu1 %v1808_v10  ;;  %2932 = vmatprep.subr.bf16.mxu0 %v1725_v12  ;;  %v1082_v10 = vunpack.c.l.s8.bf16 %v298_v2  ;;  %v1530_v12 = vunpack.c.l.s8.bf16 %v522_v3  ;;  %v382_v2 = vld [vmem:[%s8436_s29 + $0x580] sm:$0xff] }
 0x1ae   : > { %2971 = vmatprep.subr.bf16.mxu1 %v2229_v13  ;;  %v1055_v13 = vunpack.c.h.s8.bf16 %v271_v11  ;;  %v606_v3 = vld [vmem:[%s8436_s29 + $0xc80] sm:$0xff] }
 0x1b0   : > { %2933 = vmatpush2.bf16.msra.mxu0 %v1724_v15  ;;  %v8778_v15 = vld [vmem:[%s10423_s0 + $0x4] ss:$28 sps:$4 sm:$0xff]  }
 0x1b1   : > { %2972 = vmatpush2.bf16.msra.mxu1 %v2228_v25  ;;  %2934 = vmatprep.subr.bf16.mxu0 %v1697_v16  ;;  %v1054_v25 = vunpack.c.h.s8.bf16 %v270_v14 }
 0x1b2   : > { %2973 = vmatprep.subr.bf16.mxu1 %v2201_v18  ;;  %v1027_v18 = vunpack.c.l.s8.bf16 %v271_v11  ;;  %v355_v11 = vld [vmem:[%s8436_s29 + $0x4a8] sm:$0xff] }
 0x1b4   : > { %2935 = vmatpush2.bf16.msra.mxu0 %v1696_v21  ;;  %v467_v21 = vld [vmem:[%s8436_s29 + $0x828] sm:$0xff] }
 0x1b5   : > { %2974 = vmatpush2.bf16.msra.mxu1 %v2200_v23  ;;  %2936 = vmatprep.subr.bf16.mxu0 %v1669_v24  ;;  %v1026_v23 = vunpack.c.l.s8.bf16 %v270_v14  ;;  %v354_v14 = vld [vmem:[%s8436_s29 + $0x4a0] sm:$0xff] }
 0x1b6   : > { %2975 = vmatprep.subr.bf16.mxu1 %v2173_v26  ;;  %v1447_v26 = vunpack.c.h.s8.bf16 %v467_v21 }
 0x1b8   : > { %2937 = vmatpush2.bf16.msra.mxu0 %v1668_v28  ;;  %v998_v28 = vunpack.c.h.s8.bf16 %v242_v31 }
 0x1b9   : > { %2976 = vmatpush2.bf16.msra.mxu1 %v2172_v30  ;;  %2938 = vmatprep.subr.bf16.mxu0 %v1641_v32  ;;  %v1446_v30 = vunpack.c.h.s8.bf16 %v466_v27  ;;  %v971_v32 = vunpack.c.l.s8.bf16 %v243_v20 }
 0x1ba   : > { %2977 = vmatprep.subr.bf16.mxu1 %v2145_v33  ;;  %v1419_v33 = vunpack.c.l.s8.bf16 %v467_v21  ;;  %v551_v21 = vld [vmem:[%s8436_s29 + $0xac8] sm:$0xff] }
 0x1bc   : > { %2939 = vmatpush2.bf16.msra.mxu0 %v1640_v36  ;;  %v970_v36 = vunpack.c.l.s8.bf16 %v242_v31  ;;  %v326_v31 = vld [vmem:[%s8436_s29 + $0x3c0] sm:$0xff] }
 0x1bd   : > { %2978 = vmatpush2.bf16.msra.mxu1 %v2144_v37  ;;  %2940 = vmatprep.subr.bf16.mxu0 %v1613_v38  ;;  %v1418_v37 = vunpack.c.l.s8.bf16 %v466_v27  ;;  %v943_v38 = vunpack.c.h.s8.bf16 %v215_v34  ;;  %v550_v27 = vld [vmem:[%s8436_s29 + $0xac0] sm:$0xff] }
 0x1be   : > { %2979 = vmatprep.subr.bf16.mxu1 %v2117_v39  ;;  %v1391_v39 = vunpack.c.h.s8.bf16 %v439_v35 }
 0x1c0   : > { %2941 = vmatpush2.bf16.msra.mxu0 %v1612_v43  ;;  %v942_v43 = vunpack.c.h.s8.bf16 %v214_v41 }
 0x1c1   : > { %2980 = vmatpush2.bf16.msra.mxu1 %v2116_v44  ;;  %2942 = vmatprep.subr.bf16.mxu0 %v1585_v45  ;;  %v1390_v44 = vunpack.c.h.s8.bf16 %v438_v42  ;;  %v915_v45 = vunpack.c.l.s8.bf16 %v215_v34  ;;  %v747_v34 = vld [vmem:[%s8436_s29 + $0x10e8] sm:$0xff] }
 0x1c2   : > { %2981 = vmatprep.subr.bf16.mxu1 %v2089_v49  ;;  %v1363_v49 = vunpack.c.l.s8.bf16 %v439_v35  ;;  %v887_v35 = vld [vmem:[%s8436_s29 + $0x1548] sm:$0xff] }
 0x1c4   : > { %2943 = vmatpush2.bf16.msra.mxu0 %v1584_v47  ;;  %v914_v47 = vunpack.c.l.s8.bf16 %v214_v41  ;;  %v746_v41 = vld [vmem:[%s8436_s29 + $0x10e0] sm:$0xff] }
 0x1c5   : > { %2982 = vmatpush2.bf16.msra.mxu1 %v2088_v48  ;;  %3010 = vmatprep.subr.bf16.mxu0 %v2285_v56  ;;  %v1362_v48 = vunpack.c.l.s8.bf16 %v438_v42  ;;  %v1783_v56 = vunpack.c.h.s8.bf16 %v635_v46  ;;  %v886_v42 = vld [vmem:[%s8436_s29 + $0x1540] sm:$0xff] }
 0x1c6   : > { %2983 = vmatprep.subr.bf16.mxu1 %v2061_v51  ;;  %v1335_v51 = vunpack.c.h.s8.bf16 %v411_v40 }
 0x1c7   : > { %2945 = vmatmul.mubr.bf16.vlgmr.msra.gmra.mxu0 %v8757_v60 }
 0x1c8   : > { %3011 = vmatpush1.bf16.msra.mxu0 %v2284_v50  ;;  %3030 = vmatprep.mubr.bf16.mxu0 %v10428_v58  ;;  %v1782_v50 = vunpack.c.h.s8.bf16 %v634_v53 }
 0x1c9   : > { %2984 = vmatpush2.bf16.msra.mxu1 %v2060_v54  ;;  %3012 = vmatprep.subr.bf16.mxu0 %v2257_v62  ;;  %v1334_v54 = vunpack.c.h.s8.bf16 %v410_v52  ;;  %v1755_v62 = vunpack.c.l.s8.bf16 %v635_v46  ;;  %v301_v46 = vld [vmem:[%s8436_s29 + $0x2f8] sm:$0xff] }
 0x1ca   : > { %2985 = vmatprep.subr.bf16.mxu1 %v2033_v55  ;;  %v1307_v55 = vunpack.c.l.s8.bf16 %v411_v40  ;;  %v719_v40 = vld [vmem:[%s8436_s29 + $0x1008] sm:$0xff] }
 0x1cc   : > { %3013 = vmatpush1.bf16.msra.mxu0 %v2256_v63  ;;  %v1754_v63 = vunpack.c.l.s8.bf16 %v634_v53  ;;  %v718_v53 = vld [vmem:[%s8436_s29 + $0x1000] sm:$0xff] }
 0x1cd   : > { %2986 = vmatpush2.bf16.msra.mxu1 %v2032_v61  ;;  %3041 = vmatprep.subr.bf16.mxu0 %v1111_v0  ;;  %v1306_v61 = vunpack.c.l.s8.bf16 %v410_v52  ;;  %v1279_v0 = vunpack.c.h.s8.bf16 %v383_v57  ;;  %v1113_v52 = vunpack.c.h.s8.bf16 %v301_v46 }
 0x1ce   : > { %3084 = vmatprep.subr.bf16.mxu1 %v1559_v1  ;;  %v1727_v1 = vunpack.c.h.s8.bf16 %v607_v59 }
 0x1cf   : > { %7398 = vmatmul.mubr.msk.bf16.vlgmr.msra.gmra.mxu0 %vm2349_vm1, %v8769_v9 }
 0x1d0   : > { %2988 = vmatmul.mubr.bf16.vlgmr.msra.gmra.mxu1 %v8711_v22  ;;  %3042 = vmatpush1.bf16.msra.mxu0 %v1110_v4  ;;  %v494_v22 = vld [vmem:[%s8436_s29 + $0x900] sm:$0xff]  ;;  %v1278_v4 = vunpack.c.h.s8.bf16 %v382_v2 }
 0x1d1   : > { %3085 = vmatpush1.bf16.msra.mxu1 %v1558_v5  ;;  %3043 = vmatprep.subr.bf16.mxu0 %v1083_v6  ;;  %v1502_v16 = vunpack.c.h.s8.bf16 %v494_v22  ;;  %v1474_v24 = vunpack.c.l.s8.bf16 %v494_v22  ;;  %v1726_v5 = vunpack.c.h.s8.bf16 %v606_v3  ;;  %v1251_v6 = vunpack.c.l.s8.bf16 %v383_v57  ;;  %v578_v22 = vld [vmem:[%s8436_s29 + $0xba0] sm:$0xff] }
 0x1d2   : > { %3086 = vmatprep.subr.bf16.mxu1 %v1531_v7  ;;  %3073 = vmatprep.mubr.bf16.mxu0 %v8778_v15  ;;  %v1699_v7 = vunpack.c.l.s8.bf16 %v607_v59  ;;  %v1085_v57 = vunpack.c.l.s8.bf16 %v301_v46  ;;  %v691_v59 = vld [vmem:[%s8436_s29 + $0xf28] sm:$0xff] }
 0x1d3   : > { %3116 = vmatprep.mubr.bf16.mxu1 %v8719_v29  ;;  %v999_v29 = vunpack.c.h.s8.bf16 %v243_v20  ;;  %v327_v20 = vld [vmem:[%s8436_s29 + $0x3c8] sm:$0xff] }
 0x1d4   : > { %3044 = vmatpush1.bf16.msra.mxu0 %v1082_v10  ;;  %v1250_v10 = vunpack.c.l.s8.bf16 %v382_v2 }
 0x1d5   : > { %3087 = vmatpush1.bf16.msra.mxu1 %v1530_v12  ;;  %3045 = vmatprep.subr.bf16.mxu0 %v1055_v13  ;;  %v1698_v12 = vunpack.c.l.s8.bf16 %v606_v3  ;;  %v1223_v13 = vunpack.c.h.s8.bf16 %v355_v11  ;;  %v690_v3 = vld [vmem:[%s8436_s29 + $0xf20] sm:$0xff] }
 0x1d6   : > { %3088 = vmatprep.subr.bf16.mxu1 %v1503_v17  ;;  %v1671_v17 = vunpack.c.h.s8.bf16 %v579_v8 }
 0x1d8   : > { %3046 = vmatpush1.bf16.msra.mxu0 %v1054_v25  ;;  %v1222_v25 = vunpack.c.h.s8.bf16 %v354_v14 }
 0x1d9   : > { %3089 = vmatpush1.bf16.msra.mxu1 %v1502_v16  ;;  %3047 = vmatprep.subr.bf16.mxu0 %v1027_v18  ;;  %v1670_v16 = vunpack.c.h.s8.bf16 %v578_v22  ;;  %v1195_v18 = vunpack.c.l.s8.bf16 %v355_v11  ;;  %v663_v11 = vld [vmem:[%s8436_s29 + $0xe48] sm:$0xff] }
 0x1da   : > { %3090 = vmatprep.subr.bf16.mxu1 %v1475_v19  ;;  %v1643_v19 = vunpack.c.l.s8.bf16 %v579_v8  ;;  %v245_v8 = vld [vmem:[%s8436_s29 + $0x138] sm:$0xff] }
 0x1dc   : > { %3048 = vmatpush1.bf16.msra.mxu0 %v1026_v23  ;;  %v1194_v23 = vunpack.c.l.s8.bf16 %v354_v14  ;;  %v244_v14 = vld [vmem:[%s8436_s29 + $0x130] sm:$0xff] }
 0x1dd   : > { %3091 = vmatpush1.bf16.msra.mxu1 %v1474_v24  ;;  %3049 = vmatprep.subr.bf16.mxu0 %v999_v29  ;;  %v1642_v24 = vunpack.c.l.s8.bf16 %v578_v22  ;;  %v1167_v29 = vunpack.c.h.s8.bf16 %v327_v20 }
 0x1de   : > { %3092 = vmatprep.subr.bf16.mxu1 %v1447_v26  ;;  %v1615_v26 = vunpack.c.h.s8.bf16 %v551_v21 }
 0x1e0   : > { %3050 = vmatpush1.bf16.msra.mxu0 %v998_v28  ;;  %v1166_v28 = vunpack.c.h.s8.bf16 %v326_v31 }
 0x1e1   : > { %3093 = vmatpush1.bf16.msra.mxu1 %v1446_v30  ;;  %3051 = vmatprep.subr.bf16.mxu0 %v971_v32  ;;  %v1614_v30 = vunpack.c.h.s8.bf16 %v550_v27  ;;  %v1139_v32 = vunpack.c.l.s8.bf16 %v327_v20  ;;  %v217_v20 = vld [vmem:[%s8436_s29 + $0x58] sm:$0xff] }
 0x1e2   : > { %3094 = vmatprep.subr.bf16.mxu1 %v1419_v33  ;;  %v1587_v33 = vunpack.c.l.s8.bf16 %v551_v21 }
 0x1e4   : > { %3052 = vmatpush1.bf16.msra.mxu0 %v970_v36  ;;  %v1138_v36 = vunpack.c.l.s8.bf16 %v326_v31  ;;  %v216_v31 = vld [vmem:[%s8436_s29 + $0x50] sm:$0xff] }
 0x1e5   : > { %3095 = vmatpush1.bf16.msra.mxu1 %v1418_v37  ;;  %3053 = vmatprep.subr.bf16.mxu0 %v943_v38  ;;  %v1586_v37 = vunpack.c.l.s8.bf16 %v550_v27  ;;  %v2007_v38 = vunpack.c.h.s8.bf16 %v747_v34 }
 0x1e6   : > { %3096 = vmatprep.subr.bf16.mxu1 %v1391_v39  ;;  %v2287_v39 = vunpack.c.h.s8.bf16 %v887_v35 }
 0x1e8   : > { %3054 = vmatpush1.bf16.msra.mxu0 %v942_v43  ;;  %v2006_v43 = vunpack.c.h.s8.bf16 %v746_v41 }
 0x1e9   : > { %3097 = vmatpush1.bf16.msra.mxu1 %v1390_v44  ;;  %3055 = vmatprep.subr.bf16.mxu0 %v915_v45  ;;  %v2286_v44 = vunpack.c.h.s8.bf16 %v886_v42  ;;  %v1979_v45 = vunpack.c.l.s8.bf16 %v747_v34  ;;  %v413_v34 = vld [vmem:[%s8436_s29 + $0x678] sm:$0xff] }
 0x1ea   : > { %3098 = vmatprep.subr.bf16.mxu1 %v1363_v49  ;;  %v2259_v49 = vunpack.c.l.s8.bf16 %v887_v35 }
 0x1ec   : > { %3056 = vmatpush1.bf16.msra.mxu0 %v914_v47  ;;  %v8815_v47 = vld [vmem:[%s10423_s0] ss:$28 sps:$4 sm:$0xff]  }
 0x1ed   : > { %3099 = vmatpush1.bf16.msra.mxu1 %v1362_v48  ;;  %3057 = vmatprep.subr.bf16.mxu0 %v1335_v51  ;;  %v1978_v48 = vunpack.c.l.s8.bf16 %v746_v41  ;;  %v2258_v51 = vunpack.c.l.s8.bf16 %v886_v42  ;;  %v412_v41 = vld [vmem:[%s8436_s29 + $0x670] sm:$0xff] }
 0x1ee   : > { %3100 = vmatprep.subr.bf16.mxu1 %v1783_v56  ;;  %v1951_v56 = vunpack.c.h.s8.bf16 %v719_v40 }
 0x1f0   : > { %3058 = vmatpush2.bf16.msra.mxu0 %v1334_v54  ;;  %v300_v54 = vld [vmem:[%s8436_s29 + $0x2f0] sm:$0xff] }
 0x1f1   : > { %3101 = vmatpush2.bf16.msra.mxu1 %v1782_v50  ;;  %3059 = vmatprep.subr.bf16.mxu0 %v1307_v55  ;;  %v8825_v50 = vld [vmem:[%s10423_s0 + $0x14] ss:$28 sps:$4 sm:$0xff]   ;;  %v1112_v55 = vunpack.c.h.s8.bf16 %v300_v54 }
 0x1f2   : > { %3102 = vmatprep.subr.bf16.mxu1 %v1755_v62  ;;  %v1923_v62 = vunpack.c.l.s8.bf16 %v719_v40  ;;  %v385_v40 = vld [vmem:[%s8436_s29 + $0x598] sm:$0xff] }
 0x1f4   : > { %3060 = vmatpush2.bf16.msra.mxu0 %v1306_v61  ;;  %v273_v61 = vld [vmem:[%s8436_s29 + $0x218] sm:$0xff] }
 0x1f5   : > { %3103 = vmatpush2.bf16.msra.mxu1 %v1754_v63  ;;  %3061 = vmatprep.subr.bf16.mxu0 %v1279_v0  ;;  %v1922_v63 = vunpack.c.l.s8.bf16 %v718_v53  ;;  %v1084_v0 = vunpack.c.l.s8.bf16 %v300_v54  ;;  %v1057_v2 = vunpack.c.h.s8.bf16 %v273_v61 }
 0x1f6   : > { %3104 = vmatprep.subr.bf16.mxu1 %v1727_v1  ;;  %v1895_v1 = vunpack.c.h.s8.bf16 %v691_v59 }
 0x1f8   : > { %3062 = vmatpush2.bf16.msra.mxu0 %v1278_v4  ;;  %v272_v4 = vld [vmem:[%s8436_s29 + $0x210] sm:$0xff] }
 0x1f9   : > { %3105 = vmatpush2.bf16.msra.mxu1 %v1726_v5  ;;  %3063 = vmatprep.subr.bf16.mxu0 %v1251_v6  ;;  %v1894_v5 = vunpack.c.h.s8.bf16 %v690_v3  ;;  %v1056_v6 = vunpack.c.h.s8.bf16 %v272_v4 }
 0x1fa   : > { %3106 = vmatprep.subr.bf16.mxu1 %v1699_v7  ;;  %v1029_v7 = vunpack.c.l.s8.bf16 %v273_v61 }
 0x1fc   : > { %3064 = vmatpush2.bf16.msra.mxu0 %v1250_v10  ;;  %v1866_v10 = vunpack.c.l.s8.bf16 %v690_v3  ;;  %v356_v3 = vld [vmem:[%s8436_s29 + $0x4b0] sm:$0xff] }
 0x1fd   : > { %3107 = vmatpush2.bf16.msra.mxu1 %v1698_v12  ;;  %3065 = vmatprep.subr.bf16.mxu0 %v1223_v13  ;;  %v1028_v12 = vunpack.c.l.s8.bf16 %v272_v4  ;;  %v1001_v13 = vunpack.c.h.s8.bf16 %v245_v8 }
 0x1fe   : > { %3108 = vmatprep.subr.bf16.mxu1 %v1671_v17  ;;  %v662_v17 = vld [vmem:[%s8436_s29 + $0xe40] sm:$0xff] }
 0x1ff   : > { %v1838_v22 = vunpack.c.h.s8.bf16 %v662_v17  ;;  %v1810_v21 = vunpack.c.l.s8.bf16 %v662_v17  ;;  %v524_v17 = vld [vmem:[%s8436_s29 + $0x9f0] sm:$0xff] }
 0x200   : > { %3066 = vmatpush2.bf16.msra.mxu0 %v1222_v25  ;;  %v1000_v25 = vunpack.c.h.s8.bf16 %v244_v14 }
 0x201   : > { %3109 = vmatpush2.bf16.msra.mxu1 %v1670_v16  ;;  %3067 = vmatprep.subr.bf16.mxu0 %v1195_v18  ;;  %v1811_v16 = vunpack.c.l.s8.bf16 %v663_v11  ;;  %v973_v18 = vunpack.c.l.s8.bf16 %v245_v8 }
 0x202   : > { %3110 = vmatprep.subr.bf16.mxu1 %v1643_v19  ;;  %v859_v19 = vld [vmem:[%s8436_s29 + $0x1468] sm:$0xff] }
 0x204   : > { %3068 = vmatpush2.bf16.msra.mxu0 %v1194_v23  ;;  %v972_v23 = vunpack.c.l.s8.bf16 %v244_v14 }
 0x205   : > { %3111 = vmatpush2.bf16.msra.mxu1 %v1642_v24  ;;  %3069 = vmatprep.subr.bf16.mxu0 %v1167_v29  ;;  %v2231_v24 = vunpack.c.h.s8.bf16 %v859_v19  ;;  %v945_v29 = vunpack.c.h.s8.bf16 %v217_v20 }
 0x206   : > { %3112 = vmatprep.subr.bf16.mxu1 %v1615_v26  ;;  %v858_v26 = vld [vmem:[%s8436_s29 + $0x1460] sm:$0xff] }
 0x207   : > { %v2230_v27 = vunpack.c.h.s8.bf16 %v858_v26  ;;  %v2202_v35 = vunpack.c.l.s8.bf16 %v858_v26  ;;  %v496_v26 = vld [vmem:[%s8436_s29 + $0x910] sm:$0xff] }
 0x208   : > { %3070 = vmatpush2.bf16.msra.mxu0 %v1166_v28  ;;  %v944_v28 = vunpack.c.h.s8.bf16 %v216_v31 }
 0x209   : > { %3113 = vmatpush2.bf16.msra.mxu1 %v1614_v30  ;;  %3071 = vmatprep.subr.bf16.mxu0 %v1139_v32  ;;  %v2203_v30 = vunpack.c.l.s8.bf16 %v859_v19  ;;  %v917_v32 = vunpack.c.l.s8.bf16 %v217_v20  ;;  %v749_v19 = vld [vmem:[%s8436_s29 + $0x10f8] sm:$0xff]  ;;  %v8864_v20 = vld [vmem:[%s10423_s0 + $0x10] ss:$28 sps:$4 sm:$0xff]  }
 0x20a   : > { %3114 = vmatprep.subr.bf16.mxu1 %v1587_v33  ;;  %v831_v33 = vld [vmem:[%s8436_s29 + $0x1388] sm:$0xff] }
 0x20c   : > { %3072 = vmatpush2.bf16.msra.mxu0 %v1138_v36  ;;  %v916_v36 = vunpack.c.l.s8.bf16 %v216_v31  ;;  %v748_v31 = vld [vmem:[%s8436_s29 + $0x10f0] sm:$0xff] }
 0x20d   : > { %3115 = vmatpush2.bf16.msra.mxu1 %v1586_v37  ;;  %3127 = vmatprep.subr.bf16.mxu0 %v2007_v38  ;;  %v2175_v37 = vunpack.c.h.s8.bf16 %v831_v33  ;;  %v1337_v38 = vunpack.c.h.s8.bf16 %v413_v34 }
 0x20e   : > { %3182 = vmatprep.subr.bf16.mxu1 %v2287_v39  ;;  %v830_v39 = vld [vmem:[%s8436_s29 + $0x1380] sm:$0xff] }
 0x20f   : > { %3074 = vmatmul.mubr.bf16.vlgmr.msra.gmra.mxu0 %v8815_v47  ;;  %v2174_v42 = vunpack.c.h.s8.bf16 %v830_v39  ;;  %v2146_v46 = vunpack.c.l.s8.bf16 %v830_v39 }
 0x210   : > { %3117 = vmatmul.mubr.bf16.vlgmr.msra.gmra.mxu1 %v8757_v60  ;;  %3128 = vmatpush1.bf16.msra.mxu0 %v2006_v43  ;;  %v1950_v60 = vunpack.c.h.s8.bf16 %v718_v53  ;;  %v1336_v43 = vunpack.c.h.s8.bf16 %v412_v41  ;;  %v384_v53 = vld [vmem:[%s8436_s29 + $0x590] sm:$0xff] }
 0x211   : > { %3183 = vmatpush1.bf16.msra.mxu1 %v2286_v44  ;;  %3129 = vmatprep.subr.bf16.mxu0 %v1979_v45  ;;  %v2147_v44 = vunpack.c.l.s8.bf16 %v831_v33  ;;  %v1309_v45 = vunpack.c.l.s8.bf16 %v413_v34  ;;  %v1981_v33 = vunpack.c.l.s8.bf16 %v749_v19  ;;  %v469_v34 = vld [vmem:[%s8436_s29 + $0x838] sm:$0xff] }
 0x212   : > { %3184 = vmatprep.subr.bf16.mxu1 %v2259_v49  ;;  %3202 = vmatprep.mubr.bf16.mxu1 %v10428_v58  ;;  %v803_v49 = vld [vmem:[%s8436_s29 + $0x12a8] sm:$0xff] }
 0x213   : > { %3159 = vmatprep.mubr.bf16.mxu0 %v8825_v50 }
 0x214   : > { %3130 = vmatpush1.bf16.msra.mxu0 %v1978_v48  ;;  %v1308_v48 = vunpack.c.l.s8.bf16 %v412_v41  ;;  %v468_v41 = vld [vmem:[%s8436_s29 + $0x830] sm:$0xff] }
 0x215   : > { %3185 = vmatpush1.bf16.msra.mxu1 %v2258_v51  ;;  %3131 = vmatprep.subr.bf16.mxu0 %v1951_v56  ;;  %v2119_v51 = vunpack.c.h.s8.bf16 %v803_v49  ;;  %v1281_v56 = vunpack.c.h.s8.bf16 %v385_v40 }
 0x216   : > { %3213 = vmatprep.subr.bf16.mxu1 %v1113_v52  ;;  %v802_v52 = vld [vmem:[%s8436_s29 + $0x12a0] sm:$0xff] }
 0x217   : > { %v2118_v54 = vunpack.c.h.s8.bf16 %v802_v52  ;;  %v2090_v61 = vunpack.c.l.s8.bf16 %v802_v52  ;;  %v692_v52 = vld [vmem:[%s8436_s29 + $0xf30] sm:$0xff] }
 0x218   : > { %7399 = vmatmul.mubr.msk.bf16.vlgmr.msra.gmra.mxu1 %vm2349_vm1, %v8769_v9  ;;  %3132 = vmatpush1.bf16.msra.mxu0 %v1950_v60  ;;  %v1867_v9 = vunpack.c.l.s8.bf16 %v691_v59  ;;  %v1280_v60 = vunpack.c.h.s8.bf16 %v384_v53  ;;  %v357_v59 = vld [vmem:[%s8436_s29 + $0x4b8] sm:$0xff] }
 0x219   : > { %3214 = vmatpush1.bf16.msra.mxu1 %v1112_v55  ;;  %3133 = vmatprep.subr.bf16.mxu0 %v1923_v62  ;;  %v2091_v55 = vunpack.c.l.s8.bf16 %v803_v49  ;;  %v1253_v62 = vunpack.c.l.s8.bf16 %v385_v40  ;;  %v441_v49 = vld [vmem:[%s8436_s29 + $0x758] sm:$0xff] }
 0x21a   : > { %3215 = vmatprep.subr.bf16.mxu1 %v1085_v57  ;;  %3245 = vmatprep.mubr.bf16.mxu1 %v8778_v15  ;;  %v1839_v15 = vunpack.c.h.s8.bf16 %v663_v11  ;;  %v775_v57 = vld [vmem:[%s8436_s29 + $0x11c8] sm:$0xff]  ;;  %v525_v11 = vld [vmem:[%s8436_s29 + $0x9f8] sm:$0xff] }
 0x21b   : > { %v693_v40 = vld [vmem:[%s8436_s29 + $0xf38] sm:$0xff] }
 0x21c   : > { %3134 = vmatpush1.bf16.msra.mxu0 %v1922_v63  ;;  %v1252_v63 = vunpack.c.l.s8.bf16 %v384_v53 }
 0x21d   : > { %3216 = vmatpush1.bf16.msra.mxu1 %v1084_v0  ;;  %3135 = vmatprep.subr.bf16.mxu0 %v1895_v1  ;;  %v2063_v0 = vunpack.c.h.s8.bf16 %v775_v57  ;;  %v1225_v1 = vunpack.c.h.s8.bf16 %v357_v59 }
 0x21e   : > { %3217 = vmatprep.subr.bf16.mxu1 %v1057_v2  ;;  %v774_v2 = vld [vmem:[%s8436_s29 + $0x11c0] sm:$0xff] }
 0x21f   : > { %v2062_v4 = vunpack.c.h.s8.bf16 %v774_v2  ;;  %v2034_v8 = vunpack.c.l.s8.bf16 %v774_v2  ;;  %v664_v2 = vld [vmem:[%s8436_s29 + $0xe50] sm:$0xff] }
 0x220   : > { %3136 = vmatpush1.bf16.msra.mxu0 %v1894_v5  ;;  %v1224_v5 = vunpack.c.h.s8.bf16 %v356_v3 }
 0x221   : > { %3218 = vmatpush1.bf16.msra.mxu1 %v1056_v6  ;;  %3137 = vmatprep.subr.bf16.mxu0 %v1867_v9  ;;  %v2035_v6 = vunpack.c.l.s8.bf16 %v775_v57  ;;  %v1197_v9 = vunpack.c.l.s8.bf16 %v357_v59  ;;  %v665_v57 = vld [vmem:[%s8436_s29 + $0xe58] sm:$0xff] }
 0x222   : > { %3219 = vmatprep.subr.bf16.mxu1 %v1029_v7  ;;  %v329_v7 = vld [vmem:[%s8436_s29 + $0x3d8] sm:$0xff] }
 0x224   : > { %3138 = vmatpush1.bf16.msra.mxu0 %v1866_v10  ;;  %v1196_v10 = vunpack.c.l.s8.bf16 %v356_v3 }
 0x225   : > { %3220 = vmatpush1.bf16.msra.mxu1 %v1028_v12  ;;  %3139 = vmatprep.subr.bf16.mxu0 %v1839_v15  ;;  %v1169_v12 = vunpack.c.h.s8.bf16 %v329_v7  ;;  %v1561_v15 = vunpack.c.h.s8.bf16 %v525_v11 }
 0x226   : > { %3221 = vmatprep.subr.bf16.mxu1 %v1001_v13  ;;  %v328_v13 = vld [vmem:[%s8436_s29 + $0x3d0] sm:$0xff] }
 0x227   : > { %v1168_v14 = vunpack.c.h.s8.bf16 %v328_v13 }
 0x228   : > { %3140 = vmatpush1.bf16.msra.mxu0 %v1838_v22  ;;  %v1560_v22 = vunpack.c.h.s8.bf16 %v524_v17 }
 0x229   : > { %3222 = vmatpush1.bf16.msra.mxu1 %v1000_v25  ;;  %3141 = vmatprep.subr.bf16.mxu0 %v1811_v16  ;;  %v1141_v25 = vunpack.c.l.s8.bf16 %v329_v7  ;;  %v1533_v16 = vunpack.c.l.s8.bf16 %v525_v11  ;;  %v861_v7 = vld [vmem:[%s8436_s29 + $0x1478] sm:$0xff] }
 0x22a   : > { %3223 = vmatprep.subr.bf16.mxu1 %v973_v18  ;;  %v497_v18 = vld [vmem:[%s8436_s29 + $0x918] sm:$0xff] }
 0x22c   : > { %3142 = vmatpush1.bf16.msra.mxu0 %v1810_v21  ;;  %v1140_v21 = vunpack.c.l.s8.bf16 %v328_v13  ;;  %v860_v13 = vld [vmem:[%s8436_s29 + $0x1470] sm:$0xff] }
 0x22d   : > { %3224 = vmatpush1.bf16.msra.mxu1 %v972_v23  ;;  %3143 = vmatprep.subr.bf16.mxu0 %v2231_v24  ;;  %v1532_v23 = vunpack.c.l.s8.bf16 %v524_v17  ;;  %v1505_v24 = vunpack.c.h.s8.bf16 %v497_v18 }
 0x22e   : > { %3225 = vmatprep.subr.bf16.mxu1 %v945_v29  ;;  %v2009_v29 = vunpack.c.h.s8.bf16 %v749_v19 }
 0x230   : > { %3144 = vmatpush2.bf16.msra.mxu0 %v2230_v27  ;;  %v8872_v27 = vld [vmem:[%s10423_s0 + $0xc] ss:$28 sps:$4 sm:$0xff]  }
 0x231   : > { %3226 = vmatpush1.bf16.msra.mxu1 %v944_v28  ;;  %3145 = vmatprep.subr.bf16.mxu0 %v2203_v30  ;;  %v1504_v28 = vunpack.c.h.s8.bf16 %v496_v26  ;;  %v2008_v30 = vunpack.c.h.s8.bf16 %v748_v31 }
 0x232   : > { %3227 = vmatprep.subr.bf16.mxu1 %v917_v32  ;;  %v1477_v32 = vunpack.c.l.s8.bf16 %v497_v18  ;;  %v833_v18 = vld [vmem:[%s8436_s29 + $0x1398] sm:$0xff] }
 0x234   : > { %3146 = vmatpush2.bf16.msra.mxu0 %v2202_v35  ;;  %v721_v35 = vld [vmem:[%s8436_s29 + $0x1018] sm:$0xff] }
 0x235   : > { %3228 = vmatpush1.bf16.msra.mxu1 %v916_v36  ;;  %3147 = vmatprep.subr.bf16.mxu0 %v2175_v37  ;;  %v1476_v36 = vunpack.c.l.s8.bf16 %v496_v26  ;;  %v1980_v37 = vunpack.c.l.s8.bf16 %v748_v31  ;;  %v1953_v39 = vunpack.c.h.s8.bf16 %v721_v35  ;;  %v832_v26 = vld [vmem:[%s8436_s29 + $0x1390] sm:$0xff] }
 0x236   : > { %3229 = vmatprep.subr.bf16.mxu1 %v1337_v38  ;;  %v1449_v38 = vunpack.c.h.s8.bf16 %v469_v34 }
 0x238   : > { %3148 = vmatpush2.bf16.msra.mxu0 %v2174_v42  ;;  %v720_v42 = vld [vmem:[%s8436_s29 + $0x1010] sm:$0xff] }
 0x239   : > { %3230 = vmatpush2.bf16.msra.mxu1 %v1336_v43  ;;  %3149 = vmatprep.subr.bf16.mxu0 %v2147_v44  ;;  %v1448_v43 = vunpack.c.h.s8.bf16 %v468_v41  ;;  %v1952_v44 = vunpack.c.h.s8.bf16 %v720_v42 }
 0x23a   : > { %3231 = vmatprep.subr.bf16.mxu1 %v1309_v45  ;;  %v1925_v45 = vunpack.c.l.s8.bf16 %v721_v35 }
 0x23c   : > { %3150 = vmatpush2.bf16.msra.mxu0 %v2146_v46  ;;  %v1420_v46 = vunpack.c.l.s8.bf16 %v468_v41  ;;  %v804_v41 = vld [vmem:[%s8436_s29 + $0x12b0] sm:$0xff] }
 0x23d   : > { %3232 = vmatpush2.bf16.msra.mxu1 %v1308_v48  ;;  %3151 = vmatprep.subr.bf16.mxu0 %v2119_v51  ;;  %v1924_v48 = vunpack.c.l.s8.bf16 %v720_v42  ;;  %v1897_v51 = vunpack.c.h.s8.bf16 %v693_v40 }
 0x23e   : > { %3233 = vmatprep.subr.bf16.mxu1 %v1281_v56  ;;  %v440_v56 = vld [vmem:[%s8436_s29 + $0x750] sm:$0xff] }
 0x23f   : > { %v1392_v53 = vunpack.c.h.s8.bf16 %v440_v56  ;;  %v1364_v59 = vunpack.c.l.s8.bf16 %v440_v56  ;;  %v888_v56 = vld [vmem:[%s8436_s29 + $0x1550] sm:$0xff] }
 0x240   : > { %3152 = vmatpush2.bf16.msra.mxu0 %v2118_v54  ;;  %v1896_v54 = vunpack.c.h.s8.bf16 %v692_v52 }
 0x241   : > { %3234 = vmatpush2.bf16.msra.mxu1 %v1280_v60  ;;  %3153 = vmatprep.subr.bf16.mxu0 %v2091_v55  ;;  %v1365_v60 = vunpack.c.l.s8.bf16 %v441_v49  ;;  %v1869_v55 = vunpack.c.l.s8.bf16 %v693_v40 }
 0x242   : > { %3235 = vmatprep.subr.bf16.mxu1 %v1253_v62  ;;  %v637_v62 = vld [vmem:[%s8436_s29 + $0xd78] sm:$0xff] }
 0x244   : > { %3154 = vmatpush2.bf16.msra.mxu0 %v2090_v61  ;;  %v1868_v61 = vunpack.c.l.s8.bf16 %v692_v52 }
 0x245   : > { %3236 = vmatpush2.bf16.msra.mxu1 %v1252_v63  ;;  %3155 = vmatprep.subr.bf16.mxu0 %v2063_v0  ;;  %v1785_v63 = vunpack.c.h.s8.bf16 %v637_v62  ;;  %v1841_v0 = vunpack.c.h.s8.bf16 %v665_v57 }
 0x246   : > { %3237 = vmatprep.subr.bf16.mxu1 %v1225_v1  ;;  %v636_v1 = vld [vmem:[%s8436_s29 + $0xd70] sm:$0xff] }
 0x247   : > { %v1784_v3 = vunpack.c.h.s8.bf16 %v636_v1  ;;  %v1756_v11 = vunpack.c.l.s8.bf16 %v636_v1  ;;  %v302_v1 = vld [vmem:[%s8436_s29 + $0x300] sm:$0xff] }
 0x248   : > { %3156 = vmatpush2.bf16.msra.mxu0 %v2062_v4  ;;  %v1840_v4 = vunpack.c.h.s8.bf16 %v664_v2 }
 0x249   : > { %3238 = vmatpush2.bf16.msra.mxu1 %v1224_v5  ;;  %3157 = vmatprep.subr.bf16.mxu0 %v2035_v6  ;;  %v1757_v5 = vunpack.c.l.s8.bf16 %v637_v62  ;;  %v1813_v6 = vunpack.c.l.s8.bf16 %v665_v57  ;;  %v527_v62 = vld [vmem:[%s8436_s29 + $0xa08] sm:$0xff] }
 0x24a   : > { %3239 = vmatprep.subr.bf16.mxu1 %v1197_v9  ;;  %v609_v9 = vld [vmem:[%s8436_s29 + $0xc98] sm:$0xff]  ;;  %v8910_v57 = vld [vmem:[%s10423_s0 + $0x8] ss:$28 sps:$4 sm:$0xff]  }
 0x24c   : > { %3158 = vmatpush2.bf16.msra.mxu0 %v2034_v8  ;;  %v1812_v8 = vunpack.c.l.s8.bf16 %v664_v2  ;;  %v526_v2 = vld [vmem:[%s8436_s29 + $0xa00] sm:$0xff] }
 0x24d   : > { %3240 = vmatpush2.bf16.msra.mxu1 %v1196_v10  ;;  %3256 = vmatprep.subr.bf16.mxu0 %v1561_v15  ;;  %v1729_v10 = vunpack.c.h.s8.bf16 %v609_v9  ;;  %v608_v15 = vld [vmem:[%s8436_s29 + $0xc90] sm:$0xff] }
 0x24e   : > { %3241 = vmatprep.subr.bf16.mxu1 %v1169_v12  ;;  %v2233_v12 = vunpack.c.h.s8.bf16 %v861_v7  ;;  %v1728_v17 = vunpack.c.h.s8.bf16 %v608_v15  ;;  %v1700_v19 = vunpack.c.l.s8.bf16 %v608_v15 }
 0x24f   : > { %3160 = vmatmul.mubr.bf16.vlgmr.msra.gmra.mxu0 %v8864_v20 }
 0x250   : > { %3257 = vmatpush1.bf16.msra.mxu0 %v1560_v22  ;;  %3288 = vmatprep.mubr.bf16.mxu0 %v8872_v27  ;;  %v1701_v22 = vunpack.c.l.s8.bf16 %v609_v9  ;;  %v275_v9 = vld [vmem:[%s8436_s29 + $0x228] sm:$0xff] }
 0x251   : > { %3242 = vmatpush2.bf16.msra.mxu1 %v1168_v14  ;;  %3258 = vmatprep.subr.bf16.mxu0 %v1533_v16  ;;  %v2232_v14 = vunpack.c.h.s8.bf16 %v860_v13  ;;  %v581_v16 = vld [vmem:[%s8436_s29 + $0xbb8] sm:$0xff] }
 0x252   : > { %3243 = vmatprep.subr.bf16.mxu1 %v1141_v25  ;;  %v2205_v25 = vunpack.c.l.s8.bf16 %v861_v7  ;;  %v499_v7 = vld [vmem:[%s8436_s29 + $0x928] sm:$0xff] }
 0x253   : > { %v1507_v15 = vunpack.c.h.s8.bf16 %v499_v7 }
 0x254   : > { %3259 = vmatpush1.bf16.msra.mxu0 %v1532_v23  ;;  %v1673_v23 = vunpack.c.h.s8.bf16 %v581_v16 }
 0x255   : > { %3244 = vmatpush2.bf16.msra.mxu1 %v1140_v21  ;;  %3260 = vmatprep.subr.bf16.mxu0 %v1505_v24  ;;  %v2204_v21 = vunpack.c.l.s8.bf16 %v860_v13  ;;  %v2177_v24 = vunpack.c.h.s8.bf16 %v833_v18  ;;  %v274_v13 = vld [vmem:[%s8436_s29 + $0x220] sm:$0xff] }
 0x256   : > { %3299 = vmatprep.subr.bf16.mxu1 %v2009_v29  ;;  %v580_v29 = vld [vmem:[%s8436_s29 + $0xbb0] sm:$0xff] }
 0x257   : > { %v1672_v31 = vunpack.c.h.s8.bf16 %v580_v29  ;;  %v1644_v35 = vunpack.c.l.s8.bf16 %v580_v29  ;;  %v246_v29 = vld [vmem:[%s8436_s29 + $0x140] sm:$0xff] }
 0x258   : > { %3246 = vmatmul.mubr.bf16.vlgmr.msra.gmra.mxu1 %v8815_v47  ;;  %3261 = vmatpush1.bf16.msra.mxu0 %v1504_v28  ;;  %v1421_v47 = vunpack.c.l.s8.bf16 %v469_v34  ;;  %v2176_v28 = vunpack.c.h.s8.bf16 %v832_v26  ;;  %v805_v34 = vld [vmem:[%s8436_s29 + $0x12b8] sm:$0xff] }
 0x259   : > { %3300 = vmatpush1.bf16.msra.mxu1 %v2008_v30  ;;  %3262 = vmatprep.subr.bf16.mxu0 %v1477_v32  ;;  %v1645_v30 = vunpack.c.l.s8.bf16 %v581_v16  ;;  %v2149_v32 = vunpack.c.l.s8.bf16 %v833_v18  ;;  %v1479_v16 = vunpack.c.l.s8.bf16 %v499_v7  ;;  %v247_v18 = vld [vmem:[%s8436_s29 + $0x148] sm:$0xff] }
 0x25a   : > { %3301 = vmatprep.subr.bf16.mxu1 %v1981_v33  ;;  %3331 = vmatprep.mubr.bf16.mxu1 %v8825_v50  ;;  %v1393_v50 = vunpack.c.h.s8.bf16 %v441_v49  ;;  %v553_v33 = vld [vmem:[%s8436_s29 + $0xad8] sm:$0xff]  ;;  %v583_v7 = vld [vmem:[%s8436_s29 + $0xbc8] sm:$0xff] }
 0x25b   : > { %v889_v49 = vld [vmem:[%s8436_s29 + $0x1558] sm:$0xff] }
 0x25c   : > { %3263 = vmatpush1.bf16.msra.mxu0 %v1476_v36  ;;  %v2148_v36 = vunpack.c.l.s8.bf16 %v832_v26  ;;  %v470_v26 = vld [vmem:[%s8436_s29 + $0x840] sm:$0xff] }
 0x25d   : > { %3302 = vmatpush1.bf16.msra.mxu1 %v1980_v37  ;;  %3264 = vmatprep.subr.bf16.mxu0 %v1449_v38  ;;  %v1617_v37 = vunpack.c.h.s8.bf16 %v553_v33  ;;  %v2121_v38 = vunpack.c.h.s8.bf16 %v805_v34 }
 0x25e   : > { %3303 = vmatprep.subr.bf16.mxu1 %v1953_v39  ;;  %v552_v39 = vld [vmem:[%s8436_s29 + $0xad0] sm:$0xff] }
 0x25f   : > { %v1616_v42 = vunpack.c.h.s8.bf16 %v552_v39  ;;  %v1588_v40 = vunpack.c.l.s8.bf16 %v552_v39  ;;  %v218_v39 = vld [vmem:[%s8436_s29 + $0x60] sm:$0xff] }
 0x260   : > { %3265 = vmatpush1.bf16.msra.mxu0 %v1448_v43  ;;  %v2120_v43 = vunpack.c.h.s8.bf16 %v804_v41 }
 0x261   : > { %3304 = vmatpush1.bf16.msra.mxu1 %v1952_v44  ;;  %3266 = vmatprep.subr.bf16.mxu0 %v1421_v47  ;;  %v1589_v44 = vunpack.c.l.s8.bf16 %v553_v33  ;;  %v2093_v47 = vunpack.c.l.s8.bf16 %v805_v34  ;;  %v219_v33 = vld [vmem:[%s8436_s29 + $0x68] sm:$0xff] }
 0x262   : > { %3305 = vmatprep.subr.bf16.mxu1 %v1925_v45  ;;  %v777_v45 = vld [vmem:[%s8436_s29 + $0x11d8] sm:$0xff]  ;;  %v443_v34 = vld [vmem:[%s8436_s29 + $0x768] sm:$0xff] }
 0x264   : > { %3267 = vmatpush1.bf16.msra.mxu0 %v1420_v46  ;;  %v2092_v46 = vunpack.c.l.s8.bf16 %v804_v41  ;;  %v442_v41 = vld [vmem:[%s8436_s29 + $0x760] sm:$0xff] }
 0x265   : > { %3306 = vmatpush1.bf16.msra.mxu1 %v1924_v48  ;;  %3268 = vmatprep.subr.bf16.mxu0 %v1393_v50  ;;  %v2065_v48 = vunpack.c.h.s8.bf16 %v777_v45  ;;  %v2289_v50 = vunpack.c.h.s8.bf16 %v889_v49 }
 0x266   : > { %3307 = vmatprep.subr.bf16.mxu1 %v1897_v51  ;;  %v776_v51 = vld [vmem:[%s8436_s29 + $0x11d0] sm:$0xff] }
 0x267   : > { %v2064_v52 = vunpack.c.h.s8.bf16 %v776_v51 }
 0x268   : > { %3269 = vmatpush1.bf16.msra.mxu0 %v1392_v53  ;;  %v2288_v53 = vunpack.c.h.s8.bf16 %v888_v56 }
 0x269   : > { %3308 = vmatpush1.bf16.msra.mxu1 %v1896_v54  ;;  %3270 = vmatprep.subr.bf16.mxu0 %v1365_v60  ;;  %v2037_v54 = vunpack.c.l.s8.bf16 %v777_v45  ;;  %v2261_v60 = vunpack.c.l.s8.bf16 %v889_v49  ;;  %v415_v45 = vld [vmem:[%s8436_s29 + $0x688] sm:$0xff] }
 0x26a   : > { %3309 = vmatprep.subr.bf16.mxu1 %v1869_v55  ;;  %v303_v55 = vld [vmem:[%s8436_s29 + $0x308] sm:$0xff] }
 0x26b   : > { %v639_v49 = vld [vmem:[%s8436_s29 + $0xd88] sm:$0xff] }
 0x26c   : > { %3271 = vmatpush1.bf16.msra.mxu0 %v1364_v59  ;;  %v2036_v59 = vunpack.c.l.s8.bf16 %v776_v51  ;;  %v414_v51 = vld [vmem:[%s8436_s29 + $0x680] sm:$0xff] }
 0x26d   : > { %3310 = vmatpush1.bf16.msra.mxu1 %v1868_v61  ;;  %3272 = vmatprep.subr.bf16.mxu0 %v1785_v63  ;;  %v2260_v61 = vunpack.c.l.s8.bf16 %v888_v56  ;;  %v1115_v63 = vunpack.c.h.s8.bf16 %v303_v55  ;;  %v638_v56 = vld [vmem:[%s8436_s29 + $0xd80] sm:$0xff] }
 0x26e   : > { %3311 = vmatprep.subr.bf16.mxu1 %v1841_v0  ;;  %v1563_v0 = vunpack.c.h.s8.bf16 %v527_v62 }
 0x270   : > { %3273 = vmatpush2.bf16.msra.mxu0 %v1784_v3  ;;  %v1114_v3 = vunpack.c.h.s8.bf16 %v302_v1 }
 0x271   : > { %3312 = vmatpush1.bf16.msra.mxu1 %v1840_v4  ;;  %3274 = vmatprep.subr.bf16.mxu0 %v1757_v5  ;;  %v1562_v4 = vunpack.c.h.s8.bf16 %v526_v2  ;;  %v1087_v5 = vunpack.c.l.s8.bf16 %v303_v55  ;;  %v387_v55 = vld [vmem:[%s8436_s29 + $0x5a8] sm:$0xff] }
 0x272   : > { %3313 = vmatprep.subr.bf16.mxu1 %v1813_v6  ;;  %v1535_v6 = vunpack.c.l.s8.bf16 %v527_v62  ;;  %v611_v62 = vld [vmem:[%s8436_s29 + $0xca8] sm:$0xff] }
 0x274   : > { %3275 = vmatpush2.bf16.msra.mxu0 %v1756_v11  ;;  %v8922_v11 = vld [vmem:[%s10423_s0 + $0x18] ss:$28 sps:$4 sm:$0xff]  }
 0x275   : > { %3314 = vmatpush1.bf16.msra.mxu1 %v1812_v8  ;;  %3276 = vmatprep.subr.bf16.mxu0 %v1729_v10  ;;  %v1086_v8 = vunpack.c.l.s8.bf16 %v302_v1  ;;  %v1534_v10 = vunpack.c.l.s8.bf16 %v526_v2  ;;  %v386_v1 = vld [vmem:[%s8436_s29 + $0x5a0] sm:$0xff] }
 0x276   : > { %3315 = vmatprep.subr.bf16.mxu1 %v2233_v12  ;;  %v1059_v12 = vunpack.c.h.s8.bf16 %v275_v9  ;;  %v610_v2 = vld [vmem:[%s8436_s29 + $0xca0] sm:$0xff] }
 0x278   : > { %3277 = vmatpush2.bf16.msra.mxu0 %v1728_v17  ;;  %v8931_v17 = vld [vmem:[%s10423_s0 + $0x4] ss:$28 sps:$4 sm:$0xff]  }
 0x279   : > { %3316 = vmatpush2.bf16.msra.mxu1 %v2232_v14  ;;  %3278 = vmatprep.subr.bf16.mxu0 %v1701_v22  ;;  %v1058_v14 = vunpack.c.h.s8.bf16 %v274_v13 }
 0x27a   : > { %3317 = vmatprep.subr.bf16.mxu1 %v2205_v25  ;;  %v1031_v25 = vunpack.c.l.s8.bf16 %v275_v9  ;;  %v359_v9 = vld [vmem:[%s8436_s29 + $0x4c8] sm:$0xff] }
 0x27c   : > { %3279 = vmatpush2.bf16.msra.mxu0 %v1700_v19  ;;  %v471_v19 = vld [vmem:[%s8436_s29 + $0x848] sm:$0xff] }
 0x27d   : > { %3318 = vmatpush2.bf16.msra.mxu1 %v2204_v21  ;;  %3280 = vmatprep.subr.bf16.mxu0 %v1673_v23  ;;  %v1030_v21 = vunpack.c.l.s8.bf16 %v274_v13  ;;  %v358_v13 = vld [vmem:[%s8436_s29 + $0x4c0] sm:$0xff] }
 0x27e   : > { %3319 = vmatprep.subr.bf16.mxu1 %v2177_v24  ;;  %v1451_v24 = vunpack.c.h.s8.bf16 %v471_v19 }
 0x280   : > { %3281 = vmatpush2.bf16.msra.mxu0 %v1672_v31  ;;  %v1002_v31 = vunpack.c.h.s8.bf16 %v246_v29 }
 0x281   : > { %3320 = vmatpush2.bf16.msra.mxu1 %v2176_v28  ;;  %3282 = vmatprep.subr.bf16.mxu0 %v1645_v30  ;;  %v1450_v28 = vunpack.c.h.s8.bf16 %v470_v26  ;;  %v975_v30 = vunpack.c.l.s8.bf16 %v247_v18 }
 0x282   : > { %3321 = vmatprep.subr.bf16.mxu1 %v2149_v32  ;;  %v1423_v32 = vunpack.c.l.s8.bf16 %v471_v19  ;;  %v555_v19 = vld [vmem:[%s8436_s29 + $0xae8] sm:$0xff] }
 0x284   : > { %3283 = vmatpush2.bf16.msra.mxu0 %v1644_v35  ;;  %v974_v35 = vunpack.c.l.s8.bf16 %v246_v29  ;;  %v330_v29 = vld [vmem:[%s8436_s29 + $0x3e0] sm:$0xff] }
 0x285   : > { %3322 = vmatpush2.bf16.msra.mxu1 %v2148_v36  ;;  %3284 = vmatprep.subr.bf16.mxu0 %v1617_v37  ;;  %v1422_v36 = vunpack.c.l.s8.bf16 %v470_v26  ;;  %v947_v37 = vunpack.c.h.s8.bf16 %v219_v33  ;;  %v554_v26 = vld [vmem:[%s8436_s29 + $0xae0] sm:$0xff] }
 0x286   : > { %3323 = vmatprep.subr.bf16.mxu1 %v2121_v38  ;;  %v1395_v38 = vunpack.c.h.s8.bf16 %v443_v34 }
 0x288   : > { %3285 = vmatpush2.bf16.msra.mxu0 %v1616_v42  ;;  %v946_v42 = vunpack.c.h.s8.bf16 %v218_v39 }
 0x289   : > { %3324 = vmatpush2.bf16.msra.mxu1 %v2120_v43  ;;  %3286 = vmatprep.subr.bf16.mxu0 %v1589_v44  ;;  %v1394_v43 = vunpack.c.h.s8.bf16 %v442_v41  ;;  %v919_v44 = vunpack.c.l.s8.bf16 %v219_v33  ;;  %v751_v33 = vld [vmem:[%s8436_s29 + $0x1108] sm:$0xff] }
 0x28a   : > { %3325 = vmatprep.subr.bf16.mxu1 %v2093_v47  ;;  %v1367_v47 = vunpack.c.l.s8.bf16 %v443_v34  ;;  %v891_v34 = vld [vmem:[%s8436_s29 + $0x1568] sm:$0xff] }
 0x28c   : > { %3287 = vmatpush2.bf16.msra.mxu0 %v1588_v40  ;;  %v918_v40 = vunpack.c.l.s8.bf16 %v218_v39  ;;  %v750_v39 = vld [vmem:[%s8436_s29 + $0x1100] sm:$0xff] }
 0x28d   : > { %3326 = vmatpush2.bf16.msra.mxu1 %v2092_v46  ;;  %3354 = vmatprep.subr.bf16.mxu0 %v2289_v50  ;;  %v1366_v46 = vunpack.c.l.s8.bf16 %v442_v41  ;;  %v1787_v50 = vunpack.c.h.s8.bf16 %v639_v49  ;;  %v890_v41 = vld [vmem:[%s8436_s29 + $0x1560] sm:$0xff] }
 0x28e   : > { %3327 = vmatprep.subr.bf16.mxu1 %v2065_v48  ;;  %v1339_v48 = vunpack.c.h.s8.bf16 %v415_v45 }
 0x28f   : > { %3289 = vmatmul.mubr.bf16.vlgmr.msra.gmra.mxu0 %v8910_v57 }
 0x290   : > { %3355 = vmatpush1.bf16.msra.mxu0 %v2288_v53  ;;  %3374 = vmatprep.mubr.bf16.mxu0 %v10428_v58  ;;  %v1786_v53 = vunpack.c.h.s8.bf16 %v638_v56 }
 0x291   : > { %3328 = vmatpush2.bf16.msra.mxu1 %v2064_v52  ;;  %3356 = vmatprep.subr.bf16.mxu0 %v2261_v60  ;;  %v1338_v52 = vunpack.c.h.s8.bf16 %v414_v51  ;;  %v1759_v60 = vunpack.c.l.s8.bf16 %v639_v49  ;;  %v305_v49 = vld [vmem:[%s8436_s29 + $0x318] sm:$0xff] }
 0x292   : > { %3329 = vmatprep.subr.bf16.mxu1 %v2037_v54  ;;  %v1311_v54 = vunpack.c.l.s8.bf16 %v415_v45  ;;  %v723_v45 = vld [vmem:[%s8436_s29 + $0x1028] sm:$0xff] }
 0x294   : > { %3357 = vmatpush1.bf16.msra.mxu0 %v2260_v61  ;;  %v1758_v61 = vunpack.c.l.s8.bf16 %v638_v56  ;;  %v722_v56 = vld [vmem:[%s8436_s29 + $0x1020] sm:$0xff] }
 0x295   : > { %3330 = vmatpush2.bf16.msra.mxu1 %v2036_v59  ;;  %3385 = vmatprep.subr.bf16.mxu0 %v1115_v63  ;;  %v1310_v59 = vunpack.c.l.s8.bf16 %v414_v51  ;;  %v1283_v63 = vunpack.c.h.s8.bf16 %v387_v55  ;;  %v1117_v51 = vunpack.c.h.s8.bf16 %v305_v49 }
 0x296   : > { %3428 = vmatprep.subr.bf16.mxu1 %v1563_v0  ;;  %v1731_v0 = vunpack.c.h.s8.bf16 %v611_v62 }
 0x297   : > { %7400 = vmatmul.mubr.msk.bf16.vlgmr.msra.gmra.mxu0 %vm2349_vm1, %v8922_v11 }
 0x298   : > { %3332 = vmatmul.mubr.bf16.vlgmr.msra.gmra.mxu1 %v8864_v20  ;;  %3386 = vmatpush1.bf16.msra.mxu0 %v1114_v3  ;;  %v498_v20 = vld [vmem:[%s8436_s29 + $0x920] sm:$0xff]  ;;  %v1282_v3 = vunpack.c.h.s8.bf16 %v386_v1 }
 0x299   : > { %3429 = vmatpush1.bf16.msra.mxu1 %v1562_v4  ;;  %3387 = vmatprep.subr.bf16.mxu0 %v1087_v5  ;;  %v1506_v22 = vunpack.c.h.s8.bf16 %v498_v20  ;;  %v1478_v23 = vunpack.c.l.s8.bf16 %v498_v20  ;;  %v1730_v4 = vunpack.c.h.s8.bf16 %v610_v2  ;;  %v1255_v5 = vunpack.c.l.s8.bf16 %v387_v55  ;;  %v582_v20 = vld [vmem:[%s8436_s29 + $0xbc0] sm:$0xff] }
 0x29a   : > { %3430 = vmatprep.subr.bf16.mxu1 %v1535_v6  ;;  %3417 = vmatprep.mubr.bf16.mxu0 %v8931_v17  ;;  %v1703_v6 = vunpack.c.l.s8.bf16 %v611_v62  ;;  %v1089_v55 = vunpack.c.l.s8.bf16 %v305_v49  ;;  %v695_v62 = vld [vmem:[%s8436_s29 + $0xf48] sm:$0xff] }
 0x29b   : > { %3460 = vmatprep.mubr.bf16.mxu1 %v8872_v27  ;;  %v1003_v27 = vunpack.c.h.s8.bf16 %v247_v18  ;;  %v331_v18 = vld [vmem:[%s8436_s29 + $0x3e8] sm:$0xff] }
 0x29c   : > { %3388 = vmatpush1.bf16.msra.mxu0 %v1086_v8  ;;  %v1254_v8 = vunpack.c.l.s8.bf16 %v386_v1 }
 0x29d   : > { %3431 = vmatpush1.bf16.msra.mxu1 %v1534_v10  ;;  %3389 = vmatprep.subr.bf16.mxu0 %v1059_v12  ;;  %v1702_v10 = vunpack.c.l.s8.bf16 %v610_v2  ;;  %v1227_v12 = vunpack.c.h.s8.bf16 %v359_v9  ;;  %v694_v2 = vld [vmem:[%s8436_s29 + $0xf40] sm:$0xff] }
 0x29e   : > { %3432 = vmatprep.subr.bf16.mxu1 %v1507_v15  ;;  %v1675_v15 = vunpack.c.h.s8.bf16 %v583_v7 }
 0x2a0   : > { %3390 = vmatpush1.bf16.msra.mxu0 %v1058_v14  ;;  %v1226_v14 = vunpack.c.h.s8.bf16 %v358_v13 }
 0x2a1   : > { %3433 = vmatpush1.bf16.msra.mxu1 %v1506_v22  ;;  %3391 = vmatprep.subr.bf16.mxu0 %v1031_v25  ;;  %v1674_v22 = vunpack.c.h.s8.bf16 %v582_v20  ;;  %v1199_v25 = vunpack.c.l.s8.bf16 %v359_v9  ;;  %v667_v9 = vld [vmem:[%s8436_s29 + $0xe68] sm:$0xff] }
 0x2a2   : > { %3434 = vmatprep.subr.bf16.mxu1 %v1479_v16  ;;  %v1647_v16 = vunpack.c.l.s8.bf16 %v583_v7  ;;  %v249_v7 = vld [vmem:[%s8436_s29 + $0x158] sm:$0xff] }
 0x2a4   : > { %3392 = vmatpush1.bf16.msra.mxu0 %v1030_v21  ;;  %v1198_v21 = vunpack.c.l.s8.bf16 %v358_v13  ;;  %v248_v13 = vld [vmem:[%s8436_s29 + $0x150] sm:$0xff] }
 0x2a5   : > { %3435 = vmatpush1.bf16.msra.mxu1 %v1478_v23  ;;  %3393 = vmatprep.subr.bf16.mxu0 %v1003_v27  ;;  %v1646_v23 = vunpack.c.l.s8.bf16 %v582_v20  ;;  %v1171_v27 = vunpack.c.h.s8.bf16 %v331_v18 }
 0x2a6   : > { %3436 = vmatprep.subr.bf16.mxu1 %v1451_v24  ;;  %v1619_v24 = vunpack.c.h.s8.bf16 %v555_v19 }
 0x2a8   : > { %3394 = vmatpush1.bf16.msra.mxu0 %v1002_v31  ;;  %v1170_v31 = vunpack.c.h.s8.bf16 %v330_v29 }
 0x2a9   : > { %3437 = vmatpush1.bf16.msra.mxu1 %v1450_v28  ;;  %3395 = vmatprep.subr.bf16.mxu0 %v975_v30  ;;  %v1618_v28 = vunpack.c.h.s8.bf16 %v554_v26  ;;  %v1143_v30 = vunpack.c.l.s8.bf16 %v331_v18  ;;  %v221_v18 = vld [vmem:[%s8436_s29 + $0x78] sm:$0xff] }
 0x2aa   : > { %3438 = vmatprep.subr.bf16.mxu1 %v1423_v32  ;;  %v1591_v32 = vunpack.c.l.s8.bf16 %v555_v19 }
 0x2ac   : > { %3396 = vmatpush1.bf16.msra.mxu0 %v974_v35  ;;  %v1142_v35 = vunpack.c.l.s8.bf16 %v330_v29  ;;  %v220_v29 = vld [vmem:[%s8436_s29 + $0x70] sm:$0xff] }
 0x2ad   : > { %3439 = vmatpush1.bf16.msra.mxu1 %v1422_v36  ;;  %3397 = vmatprep.subr.bf16.mxu0 %v947_v37  ;;  %v1590_v36 = vunpack.c.l.s8.bf16 %v554_v26  ;;  %v2011_v37 = vunpack.c.h.s8.bf16 %v751_v33 }
 0x2ae   : > { %3440 = vmatprep.subr.bf16.mxu1 %v1395_v38  ;;  %v2291_v38 = vunpack.c.h.s8.bf16 %v891_v34 }
 0x2b0   : > { %3398 = vmatpush1.bf16.msra.mxu0 %v946_v42  ;;  %v2010_v42 = vunpack.c.h.s8.bf16 %v750_v39 }
 0x2b1   : > { %3441 = vmatpush1.bf16.msra.mxu1 %v1394_v43  ;;  %3399 = vmatprep.subr.bf16.mxu0 %v919_v44  ;;  %v2290_v43 = vunpack.c.h.s8.bf16 %v890_v41  ;;  %v1983_v44 = vunpack.c.l.s8.bf16 %v751_v33  ;;  %v417_v33 = vld [vmem:[%s8436_s29 + $0x698] sm:$0xff] }
 0x2b2   : > { %3442 = vmatprep.subr.bf16.mxu1 %v1367_v47  ;;  %v2263_v47 = vunpack.c.l.s8.bf16 %v891_v34 }
 0x2b4   : > { %3400 = vmatpush1.bf16.msra.mxu0 %v918_v40  ;;  %v8968_v40 = vld [vmem:[%s10423_s0] ss:$28 sps:$4 sm:$0xff]  }
 0x2b5   : > { %3443 = vmatpush1.bf16.msra.mxu1 %v1366_v46  ;;  %3401 = vmatprep.subr.bf16.mxu0 %v1339_v48  ;;  %v1982_v46 = vunpack.c.l.s8.bf16 %v750_v39  ;;  %v2262_v48 = vunpack.c.l.s8.bf16 %v890_v41  ;;  %v416_v39 = vld [vmem:[%s8436_s29 + $0x690] sm:$0xff] }
 0x2b6   : > { %3444 = vmatprep.subr.bf16.mxu1 %v1787_v50  ;;  %v1955_v50 = vunpack.c.h.s8.bf16 %v723_v45 }
 0x2b8   : > { %3402 = vmatpush2.bf16.msra.mxu0 %v1338_v52  ;;  %v304_v52 = vld [vmem:[%s8436_s29 + $0x310] sm:$0xff] }
 0x2b9   : > { %3445 = vmatpush2.bf16.msra.mxu1 %v1786_v53  ;;  %3403 = vmatprep.subr.bf16.mxu0 %v1311_v54  ;;  %v8978_v53 = vld [vmem:[%s10423_s0 + $0x14] ss:$28 sps:$4 sm:$0xff]   ;;  %v1116_v54 = vunpack.c.h.s8.bf16 %v304_v52 }
 0x2ba   : > { %3446 = vmatprep.subr.bf16.mxu1 %v1759_v60  ;;  %v1927_v60 = vunpack.c.l.s8.bf16 %v723_v45  ;;  %v389_v45 = vld [vmem:[%s8436_s29 + $0x5b8] sm:$0xff] }
 0x2bc   : > { %3404 = vmatpush2.bf16.msra.mxu0 %v1310_v59  ;;  %v277_v59 = vld [vmem:[%s8436_s29 + $0x238] sm:$0xff] }
 0x2bd   : > { %3447 = vmatpush2.bf16.msra.mxu1 %v1758_v61  ;;  %3405 = vmatprep.subr.bf16.mxu0 %v1283_v63  ;;  %v1926_v61 = vunpack.c.l.s8.bf16 %v722_v56  ;;  %v1088_v63 = vunpack.c.l.s8.bf16 %v304_v52  ;;  %v1061_v1 = vunpack.c.h.s8.bf16 %v277_v59 }
 0x2be   : > { %3448 = vmatprep.subr.bf16.mxu1 %v1731_v0  ;;  %v1899_v0 = vunpack.c.h.s8.bf16 %v695_v62 }
 0x2c0   : > { %3406 = vmatpush2.bf16.msra.mxu0 %v1282_v3  ;;  %v276_v3 = vld [vmem:[%s8436_s29 + $0x230] sm:$0xff] }
 0x2c1   : > { %3449 = vmatpush2.bf16.msra.mxu1 %v1730_v4  ;;  %3407 = vmatprep.subr.bf16.mxu0 %v1255_v5  ;;  %v1898_v4 = vunpack.c.h.s8.bf16 %v694_v2  ;;  %v1060_v5 = vunpack.c.h.s8.bf16 %v276_v3 }
 0x2c2   : > { %3450 = vmatprep.subr.bf16.mxu1 %v1703_v6  ;;  %v1033_v6 = vunpack.c.l.s8.bf16 %v277_v59 }
 0x2c4   : > { %3408 = vmatpush2.bf16.msra.mxu0 %v1254_v8  ;;  %v1870_v8 = vunpack.c.l.s8.bf16 %v694_v2  ;;  %v360_v2 = vld [vmem:[%s8436_s29 + $0x4d0] sm:$0xff] }
 0x2c5   : > { %3451 = vmatpush2.bf16.msra.mxu1 %v1702_v10  ;;  %3409 = vmatprep.subr.bf16.mxu0 %v1227_v12  ;;  %v1032_v10 = vunpack.c.l.s8.bf16 %v276_v3  ;;  %v1005_v12 = vunpack.c.h.s8.bf16 %v249_v7 }
 0x2c6   : > { %3452 = vmatprep.subr.bf16.mxu1 %v1675_v15  ;;  %v666_v15 = vld [vmem:[%s8436_s29 + $0xe60] sm:$0xff] }
 0x2c7   : > { %v1842_v20 = vunpack.c.h.s8.bf16 %v666_v15  ;;  %v1814_v19 = vunpack.c.l.s8.bf16 %v666_v15  ;;  %v528_v15 = vld [vmem:[%s8436_s29 + $0xa10] sm:$0xff] }
 0x2c8   : > { %3410 = vmatpush2.bf16.msra.mxu0 %v1226_v14  ;;  %v1004_v14 = vunpack.c.h.s8.bf16 %v248_v13 }
 0x2c9   : > { %3453 = vmatpush2.bf16.msra.mxu1 %v1674_v22  ;;  %3411 = vmatprep.subr.bf16.mxu0 %v1199_v25  ;;  %v1815_v22 = vunpack.c.l.s8.bf16 %v667_v9  ;;  %v977_v25 = vunpack.c.l.s8.bf16 %v249_v7 }
 0x2ca   : > { %3454 = vmatprep.subr.bf16.mxu1 %v1647_v16  ;;  %v863_v16 = vld [vmem:[%s8436_s29 + $0x1488] sm:$0xff] }
 0x2cc   : > { %3412 = vmatpush2.bf16.msra.mxu0 %v1198_v21  ;;  %v976_v21 = vunpack.c.l.s8.bf16 %v248_v13 }
 0x2cd   : > { %3455 = vmatpush2.bf16.msra.mxu1 %v1646_v23  ;;  %3413 = vmatprep.subr.bf16.mxu0 %v1171_v27  ;;  %v2235_v23 = vunpack.c.h.s8.bf16 %v863_v16  ;;  %v949_v27 = vunpack.c.h.s8.bf16 %v221_v18 }
 0x2ce   : > { %3456 = vmatprep.subr.bf16.mxu1 %v1619_v24  ;;  %v862_v24 = vld [vmem:[%s8436_s29 + $0x1480] sm:$0xff] }
 0x2cf   : > { %v2234_v26 = vunpack.c.h.s8.bf16 %v862_v24  ;;  %v2206_v34 = vunpack.c.l.s8.bf16 %v862_v24  ;;  %v500_v24 = vld [vmem:[%s8436_s29 + $0x930] sm:$0xff] }
 0x2d0   : > { %3414 = vmatpush2.bf16.msra.mxu0 %v1170_v31  ;;  %v948_v31 = vunpack.c.h.s8.bf16 %v220_v29 }
 0x2d1   : > { %3457 = vmatpush2.bf16.msra.mxu1 %v1618_v28  ;;  %3415 = vmatprep.subr.bf16.mxu0 %v1143_v30  ;;  %v2207_v28 = vunpack.c.l.s8.bf16 %v863_v16  ;;  %v921_v30 = vunpack.c.l.s8.bf16 %v221_v18  ;;  %v753_v16 = vld [vmem:[%s8436_s29 + $0x1118] sm:$0xff]  ;;  %v9017_v18 = vld [vmem:[%s10423_s0 + $0x10] ss:$28 sps:$4 sm:$0xff]  }
 0x2d2   : > { %3458 = vmatprep.subr.bf16.mxu1 %v1591_v32  ;;  %v835_v32 = vld [vmem:[%s8436_s29 + $0x13a8] sm:$0xff] }
 0x2d4   : > { %3416 = vmatpush2.bf16.msra.mxu0 %v1142_v35  ;;  %v920_v35 = vunpack.c.l.s8.bf16 %v220_v29  ;;  %v752_v29 = vld [vmem:[%s8436_s29 + $0x1110] sm:$0xff] }
 0x2d5   : > { %3459 = vmatpush2.bf16.msra.mxu1 %v1590_v36  ;;  %3471 = vmatprep.subr.bf16.mxu0 %v2011_v37  ;;  %v2179_v36 = vunpack.c.h.s8.bf16 %v835_v32  ;;  %v1341_v37 = vunpack.c.h.s8.bf16 %v417_v33 }
 0x2d6   : > { %3526 = vmatprep.subr.bf16.mxu1 %v2291_v38  ;;  %v834_v38 = vld [vmem:[%s8436_s29 + $0x13a0] sm:$0xff] }
 0x2d7   : > { %3418 = vmatmul.mubr.bf16.vlgmr.msra.gmra.mxu0 %v8968_v40  ;;  %v2178_v41 = vunpack.c.h.s8.bf16 %v834_v38  ;;  %v2150_v49 = vunpack.c.l.s8.bf16 %v834_v38 }
 0x2d8   : > { %3461 = vmatmul.mubr.bf16.vlgmr.msra.gmra.mxu1 %v8910_v57  ;;  %3472 = vmatpush1.bf16.msra.mxu0 %v2010_v42  ;;  %v1954_v57 = vunpack.c.h.s8.bf16 %v722_v56  ;;  %v1340_v42 = vunpack.c.h.s8.bf16 %v416_v39  ;;  %v388_v56 = vld [vmem:[%s8436_s29 + $0x5b0] sm:$0xff] }
 0x2d9   : > { %3527 = vmatpush1.bf16.msra.mxu1 %v2290_v43  ;;  %3473 = vmatprep.subr.bf16.mxu0 %v1983_v44  ;;  %v2151_v43 = vunpack.c.l.s8.bf16 %v835_v32  ;;  %v1313_v44 = vunpack.c.l.s8.bf16 %v417_v33  ;;  %v1985_v32 = vunpack.c.l.s8.bf16 %v753_v16  ;;  %v473_v33 = vld [vmem:[%s8436_s29 + $0x858] sm:$0xff] }
 0x2da   : > { %3528 = vmatprep.subr.bf16.mxu1 %v2263_v47  ;;  %3546 = vmatprep.mubr.bf16.mxu1 %v10428_v58  ;;  %v807_v47 = vld [vmem:[%s8436_s29 + $0x12c8] sm:$0xff] }
 0x2db   : > { %3503 = vmatprep.mubr.bf16.mxu0 %v8978_v53 }
 0x2dc   : > { %3474 = vmatpush1.bf16.msra.mxu0 %v1982_v46  ;;  %v1312_v46 = vunpack.c.l.s8.bf16 %v416_v39  ;;  %v472_v39 = vld [vmem:[%s8436_s29 + $0x850] sm:$0xff] }
 0x2dd   : > { %3529 = vmatpush1.bf16.msra.mxu1 %v2262_v48  ;;  %3475 = vmatprep.subr.bf16.mxu0 %v1955_v50  ;;  %v2123_v48 = vunpack.c.h.s8.bf16 %v807_v47  ;;  %v1285_v50 = vunpack.c.h.s8.bf16 %v389_v45 }
 0x2de   : > { %3557 = vmatprep.subr.bf16.mxu1 %v1117_v51  ;;  %v806_v51 = vld [vmem:[%s8436_s29 + $0x12c0] sm:$0xff] }
 0x2df   : > { %v2122_v52 = vunpack.c.h.s8.bf16 %v806_v51  ;;  %v2094_v59 = vunpack.c.l.s8.bf16 %v806_v51  ;;  %v696_v51 = vld [vmem:[%s8436_s29 + $0xf50] sm:$0xff] }
 0x2e0   : > { %7401 = vmatmul.mubr.msk.bf16.vlgmr.msra.gmra.mxu1 %vm2349_vm1, %v8922_v11  ;;  %3476 = vmatpush1.bf16.msra.mxu0 %v1954_v57  ;;  %v1871_v11 = vunpack.c.l.s8.bf16 %v695_v62  ;;  %v1284_v57 = vunpack.c.h.s8.bf16 %v388_v56  ;;  %v361_v62 = vld [vmem:[%s8436_s29 + $0x4d8] sm:$0xff] }
 0x2e1   : > { %3558 = vmatpush1.bf16.msra.mxu1 %v1116_v54  ;;  %3477 = vmatprep.subr.bf16.mxu0 %v1927_v60  ;;  %v2095_v54 = vunpack.c.l.s8.bf16 %v807_v47  ;;  %v1257_v60 = vunpack.c.l.s8.bf16 %v389_v45  ;;  %v445_v47 = vld [vmem:[%s8436_s29 + $0x778] sm:$0xff] }
 0x2e2   : > { %3559 = vmatprep.subr.bf16.mxu1 %v1089_v55  ;;  %3589 = vmatprep.mubr.bf16.mxu1 %v8931_v17  ;;  %v1843_v17 = vunpack.c.h.s8.bf16 %v667_v9  ;;  %v779_v55 = vld [vmem:[%s8436_s29 + $0x11e8] sm:$0xff]  ;;  %v529_v9 = vld [vmem:[%s8436_s29 + $0xa18] sm:$0xff] }
 0x2e3   : > { %v697_v45 = vld [vmem:[%s8436_s29 + $0xf58] sm:$0xff] }
 0x2e4   : > { %3478 = vmatpush1.bf16.msra.mxu0 %v1926_v61  ;;  %v1256_v61 = vunpack.c.l.s8.bf16 %v388_v56 }
 0x2e5   : > { %3560 = vmatpush1.bf16.msra.mxu1 %v1088_v63  ;;  %3479 = vmatprep.subr.bf16.mxu0 %v1899_v0  ;;  %v2067_v63 = vunpack.c.h.s8.bf16 %v779_v55  ;;  %v1229_v0 = vunpack.c.h.s8.bf16 %v361_v62 }
 0x2e6   : > { %3561 = vmatprep.subr.bf16.mxu1 %v1061_v1  ;;  %v778_v1 = vld [vmem:[%s8436_s29 + $0x11e0] sm:$0xff] }
 0x2e7   : > { %v2066_v3 = vunpack.c.h.s8.bf16 %v778_v1  ;;  %v2038_v7 = vunpack.c.l.s8.bf16 %v778_v1  ;;  %v668_v1 = vld [vmem:[%s8436_s29 + $0xe70] sm:$0xff] }
 0x2e8   : > { %3480 = vmatpush1.bf16.msra.mxu0 %v1898_v4  ;;  %v1228_v4 = vunpack.c.h.s8.bf16 %v360_v2 }
 0x2e9   : > { %3562 = vmatpush1.bf16.msra.mxu1 %v1060_v5  ;;  %3481 = vmatprep.subr.bf16.mxu0 %v1871_v11  ;;  %v2039_v5 = vunpack.c.l.s8.bf16 %v779_v55  ;;  %v1201_v11 = vunpack.c.l.s8.bf16 %v361_v62  ;;  %v669_v55 = vld [vmem:[%s8436_s29 + $0xe78] sm:$0xff] }
 0x2ea   : > { %3563 = vmatprep.subr.bf16.mxu1 %v1033_v6  ;;  %v333_v6 = vld [vmem:[%s8436_s29 + $0x3f8] sm:$0xff] }
 0x2ec   : > { %3482 = vmatpush1.bf16.msra.mxu0 %v1870_v8  ;;  %v1200_v8 = vunpack.c.l.s8.bf16 %v360_v2 }
 0x2ed   : > { %3564 = vmatpush1.bf16.msra.mxu1 %v1032_v10  ;;  %3483 = vmatprep.subr.bf16.mxu0 %v1843_v17  ;;  %v1173_v10 = vunpack.c.h.s8.bf16 %v333_v6  ;;  %v1565_v17 = vunpack.c.h.s8.bf16 %v529_v9 }
 0x2ee   : > { %3565 = vmatprep.subr.bf16.mxu1 %v1005_v12  ;;  %v332_v12 = vld [vmem:[%s8436_s29 + $0x3f0] sm:$0xff] }
 0x2ef   : > { %v1172_v13 = vunpack.c.h.s8.bf16 %v332_v12 }
 0x2f0   : > { %3484 = vmatpush1.bf16.msra.mxu0 %v1842_v20  ;;  %v1564_v20 = vunpack.c.h.s8.bf16 %v528_v15 }
 0x2f1   : > { %3566 = vmatpush1.bf16.msra.mxu1 %v1004_v14  ;;  %3485 = vmatprep.subr.bf16.mxu0 %v1815_v22  ;;  %v1145_v14 = vunpack.c.l.s8.bf16 %v333_v6  ;;  %v1537_v22 = vunpack.c.l.s8.bf16 %v529_v9  ;;  %v865_v6 = vld [vmem:[%s8436_s29 + $0x1498] sm:$0xff] }
 0x2f2   : > { %3567 = vmatprep.subr.bf16.mxu1 %v977_v25  ;;  %v501_v25 = vld [vmem:[%s8436_s29 + $0x938] sm:$0xff] }
 0x2f4   : > { %3486 = vmatpush1.bf16.msra.mxu0 %v1814_v19  ;;  %v1144_v19 = vunpack.c.l.s8.bf16 %v332_v12  ;;  %v864_v12 = vld [vmem:[%s8436_s29 + $0x1490] sm:$0xff] }
 0x2f5   : > { %3568 = vmatpush1.bf16.msra.mxu1 %v976_v21  ;;  %3487 = vmatprep.subr.bf16.mxu0 %v2235_v23  ;;  %v1536_v21 = vunpack.c.l.s8.bf16 %v528_v15  ;;  %v1509_v23 = vunpack.c.h.s8.bf16 %v501_v25 }
 0x2f6   : > { %3569 = vmatprep.subr.bf16.mxu1 %v949_v27  ;;  %v2013_v27 = vunpack.c.h.s8.bf16 %v753_v16 }
 0x2f8   : > { %3488 = vmatpush2.bf16.msra.mxu0 %v2234_v26  ;;  %v9025_v26 = vld [vmem:[%s10423_s0 + $0xc] ss:$28 sps:$4 sm:$0xff]  }
 0x2f9   : > { %3570 = vmatpush1.bf16.msra.mxu1 %v948_v31  ;;  %3489 = vmatprep.subr.bf16.mxu0 %v2207_v28  ;;  %v1508_v31 = vunpack.c.h.s8.bf16 %v500_v24  ;;  %v2012_v28 = vunpack.c.h.s8.bf16 %v752_v29 }
 0x2fa   : > { %3571 = vmatprep.subr.bf16.mxu1 %v921_v30  ;;  %v1481_v30 = vunpack.c.l.s8.bf16 %v501_v25  ;;  %v837_v25 = vld [vmem:[%s8436_s29 + $0x13b8] sm:$0xff] }
 0x2fc   : > { %3490 = vmatpush2.bf16.msra.mxu0 %v2206_v34  ;;  %v725_v34 = vld [vmem:[%s8436_s29 + $0x1038] sm:$0xff] }
 0x2fd   : > { %3572 = vmatpush1.bf16.msra.mxu1 %v920_v35  ;;  %3491 = vmatprep.subr.bf16.mxu0 %v2179_v36  ;;  %v1480_v35 = vunpack.c.l.s8.bf16 %v500_v24  ;;  %v1984_v36 = vunpack.c.l.s8.bf16 %v752_v29  ;;  %v1957_v38 = vunpack.c.h.s8.bf16 %v725_v34  ;;  %v836_v24 = vld [vmem:[%s8436_s29 + $0x13b0] sm:$0xff] }
 0x2fe   : > { %3573 = vmatprep.subr.bf16.mxu1 %v1341_v37  ;;  %v1453_v37 = vunpack.c.h.s8.bf16 %v473_v33 }
 0x300   : > { %3492 = vmatpush2.bf16.msra.mxu0 %v2178_v41  ;;  %v724_v41 = vld [vmem:[%s8436_s29 + $0x1030] sm:$0xff] }
 0x301   : > { %3574 = vmatpush2.bf16.msra.mxu1 %v1340_v42  ;;  %3493 = vmatprep.subr.bf16.mxu0 %v2151_v43  ;;  %v1452_v42 = vunpack.c.h.s8.bf16 %v472_v39  ;;  %v1956_v43 = vunpack.c.h.s8.bf16 %v724_v41 }
 0x302   : > { %3575 = vmatprep.subr.bf16.mxu1 %v1313_v44  ;;  %v1929_v44 = vunpack.c.l.s8.bf16 %v725_v34 }
 0x304   : > { %3494 = vmatpush2.bf16.msra.mxu0 %v2150_v49  ;;  %v1424_v49 = vunpack.c.l.s8.bf16 %v472_v39  ;;  %v808_v39 = vld [vmem:[%s8436_s29 + $0x12d0] sm:$0xff] }
 0x305   : > { %3576 = vmatpush2.bf16.msra.mxu1 %v1312_v46  ;;  %3495 = vmatprep.subr.bf16.mxu0 %v2123_v48  ;;  %v1928_v46 = vunpack.c.l.s8.bf16 %v724_v41  ;;  %v1901_v48 = vunpack.c.h.s8.bf16 %v697_v45 }
 0x306   : > { %3577 = vmatprep.subr.bf16.mxu1 %v1285_v50  ;;  %v444_v50 = vld [vmem:[%s8436_s29 + $0x770] sm:$0xff] }
 0x307   : > { %v1396_v56 = vunpack.c.h.s8.bf16 %v444_v50  ;;  %v1368_v62 = vunpack.c.l.s8.bf16 %v444_v50  ;;  %v892_v50 = vld [vmem:[%s8436_s29 + $0x1570] sm:$0xff] }
 0x308   : > { %3496 = vmatpush2.bf16.msra.mxu0 %v2122_v52  ;;  %v1900_v52 = vunpack.c.h.s8.bf16 %v696_v51 }
 0x309   : > { %3578 = vmatpush2.bf16.msra.mxu1 %v1284_v57  ;;  %3497 = vmatprep.subr.bf16.mxu0 %v2095_v54  ;;  %v1369_v57 = vunpack.c.l.s8.bf16 %v445_v47  ;;  %v1873_v54 = vunpack.c.l.s8.bf16 %v697_v45 }
 0x30a   : > { %3579 = vmatprep.subr.bf16.mxu1 %v1257_v60  ;;  %v641_v60 = vld [vmem:[%s8436_s29 + $0xd98] sm:$0xff] }
 0x30c   : > { %3498 = vmatpush2.bf16.msra.mxu0 %v2094_v59  ;;  %v1872_v59 = vunpack.c.l.s8.bf16 %v696_v51 }
 0x30d   : > { %3580 = vmatpush2.bf16.msra.mxu1 %v1256_v61  ;;  %3499 = vmatprep.subr.bf16.mxu0 %v2067_v63  ;;  %v1789_v61 = vunpack.c.h.s8.bf16 %v641_v60  ;;  %v1845_v63 = vunpack.c.h.s8.bf16 %v669_v55 }
 0x30e   : > { %3581 = vmatprep.subr.bf16.mxu1 %v1229_v0  ;;  %v640_v0 = vld [vmem:[%s8436_s29 + $0xd90] sm:$0xff] }
 0x30f   : > { %v1788_v2 = vunpack.c.h.s8.bf16 %v640_v0  ;;  %v1760_v9 = vunpack.c.l.s8.bf16 %v640_v0  ;;  %v306_v0 = vld [vmem:[%s8436_s29 + $0x320] sm:$0xff] }
 0x310   : > { %3500 = vmatpush2.bf16.msra.mxu0 %v2066_v3  ;;  %v1844_v3 = vunpack.c.h.s8.bf16 %v668_v1 }
 0x311   : > { %3582 = vmatpush2.bf16.msra.mxu1 %v1228_v4  ;;  %3501 = vmatprep.subr.bf16.mxu0 %v2039_v5  ;;  %v1761_v4 = vunpack.c.l.s8.bf16 %v641_v60  ;;  %v1817_v5 = vunpack.c.l.s8.bf16 %v669_v55  ;;  %v531_v60 = vld [vmem:[%s8436_s29 + $0xa28] sm:$0xff] }
 0x312   : > { %3583 = vmatprep.subr.bf16.mxu1 %v1201_v11  ;;  %v613_v11 = vld [vmem:[%s8436_s29 + $0xcb8] sm:$0xff]  ;;  %v9063_v55 = vld [vmem:[%s10423_s0 + $0x8] ss:$28 sps:$4 sm:$0xff]  }
 0x314   : > { %3502 = vmatpush2.bf16.msra.mxu0 %v2038_v7  ;;  %v1816_v7 = vunpack.c.l.s8.bf16 %v668_v1  ;;  %v530_v1 = vld [vmem:[%s8436_s29 + $0xa20] sm:$0xff] }
 0x315   : > { %3584 = vmatpush2.bf16.msra.mxu1 %v1200_v8  ;;  %3600 = vmatprep.subr.bf16.mxu0 %v1565_v17  ;;  %v1733_v8 = vunpack.c.h.s8.bf16 %v613_v11  ;;  %v612_v17 = vld [vmem:[%s8436_s29 + $0xcb0] sm:$0xff] }
 0x316   : > { %3585 = vmatprep.subr.bf16.mxu1 %v1173_v10  ;;  %v2237_v10 = vunpack.c.h.s8.bf16 %v865_v6  ;;  %v1732_v15 = vunpack.c.h.s8.bf16 %v612_v17  ;;  %v1704_v16 = vunpack.c.l.s8.bf16 %v612_v17 }
 0x317   : > { %3504 = vmatmul.mubr.bf16.vlgmr.msra.gmra.mxu0 %v9017_v18 }
 0x318   : > { %3601 = vmatpush1.bf16.msra.mxu0 %v1564_v20  ;;  %3632 = vmatprep.mubr.bf16.mxu0 %v9025_v26  ;;  %v1705_v20 = vunpack.c.l.s8.bf16 %v613_v11  ;;  %v279_v11 = vld [vmem:[%s8436_s29 + $0x248] sm:$0xff] }
 0x319   : > { %3586 = vmatpush2.bf16.msra.mxu1 %v1172_v13  ;;  %3602 = vmatprep.subr.bf16.mxu0 %v1537_v22  ;;  %v2236_v13 = vunpack.c.h.s8.bf16 %v864_v12  ;;  %v585_v22 = vld [vmem:[%s8436_s29 + $0xbd8] sm:$0xff] }
 0x31a   : > { %3587 = vmatprep.subr.bf16.mxu1 %v1145_v14  ;;  %v2209_v14 = vunpack.c.l.s8.bf16 %v865_v6  ;;  %v503_v6 = vld [vmem:[%s8436_s29 + $0x948] sm:$0xff] }
 0x31b   : > { %v1511_v17 = vunpack.c.h.s8.bf16 %v503_v6 }
 0x31c   : > { %3603 = vmatpush1.bf16.msra.mxu0 %v1536_v21  ;;  %v1677_v21 = vunpack.c.h.s8.bf16 %v585_v22 }
 0x31d   : > { %3588 = vmatpush2.bf16.msra.mxu1 %v1144_v19  ;;  %3604 = vmatprep.subr.bf16.mxu0 %v1509_v23  ;;  %v2208_v19 = vunpack.c.l.s8.bf16 %v864_v12  ;;  %v2181_v23 = vunpack.c.h.s8.bf16 %v837_v25  ;;  %v278_v12 = vld [vmem:[%s8436_s29 + $0x240] sm:$0xff] }
 0x31e   : > { %3643 = vmatprep.subr.bf16.mxu1 %v2013_v27  ;;  %v584_v27 = vld [vmem:[%s8436_s29 + $0xbd0] sm:$0xff] }
 0x31f   : > { %v1676_v29 = vunpack.c.h.s8.bf16 %v584_v27  ;;  %v1648_v34 = vunpack.c.l.s8.bf16 %v584_v27  ;;  %v250_v27 = vld [vmem:[%s8436_s29 + $0x160] sm:$0xff] }
 0x320   : > { %3590 = vmatmul.mubr.bf16.vlgmr.msra.gmra.mxu1 %v8968_v40  ;;  %3605 = vmatpush1.bf16.msra.mxu0 %v1508_v31  ;;  %v1425_v40 = vunpack.c.l.s8.bf16 %v473_v33  ;;  %v2180_v31 = vunpack.c.h.s8.bf16 %v836_v24  ;;  %v809_v33 = vld [vmem:[%s8436_s29 + $0x12d8] sm:$0xff] }
 0x321   : > { %3644 = vmatpush1.bf16.msra.mxu1 %v2012_v28  ;;  %3606 = vmatprep.subr.bf16.mxu0 %v1481_v30  ;;  %v1649_v28 = vunpack.c.l.s8.bf16 %v585_v22  ;;  %v2153_v30 = vunpack.c.l.s8.bf16 %v837_v25  ;;  %v1483_v22 = vunpack.c.l.s8.bf16 %v503_v6  ;;  %v251_v25 = vld [vmem:[%s8436_s29 + $0x168] sm:$0xff] }
 0x322   : > { %3645 = vmatprep.subr.bf16.mxu1 %v1985_v32  ;;  %3675 = vmatprep.mubr.bf16.mxu1 %v8978_v53  ;;  %v1397_v53 = vunpack.c.h.s8.bf16 %v445_v47  ;;  %v557_v32 = vld [vmem:[%s8436_s29 + $0xaf8] sm:$0xff]  ;;  %v587_v6 = vld [vmem:[%s8436_s29 + $0xbe8] sm:$0xff] }
 0x323   : > { %v893_v47 = vld [vmem:[%s8436_s29 + $0x1578] sm:$0xff] }
 0x324   : > { %3607 = vmatpush1.bf16.msra.mxu0 %v1480_v35  ;;  %v2152_v35 = vunpack.c.l.s8.bf16 %v836_v24  ;;  %v474_v24 = vld [vmem:[%s8436_s29 + $0x860] sm:$0xff] }
 0x325   : > { %3646 = vmatpush1.bf16.msra.mxu1 %v1984_v36  ;;  %3608 = vmatprep.subr.bf16.mxu0 %v1453_v37  ;;  %v1621_v36 = vunpack.c.h.s8.bf16 %v557_v32  ;;  %v2125_v37 = vunpack.c.h.s8.bf16 %v809_v33 }
 0x326   : > { %3647 = vmatprep.subr.bf16.mxu1 %v1957_v38  ;;  %v556_v38 = vld [vmem:[%s8436_s29 + $0xaf0] sm:$0xff] }
 0x327   : > { %v1620_v41 = vunpack.c.h.s8.bf16 %v556_v38  ;;  %v1592_v45 = vunpack.c.l.s8.bf16 %v556_v38  ;;  %v222_v38 = vld [vmem:[%s8436_s29 + $0x80] sm:$0xff] }
 0x328   : > { %3609 = vmatpush1.bf16.msra.mxu0 %v1452_v42  ;;  %v2124_v42 = vunpack.c.h.s8.bf16 %v808_v39 }
 0x329   : > { %3648 = vmatpush1.bf16.msra.mxu1 %v1956_v43  ;;  %3610 = vmatprep.subr.bf16.mxu0 %v1425_v40  ;;  %v1593_v43 = vunpack.c.l.s8.bf16 %v557_v32  ;;  %v2097_v40 = vunpack.c.l.s8.bf16 %v809_v33  ;;  %v223_v32 = vld [vmem:[%s8436_s29 + $0x88] sm:$0xff] }
 0x32a   : > { %3649 = vmatprep.subr.bf16.mxu1 %v1929_v44  ;;  %v781_v44 = vld [vmem:[%s8436_s29 + $0x11f8] sm:$0xff]  ;;  %v447_v33 = vld [vmem:[%s8436_s29 + $0x788] sm:$0xff] }
 0x32c   : > { %3611 = vmatpush1.bf16.msra.mxu0 %v1424_v49  ;;  %v2096_v49 = vunpack.c.l.s8.bf16 %v808_v39  ;;  %v446_v39 = vld [vmem:[%s8436_s29 + $0x780] sm:$0xff] }
 0x32d   : > { %3650 = vmatpush1.bf16.msra.mxu1 %v1928_v46  ;;  %3612 = vmatprep.subr.bf16.mxu0 %v1397_v53  ;;  %v2069_v46 = vunpack.c.h.s8.bf16 %v781_v44  ;;  %v2293_v53 = vunpack.c.h.s8.bf16 %v893_v47 }
 0x32e   : > { %3651 = vmatprep.subr.bf16.mxu1 %v1901_v48  ;;  %v780_v48 = vld [vmem:[%s8436_s29 + $0x11f0] sm:$0xff] }
 0x32f   : > { %v2068_v51 = vunpack.c.h.s8.bf16 %v780_v48 }
 0x330   : > { %3613 = vmatpush1.bf16.msra.mxu0 %v1396_v56  ;;  %v2292_v56 = vunpack.c.h.s8.bf16 %v892_v50 }
 0x331   : > { %3652 = vmatpush1.bf16.msra.mxu1 %v1900_v52  ;;  %3614 = vmatprep.subr.bf16.mxu0 %v1369_v57  ;;  %v2041_v52 = vunpack.c.l.s8.bf16 %v781_v44  ;;  %v2265_v57 = vunpack.c.l.s8.bf16 %v893_v47  ;;  %v419_v44 = vld [vmem:[%s8436_s29 + $0x6a8] sm:$0xff] }
 0x332   : > { %3653 = vmatprep.subr.bf16.mxu1 %v1873_v54  ;;  %v307_v54 = vld [vmem:[%s8436_s29 + $0x328] sm:$0xff] }
 0x333   : > { %v643_v47 = vld [vmem:[%s8436_s29 + $0xda8] sm:$0xff] }
 0x334   : > { %3615 = vmatpush1.bf16.msra.mxu0 %v1368_v62  ;;  %v2040_v62 = vunpack.c.l.s8.bf16 %v780_v48  ;;  %v418_v48 = vld [vmem:[%s8436_s29 + $0x6a0] sm:$0xff] }
 0x335   : > { %3654 = vmatpush1.bf16.msra.mxu1 %v1872_v59  ;;  %3616 = vmatprep.subr.bf16.mxu0 %v1789_v61  ;;  %v2264_v59 = vunpack.c.l.s8.bf16 %v892_v50  ;;  %v1119_v61 = vunpack.c.h.s8.bf16 %v307_v54  ;;  %v642_v50 = vld [vmem:[%s8436_s29 + $0xda0] sm:$0xff] }
 0x336   : > { %3655 = vmatprep.subr.bf16.mxu1 %v1845_v63  ;;  %v1567_v63 = vunpack.c.h.s8.bf16 %v531_v60 }
 0x338   : > { %3617 = vmatpush2.bf16.msra.mxu0 %v1788_v2  ;;  %v1118_v2 = vunpack.c.h.s8.bf16 %v306_v0 }
 0x339   : > { %3656 = vmatpush1.bf16.msra.mxu1 %v1844_v3  ;;  %3618 = vmatprep.subr.bf16.mxu0 %v1761_v4  ;;  %v1566_v3 = vunpack.c.h.s8.bf16 %v530_v1  ;;  %v1091_v4 = vunpack.c.l.s8.bf16 %v307_v54  ;;  %v391_v54 = vld [vmem:[%s8436_s29 + $0x5c8] sm:$0xff] }
 0x33a   : > { %3657 = vmatprep.subr.bf16.mxu1 %v1817_v5  ;;  %v1539_v5 = vunpack.c.l.s8.bf16 %v531_v60  ;;  %v615_v60 = vld [vmem:[%s8436_s29 + $0xcc8] sm:$0xff] }
 0x33c   : > { %3619 = vmatpush2.bf16.msra.mxu0 %v1760_v9  ;;  %v9075_v9 = vld [vmem:[%s10423_s0 + $0x18] ss:$28 sps:$4 sm:$0xff]  }
 0x33d   : > { %3658 = vmatpush1.bf16.msra.mxu1 %v1816_v7  ;;  %3620 = vmatprep.subr.bf16.mxu0 %v1733_v8  ;;  %v1090_v7 = vunpack.c.l.s8.bf16 %v306_v0  ;;  %v1538_v8 = vunpack.c.l.s8.bf16 %v530_v1  ;;  %v390_v0 = vld [vmem:[%s8436_s29 + $0x5c0] sm:$0xff] }
 0x33e   : > { %3659 = vmatprep.subr.bf16.mxu1 %v2237_v10  ;;  %v1063_v10 = vunpack.c.h.s8.bf16 %v279_v11  ;;  %v614_v1 = vld [vmem:[%s8436_s29 + $0xcc0] sm:$0xff] }
 0x340   : > { %3621 = vmatpush2.bf16.msra.mxu0 %v1732_v15  ;;  %v9084_v15 = vld [vmem:[%s10423_s0 + $0x4] ss:$28 sps:$4 sm:$0xff]  }
 0x341   : > { %3660 = vmatpush2.bf16.msra.mxu1 %v2236_v13  ;;  %3622 = vmatprep.subr.bf16.mxu0 %v1705_v20  ;;  %v1062_v13 = vunpack.c.h.s8.bf16 %v278_v12 }
 0x342   : > { %3661 = vmatprep.subr.bf16.mxu1 %v2209_v14  ;;  %v1035_v14 = vunpack.c.l.s8.bf16 %v279_v11  ;;  %v363_v11 = vld [vmem:[%s8436_s29 + $0x4e8] sm:$0xff] }
 0x344   : > { %3623 = vmatpush2.bf16.msra.mxu0 %v1704_v16  ;;  %v475_v16 = vld [vmem:[%s8436_s29 + $0x868] sm:$0xff] }
 0x345   : > { %3662 = vmatpush2.bf16.msra.mxu1 %v2208_v19  ;;  %3624 = vmatprep.subr.bf16.mxu0 %v1677_v21  ;;  %v1034_v19 = vunpack.c.l.s8.bf16 %v278_v12  ;;  %v362_v12 = vld [vmem:[%s8436_s29 + $0x4e0] sm:$0xff] }
 0x346   : > { %3663 = vmatprep.subr.bf16.mxu1 %v2181_v23  ;;  %v1455_v23 = vunpack.c.h.s8.bf16 %v475_v16 }
 0x348   : > { %3625 = vmatpush2.bf16.msra.mxu0 %v1676_v29  ;;  %v1006_v29 = vunpack.c.h.s8.bf16 %v250_v27 }
 0x349   : > { %3664 = vmatpush2.bf16.msra.mxu1 %v2180_v31  ;;  %3626 = vmatprep.subr.bf16.mxu0 %v1649_v28  ;;  %v1454_v31 = vunpack.c.h.s8.bf16 %v474_v24  ;;  %v979_v28 = vunpack.c.l.s8.bf16 %v251_v25 }
 0x34a   : > { %3665 = vmatprep.subr.bf16.mxu1 %v2153_v30  ;;  %v1427_v30 = vunpack.c.l.s8.bf16 %v475_v16  ;;  %v559_v16 = vld [vmem:[%s8436_s29 + $0xb08] sm:$0xff] }
 0x34c   : > { %3627 = vmatpush2.bf16.msra.mxu0 %v1648_v34  ;;  %v978_v34 = vunpack.c.l.s8.bf16 %v250_v27  ;;  %v334_v27 = vld [vmem:[%s8436_s29 + $0x400] sm:$0xff] }
 0x34d   : > { %3666 = vmatpush2.bf16.msra.mxu1 %v2152_v35  ;;  %3628 = vmatprep.subr.bf16.mxu0 %v1621_v36  ;;  %v1426_v35 = vunpack.c.l.s8.bf16 %v474_v24  ;;  %v951_v36 = vunpack.c.h.s8.bf16 %v223_v32  ;;  %v558_v24 = vld [vmem:[%s8436_s29 + $0xb00] sm:$0xff] }
 0x34e   : > { %3667 = vmatprep.subr.bf16.mxu1 %v2125_v37  ;;  %v1399_v37 = vunpack.c.h.s8.bf16 %v447_v33 }
 0x350   : > { %3629 = vmatpush2.bf16.msra.mxu0 %v1620_v41  ;;  %v950_v41 = vunpack.c.h.s8.bf16 %v222_v38 }
 0x351   : > { %3668 = vmatpush2.bf16.msra.mxu1 %v2124_v42  ;;  %3630 = vmatprep.subr.bf16.mxu0 %v1593_v43  ;;  %v1398_v42 = vunpack.c.h.s8.bf16 %v446_v39  ;;  %v923_v43 = vunpack.c.l.s8.bf16 %v223_v32  ;;  %v755_v32 = vld [vmem:[%s8436_s29 + $0x1128] sm:$0xff] }
 0x352   : > { %3669 = vmatprep.subr.bf16.mxu1 %v2097_v40  ;;  %v1371_v40 = vunpack.c.l.s8.bf16 %v447_v33  ;;  %v895_v33 = vld [vmem:[%s8436_s29 + $0x1588] sm:$0xff] }
 0x354   : > { %3631 = vmatpush2.bf16.msra.mxu0 %v1592_v45  ;;  %v922_v45 = vunpack.c.l.s8.bf16 %v222_v38  ;;  %v754_v38 = vld [vmem:[%s8436_s29 + $0x1120] sm:$0xff] }
 0x355   : > { %3670 = vmatpush2.bf16.msra.mxu1 %v2096_v49  ;;  %3698 = vmatprep.subr.bf16.mxu0 %v2293_v53  ;;  %v1370_v49 = vunpack.c.l.s8.bf16 %v446_v39  ;;  %v1791_v53 = vunpack.c.h.s8.bf16 %v643_v47  ;;  %v894_v39 = vld [vmem:[%s8436_s29 + $0x1580] sm:$0xff] }
 0x356   : > { %3671 = vmatprep.subr.bf16.mxu1 %v2069_v46  ;;  %v1343_v46 = vunpack.c.h.s8.bf16 %v419_v44 }
 0x357   : > { %3633 = vmatmul.mubr.bf16.vlgmr.msra.gmra.mxu0 %v9063_v55 }
 0x358   : > { %3699 = vmatpush1.bf16.msra.mxu0 %v2292_v56  ;;  %3718 = vmatprep.mubr.bf16.mxu0 %v10428_v58  ;;  %v1790_v56 = vunpack.c.h.s8.bf16 %v642_v50 }
 0x359   : > { %3672 = vmatpush2.bf16.msra.mxu1 %v2068_v51  ;;  %3700 = vmatprep.subr.bf16.mxu0 %v2265_v57  ;;  %v1342_v51 = vunpack.c.h.s8.bf16 %v418_v48  ;;  %v1763_v57 = vunpack.c.l.s8.bf16 %v643_v47  ;;  %v309_v47 = vld [vmem:[%s8436_s29 + $0x338] sm:$0xff] }
 0x35a   : > { %3673 = vmatprep.subr.bf16.mxu1 %v2041_v52  ;;  %v1315_v52 = vunpack.c.l.s8.bf16 %v419_v44  ;;  %v727_v44 = vld [vmem:[%s8436_s29 + $0x1048] sm:$0xff] }
 0x35c   : > { %3701 = vmatpush1.bf16.msra.mxu0 %v2264_v59  ;;  %v1762_v59 = vunpack.c.l.s8.bf16 %v642_v50  ;;  %v726_v50 = vld [vmem:[%s8436_s29 + $0x1040] sm:$0xff] }
 0x35d   : > { %3674 = vmatpush2.bf16.msra.mxu1 %v2040_v62  ;;  %3729 = vmatprep.subr.bf16.mxu0 %v1119_v61  ;;  %v1314_v62 = vunpack.c.l.s8.bf16 %v418_v48  ;;  %v1287_v61 = vunpack.c.h.s8.bf16 %v391_v54  ;;  %v1121_v48 = vunpack.c.h.s8.bf16 %v309_v47 }
 0x35e   : > { %3772 = vmatprep.subr.bf16.mxu1 %v1567_v63  ;;  %v1735_v63 = vunpack.c.h.s8.bf16 %v615_v60 }
 0x35f   : > { %7402 = vmatmul.mubr.msk.bf16.vlgmr.msra.gmra.mxu0 %vm2349_vm1, %v9075_v9 }
 0x360   : > { %3676 = vmatmul.mubr.bf16.vlgmr.msra.gmra.mxu1 %v9017_v18  ;;  %3730 = vmatpush1.bf16.msra.mxu0 %v1118_v2  ;;  %v502_v18 = vld [vmem:[%s8436_s29 + $0x940] sm:$0xff]  ;;  %v1286_v2 = vunpack.c.h.s8.bf16 %v390_v0 }
 0x361   : > { %3773 = vmatpush1.bf16.msra.mxu1 %v1566_v3  ;;  %3731 = vmatprep.subr.bf16.mxu0 %v1091_v4  ;;  %v1510_v20 = vunpack.c.h.s8.bf16 %v502_v18  ;;  %v1482_v21 = vunpack.c.l.s8.bf16 %v502_v18  ;;  %v1734_v3 = vunpack.c.h.s8.bf16 %v614_v1  ;;  %v1259_v4 = vunpack.c.l.s8.bf16 %v391_v54  ;;  %v586_v18 = vld [vmem:[%s8436_s29 + $0xbe0] sm:$0xff] }
 0x362   : > { %3774 = vmatprep.subr.bf16.mxu1 %v1539_v5  ;;  %3761 = vmatprep.mubr.bf16.mxu0 %v9084_v15  ;;  %v1707_v5 = vunpack.c.l.s8.bf16 %v615_v60  ;;  %v1093_v54 = vunpack.c.l.s8.bf16 %v309_v47  ;;  %v699_v60 = vld [vmem:[%s8436_s29 + $0xf68] sm:$0xff] }
 0x363   : > { %3804 = vmatprep.mubr.bf16.mxu1 %v9025_v26  ;;  %v1007_v26 = vunpack.c.h.s8.bf16 %v251_v25  ;;  %v335_v25 = vld [vmem:[%s8436_s29 + $0x408] sm:$0xff] }
 0x364   : > { %3732 = vmatpush1.bf16.msra.mxu0 %v1090_v7  ;;  %v1258_v7 = vunpack.c.l.s8.bf16 %v390_v0 }
 0x365   : > { %3775 = vmatpush1.bf16.msra.mxu1 %v1538_v8  ;;  %3733 = vmatprep.subr.bf16.mxu0 %v1063_v10  ;;  %v1706_v8 = vunpack.c.l.s8.bf16 %v614_v1  ;;  %v1231_v10 = vunpack.c.h.s8.bf16 %v363_v11  ;;  %v698_v1 = vld [vmem:[%s8436_s29 + $0xf60] sm:$0xff] }
 0x366   : > { %3776 = vmatprep.subr.bf16.mxu1 %v1511_v17  ;;  %v1679_v17 = vunpack.c.h.s8.bf16 %v587_v6 }
 0x368   : > { %3734 = vmatpush1.bf16.msra.mxu0 %v1062_v13  ;;  %v1230_v13 = vunpack.c.h.s8.bf16 %v362_v12 }
 0x369   : > { %3777 = vmatpush1.bf16.msra.mxu1 %v1510_v20  ;;  %3735 = vmatprep.subr.bf16.mxu0 %v1035_v14  ;;  %v1678_v20 = vunpack.c.h.s8.bf16 %v586_v18  ;;  %v1203_v14 = vunpack.c.l.s8.bf16 %v363_v11  ;;  %v671_v11 = vld [vmem:[%s8436_s29 + $0xe88] sm:$0xff] }
 0x36a   : > { %3778 = vmatprep.subr.bf16.mxu1 %v1483_v22  ;;  %v1651_v22 = vunpack.c.l.s8.bf16 %v587_v6  ;;  %v253_v6 = vld [vmem:[%s8436_s29 + $0x178] sm:$0xff] }
 0x36c   : > { %3736 = vmatpush1.bf16.msra.mxu0 %v1034_v19  ;;  %v1202_v19 = vunpack.c.l.s8.bf16 %v362_v12  ;;  %v252_v12 = vld [vmem:[%s8436_s29 + $0x170] sm:$0xff] }
 0x36d   : > { %3779 = vmatpush1.bf16.msra.mxu1 %v1482_v21  ;;  %3737 = vmatprep.subr.bf16.mxu0 %v1007_v26  ;;  %v1650_v21 = vunpack.c.l.s8.bf16 %v586_v18  ;;  %v1175_v26 = vunpack.c.h.s8.bf16 %v335_v25 }
 0x36e   : > { %3780 = vmatprep.subr.bf16.mxu1 %v1455_v23  ;;  %v1623_v23 = vunpack.c.h.s8.bf16 %v559_v16 }
 0x370   : > { %3738 = vmatpush1.bf16.msra.mxu0 %v1006_v29  ;;  %v1174_v29 = vunpack.c.h.s8.bf16 %v334_v27 }
 0x371   : > { %3781 = vmatpush1.bf16.msra.mxu1 %v1454_v31  ;;  %3739 = vmatprep.subr.bf16.mxu0 %v979_v28  ;;  %v1622_v31 = vunpack.c.h.s8.bf16 %v558_v24  ;;  %v1147_v28 = vunpack.c.l.s8.bf16 %v335_v25  ;;  %v225_v25 = vld [vmem:[%s8436_s29 + $0x98] sm:$0xff] }
 0x372   : > { %3782 = vmatprep.subr.bf16.mxu1 %v1427_v30  ;;  %v1595_v30 = vunpack.c.l.s8.bf16 %v559_v16 }
 0x374   : > { %3740 = vmatpush1.bf16.msra.mxu0 %v978_v34  ;;  %v1146_v34 = vunpack.c.l.s8.bf16 %v334_v27  ;;  %v224_v27 = vld [vmem:[%s8436_s29 + $0x90] sm:$0xff] }
 0x375   : > { %3783 = vmatpush1.bf16.msra.mxu1 %v1426_v35  ;;  %3741 = vmatprep.subr.bf16.mxu0 %v951_v36  ;;  %v1594_v35 = vunpack.c.l.s8.bf16 %v558_v24  ;;  %v2015_v36 = vunpack.c.h.s8.bf16 %v755_v32 }
 0x376   : > { %3784 = vmatprep.subr.bf16.mxu1 %v1399_v37  ;;  %v2295_v37 = vunpack.c.h.s8.bf16 %v895_v33 }
 0x378   : > { %3742 = vmatpush1.bf16.msra.mxu0 %v950_v41  ;;  %v2014_v41 = vunpack.c.h.s8.bf16 %v754_v38 }
 0x379   : > { %3785 = vmatpush1.bf16.msra.mxu1 %v1398_v42  ;;  %3743 = vmatprep.subr.bf16.mxu0 %v923_v43  ;;  %v2294_v42 = vunpack.c.h.s8.bf16 %v894_v39  ;;  %v1987_v43 = vunpack.c.l.s8.bf16 %v755_v32  ;;  %v421_v32 = vld [vmem:[%s8436_s29 + $0x6b8] sm:$0xff] }
 0x37a   : > { %3786 = vmatprep.subr.bf16.mxu1 %v1371_v40  ;;  %v2267_v40 = vunpack.c.l.s8.bf16 %v895_v33 }
 0x37c   : > { %3744 = vmatpush1.bf16.msra.mxu0 %v922_v45  ;;  %v9121_v45 = vld [vmem:[%s10423_s0] ss:$28 sps:$4 sm:$0xff]  }
 0x37d   : > { %3787 = vmatpush1.bf16.msra.mxu1 %v1370_v49  ;;  %3745 = vmatprep.subr.bf16.mxu0 %v1343_v46  ;;  %v1986_v49 = vunpack.c.l.s8.bf16 %v754_v38  ;;  %v2266_v46 = vunpack.c.l.s8.bf16 %v894_v39  ;;  %v420_v38 = vld [vmem:[%s8436_s29 + $0x6b0] sm:$0xff] }
 0x37e   : > { %3788 = vmatprep.subr.bf16.mxu1 %v1791_v53  ;;  %v1959_v53 = vunpack.c.h.s8.bf16 %v727_v44 }
 0x380   : > { %3746 = vmatpush2.bf16.msra.mxu0 %v1342_v51  ;;  %v308_v51 = vld [vmem:[%s8436_s29 + $0x330] sm:$0xff] }
 0x381   : > { %3789 = vmatpush2.bf16.msra.mxu1 %v1790_v56  ;;  %3747 = vmatprep.subr.bf16.mxu0 %v1315_v52  ;;  %v9131_v56 = vld [vmem:[%s10423_s0 + $0x14] ss:$28 sps:$4 sm:$0xff]   ;;  %v1120_v52 = vunpack.c.h.s8.bf16 %v308_v51 }
 0x382   : > { %3790 = vmatprep.subr.bf16.mxu1 %v1763_v57  ;;  %v1931_v57 = vunpack.c.l.s8.bf16 %v727_v44  ;;  %v393_v44 = vld [vmem:[%s8436_s29 + $0x5d8] sm:$0xff] }
 0x384   : > { %3748 = vmatpush2.bf16.msra.mxu0 %v1314_v62  ;;  %v281_v62 = vld [vmem:[%s8436_s29 + $0x258] sm:$0xff] }
 0x385   : > { %3791 = vmatpush2.bf16.msra.mxu1 %v1762_v59  ;;  %3749 = vmatprep.subr.bf16.mxu0 %v1287_v61  ;;  %v1930_v59 = vunpack.c.l.s8.bf16 %v726_v50  ;;  %v1092_v61 = vunpack.c.l.s8.bf16 %v308_v51  ;;  %v1065_v0 = vunpack.c.h.s8.bf16 %v281_v62 }
 0x386   : > { %3792 = vmatprep.subr.bf16.mxu1 %v1735_v63  ;;  %v1903_v63 = vunpack.c.h.s8.bf16 %v699_v60 }
 0x388   : > { %3750 = vmatpush2.bf16.msra.mxu0 %v1286_v2  ;;  %v280_v2 = vld [vmem:[%s8436_s29 + $0x250] sm:$0xff] }
 0x389   : > { %3793 = vmatpush2.bf16.msra.mxu1 %v1734_v3  ;;  %3751 = vmatprep.subr.bf16.mxu0 %v1259_v4  ;;  %v1902_v3 = vunpack.c.h.s8.bf16 %v698_v1  ;;  %v1064_v4 = vunpack.c.h.s8.bf16 %v280_v2 }
 0x38a   : > { %3794 = vmatprep.subr.bf16.mxu1 %v1707_v5  ;;  %v1037_v5 = vunpack.c.l.s8.bf16 %v281_v62 }
 0x38c   : > { %3752 = vmatpush2.bf16.msra.mxu0 %v1258_v7  ;;  %v1874_v7 = vunpack.c.l.s8.bf16 %v698_v1  ;;  %v364_v1 = vld [vmem:[%s8436_s29 + $0x4f0] sm:$0xff] }
 0x38d   : > { %3795 = vmatpush2.bf16.msra.mxu1 %v1706_v8  ;;  %3753 = vmatprep.subr.bf16.mxu0 %v1231_v10  ;;  %v1036_v8 = vunpack.c.l.s8.bf16 %v280_v2  ;;  %v1009_v10 = vunpack.c.h.s8.bf16 %v253_v6 }
 0x38e   : > { %3796 = vmatprep.subr.bf16.mxu1 %v1679_v17  ;;  %v670_v17 = vld [vmem:[%s8436_s29 + $0xe80] sm:$0xff] }
 0x38f   : > { %v1846_v18 = vunpack.c.h.s8.bf16 %v670_v17  ;;  %v1818_v16 = vunpack.c.l.s8.bf16 %v670_v17  ;;  %v532_v17 = vld [vmem:[%s8436_s29 + $0xa30] sm:$0xff] }
 0x390   : > { %3754 = vmatpush2.bf16.msra.mxu0 %v1230_v13  ;;  %v1008_v13 = vunpack.c.h.s8.bf16 %v252_v12 }
 0x391   : > { %3797 = vmatpush2.bf16.msra.mxu1 %v1678_v20  ;;  %3755 = vmatprep.subr.bf16.mxu0 %v1203_v14  ;;  %v1819_v20 = vunpack.c.l.s8.bf16 %v671_v11  ;;  %v981_v14 = vunpack.c.l.s8.bf16 %v253_v6 }
 0x392   : > { %3798 = vmatprep.subr.bf16.mxu1 %v1651_v22  ;;  %v867_v22 = vld [vmem:[%s8436_s29 + $0x14a8] sm:$0xff] }
 0x394   : > { %3756 = vmatpush2.bf16.msra.mxu0 %v1202_v19  ;;  %v980_v19 = vunpack.c.l.s8.bf16 %v252_v12 }
 0x395   : > { %3799 = vmatpush2.bf16.msra.mxu1 %v1650_v21  ;;  %3757 = vmatprep.subr.bf16.mxu0 %v1175_v26  ;;  %v2239_v21 = vunpack.c.h.s8.bf16 %v867_v22  ;;  %v953_v26 = vunpack.c.h.s8.bf16 %v225_v25 }
 0x396   : > { %3800 = vmatprep.subr.bf16.mxu1 %v1623_v23  ;;  %v866_v23 = vld [vmem:[%s8436_s29 + $0x14a0] sm:$0xff] }
 0x397   : > { %v2238_v24 = vunpack.c.h.s8.bf16 %v866_v23  ;;  %v2210_v33 = vunpack.c.l.s8.bf16 %v866_v23  ;;  %v504_v23 = vld [vmem:[%s8436_s29 + $0x950] sm:$0xff] }
 0x398   : > { %3758 = vmatpush2.bf16.msra.mxu0 %v1174_v29  ;;  %v952_v29 = vunpack.c.h.s8.bf16 %v224_v27 }
 0x399   : > { %3801 = vmatpush2.bf16.msra.mxu1 %v1622_v31  ;;  %3759 = vmatprep.subr.bf16.mxu0 %v1147_v28  ;;  %v2211_v31 = vunpack.c.l.s8.bf16 %v867_v22  ;;  %v925_v28 = vunpack.c.l.s8.bf16 %v225_v25  ;;  %v757_v22 = vld [vmem:[%s8436_s29 + $0x1138] sm:$0xff]  ;;  %v9170_v25 = vld [vmem:[%s10423_s0 + $0x10] ss:$28 sps:$4 sm:$0xff]  }
 0x39a   : > { %3802 = vmatprep.subr.bf16.mxu1 %v1595_v30  ;;  %v839_v30 = vld [vmem:[%s8436_s29 + $0x13c8] sm:$0xff] }
 0x39c   : > { %3760 = vmatpush2.bf16.msra.mxu0 %v1146_v34  ;;  %v924_v34 = vunpack.c.l.s8.bf16 %v224_v27  ;;  %v756_v27 = vld [vmem:[%s8436_s29 + $0x1130] sm:$0xff] }
 0x39d   : > { %3803 = vmatpush2.bf16.msra.mxu1 %v1594_v35  ;;  %3815 = vmatprep.subr.bf16.mxu0 %v2015_v36  ;;  %v2183_v35 = vunpack.c.h.s8.bf16 %v839_v30  ;;  %v1345_v36 = vunpack.c.h.s8.bf16 %v421_v32 }
 0x39e   : > { %3870 = vmatprep.subr.bf16.mxu1 %v2295_v37  ;;  %v838_v37 = vld [vmem:[%s8436_s29 + $0x13c0] sm:$0xff] }
 0x39f   : > { %3762 = vmatmul.mubr.bf16.vlgmr.msra.gmra.mxu0 %v9121_v45  ;;  %v2182_v39 = vunpack.c.h.s8.bf16 %v838_v37  ;;  %v2154_v47 = vunpack.c.l.s8.bf16 %v838_v37 }
 0x3a0   : > { %3805 = vmatmul.mubr.bf16.vlgmr.msra.gmra.mxu1 %v9063_v55  ;;  %3816 = vmatpush1.bf16.msra.mxu0 %v2014_v41  ;;  %v1958_v55 = vunpack.c.h.s8.bf16 %v726_v50  ;;  %v1344_v41 = vunpack.c.h.s8.bf16 %v420_v38  ;;  %v392_v50 = vld [vmem:[%s8436_s29 + $0x5d0] sm:$0xff] }
 0x3a1   : > { %3871 = vmatpush1.bf16.msra.mxu1 %v2294_v42  ;;  %3817 = vmatprep.subr.bf16.mxu0 %v1987_v43  ;;  %v2155_v42 = vunpack.c.l.s8.bf16 %v839_v30  ;;  %v1317_v43 = vunpack.c.l.s8.bf16 %v421_v32  ;;  %v1989_v30 = vunpack.c.l.s8.bf16 %v757_v22  ;;  %v477_v32 = vld [vmem:[%s8436_s29 + $0x878] sm:$0xff] }
 0x3a2   : > { %3872 = vmatprep.subr.bf16.mxu1 %v2267_v40  ;;  %3890 = vmatprep.mubr.bf16.mxu1 %v10428_v58  ;;  %v811_v40 = vld [vmem:[%s8436_s29 + $0x12e8] sm:$0xff] }
 0x3a3   : > { %3847 = vmatprep.mubr.bf16.mxu0 %v9131_v56 }
 0x3a4   : > { %3818 = vmatpush1.bf16.msra.mxu0 %v1986_v49  ;;  %v1316_v49 = vunpack.c.l.s8.bf16 %v420_v38  ;;  %v476_v38 = vld [vmem:[%s8436_s29 + $0x870] sm:$0xff] }
 0x3a5   : > { %3873 = vmatpush1.bf16.msra.mxu1 %v2266_v46  ;;  %3819 = vmatprep.subr.bf16.mxu0 %v1959_v53  ;;  %v2127_v46 = vunpack.c.h.s8.bf16 %v811_v40  ;;  %v1289_v53 = vunpack.c.h.s8.bf16 %v393_v44 }
 0x3a6   : > { %3901 = vmatprep.subr.bf16.mxu1 %v1121_v48  ;;  %v810_v48 = vld [vmem:[%s8436_s29 + $0x12e0] sm:$0xff] }
 0x3a7   : > { %v2126_v51 = vunpack.c.h.s8.bf16 %v810_v48  ;;  %v2098_v62 = vunpack.c.l.s8.bf16 %v810_v48  ;;  %v700_v48 = vld [vmem:[%s8436_s29 + $0xf70] sm:$0xff] }
 0x3a8   : > { %7403 = vmatmul.mubr.msk.bf16.vlgmr.msra.gmra.mxu1 %vm2349_vm1, %v9075_v9  ;;  %3820 = vmatpush1.bf16.msra.mxu0 %v1958_v55  ;;  %v1875_v9 = vunpack.c.l.s8.bf16 %v699_v60  ;;  %v1288_v55 = vunpack.c.h.s8.bf16 %v392_v50  ;;  %v365_v60 = vld [vmem:[%s8436_s29 + $0x4f8] sm:$0xff] }
 0x3a9   : > { %3902 = vmatpush1.bf16.msra.mxu1 %v1120_v52  ;;  %3821 = vmatprep.subr.bf16.mxu0 %v1931_v57  ;;  %v2099_v52 = vunpack.c.l.s8.bf16 %v811_v40  ;;  %v1261_v57 = vunpack.c.l.s8.bf16 %v393_v44  ;;  %v449_v40 = vld [vmem:[%s8436_s29 + $0x798] sm:$0xff] }
 0x3aa   : > { %3903 = vmatprep.subr.bf16.mxu1 %v1093_v54  ;;  %3933 = vmatprep.mubr.bf16.mxu1 %v9084_v15  ;;  %v1847_v15 = vunpack.c.h.s8.bf16 %v671_v11  ;;  %v783_v54 = vld [vmem:[%s8436_s29 + $0x1208] sm:$0xff]  ;;  %v533_v11 = vld [vmem:[%s8436_s29 + $0xa38] sm:$0xff] }
 0x3ab   : > { %v701_v44 = vld [vmem:[%s8436_s29 + $0xf78] sm:$0xff] }
 0x3ac   : > { %3822 = vmatpush1.bf16.msra.mxu0 %v1930_v59  ;;  %v1260_v59 = vunpack.c.l.s8.bf16 %v392_v50 }
 0x3ad   : > { %3904 = vmatpush1.bf16.msra.mxu1 %v1092_v61  ;;  %3823 = vmatprep.subr.bf16.mxu0 %v1903_v63  ;;  %v2071_v61 = vunpack.c.h.s8.bf16 %v783_v54  ;;  %v1233_v63 = vunpack.c.h.s8.bf16 %v365_v60 }
 0x3ae   : > { %3905 = vmatprep.subr.bf16.mxu1 %v1065_v0  ;;  %v782_v0 = vld [vmem:[%s8436_s29 + $0x1200] sm:$0xff] }
 0x3af   : > { %v2070_v2 = vunpack.c.h.s8.bf16 %v782_v0  ;;  %v2042_v6 = vunpack.c.l.s8.bf16 %v782_v0  ;;  %v672_v0 = vld [vmem:[%s8436_s29 + $0xe90] sm:$0xff] }
 0x3b0   : > { %3824 = vmatpush1.bf16.msra.mxu0 %v1902_v3  ;;  %v1232_v3 = vunpack.c.h.s8.bf16 %v364_v1 }
 0x3b1   : > { %3906 = vmatpush1.bf16.msra.mxu1 %v1064_v4  ;;  %3825 = vmatprep.subr.bf16.mxu0 %v1875_v9  ;;  %v2043_v4 = vunpack.c.l.s8.bf16 %v783_v54  ;;  %v1205_v9 = vunpack.c.l.s8.bf16 %v365_v60  ;;  %v673_v54 = vld [vmem:[%s8436_s29 + $0xe98] sm:$0xff] }
 0x3b2   : > { %3907 = vmatprep.subr.bf16.mxu1 %v1037_v5  ;;  %v337_v5 = vld [vmem:[%s8436_s29 + $0x418] sm:$0xff] }
 0x3b4   : > { %3826 = vmatpush1.bf16.msra.mxu0 %v1874_v7  ;;  %v1204_v7 = vunpack.c.l.s8.bf16 %v364_v1 }
 0x3b5   : > { %3908 = vmatpush1.bf16.msra.mxu1 %v1036_v8  ;;  %3827 = vmatprep.subr.bf16.mxu0 %v1847_v15  ;;  %v1177_v8 = vunpack.c.h.s8.bf16 %v337_v5  ;;  %v1569_v15 = vunpack.c.h.s8.bf16 %v533_v11 }
 0x3b6   : > { %3909 = vmatprep.subr.bf16.mxu1 %v1009_v10  ;;  %v336_v10 = vld [vmem:[%s8436_s29 + $0x410] sm:$0xff] }
 0x3b7   : > { %v1176_v12 = vunpack.c.h.s8.bf16 %v336_v10 }
 0x3b8   : > { %3828 = vmatpush1.bf16.msra.mxu0 %v1846_v18  ;;  %v1568_v18 = vunpack.c.h.s8.bf16 %v532_v17 }
 0x3b9   : > { %3910 = vmatpush1.bf16.msra.mxu1 %v1008_v13  ;;  %3829 = vmatprep.subr.bf16.mxu0 %v1819_v20  ;;  %v1149_v13 = vunpack.c.l.s8.bf16 %v337_v5  ;;  %v1541_v20 = vunpack.c.l.s8.bf16 %v533_v11  ;;  %v869_v5 = vld [vmem:[%s8436_s29 + $0x14b8] sm:$0xff] }
 0x3ba   : > { %3911 = vmatprep.subr.bf16.mxu1 %v981_v14  ;;  %v505_v14 = vld [vmem:[%s8436_s29 + $0x958] sm:$0xff] }
 0x3bc   : > { %3830 = vmatpush1.bf16.msra.mxu0 %v1818_v16  ;;  %v1148_v16 = vunpack.c.l.s8.bf16 %v336_v10  ;;  %v868_v10 = vld [vmem:[%s8436_s29 + $0x14b0] sm:$0xff] }
 0x3bd   : > { %3912 = vmatpush1.bf16.msra.mxu1 %v980_v19  ;;  %3831 = vmatprep.subr.bf16.mxu0 %v2239_v21  ;;  %v1540_v19 = vunpack.c.l.s8.bf16 %v532_v17  ;;  %v1513_v21 = vunpack.c.h.s8.bf16 %v505_v14 }
 0x3be   : > { %3913 = vmatprep.subr.bf16.mxu1 %v953_v26  ;;  %v2017_v26 = vunpack.c.h.s8.bf16 %v757_v22 }
 0x3c0   : > { %3832 = vmatpush2.bf16.msra.mxu0 %v2238_v24  ;;  %v9178_v24 = vld [vmem:[%s10423_s0 + $0xc] ss:$28 sps:$4 sm:$0xff]  }
 0x3c1   : > { %3914 = vmatpush1.bf16.msra.mxu1 %v952_v29  ;;  %3833 = vmatprep.subr.bf16.mxu0 %v2211_v31  ;;  %v1512_v29 = vunpack.c.h.s8.bf16 %v504_v23  ;;  %v2016_v31 = vunpack.c.h.s8.bf16 %v756_v27 }
 0x3c2   : > { %3915 = vmatprep.subr.bf16.mxu1 %v925_v28  ;;  %v1485_v28 = vunpack.c.l.s8.bf16 %v505_v14  ;;  %v841_v14 = vld [vmem:[%s8436_s29 + $0x13d8] sm:$0xff] }
 0x3c4   : > { %3834 = vmatpush2.bf16.msra.mxu0 %v2210_v33  ;;  %v729_v33 = vld [vmem:[%s8436_s29 + $0x1058] sm:$0xff] }
 0x3c5   : > { %3916 = vmatpush1.bf16.msra.mxu1 %v924_v34  ;;  %3835 = vmatprep.subr.bf16.mxu0 %v2183_v35  ;;  %v1484_v34 = vunpack.c.l.s8.bf16 %v504_v23  ;;  %v1988_v35 = vunpack.c.l.s8.bf16 %v756_v27  ;;  %v1961_v37 = vunpack.c.h.s8.bf16 %v729_v33  ;;  %v840_v23 = vld [vmem:[%s8436_s29 + $0x13d0] sm:$0xff] }
 0x3c6   : > { %3917 = vmatprep.subr.bf16.mxu1 %v1345_v36  ;;  %v1457_v36 = vunpack.c.h.s8.bf16 %v477_v32 }
 0x3c8   : > { %3836 = vmatpush2.bf16.msra.mxu0 %v2182_v39  ;;  %v728_v39 = vld [vmem:[%s8436_s29 + $0x1050] sm:$0xff] }
 0x3c9   : > { %3918 = vmatpush2.bf16.msra.mxu1 %v1344_v41  ;;  %3837 = vmatprep.subr.bf16.mxu0 %v2155_v42  ;;  %v1456_v41 = vunpack.c.h.s8.bf16 %v476_v38  ;;  %v1960_v42 = vunpack.c.h.s8.bf16 %v728_v39 }
 0x3ca   : > { %3919 = vmatprep.subr.bf16.mxu1 %v1317_v43  ;;  %v1933_v43 = vunpack.c.l.s8.bf16 %v729_v33 }
 0x3cc   : > { %3838 = vmatpush2.bf16.msra.mxu0 %v2154_v47  ;;  %v1428_v47 = vunpack.c.l.s8.bf16 %v476_v38  ;;  %v812_v38 = vld [vmem:[%s8436_s29 + $0x12f0] sm:$0xff] }
 0x3cd   : > { %3920 = vmatpush2.bf16.msra.mxu1 %v1316_v49  ;;  %3839 = vmatprep.subr.bf16.mxu0 %v2127_v46  ;;  %v1932_v49 = vunpack.c.l.s8.bf16 %v728_v39  ;;  %v1905_v46 = vunpack.c.h.s8.bf16 %v701_v44 }
 0x3ce   : > { %3921 = vmatprep.subr.bf16.mxu1 %v1289_v53  ;;  %v448_v53 = vld [vmem:[%s8436_s29 + $0x790] sm:$0xff] }
 0x3cf   : > { %v1400_v50 = vunpack.c.h.s8.bf16 %v448_v53  ;;  %v1372_v60 = vunpack.c.l.s8.bf16 %v448_v53  ;;  %v896_v53 = vld [vmem:[%s8436_s29 + $0x1590] sm:$0xff] }
 0x3d0   : > { %3840 = vmatpush2.bf16.msra.mxu0 %v2126_v51  ;;  %v1904_v51 = vunpack.c.h.s8.bf16 %v700_v48 }
 0x3d1   : > { %3922 = vmatpush2.bf16.msra.mxu1 %v1288_v55  ;;  %3841 = vmatprep.subr.bf16.mxu0 %v2099_v52  ;;  %v1373_v55 = vunpack.c.l.s8.bf16 %v449_v40  ;;  %v1877_v52 = vunpack.c.l.s8.bf16 %v701_v44 }
 0x3d2   : > { %3923 = vmatprep.subr.bf16.mxu1 %v1261_v57  ;;  %v645_v57 = vld [vmem:[%s8436_s29 + $0xdb8] sm:$0xff] }
 0x3d4   : > { %3842 = vmatpush2.bf16.msra.mxu0 %v2098_v62  ;;  %v1876_v62 = vunpack.c.l.s8.bf16 %v700_v48 }
 0x3d5   : > { %3924 = vmatpush2.bf16.msra.mxu1 %v1260_v59  ;;  %3843 = vmatprep.subr.bf16.mxu0 %v2071_v61  ;;  %v1793_v59 = vunpack.c.h.s8.bf16 %v645_v57  ;;  %v1849_v61 = vunpack.c.h.s8.bf16 %v673_v54 }
 0x3d6   : > { %3925 = vmatprep.subr.bf16.mxu1 %v1233_v63  ;;  %v644_v63 = vld [vmem:[%s8436_s29 + $0xdb0] sm:$0xff] }
 0x3d7   : > { %v1792_v1 = vunpack.c.h.s8.bf16 %v644_v63  ;;  %v1764_v11 = vunpack.c.l.s8.bf16 %v644_v63  ;;  %v310_v63 = vld [vmem:[%s8436_s29 + $0x340] sm:$0xff] }
 0x3d8   : > { %3844 = vmatpush2.bf16.msra.mxu0 %v2070_v2  ;;  %v1848_v2 = vunpack.c.h.s8.bf16 %v672_v0 }
 0x3d9   : > { %3926 = vmatpush2.bf16.msra.mxu1 %v1232_v3  ;;  %3845 = vmatprep.subr.bf16.mxu0 %v2043_v4  ;;  %v1765_v3 = vunpack.c.l.s8.bf16 %v645_v57  ;;  %v1821_v4 = vunpack.c.l.s8.bf16 %v673_v54  ;;  %v535_v57 = vld [vmem:[%s8436_s29 + $0xa48] sm:$0xff] }
 0x3da   : > { %3927 = vmatprep.subr.bf16.mxu1 %v1205_v9  ;;  %v617_v9 = vld [vmem:[%s8436_s29 + $0xcd8] sm:$0xff]  ;;  %v9216_v54 = vld [vmem:[%s10423_s0 + $0x8] ss:$28 sps:$4 sm:$0xff]  }
 0x3dc   : > { %3846 = vmatpush2.bf16.msra.mxu0 %v2042_v6  ;;  %v1820_v6 = vunpack.c.l.s8.bf16 %v672_v0  ;;  %v534_v0 = vld [vmem:[%s8436_s29 + $0xa40] sm:$0xff] }
 0x3dd   : > { %3928 = vmatpush2.bf16.msra.mxu1 %v1204_v7  ;;  %3944 = vmatprep.subr.bf16.mxu0 %v1569_v15  ;;  %v1737_v7 = vunpack.c.h.s8.bf16 %v617_v9  ;;  %v616_v15 = vld [vmem:[%s8436_s29 + $0xcd0] sm:$0xff] }
 0x3de   : > { %3929 = vmatprep.subr.bf16.mxu1 %v1177_v8  ;;  %v2241_v8 = vunpack.c.h.s8.bf16 %v869_v5  ;;  %v1736_v17 = vunpack.c.h.s8.bf16 %v616_v15  ;;  %v1708_v22 = vunpack.c.l.s8.bf16 %v616_v15 }
 0x3df   : > { %3848 = vmatmul.mubr.bf16.vlgmr.msra.gmra.mxu0 %v9170_v25 }
 0x3e0   : > { %3945 = vmatpush1.bf16.msra.mxu0 %v1568_v18  ;;  %3976 = vmatprep.mubr.bf16.mxu0 %v9178_v24  ;;  %v1709_v18 = vunpack.c.l.s8.bf16 %v617_v9  ;;  %v283_v9 = vld [vmem:[%s8436_s29 + $0x268] sm:$0xff] }
 0x3e1   : > { %3930 = vmatpush2.bf16.msra.mxu1 %v1176_v12  ;;  %3946 = vmatprep.subr.bf16.mxu0 %v1541_v20  ;;  %v2240_v12 = vunpack.c.h.s8.bf16 %v868_v10  ;;  %v589_v20 = vld [vmem:[%s8436_s29 + $0xbf8] sm:$0xff] }
 0x3e2   : > { %3931 = vmatprep.subr.bf16.mxu1 %v1149_v13  ;;  %v2213_v13 = vunpack.c.l.s8.bf16 %v869_v5  ;;  %v507_v5 = vld [vmem:[%s8436_s29 + $0x968] sm:$0xff] }
 0x3e3   : > { %v1515_v15 = vunpack.c.h.s8.bf16 %v507_v5 }
 0x3e4   : > { %3947 = vmatpush1.bf16.msra.mxu0 %v1540_v19  ;;  %v1681_v19 = vunpack.c.h.s8.bf16 %v589_v20 }
 0x3e5   : > { %3932 = vmatpush2.bf16.msra.mxu1 %v1148_v16  ;;  %3948 = vmatprep.subr.bf16.mxu0 %v1513_v21  ;;  %v2212_v16 = vunpack.c.l.s8.bf16 %v868_v10  ;;  %v2185_v21 = vunpack.c.h.s8.bf16 %v841_v14  ;;  %v282_v10 = vld [vmem:[%s8436_s29 + $0x260] sm:$0xff] }
 0x3e6   : > { %3987 = vmatprep.subr.bf16.mxu1 %v2017_v26  ;;  %v588_v26 = vld [vmem:[%s8436_s29 + $0xbf0] sm:$0xff] }
 0x3e7   : > { %v1680_v27 = vunpack.c.h.s8.bf16 %v588_v26  ;;  %v1652_v33 = vunpack.c.l.s8.bf16 %v588_v26  ;;  %v254_v26 = vld [vmem:[%s8436_s29 + $0x180] sm:$0xff] }
 0x3e8   : > { %3934 = vmatmul.mubr.bf16.vlgmr.msra.gmra.mxu1 %v9121_v45  ;;  %3949 = vmatpush1.bf16.msra.mxu0 %v1512_v29  ;;  %v1429_v45 = vunpack.c.l.s8.bf16 %v477_v32  ;;  %v2184_v29 = vunpack.c.h.s8.bf16 %v840_v23  ;;  %v813_v32 = vld [vmem:[%s8436_s29 + $0x12f8] sm:$0xff] }
 0x3e9   : > { %3988 = vmatpush1.bf16.msra.mxu1 %v2016_v31  ;;  %3950 = vmatprep.subr.bf16.mxu0 %v1485_v28  ;;  %v1653_v31 = vunpack.c.l.s8.bf16 %v589_v20  ;;  %v2157_v28 = vunpack.c.l.s8.bf16 %v841_v14  ;;  %v1487_v20 = vunpack.c.l.s8.bf16 %v507_v5  ;;  %v255_v14 = vld [vmem:[%s8436_s29 + $0x188] sm:$0xff] }
 0x3ea   : > { %3989 = vmatprep.subr.bf16.mxu1 %v1989_v30  ;;  %4019 = vmatprep.mubr.bf16.mxu1 %v9131_v56  ;;  %v1401_v56 = vunpack.c.h.s8.bf16 %v449_v40  ;;  %v561_v30 = vld [vmem:[%s8436_s29 + $0xb18] sm:$0xff]  ;;  %v591_v5 = vld [vmem:[%s8436_s29 + $0xc08] sm:$0xff] }
 0x3eb   : > { %v897_v40 = vld [vmem:[%s8436_s29 + $0x1598] sm:$0xff] }
 0x3ec   : > { %3951 = vmatpush1.bf16.msra.mxu0 %v1484_v34  ;;  %v2156_v34 = vunpack.c.l.s8.bf16 %v840_v23  ;;  %v478_v23 = vld [vmem:[%s8436_s29 + $0x880] sm:$0xff] }
 0x3ed   : > { %3990 = vmatpush1.bf16.msra.mxu1 %v1988_v35  ;;  %3952 = vmatprep.subr.bf16.mxu0 %v1457_v36  ;;  %v1625_v35 = vunpack.c.h.s8.bf16 %v561_v30  ;;  %v2129_v36 = vunpack.c.h.s8.bf16 %v813_v32 }
 0x3ee   : > { %3991 = vmatprep.subr.bf16.mxu1 %v1961_v37  ;;  %v560_v37 = vld [vmem:[%s8436_s29 + $0xb10] sm:$0xff] }
 0x3ef   : > { %v1624_v39 = vunpack.c.h.s8.bf16 %v560_v37  ;;  %v1596_v44 = vunpack.c.l.s8.bf16 %v560_v37  ;;  %v226_v37 = vld [vmem:[%s8436_s29 + $0xa0] sm:$0xff] }
 0x3f0   : > { %3953 = vmatpush1.bf16.msra.mxu0 %v1456_v41  ;;  %v2128_v41 = vunpack.c.h.s8.bf16 %v812_v38 }
 0x3f1   : > { %3992 = vmatpush1.bf16.msra.mxu1 %v1960_v42  ;;  %3954 = vmatprep.subr.bf16.mxu0 %v1429_v45  ;;  %v1597_v42 = vunpack.c.l.s8.bf16 %v561_v30  ;;  %v2101_v45 = vunpack.c.l.s8.bf16 %v813_v32  ;;  %v227_v30 = vld [vmem:[%s8436_s29 + $0xa8] sm:$0xff] }
 0x3f2   : > { %3993 = vmatprep.subr.bf16.mxu1 %v1933_v43  ;;  %v785_v43 = vld [vmem:[%s8436_s29 + $0x1218] sm:$0xff]  ;;  %v451_v32 = vld [vmem:[%s8436_s29 + $0x7a8] sm:$0xff] }
 0x3f4   : > { %3955 = vmatpush1.bf16.msra.mxu0 %v1428_v47  ;;  %v2100_v47 = vunpack.c.l.s8.bf16 %v812_v38  ;;  %v450_v38 = vld [vmem:[%s8436_s29 + $0x7a0] sm:$0xff] }
 0x3f5   : > { %3994 = vmatpush1.bf16.msra.mxu1 %v1932_v49  ;;  %3956 = vmatprep.subr.bf16.mxu0 %v1401_v56  ;;  %v2073_v49 = vunpack.c.h.s8.bf16 %v785_v43  ;;  %v2297_v56 = vunpack.c.h.s8.bf16 %v897_v40 }
 0x3f6   : > { %3995 = vmatprep.subr.bf16.mxu1 %v1905_v46  ;;  %v784_v46 = vld [vmem:[%s8436_s29 + $0x1210] sm:$0xff] }
 0x3f7   : > { %v2072_v48 = vunpack.c.h.s8.bf16 %v784_v46 }
 0x3f8   : > { %3957 = vmatpush1.bf16.msra.mxu0 %v1400_v50  ;;  %v2296_v50 = vunpack.c.h.s8.bf16 %v896_v53 }
 0x3f9   : > { %3996 = vmatpush1.bf16.msra.mxu1 %v1904_v51  ;;  %3958 = vmatprep.subr.bf16.mxu0 %v1373_v55  ;;  %v2045_v51 = vunpack.c.l.s8.bf16 %v785_v43  ;;  %v2269_v55 = vunpack.c.l.s8.bf16 %v897_v40  ;;  %v423_v43 = vld [vmem:[%s8436_s29 + $0x6c8] sm:$0xff] }
 0x3fa   : > { %3997 = vmatprep.subr.bf16.mxu1 %v1877_v52  ;;  %v311_v52 = vld [vmem:[%s8436_s29 + $0x348] sm:$0xff] }
 0x3fb   : > { %v647_v40 = vld [vmem:[%s8436_s29 + $0xdc8] sm:$0xff] }
 0x3fc   : > { %3959 = vmatpush1.bf16.msra.mxu0 %v1372_v60  ;;  %v2044_v60 = vunpack.c.l.s8.bf16 %v784_v46  ;;  %v422_v46 = vld [vmem:[%s8436_s29 + $0x6c0] sm:$0xff] }
 0x3fd   : > { %3998 = vmatpush1.bf16.msra.mxu1 %v1876_v62  ;;  %3960 = vmatprep.subr.bf16.mxu0 %v1793_v59  ;;  %v2268_v62 = vunpack.c.l.s8.bf16 %v896_v53  ;;  %v1123_v59 = vunpack.c.h.s8.bf16 %v311_v52  ;;  %v646_v53 = vld [vmem:[%s8436_s29 + $0xdc0] sm:$0xff] }
 0x3fe   : > { %3999 = vmatprep.subr.bf16.mxu1 %v1849_v61  ;;  %v1571_v61 = vunpack.c.h.s8.bf16 %v535_v57 }
 0x400   : > { %3961 = vmatpush2.bf16.msra.mxu0 %v1792_v1  ;;  %v1122_v1 = vunpack.c.h.s8.bf16 %v310_v63 }
 0x401   : > { %4000 = vmatpush1.bf16.msra.mxu1 %v1848_v2  ;;  %3962 = vmatprep.subr.bf16.mxu0 %v1765_v3  ;;  %v1570_v2 = vunpack.c.h.s8.bf16 %v534_v0  ;;  %v1095_v3 = vunpack.c.l.s8.bf16 %v311_v52  ;;  %v395_v52 = vld [vmem:[%s8436_s29 + $0x5e8] sm:$0xff] }
 0x402   : > { %4001 = vmatprep.subr.bf16.mxu1 %v1821_v4  ;;  %v1543_v4 = vunpack.c.l.s8.bf16 %v535_v57  ;;  %v619_v57 = vld [vmem:[%s8436_s29 + $0xce8] sm:$0xff] }
 0x404   : > { %3963 = vmatpush2.bf16.msra.mxu0 %v1764_v11  ;;  %v9228_v11 = vld [vmem:[%s10423_s0 + $0x18] ss:$28 sps:$4 sm:$0xff]  }
 0x405   : > { %4002 = vmatpush1.bf16.msra.mxu1 %v1820_v6  ;;  %3964 = vmatprep.subr.bf16.mxu0 %v1737_v7  ;;  %v1094_v6 = vunpack.c.l.s8.bf16 %v310_v63  ;;  %v1542_v7 = vunpack.c.l.s8.bf16 %v534_v0  ;;  %v394_v63 = vld [vmem:[%s8436_s29 + $0x5e0] sm:$0xff] }
 0x406   : > { %4003 = vmatprep.subr.bf16.mxu1 %v2241_v8  ;;  %v1067_v8 = vunpack.c.h.s8.bf16 %v283_v9  ;;  %v618_v0 = vld [vmem:[%s8436_s29 + $0xce0] sm:$0xff] }
 0x408   : > { %3965 = vmatpush2.bf16.msra.mxu0 %v1736_v17  ;;  %v9237_v17 = vld [vmem:[%s10423_s0 + $0x4] ss:$28 sps:$4 sm:$0xff]  }
 0x409   : > { %4004 = vmatpush2.bf16.msra.mxu1 %v2240_v12  ;;  %3966 = vmatprep.subr.bf16.mxu0 %v1709_v18  ;;  %v1066_v12 = vunpack.c.h.s8.bf16 %v282_v10 }
 0x40a   : > { %4005 = vmatprep.subr.bf16.mxu1 %v2213_v13  ;;  %v1039_v13 = vunpack.c.l.s8.bf16 %v283_v9  ;;  %v367_v9 = vld [vmem:[%s8436_s29 + $0x508] sm:$0xff] }
 0x40c   : > { %3967 = vmatpush2.bf16.msra.mxu0 %v1708_v22  ;;  %v479_v22 = vld [vmem:[%s8436_s29 + $0x888] sm:$0xff] }
 0x40d   : > { %4006 = vmatpush2.bf16.msra.mxu1 %v2212_v16  ;;  %3968 = vmatprep.subr.bf16.mxu0 %v1681_v19  ;;  %v1038_v16 = vunpack.c.l.s8.bf16 %v282_v10  ;;  %v366_v10 = vld [vmem:[%s8436_s29 + $0x500] sm:$0xff] }
 0x40e   : > { %4007 = vmatprep.subr.bf16.mxu1 %v2185_v21  ;;  %v1459_v21 = vunpack.c.h.s8.bf16 %v479_v22 }
 0x410   : > { %3969 = vmatpush2.bf16.msra.mxu0 %v1680_v27  ;;  %v1010_v27 = vunpack.c.h.s8.bf16 %v254_v26 }
 0x411   : > { %4008 = vmatpush2.bf16.msra.mxu1 %v2184_v29  ;;  %3970 = vmatprep.subr.bf16.mxu0 %v1653_v31  ;;  %v1458_v29 = vunpack.c.h.s8.bf16 %v478_v23  ;;  %v983_v31 = vunpack.c.l.s8.bf16 %v255_v14 }
 0x412   : > { %4009 = vmatprep.subr.bf16.mxu1 %v2157_v28  ;;  %v1431_v28 = vunpack.c.l.s8.bf16 %v479_v22  ;;  %v563_v22 = vld [vmem:[%s8436_s29 + $0xb28] sm:$0xff] }
 0x414   : > { %3971 = vmatpush2.bf16.msra.mxu0 %v1652_v33  ;;  %v982_v33 = vunpack.c.l.s8.bf16 %v254_v26  ;;  %v338_v26 = vld [vmem:[%s8436_s29 + $0x420] sm:$0xff] }
 0x415   : > { %4010 = vmatpush2.bf16.msra.mxu1 %v2156_v34  ;;  %3972 = vmatprep.subr.bf16.mxu0 %v1625_v35  ;;  %v1430_v34 = vunpack.c.l.s8.bf16 %v478_v23  ;;  %v955_v35 = vunpack.c.h.s8.bf16 %v227_v30  ;;  %v562_v23 = vld [vmem:[%s8436_s29 + $0xb20] sm:$0xff] }
 0x416   : > { %4011 = vmatprep.subr.bf16.mxu1 %v2129_v36  ;;  %v1403_v36 = vunpack.c.h.s8.bf16 %v451_v32 }
 0x418   : > { %3973 = vmatpush2.bf16.msra.mxu0 %v1624_v39  ;;  %v954_v39 = vunpack.c.h.s8.bf16 %v226_v37 }
 0x419   : > { %4012 = vmatpush2.bf16.msra.mxu1 %v2128_v41  ;;  %3974 = vmatprep.subr.bf16.mxu0 %v1597_v42  ;;  %v1402_v41 = vunpack.c.h.s8.bf16 %v450_v38  ;;  %v927_v42 = vunpack.c.l.s8.bf16 %v227_v30  ;;  %v759_v30 = vld [vmem:[%s8436_s29 + $0x1148] sm:$0xff] }
 0x41a   : > { %4013 = vmatprep.subr.bf16.mxu1 %v2101_v45  ;;  %v1375_v45 = vunpack.c.l.s8.bf16 %v451_v32  ;;  %v899_v32 = vld [vmem:[%s8436_s29 + $0x15a8] sm:$0xff] }
 0x41c   : > { %3975 = vmatpush2.bf16.msra.mxu0 %v1596_v44  ;;  %v926_v44 = vunpack.c.l.s8.bf16 %v226_v37  ;;  %v758_v37 = vld [vmem:[%s8436_s29 + $0x1140] sm:$0xff] }
 0x41d   : > { %4014 = vmatpush2.bf16.msra.mxu1 %v2100_v47  ;;  %4042 = vmatprep.subr.bf16.mxu0 %v2297_v56  ;;  %v1374_v47 = vunpack.c.l.s8.bf16 %v450_v38  ;;  %v1795_v56 = vunpack.c.h.s8.bf16 %v647_v40  ;;  %v898_v38 = vld [vmem:[%s8436_s29 + $0x15a0] sm:$0xff] }
 0x41e   : > { %4015 = vmatprep.subr.bf16.mxu1 %v2073_v49  ;;  %v1347_v49 = vunpack.c.h.s8.bf16 %v423_v43 }
 0x41f   : > { %3977 = vmatmul.mubr.bf16.vlgmr.msra.gmra.mxu0 %v9216_v54 }
 0x420   : > { %4043 = vmatpush1.bf16.msra.mxu0 %v2296_v50  ;;  %4062 = vmatprep.mubr.bf16.mxu0 %v10428_v58  ;;  %v1794_v50 = vunpack.c.h.s8.bf16 %v646_v53 }
 0x421   : > { %4016 = vmatpush2.bf16.msra.mxu1 %v2072_v48  ;;  %4044 = vmatprep.subr.bf16.mxu0 %v2269_v55  ;;  %v1346_v48 = vunpack.c.h.s8.bf16 %v422_v46  ;;  %v1767_v55 = vunpack.c.l.s8.bf16 %v647_v40  ;;  %v313_v40 = vld [vmem:[%s8436_s29 + $0x358] sm:$0xff] }
 0x422   : > { %4017 = vmatprep.subr.bf16.mxu1 %v2045_v51  ;;  %v1319_v51 = vunpack.c.l.s8.bf16 %v423_v43  ;;  %v731_v43 = vld [vmem:[%s8436_s29 + $0x1068] sm:$0xff] }
 0x424   : > { %4045 = vmatpush1.bf16.msra.mxu0 %v2268_v62  ;;  %v1766_v62 = vunpack.c.l.s8.bf16 %v646_v53  ;;  %v730_v53 = vld [vmem:[%s8436_s29 + $0x1060] sm:$0xff] }
 0x425   : > { %4018 = vmatpush2.bf16.msra.mxu1 %v2044_v60  ;;  %4073 = vmatprep.subr.bf16.mxu0 %v1123_v59  ;;  %v1318_v60 = vunpack.c.l.s8.bf16 %v422_v46  ;;  %v1291_v59 = vunpack.c.h.s8.bf16 %v395_v52  ;;  %v1125_v46 = vunpack.c.h.s8.bf16 %v313_v40 }
 0x426   : > { %4116 = vmatprep.subr.bf16.mxu1 %v1571_v61  ;;  %v1739_v61 = vunpack.c.h.s8.bf16 %v619_v57 }
 0x427   : > { %7404 = vmatmul.mubr.msk.bf16.vlgmr.msra.gmra.mxu0 %vm2349_vm1, %v9228_v11 }
 0x428   : > { %4020 = vmatmul.mubr.bf16.vlgmr.msra.gmra.mxu1 %v9170_v25  ;;  %4074 = vmatpush1.bf16.msra.mxu0 %v1122_v1  ;;  %v506_v25 = vld [vmem:[%s8436_s29 + $0x960] sm:$0xff]  ;;  %v1290_v1 = vunpack.c.h.s8.bf16 %v394_v63 }
 0x429   : > { %4117 = vmatpush1.bf16.msra.mxu1 %v1570_v2  ;;  %4075 = vmatprep.subr.bf16.mxu0 %v1095_v3  ;;  %v1514_v18 = vunpack.c.h.s8.bf16 %v506_v25  ;;  %v1486_v19 = vunpack.c.l.s8.bf16 %v506_v25  ;;  %v1738_v2 = vunpack.c.h.s8.bf16 %v618_v0  ;;  %v1263_v3 = vunpack.c.l.s8.bf16 %v395_v52  ;;  %v590_v25 = vld [vmem:[%s8436_s29 + $0xc00] sm:$0xff] }
 0x42a   : > { %4118 = vmatprep.subr.bf16.mxu1 %v1543_v4  ;;  %4105 = vmatprep.mubr.bf16.mxu0 %v9237_v17  ;;  %v1711_v4 = vunpack.c.l.s8.bf16 %v619_v57  ;;  %v1097_v52 = vunpack.c.l.s8.bf16 %v313_v40  ;;  %v703_v57 = vld [vmem:[%s8436_s29 + $0xf88] sm:$0xff] }
 0x42b   : > { %4148 = vmatprep.mubr.bf16.mxu1 %v9178_v24  ;;  %v1011_v24 = vunpack.c.h.s8.bf16 %v255_v14  ;;  %v339_v14 = vld [vmem:[%s8436_s29 + $0x428] sm:$0xff] }
 0x42c   : > { %4076 = vmatpush1.bf16.msra.mxu0 %v1094_v6  ;;  %v1262_v6 = vunpack.c.l.s8.bf16 %v394_v63 }
 0x42d   : > { %4119 = vmatpush1.bf16.msra.mxu1 %v1542_v7  ;;  %4077 = vmatprep.subr.bf16.mxu0 %v1067_v8  ;;  %v1710_v7 = vunpack.c.l.s8.bf16 %v618_v0  ;;  %v1235_v8 = vunpack.c.h.s8.bf16 %v367_v9  ;;  %v702_v0 = vld [vmem:[%s8436_s29 + $0xf80] sm:$0xff] }
 0x42e   : > { %4120 = vmatprep.subr.bf16.mxu1 %v1515_v15  ;;  %v1683_v15 = vunpack.c.h.s8.bf16 %v591_v5 }
 0x430   : > { %4078 = vmatpush1.bf16.msra.mxu0 %v1066_v12  ;;  %v1234_v12 = vunpack.c.h.s8.bf16 %v366_v10 }
 0x431   : > { %4121 = vmatpush1.bf16.msra.mxu1 %v1514_v18  ;;  %4079 = vmatprep.subr.bf16.mxu0 %v1039_v13  ;;  %v1682_v18 = vunpack.c.h.s8.bf16 %v590_v25  ;;  %v1207_v13 = vunpack.c.l.s8.bf16 %v367_v9  ;;  %v675_v9 = vld [vmem:[%s8436_s29 + $0xea8] sm:$0xff] }
 0x432   : > { %4122 = vmatprep.subr.bf16.mxu1 %v1487_v20  ;;  %v1655_v20 = vunpack.c.l.s8.bf16 %v591_v5  ;;  %v257_v5 = vld [vmem:[%s8436_s29 + $0x198] sm:$0xff] }
 0x434   : > { %4080 = vmatpush1.bf16.msra.mxu0 %v1038_v16  ;;  %v1206_v16 = vunpack.c.l.s8.bf16 %v366_v10  ;;  %v256_v10 = vld [vmem:[%s8436_s29 + $0x190] sm:$0xff] }
 0x435   : > { %4123 = vmatpush1.bf16.msra.mxu1 %v1486_v19  ;;  %4081 = vmatprep.subr.bf16.mxu0 %v1011_v24  ;;  %v1654_v19 = vunpack.c.l.s8.bf16 %v590_v25  ;;  %v1179_v24 = vunpack.c.h.s8.bf16 %v339_v14 }
 0x436   : > { %4124 = vmatprep.subr.bf16.mxu1 %v1459_v21  ;;  %v1627_v21 = vunpack.c.h.s8.bf16 %v563_v22 }
 0x438   : > { %4082 = vmatpush1.bf16.msra.mxu0 %v1010_v27  ;;  %v1178_v27 = vunpack.c.h.s8.bf16 %v338_v26 }
 0x439   : > { %4125 = vmatpush1.bf16.msra.mxu1 %v1458_v29  ;;  %4083 = vmatprep.subr.bf16.mxu0 %v983_v31  ;;  %v1626_v29 = vunpack.c.h.s8.bf16 %v562_v23  ;;  %v1151_v31 = vunpack.c.l.s8.bf16 %v339_v14  ;;  %v229_v14 = vld [vmem:[%s8436_s29 + $0xb8] sm:$0xff] }
 0x43a   : > { %4126 = vmatprep.subr.bf16.mxu1 %v1431_v28  ;;  %v1599_v28 = vunpack.c.l.s8.bf16 %v563_v22 }
 0x43c   : > { %4084 = vmatpush1.bf16.msra.mxu0 %v982_v33  ;;  %v1150_v33 = vunpack.c.l.s8.bf16 %v338_v26  ;;  %v228_v26 = vld [vmem:[%s8436_s29 + $0xb0] sm:$0xff] }
 0x43d   : > { %4127 = vmatpush1.bf16.msra.mxu1 %v1430_v34  ;;  %4085 = vmatprep.subr.bf16.mxu0 %v955_v35  ;;  %v1598_v34 = vunpack.c.l.s8.bf16 %v562_v23  ;;  %v2019_v35 = vunpack.c.h.s8.bf16 %v759_v30 }
 0x43e   : > { %4128 = vmatprep.subr.bf16.mxu1 %v1403_v36  ;;  %v2299_v36 = vunpack.c.h.s8.bf16 %v899_v32 }
 0x440   : > { %4086 = vmatpush1.bf16.msra.mxu0 %v954_v39  ;;  %v2018_v39 = vunpack.c.h.s8.bf16 %v758_v37 }
 0x441   : > { %4129 = vmatpush1.bf16.msra.mxu1 %v1402_v41  ;;  %4087 = vmatprep.subr.bf16.mxu0 %v927_v42  ;;  %v2298_v41 = vunpack.c.h.s8.bf16 %v898_v38  ;;  %v1991_v42 = vunpack.c.l.s8.bf16 %v759_v30  ;;  %v425_v30 = vld [vmem:[%s8436_s29 + $0x6d8] sm:$0xff] }
 0x442   : > { %4130 = vmatprep.subr.bf16.mxu1 %v1375_v45  ;;  %v2271_v45 = vunpack.c.l.s8.bf16 %v899_v32 }
 0x444   : > { %4088 = vmatpush1.bf16.msra.mxu0 %v926_v44  ;;  %v9274_v44 = vld [vmem:[%s10423_s0] ss:$28 sps:$4 sm:$0xff]  }
 0x445   : > { %4131 = vmatpush1.bf16.msra.mxu1 %v1374_v47  ;;  %4089 = vmatprep.subr.bf16.mxu0 %v1347_v49  ;;  %v1990_v47 = vunpack.c.l.s8.bf16 %v758_v37  ;;  %v2270_v49 = vunpack.c.l.s8.bf16 %v898_v38  ;;  %v424_v37 = vld [vmem:[%s8436_s29 + $0x6d0] sm:$0xff] }
 0x446   : > { %4132 = vmatprep.subr.bf16.mxu1 %v1795_v56  ;;  %v1963_v56 = vunpack.c.h.s8.bf16 %v731_v43 }
 0x448   : > { %4090 = vmatpush2.bf16.msra.mxu0 %v1346_v48  ;;  %v312_v48 = vld [vmem:[%s8436_s29 + $0x350] sm:$0xff] }
 0x449   : > { %4133 = vmatpush2.bf16.msra.mxu1 %v1794_v50  ;;  %4091 = vmatprep.subr.bf16.mxu0 %v1319_v51  ;;  %v9284_v50 = vld [vmem:[%s10423_s0 + $0x14] ss:$28 sps:$4 sm:$0xff]   ;;  %v1124_v51 = vunpack.c.h.s8.bf16 %v312_v48 }
 0x44a   : > { %4134 = vmatprep.subr.bf16.mxu1 %v1767_v55  ;;  %v1935_v55 = vunpack.c.l.s8.bf16 %v731_v43  ;;  %v397_v43 = vld [vmem:[%s8436_s29 + $0x5f8] sm:$0xff] }
 0x44c   : > { %4092 = vmatpush2.bf16.msra.mxu0 %v1318_v60  ;;  %v285_v60 = vld [vmem:[%s8436_s29 + $0x278] sm:$0xff] }
 0x44d   : > { %4135 = vmatpush2.bf16.msra.mxu1 %v1766_v62  ;;  %4093 = vmatprep.subr.bf16.mxu0 %v1291_v59  ;;  %v1934_v62 = vunpack.c.l.s8.bf16 %v730_v53  ;;  %v1096_v59 = vunpack.c.l.s8.bf16 %v312_v48  ;;  %v1069_v63 = vunpack.c.h.s8.bf16 %v285_v60 }
 0x44e   : > { %4136 = vmatprep.subr.bf16.mxu1 %v1739_v61  ;;  %v1907_v61 = vunpack.c.h.s8.bf16 %v703_v57 }
 0x450   : > { %4094 = vmatpush2.bf16.msra.mxu0 %v1290_v1  ;;  %v284_v1 = vld [vmem:[%s8436_s29 + $0x270] sm:$0xff] }
 0x451   : > { %4137 = vmatpush2.bf16.msra.mxu1 %v1738_v2  ;;  %4095 = vmatprep.subr.bf16.mxu0 %v1263_v3  ;;  %v1906_v2 = vunpack.c.h.s8.bf16 %v702_v0  ;;  %v1068_v3 = vunpack.c.h.s8.bf16 %v284_v1 }
 0x452   : > { %4138 = vmatprep.subr.bf16.mxu1 %v1711_v4  ;;  %v1041_v4 = vunpack.c.l.s8.bf16 %v285_v60 }
 0x454   : > { %4096 = vmatpush2.bf16.msra.mxu0 %v1262_v6  ;;  %v1878_v6 = vunpack.c.l.s8.bf16 %v702_v0  ;;  %v368_v0 = vld [vmem:[%s8436_s29 + $0x510] sm:$0xff] }
 0x455   : > { %4139 = vmatpush2.bf16.msra.mxu1 %v1710_v7  ;;  %4097 = vmatprep.subr.bf16.mxu0 %v1235_v8  ;;  %v1040_v7 = vunpack.c.l.s8.bf16 %v284_v1  ;;  %v1013_v8 = vunpack.c.h.s8.bf16 %v257_v5 }
 0x456   : > { %4140 = vmatprep.subr.bf16.mxu1 %v1683_v15  ;;  %v674_v15 = vld [vmem:[%s8436_s29 + $0xea0] sm:$0xff] }
 0x457   : > { %v1850_v25 = vunpack.c.h.s8.bf16 %v674_v15  ;;  %v1822_v22 = vunpack.c.l.s8.bf16 %v674_v15  ;;  %v536_v15 = vld [vmem:[%s8436_s29 + $0xa50] sm:$0xff] }
 0x458   : > { %4098 = vmatpush2.bf16.msra.mxu0 %v1234_v12  ;;  %v1012_v12 = vunpack.c.h.s8.bf16 %v256_v10 }
 0x459   : > { %4141 = vmatpush2.bf16.msra.mxu1 %v1682_v18  ;;  %4099 = vmatprep.subr.bf16.mxu0 %v1207_v13  ;;  %v1823_v18 = vunpack.c.l.s8.bf16 %v675_v9  ;;  %v985_v13 = vunpack.c.l.s8.bf16 %v257_v5 }
 0x45a   : > { %4142 = vmatprep.subr.bf16.mxu1 %v1655_v20  ;;  %v871_v20 = vld [vmem:[%s8436_s29 + $0x14c8] sm:$0xff] }
 0x45c   : > { %4100 = vmatpush2.bf16.msra.mxu0 %v1206_v16  ;;  %v984_v16 = vunpack.c.l.s8.bf16 %v256_v10 }
 0x45d   : > { %4143 = vmatpush2.bf16.msra.mxu1 %v1654_v19  ;;  %4101 = vmatprep.subr.bf16.mxu0 %v1179_v24  ;;  %v2243_v19 = vunpack.c.h.s8.bf16 %v871_v20  ;;  %v957_v24 = vunpack.c.h.s8.bf16 %v229_v14 }
 0x45e   : > { %4144 = vmatprep.subr.bf16.mxu1 %v1627_v21  ;;  %v870_v21 = vld [vmem:[%s8436_s29 + $0x14c0] sm:$0xff] }
 0x45f   : > { %v2242_v23 = vunpack.c.h.s8.bf16 %v870_v21  ;;  %v2214_v32 = vunpack.c.l.s8.bf16 %v870_v21  ;;  %v508_v21 = vld [vmem:[%s8436_s29 + $0x970] sm:$0xff] }
 0x460   : > { %4102 = vmatpush2.bf16.msra.mxu0 %v1178_v27  ;;  %v956_v27 = vunpack.c.h.s8.bf16 %v228_v26 }
 0x461   : > { %4145 = vmatpush2.bf16.msra.mxu1 %v1626_v29  ;;  %4103 = vmatprep.subr.bf16.mxu0 %v1151_v31  ;;  %v2215_v29 = vunpack.c.l.s8.bf16 %v871_v20  ;;  %v929_v31 = vunpack.c.l.s8.bf16 %v229_v14  ;;  %v761_v20 = vld [vmem:[%s8436_s29 + $0x1158] sm:$0xff]  ;;  %v9323_v14 = vld [vmem:[%s10423_s0 + $0x10] ss:$28 sps:$4 sm:$0xff]  }
 0x462   : > { %4146 = vmatprep.subr.bf16.mxu1 %v1599_v28  ;;  %v843_v28 = vld [vmem:[%s8436_s29 + $0x13e8] sm:$0xff] }
 0x464   : > { %4104 = vmatpush2.bf16.msra.mxu0 %v1150_v33  ;;  %v928_v33 = vunpack.c.l.s8.bf16 %v228_v26  ;;  %v760_v26 = vld [vmem:[%s8436_s29 + $0x1150] sm:$0xff] }
 0x465   : > { %4147 = vmatpush2.bf16.msra.mxu1 %v1598_v34  ;;  %4159 = vmatprep.subr.bf16.mxu0 %v2019_v35  ;;  %v2187_v34 = vunpack.c.h.s8.bf16 %v843_v28  ;;  %v1349_v35 = vunpack.c.h.s8.bf16 %v425_v30 }
 0x466   : > { %4214 = vmatprep.subr.bf16.mxu1 %v2299_v36  ;;  %v842_v36 = vld [vmem:[%s8436_s29 + $0x13e0] sm:$0xff] }
 0x467   : > { %4106 = vmatmul.mubr.bf16.vlgmr.msra.gmra.mxu0 %v9274_v44  ;;  %v2186_v38 = vunpack.c.h.s8.bf16 %v842_v36  ;;  %v2158_v40 = vunpack.c.l.s8.bf16 %v842_v36 }
 0x468   : > { %4149 = vmatmul.mubr.bf16.vlgmr.msra.gmra.mxu1 %v9216_v54  ;;  %4160 = vmatpush1.bf16.msra.mxu0 %v2018_v39  ;;  %v1962_v54 = vunpack.c.h.s8.bf16 %v730_v53  ;;  %v1348_v39 = vunpack.c.h.s8.bf16 %v424_v37  ;;  %v396_v53 = vld [vmem:[%s8436_s29 + $0x5f0] sm:$0xff] }
 0x469   : > { %4215 = vmatpush1.bf16.msra.mxu1 %v2298_v41  ;;  %4161 = vmatprep.subr.bf16.mxu0 %v1991_v42  ;;  %v2159_v41 = vunpack.c.l.s8.bf16 %v843_v28  ;;  %v1321_v42 = vunpack.c.l.s8.bf16 %v425_v30  ;;  %v1993_v28 = vunpack.c.l.s8.bf16 %v761_v20  ;;  %v481_v30 = vld [vmem:[%s8436_s29 + $0x898] sm:$0xff] }
 0x46a   : > { %4216 = vmatprep.subr.bf16.mxu1 %v2271_v45  ;;  %4234 = vmatprep.mubr.bf16.mxu1 %v10428_v58  ;;  %v815_v45 = vld [vmem:[%s8436_s29 + $0x1308] sm:$0xff] }
 0x46b   : > { %4191 = vmatprep.mubr.bf16.mxu0 %v9284_v50 }
 0x46c   : > { %4162 = vmatpush1.bf16.msra.mxu0 %v1990_v47  ;;  %v1320_v47 = vunpack.c.l.s8.bf16 %v424_v37  ;;  %v480_v37 = vld [vmem:[%s8436_s29 + $0x890] sm:$0xff] }
 0x46d   : > { %4217 = vmatpush1.bf16.msra.mxu1 %v2270_v49  ;;  %4163 = vmatprep.subr.bf16.mxu0 %v1963_v56  ;;  %v2131_v49 = vunpack.c.h.s8.bf16 %v815_v45  ;;  %v1293_v56 = vunpack.c.h.s8.bf16 %v397_v43 }
 0x46e   : > { %4245 = vmatprep.subr.bf16.mxu1 %v1125_v46  ;;  %v814_v46 = vld [vmem:[%s8436_s29 + $0x1300] sm:$0xff] }
 0x46f   : > { %v2130_v48 = vunpack.c.h.s8.bf16 %v814_v46  ;;  %v2102_v60 = vunpack.c.l.s8.bf16 %v814_v46  ;;  %v704_v46 = vld [vmem:[%s8436_s29 + $0xf90] sm:$0xff] }
 0x470   : > { %7405 = vmatmul.mubr.msk.bf16.vlgmr.msra.gmra.mxu1 %vm2349_vm1, %v9228_v11  ;;  %4164 = vmatpush1.bf16.msra.mxu0 %v1962_v54  ;;  %v1879_v11 = vunpack.c.l.s8.bf16 %v703_v57  ;;  %v1292_v54 = vunpack.c.h.s8.bf16 %v396_v53  ;;  %v369_v57 = vld [vmem:[%s8436_s29 + $0x518] sm:$0xff] }
 0x471   : > { %4246 = vmatpush1.bf16.msra.mxu1 %v1124_v51  ;;  %4165 = vmatprep.subr.bf16.mxu0 %v1935_v55  ;;  %v2103_v51 = vunpack.c.l.s8.bf16 %v815_v45  ;;  %v1265_v55 = vunpack.c.l.s8.bf16 %v397_v43  ;;  %v453_v45 = vld [vmem:[%s8436_s29 + $0x7b8] sm:$0xff] }
 0x472   : > { %4247 = vmatprep.subr.bf16.mxu1 %v1097_v52  ;;  %4277 = vmatprep.mubr.bf16.mxu1 %v9237_v17  ;;  %v1851_v17 = vunpack.c.h.s8.bf16 %v675_v9  ;;  %v787_v52 = vld [vmem:[%s8436_s29 + $0x1228] sm:$0xff]  ;;  %v537_v9 = vld [vmem:[%s8436_s29 + $0xa58] sm:$0xff] }
 0x473   : > { %v705_v43 = vld [vmem:[%s8436_s29 + $0xf98] sm:$0xff] }
 0x474   : > { %4166 = vmatpush1.bf16.msra.mxu0 %v1934_v62  ;;  %v1264_v62 = vunpack.c.l.s8.bf16 %v396_v53 }
 0x475   : > { %4248 = vmatpush1.bf16.msra.mxu1 %v1096_v59  ;;  %4167 = vmatprep.subr.bf16.mxu0 %v1907_v61  ;;  %v2075_v59 = vunpack.c.h.s8.bf16 %v787_v52  ;;  %v1237_v61 = vunpack.c.h.s8.bf16 %v369_v57 }
 0x476   : > { %4249 = vmatprep.subr.bf16.mxu1 %v1069_v63  ;;  %v786_v63 = vld [vmem:[%s8436_s29 + $0x1220] sm:$0xff] }
 0x477   : > { %v2074_v1 = vunpack.c.h.s8.bf16 %v786_v63  ;;  %v2046_v5 = vunpack.c.l.s8.bf16 %v786_v63  ;;  %v676_v63 = vld [vmem:[%s8436_s29 + $0xeb0] sm:$0xff] }
 0x478   : > { %4168 = vmatpush1.bf16.msra.mxu0 %v1906_v2  ;;  %v1236_v2 = vunpack.c.h.s8.bf16 %v368_v0 }
 0x479   : > { %4250 = vmatpush1.bf16.msra.mxu1 %v1068_v3  ;;  %4169 = vmatprep.subr.bf16.mxu0 %v1879_v11  ;;  %v2047_v3 = vunpack.c.l.s8.bf16 %v787_v52  ;;  %v1209_v11 = vunpack.c.l.s8.bf16 %v369_v57  ;;  %v677_v52 = vld [vmem:[%s8436_s29 + $0xeb8] sm:$0xff] }
 0x47a   : > { %4251 = vmatprep.subr.bf16.mxu1 %v1041_v4  ;;  %v341_v4 = vld [vmem:[%s8436_s29 + $0x438] sm:$0xff] }
 0x47c   : > { %4170 = vmatpush1.bf16.msra.mxu0 %v1878_v6  ;;  %v1208_v6 = vunpack.c.l.s8.bf16 %v368_v0 }
 0x47d   : > { %4252 = vmatpush1.bf16.msra.mxu1 %v1040_v7  ;;  %4171 = vmatprep.subr.bf16.mxu0 %v1851_v17  ;;  %v1181_v7 = vunpack.c.h.s8.bf16 %v341_v4  ;;  %v1573_v17 = vunpack.c.h.s8.bf16 %v537_v9 }
 0x47e   : > { %4253 = vmatprep.subr.bf16.mxu1 %v1013_v8  ;;  %v340_v8 = vld [vmem:[%s8436_s29 + $0x430] sm:$0xff] }
 0x47f   : > { %v1180_v10 = vunpack.c.h.s8.bf16 %v340_v8 }
 0x480   : > { %4172 = vmatpush1.bf16.msra.mxu0 %v1850_v25  ;;  %v1572_v25 = vunpack.c.h.s8.bf16 %v536_v15 }
 0x481   : > { %4254 = vmatpush1.bf16.msra.mxu1 %v1012_v12  ;;  %4173 = vmatprep.subr.bf16.mxu0 %v1823_v18  ;;  %v1153_v12 = vunpack.c.l.s8.bf16 %v341_v4  ;;  %v1545_v18 = vunpack.c.l.s8.bf16 %v537_v9  ;;  %v873_v4 = vld [vmem:[%s8436_s29 + $0x14d8] sm:$0xff] }
 0x482   : > { %4255 = vmatprep.subr.bf16.mxu1 %v985_v13  ;;  %v509_v13 = vld [vmem:[%s8436_s29 + $0x978] sm:$0xff] }
 0x484   : > { %4174 = vmatpush1.bf16.msra.mxu0 %v1822_v22  ;;  %v1152_v22 = vunpack.c.l.s8.bf16 %v340_v8  ;;  %v872_v8 = vld [vmem:[%s8436_s29 + $0x14d0] sm:$0xff] }
 0x485   : > { %4256 = vmatpush1.bf16.msra.mxu1 %v984_v16  ;;  %4175 = vmatprep.subr.bf16.mxu0 %v2243_v19  ;;  %v1544_v16 = vunpack.c.l.s8.bf16 %v536_v15  ;;  %v1517_v19 = vunpack.c.h.s8.bf16 %v509_v13 }
 0x486   : > { %4257 = vmatprep.subr.bf16.mxu1 %v957_v24  ;;  %v2021_v24 = vunpack.c.h.s8.bf16 %v761_v20 }
 0x488   : > { %4176 = vmatpush2.bf16.msra.mxu0 %v2242_v23  ;;  %v9331_v23 = vld [vmem:[%s10423_s0 + $0xc] ss:$28 sps:$4 sm:$0xff]  }
 0x489   : > { %4258 = vmatpush1.bf16.msra.mxu1 %v956_v27  ;;  %4177 = vmatprep.subr.bf16.mxu0 %v2215_v29  ;;  %v1516_v27 = vunpack.c.h.s8.bf16 %v508_v21  ;;  %v2020_v29 = vunpack.c.h.s8.bf16 %v760_v26 }
 0x48a   : > { %4259 = vmatprep.subr.bf16.mxu1 %v929_v31  ;;  %v1489_v31 = vunpack.c.l.s8.bf16 %v509_v13  ;;  %v845_v13 = vld [vmem:[%s8436_s29 + $0x13f8] sm:$0xff] }
 0x48c   : > { %4178 = vmatpush2.bf16.msra.mxu0 %v2214_v32  ;;  %v733_v32 = vld [vmem:[%s8436_s29 + $0x1078] sm:$0xff] }
 0x48d   : > { %4260 = vmatpush1.bf16.msra.mxu1 %v928_v33  ;;  %4179 = vmatprep.subr.bf16.mxu0 %v2187_v34  ;;  %v1488_v33 = vunpack.c.l.s8.bf16 %v508_v21  ;;  %v1992_v34 = vunpack.c.l.s8.bf16 %v760_v26  ;;  %v1965_v36 = vunpack.c.h.s8.bf16 %v733_v32  ;;  %v844_v21 = vld [vmem:[%s8436_s29 + $0x13f0] sm:$0xff] }
 0x48e   : > { %4261 = vmatprep.subr.bf16.mxu1 %v1349_v35  ;;  %v1461_v35 = vunpack.c.h.s8.bf16 %v481_v30 }
 0x490   : > { %4180 = vmatpush2.bf16.msra.mxu0 %v2186_v38  ;;  %v732_v38 = vld [vmem:[%s8436_s29 + $0x1070] sm:$0xff] }
 0x491   : > { %4262 = vmatpush2.bf16.msra.mxu1 %v1348_v39  ;;  %4181 = vmatprep.subr.bf16.mxu0 %v2159_v41  ;;  %v1460_v39 = vunpack.c.h.s8.bf16 %v480_v37  ;;  %v1964_v41 = vunpack.c.h.s8.bf16 %v732_v38 }
 0x492   : > { %4263 = vmatprep.subr.bf16.mxu1 %v1321_v42  ;;  %v1937_v42 = vunpack.c.l.s8.bf16 %v733_v32 }
 0x494   : > { %4182 = vmatpush2.bf16.msra.mxu0 %v2158_v40  ;;  %v1432_v40 = vunpack.c.l.s8.bf16 %v480_v37  ;;  %v816_v37 = vld [vmem:[%s8436_s29 + $0x1310] sm:$0xff] }
 0x495   : > { %4264 = vmatpush2.bf16.msra.mxu1 %v1320_v47  ;;  %4183 = vmatprep.subr.bf16.mxu0 %v2131_v49  ;;  %v1936_v47 = vunpack.c.l.s8.bf16 %v732_v38  ;;  %v1909_v49 = vunpack.c.h.s8.bf16 %v705_v43 }
 0x496   : > { %4265 = vmatprep.subr.bf16.mxu1 %v1293_v56  ;;  %v452_v56 = vld [vmem:[%s8436_s29 + $0x7b0] sm:$0xff] }
 0x497   : > { %v1404_v53 = vunpack.c.h.s8.bf16 %v452_v56  ;;  %v1376_v57 = vunpack.c.l.s8.bf16 %v452_v56  ;;  %v900_v56 = vld [vmem:[%s8436_s29 + $0x15b0] sm:$0xff] }
 0x498   : > { %4184 = vmatpush2.bf16.msra.mxu0 %v2130_v48  ;;  %v1908_v48 = vunpack.c.h.s8.bf16 %v704_v46 }
 0x499   : > { %4266 = vmatpush2.bf16.msra.mxu1 %v1292_v54  ;;  %4185 = vmatprep.subr.bf16.mxu0 %v2103_v51  ;;  %v1377_v54 = vunpack.c.l.s8.bf16 %v453_v45  ;;  %v1881_v51 = vunpack.c.l.s8.bf16 %v705_v43 }
 0x49a   : > { %4267 = vmatprep.subr.bf16.mxu1 %v1265_v55  ;;  %v649_v55 = vld [vmem:[%s8436_s29 + $0xdd8] sm:$0xff] }
 0x49c   : > { %4186 = vmatpush2.bf16.msra.mxu0 %v2102_v60  ;;  %v1880_v60 = vunpack.c.l.s8.bf16 %v704_v46 }
 0x49d   : > { %4268 = vmatpush2.bf16.msra.mxu1 %v1264_v62  ;;  %4187 = vmatprep.subr.bf16.mxu0 %v2075_v59  ;;  %v1797_v62 = vunpack.c.h.s8.bf16 %v649_v55  ;;  %v1853_v59 = vunpack.c.h.s8.bf16 %v677_v52 }
 0x49e   : > { %4269 = vmatprep.subr.bf16.mxu1 %v1237_v61  ;;  %v648_v61 = vld [vmem:[%s8436_s29 + $0xdd0] sm:$0xff] }
 0x49f   : > { %v1796_v0 = vunpack.c.h.s8.bf16 %v648_v61  ;;  %v1768_v9 = vunpack.c.l.s8.bf16 %v648_v61  ;;  %v314_v61 = vld [vmem:[%s8436_s29 + $0x360] sm:$0xff] }
 0x4a0   : > { %4188 = vmatpush2.bf16.msra.mxu0 %v2074_v1  ;;  %v1852_v1 = vunpack.c.h.s8.bf16 %v676_v63 }
 0x4a1   : > { %4270 = vmatpush2.bf16.msra.mxu1 %v1236_v2  ;;  %4189 = vmatprep.subr.bf16.mxu0 %v2047_v3  ;;  %v1769_v2 = vunpack.c.l.s8.bf16 %v649_v55  ;;  %v1825_v3 = vunpack.c.l.s8.bf16 %v677_v52  ;;  %v539_v55 = vld [vmem:[%s8436_s29 + $0xa68] sm:$0xff] }
 0x4a2   : > { %4271 = vmatprep.subr.bf16.mxu1 %v1209_v11  ;;  %v621_v11 = vld [vmem:[%s8436_s29 + $0xcf8] sm:$0xff]  ;;  %v9369_v52 = vld [vmem:[%s10423_s0 + $0x8] ss:$28 sps:$4 sm:$0xff]  }
 0x4a4   : > { %4190 = vmatpush2.bf16.msra.mxu0 %v2046_v5  ;;  %v1824_v5 = vunpack.c.l.s8.bf16 %v676_v63  ;;  %v538_v63 = vld [vmem:[%s8436_s29 + $0xa60] sm:$0xff] }
 0x4a5   : > { %4272 = vmatpush2.bf16.msra.mxu1 %v1208_v6  ;;  %4288 = vmatprep.subr.bf16.mxu0 %v1573_v17  ;;  %v1741_v6 = vunpack.c.h.s8.bf16 %v621_v11  ;;  %v620_v17 = vld [vmem:[%s8436_s29 + $0xcf0] sm:$0xff] }
 0x4a6   : > { %4273 = vmatprep.subr.bf16.mxu1 %v1181_v7  ;;  %v2245_v7 = vunpack.c.h.s8.bf16 %v873_v4  ;;  %v1740_v15 = vunpack.c.h.s8.bf16 %v620_v17  ;;  %v1712_v20 = vunpack.c.l.s8.bf16 %v620_v17  ;;  %v1098_v17 = vunpack.c.l.s8.bf16 %v314_v61 }
 0x4a7   : > { %4192 = vmatmul.mubr.bf16.vlgmr.msra.gmra.mxu0 %v9323_v14 }
 0x4a8   : > { %4289 = vmatpush1.bf16.msra.mxu0 %v1572_v25  ;;  %4320 = vmatprep.mubr.bf16.mxu0 %v9331_v23  ;;  %v1713_v25 = vunpack.c.l.s8.bf16 %v621_v11  ;;  %v1547_v11 = vunpack.c.l.s8.bf16 %v539_v55 }
 0x4a9   : > { %4274 = vmatpush2.bf16.msra.mxu1 %v1180_v10  ;;  %4290 = vmatprep.subr.bf16.mxu0 %v1545_v18  ;;  %v2244_v10 = vunpack.c.h.s8.bf16 %v872_v8  ;;  %v593_v18 = vld [vmem:[%s8436_s29 + $0xc18] sm:$0xff] }
 0x4aa   : > { %4275 = vmatprep.subr.bf16.mxu1 %v1153_v12  ;;  %v2217_v12 = vunpack.c.l.s8.bf16 %v873_v4  ;;  %v287_v4 = vld [vmem:[%s8436_s29 + $0x288] sm:$0xff] }
 0x4ac   : > { %4291 = vmatpush1.bf16.msra.mxu0 %v1544_v16  ;;  %v1685_v16 = vunpack.c.h.s8.bf16 %v593_v18 }
 0x4ad   : > { %4276 = vmatpush2.bf16.msra.mxu1 %v1152_v22  ;;  %4292 = vmatprep.subr.bf16.mxu0 %v1517_v19  ;;  %v2216_v22 = vunpack.c.l.s8.bf16 %v872_v8  ;;  %v2189_v19 = vunpack.c.h.s8.bf16 %v845_v13  ;;  %v1546_v8 = vunpack.c.l.s8.bf16 %v538_v63 }
 0x4ae   : > { %4331 = vmatprep.subr.bf16.mxu1 %v2021_v24  ;;  %v592_v24 = vld [vmem:[%s8436_s29 + $0xc10] sm:$0xff] }
 0x4af   : > { %v1684_v26 = vunpack.c.h.s8.bf16 %v592_v24  ;;  %v1656_v32 = vunpack.c.l.s8.bf16 %v592_v24  ;;  %v259_v24 = vld [vmem:[%s8436_s29 + $0x1a8] sm:$0xff] }
 0x4b0   : > { %4278 = vmatmul.mubr.bf16.vlgmr.msra.gmra.mxu1 %v9274_v44  ;;  %4293 = vmatpush1.bf16.msra.mxu0 %v1516_v27  ;;  %v1433_v44 = vunpack.c.l.s8.bf16 %v481_v30  ;;  %v2188_v27 = vunpack.c.h.s8.bf16 %v844_v21  ;;  %v817_v30 = vld [vmem:[%s8436_s29 + $0x1318] sm:$0xff] }
 0x4b1   : > { %4332 = vmatpush1.bf16.msra.mxu1 %v2020_v29  ;;  %4294 = vmatprep.subr.bf16.mxu0 %v1489_v31  ;;  %v1657_v29 = vunpack.c.l.s8.bf16 %v593_v18  ;;  %v2161_v31 = vunpack.c.l.s8.bf16 %v845_v13 }
 0x4b2   : > { %4333 = vmatprep.subr.bf16.mxu1 %v1993_v28  ;;  %4363 = vmatprep.mubr.bf16.mxu1 %v9284_v50  ;;  %v1405_v50 = vunpack.c.h.s8.bf16 %v453_v45  ;;  %v565_v28 = vld [vmem:[%s8436_s29 + $0xb38] sm:$0xff] }
 0x4b3   : > { %v901_v45 = vld [vmem:[%s8436_s29 + $0x15b8] sm:$0xff] }
 0x4b4   : > { %4295 = vmatpush1.bf16.msra.mxu0 %v1488_v33  ;;  %v2160_v33 = vunpack.c.l.s8.bf16 %v844_v21  ;;  %v483_v21 = vld [vmem:[%s8436_s29 + $0x8a8] sm:$0xff] }
 0x4b5   : > { %4334 = vmatpush1.bf16.msra.mxu1 %v1992_v34  ;;  %4296 = vmatprep.subr.bf16.mxu0 %v1461_v35  ;;  %v1629_v34 = vunpack.c.h.s8.bf16 %v565_v28  ;;  %v2133_v35 = vunpack.c.h.s8.bf16 %v817_v30 }
 0x4b6   : > { %4335 = vmatprep.subr.bf16.mxu1 %v1965_v36  ;;  %v564_v36 = vld [vmem:[%s8436_s29 + $0xb30] sm:$0xff] }
 0x4b7   : > { %v1628_v38 = vunpack.c.h.s8.bf16 %v564_v36  ;;  %v1600_v43 = vunpack.c.l.s8.bf16 %v564_v36 }
 0x4b8   : > { %4297 = vmatpush1.bf16.msra.mxu0 %v1460_v39  ;;  %v2132_v39 = vunpack.c.h.s8.bf16 %v816_v37 }
 0x4b9   : > { %4336 = vmatpush1.bf16.msra.mxu1 %v1964_v41  ;;  %4298 = vmatprep.subr.bf16.mxu0 %v1433_v44  ;;  %v1601_v41 = vunpack.c.l.s8.bf16 %v565_v28  ;;  %v2105_v44 = vunpack.c.l.s8.bf16 %v817_v30  ;;  %v1463_v28 = vunpack.c.h.s8.bf16 %v483_v21  ;;  %v258_v30 = vld [vmem:[%s8436_s29 + $0x1a0] sm:$0xff] }
 0x4ba   : > { %4337 = vmatprep.subr.bf16.mxu1 %v1937_v42  ;;  %v789_v42 = vld [vmem:[%s8436_s29 + $0x1238] sm:$0xff] }
 0x4bc   : > { %4299 = vmatpush1.bf16.msra.mxu0 %v1432_v40  ;;  %v2104_v40 = vunpack.c.l.s8.bf16 %v816_v37 }
 0x4bd   : > { %4338 = vmatpush1.bf16.msra.mxu1 %v1936_v47  ;;  %4300 = vmatprep.subr.bf16.mxu0 %v1405_v50  ;;  %v2077_v47 = vunpack.c.h.s8.bf16 %v789_v42  ;;  %v2301_v50 = vunpack.c.h.s8.bf16 %v901_v45 }
 0x4be   : > { %4339 = vmatprep.subr.bf16.mxu1 %v1909_v49  ;;  %v788_v49 = vld [vmem:[%s8436_s29 + $0x1230] sm:$0xff] }
 0x4bf   : > { %v2076_v46 = vunpack.c.h.s8.bf16 %v788_v49 }
 0x4c0   : > { %4301 = vmatpush1.bf16.msra.mxu0 %v1404_v53  ;;  %v2300_v53 = vunpack.c.h.s8.bf16 %v900_v56 }
 0x4c1   : > { %4340 = vmatpush1.bf16.msra.mxu1 %v1908_v48  ;;  %4302 = vmatprep.subr.bf16.mxu0 %v1377_v54  ;;  %v2049_v48 = vunpack.c.l.s8.bf16 %v789_v42  ;;  %v2273_v54 = vunpack.c.l.s8.bf16 %v901_v45  ;;  %v986_v45 = vunpack.c.l.s8.bf16 %v258_v30 }
 0x4c2   : > { %4341 = vmatprep.subr.bf16.mxu1 %v1881_v51  ;;  %v315_v51 = vld [vmem:[%s8436_s29 + $0x368] sm:$0xff] }
 0x4c4   : > { %4303 = vmatpush1.bf16.msra.mxu0 %v1376_v57  ;;  %v2048_v57 = vunpack.c.l.s8.bf16 %v788_v49  ;;  %v230_v49 = vld [vmem:[%s8436_s29 + $0xc0] sm:$0xff] }
 0x4c5   : > { %4342 = vmatpush1.bf16.msra.mxu1 %v1880_v60  ;;  %4304 = vmatprep.subr.bf16.mxu0 %v1797_v62  ;;  %v2272_v60 = vunpack.c.l.s8.bf16 %v900_v56  ;;  %v1127_v62 = vunpack.c.h.s8.bf16 %v315_v51  ;;  %v454_v56 = vld [vmem:[%s8436_s29 + $0x7c0] sm:$0xff] }
 0x4c6   : > { %4343 = vmatprep.subr.bf16.mxu1 %v1853_v59  ;;  %v1575_v59 = vunpack.c.h.s8.bf16 %v539_v55 }
 0x4c8   : > { %4305 = vmatpush2.bf16.msra.mxu0 %v1796_v0  ;;  %v9375_v0 = vpop.f32.mrf.mxu1 }
 0x4c9   : > { %4344 = vmatpush1.bf16.msra.mxu1 %v1852_v1  ;;  %4306 = vmatprep.subr.bf16.mxu0 %v1769_v2  ;;  %v1126_v1 = vunpack.c.h.s8.bf16 %v314_v61  ;;  %v1574_v2 = vunpack.c.h.s8.bf16 %v538_v63  ;;  %v1378_v61 = vunpack.c.l.s8.bf16 %v454_v56 }
 0x4ca   : > { %4345 = vmatprep.subr.bf16.mxu1 %v1825_v3  ;;  %v1099_v3 = vunpack.c.l.s8.bf16 %v315_v51 }
 0x4cc   : > { %4307 = vmatpush2.bf16.msra.mxu0 %v1768_v9  ;;  %v511_v9 = vld [vmem:[%s8436_s29 + $0x988] sm:$0xff] }
 0x4cd   : > { %4346 = vmatpush1.bf16.msra.mxu1 %v1824_v5  ;;  %4308 = vmatprep.subr.bf16.mxu0 %v1741_v6  ;;  %v9379_v5 = vpop.f32.mrf.mxu0  ;;  %v9385_v6 = vld [vmem:[%s10423_s0 + $0x18] ss:$28 sps:$4 sm:$0xff]  }
 0x4ce   : > { %4347 = vmatprep.subr.bf16.mxu1 %v2245_v7  ;;  %v9389_v7 = vpop.f32.mrf.mxu1 }
 0x4cf   : > { %v9400_v18 = vpop.f32.mrf.mxu0 }
 0x4d0   : > { %4309 = vmatpush2.bf16.msra.mxu0 %v1740_v15  ;;  %v1071_v15 = vunpack.c.h.s8.bf16 %v287_v4  ;;  %v9402_v13 = vpop.f32.mrf.mxu1 }
 0x4d1   : > { %4348 = vmatpush2.bf16.msra.mxu1 %v2244_v10  ;;  %4310 = vmatprep.subr.bf16.mxu0 %v1713_v25  ;;  %v1519_v10 = vunpack.c.h.s8.bf16 %v511_v9  ;;  %v510_v25 = vld [vmem:[%s8436_s29 + $0x980] sm:$0xff] }
 0x4d2   : > { %4349 = vmatprep.subr.bf16.mxu1 %v2217_v12  ;;  %v9396_v12 = vld [vmem:[%s10423_s0 + $0x4] ss:$28 sps:$4 sm:$0xff]  }
 0x4d4   : > { %4311 = vmatpush2.bf16.msra.mxu0 %v1712_v20 }
 0x4d5   : > { %4350 = vmatpush2.bf16.msra.mxu1 %v2216_v22  ;;  %4312 = vmatprep.subr.bf16.mxu0 %v1685_v16  ;;  %v1518_v22 = vunpack.c.h.s8.bf16 %v510_v25  ;;  %v1043_v16 = vunpack.c.l.s8.bf16 %v287_v4 }
 0x4d6   : > { %4351 = vmatprep.subr.bf16.mxu1 %v2189_v19  ;;  %v1491_v19 = vunpack.c.l.s8.bf16 %v511_v9 }
 0x4d8   : > { %4313 = vmatpush2.bf16.msra.mxu0 %v1684_v26  ;;  %v9406_v26 = vpop.f32.mrf.mxu0 }
 0x4d9   : > { %4352 = vmatpush2.bf16.msra.mxu1 %v2188_v27  ;;  %4314 = vmatprep.subr.bf16.mxu0 %v1657_v29  ;;  %v9408_v27 = vpop.f32.mrf.mxu1  ;;  %v1490_v29 = vunpack.c.l.s8.bf16 %v510_v25  ;;  %v399_v25 = vld [vmem:[%s8436_s29 + $0x608] sm:$0xff] }
 0x4da   : > { %4353 = vmatprep.subr.bf16.mxu1 %v2161_v31  ;;  %v1015_v31 = vunpack.c.h.s8.bf16 %v259_v24 }
 0x4dc   : > { %4315 = vmatpush2.bf16.msra.mxu0 %v1656_v32  ;;  %v482_v32 = vld [vmem:[%s8436_s29 + $0x8a0] sm:$0xff] }
 0x4dd   : > { %4354 = vmatpush2.bf16.msra.mxu1 %v2160_v33  ;;  %4316 = vmatprep.subr.bf16.mxu0 %v1629_v34  ;;  %v9412_v33 = vpop.f32.mrf.mxu0  ;;  %v9414_v34 = vpop.f32.mrf.mxu1  ;;  %v1462_v36 = vunpack.c.h.s8.bf16 %v482_v32 }
 0x4de   : > { %4355 = vmatprep.subr.bf16.mxu1 %v2133_v35  ;;  %v1014_v35 = vunpack.c.h.s8.bf16 %v258_v30 }
 0x4df   : > { %v9416_v37 = vpop.f32.mrf.mxu0  ;;  %v9420_v42 = vpop.f32.mrf.mxu1 }
 0x4e0   : > { %4317 = vmatpush2.bf16.msra.mxu0 %v1628_v38  ;;  %v987_v38 = vunpack.c.l.s8.bf16 %v259_v24  ;;  %v1295_v24 = vunpack.c.h.s8.bf16 %v399_v25 }
 0x4e1   : > { %4356 = vmatpush2.bf16.msra.mxu1 %v2132_v39  ;;  %4318 = vmatprep.subr.bf16.mxu0 %v1601_v41  ;;  %v1435_v39 = vunpack.c.l.s8.bf16 %v483_v21  ;;  %v231_v41 = vld [vmem:[%s8436_s29 + $0xc8] sm:$0xff] }
 0x4e2   : > { %4357 = vmatprep.subr.bf16.mxu1 %v2105_v44  ;;  %v455_v44 = vld [vmem:[%s8436_s29 + $0x7c8] sm:$0xff]  ;;  %v931_v51 = vunpack.c.l.s8.bf16 %v231_v41 }
 0x4e3   : > { %v1379_v55 = vunpack.c.l.s8.bf16 %v455_v44 }
 0x4e4   : > { %4319 = vmatpush2.bf16.msra.mxu0 %v1600_v43  ;;  %v1434_v43 = vunpack.c.l.s8.bf16 %v482_v32 }
 0x4e5   : > { %4358 = vmatpush2.bf16.msra.mxu1 %v2104_v40  ;;  %4386 = vmatprep.subr.bf16.mxu0 %v2301_v50  ;;  %v9422_v40 = vpop.f32.mrf.mxu0  ;;  %v1407_v50 = vunpack.c.h.s8.bf16 %v455_v44 }
 0x4e6   : > { %4359 = vmatprep.subr.bf16.mxu1 %v2077_v47  ;;  %v959_v47 = vunpack.c.h.s8.bf16 %v231_v41  ;;  %v595_v41 = vld [vmem:[%s8436_s29 + $0xc28] sm:$0xff] }
 0x4e7   : > { %4321 = vmatmul.mubr.bf16.vlgmr.msra.gmra.mxu0 %v9369_v52 }
 0x4e8   : > { %4387 = vmatpush1.bf16.msra.mxu0 %v2300_v53  ;;  %4406 = vmatprep.mubr.bf16.mxu0 %v10428_v58  ;;  %v958_v53 = vunpack.c.h.s8.bf16 %v230_v49 }
 0x4e9   : > { %4360 = vmatpush2.bf16.msra.mxu1 %v2076_v46  ;;  %4388 = vmatprep.subr.bf16.mxu0 %v2273_v54  ;;  %v9426_v46 = vpop.f32.mrf.mxu1  ;;  %v9428_v54 = vpop.f32.mrf.mxu0 }
 0x4ea   : > { %4361 = vmatprep.subr.bf16.mxu1 %v2049_v48  ;;  %v1406_v48 = vunpack.c.h.s8.bf16 %v454_v56  ;;  %v370_v56 = vld [vmem:[%s8436_s29 + $0x520] sm:$0xff] }
 0x4eb   : > { %v9434_v63 = vpop.f32.mrf.mxu0 }
 0x4ec   : > { %4389 = vmatpush1.bf16.msra.mxu0 %v2272_v60  ;;  %v651_v60 = vld [vmem:[%s8436_s29 + $0xde8] sm:$0xff] }
 0x4ed   : > { %4362 = vmatpush2.bf16.msra.mxu1 %v2048_v57  ;;  %4417 = vmatprep.subr.bf16.mxu0 %v1127_v62  ;;  %v427_v57 = vld [vmem:[%s8436_s29 + $0x6e8] sm:$0xff]  ;;  %v9432_v62 = vpop.f32.mrf.mxu1  ;;  %v9440_v9 = vpop.f32.mrf.mxu0 }
 0x4ee   : > { %4460 = vmatprep.subr.bf16.mxu1 %v1575_v59  ;;  %v930_v59 = vunpack.c.l.s8.bf16 %v230_v49  ;;  %v1687_v49 = vunpack.c.h.s8.bf16 %v595_v41 }
 0x4ef   : > { %7406 = vmatmul.mubr.msk.bf16.vlgmr.msra.gmra.mxu0 %vm2349_vm1, %v9385_v6  ;;  %v9438_v4 = vpop.f32.mrf.mxu1 }
 0x4f0   : > { %4364 = vmatmul.mubr.bf16.vlgmr.msra.gmra.mxu1 %v9323_v14  ;;  %4418 = vmatpush1.bf16.msra.mxu0 %v1126_v1  ;;  %v286_v14 = vld [vmem:[%s8436_s29 + $0x280] sm:$0xff]  ;;  %v1351_v1 = vunpack.c.h.s8.bf16 %v427_v57 }
 0x4f1   : > { %4461 = vmatpush1.bf16.msra.mxu1 %v1574_v2  ;;  %4419 = vmatprep.subr.bf16.mxu0 %v1099_v3  ;;  %v1070_v20 = vunpack.c.h.s8.bf16 %v286_v14  ;;  %v1799_v2 = vunpack.c.h.s8.bf16 %v651_v60  ;;  %v426_v3 = vld [vmem:[%s8436_s29 + $0x6e0] sm:$0xff] }
 0x4f2   : > { %4462 = vmatprep.subr.bf16.mxu1 %v1547_v11  ;;  %4449 = vmatprep.mubr.bf16.mxu0 %v9396_v12  ;;  %v650_v11 = vld [vmem:[%s8436_s29 + $0xde0] sm:$0xff] }
 0x4f3   : > { %4492 = vmatprep.mubr.bf16.mxu1 %v9331_v23  ;;  %v1042_v23 = vunpack.c.l.s8.bf16 %v286_v14  ;;  %v9442_v14 = vpop.f32.mrf.mxu1 }
 0x4f4   : > { %4420 = vmatpush1.bf16.msra.mxu0 %v1098_v17  ;;  %v1350_v17 = vunpack.c.h.s8.bf16 %v426_v3 }
 0x4f5   : > { %4463 = vmatpush1.bf16.msra.mxu1 %v1546_v8  ;;  %4421 = vmatprep.subr.bf16.mxu0 %v1071_v15  ;;  %v1798_v8 = vunpack.c.h.s8.bf16 %v650_v11  ;;  %v1323_v15 = vunpack.c.l.s8.bf16 %v427_v57 }
 0x4f6   : > { %4464 = vmatprep.subr.bf16.mxu1 %v1519_v10  ;;  %v1771_v10 = vunpack.c.l.s8.bf16 %v651_v60 }
 0x4f8   : > { %4422 = vmatpush1.bf16.msra.mxu0 %v1070_v20  ;;  %v623_v20 = vld [vmem:[%s8436_s29 + $0xd08] sm:$0xff] }
 0x4f9   : > { %4465 = vmatpush1.bf16.msra.mxu1 %v1518_v22  ;;  %4423 = vmatprep.subr.bf16.mxu0 %v1043_v16  ;;  %v9446_v22 = vpop.f32.mrf.mxu0  ;;  %v1322_v16 = vunpack.c.l.s8.bf16 %v426_v3  ;;  %v1743_v21 = vunpack.c.h.s8.bf16 %v623_v20 }
 0x4fa   : > { %4466 = vmatprep.subr.bf16.mxu1 %v1491_v19  ;;  %v1770_v19 = vunpack.c.l.s8.bf16 %v650_v11  ;;  %v1210_v11 = vunpack.c.l.s8.bf16 %v370_v56 }
 0x4fc   : > { %4424 = vmatpush1.bf16.msra.mxu0 %v1042_v23  ;;  %v398_v23 = vld [vmem:[%s8436_s29 + $0x600] sm:$0xff] }
 0x4fd   : > { %4467 = vmatpush1.bf16.msra.mxu1 %v1490_v29  ;;  %4425 = vmatprep.subr.bf16.mxu0 %v1015_v31  ;;  %v622_v29 = vld [vmem:[%s8436_s29 + $0xd00] sm:$0xff]  ;;  %v9450_v31 = vpop.f32.mrf.mxu1  ;;  %v1294_v30 = vunpack.c.h.s8.bf16 %v398_v23 }
 0x4fe   : > { %4468 = vmatprep.subr.bf16.mxu1 %v1463_v28  ;;  %v9452_v28 = vpop.f32.mrf.mxu0  ;;  %v1742_v32 = vunpack.c.h.s8.bf16 %v622_v29 }
 0x500   : > { %4426 = vmatpush1.bf16.msra.mxu0 %v1014_v35  ;;  %v1267_v35 = vunpack.c.l.s8.bf16 %v399_v25  ;;  %v9458_v44 = vpop.f32.mrf.mxu0  ;;  %v566_v25 = vld [vmem:[%s8436_s29 + $0xb40] sm:$0xff] }
 0x501   : > { %4469 = vmatpush1.bf16.msra.mxu1 %v1462_v36  ;;  %4427 = vmatprep.subr.bf16.mxu0 %v987_v38  ;;  %v1715_v36 = vunpack.c.l.s8.bf16 %v623_v20  ;;  %v9454_v38 = vpop.f32.mrf.mxu1 }
 0x502   : > { %4470 = vmatprep.subr.bf16.mxu1 %v1435_v39  ;;  %v371_v39 = vld [vmem:[%s8436_s29 + $0x528] sm:$0xff] }
 0x503   : > { %v1211_v60 = vunpack.c.l.s8.bf16 %v371_v39 }
 0x504   : > { %4428 = vmatpush1.bf16.msra.mxu0 %v986_v45  ;;  %v9460_v45 = vpop.f32.mrf.mxu1 }
 0x505   : > { %4471 = vmatpush1.bf16.msra.mxu1 %v1434_v43  ;;  %4429 = vmatprep.subr.bf16.mxu0 %v959_v47  ;;  %v1266_v43 = vunpack.c.l.s8.bf16 %v398_v23  ;;  %v1714_v47 = vunpack.c.l.s8.bf16 %v622_v29 }
 0x506   : > { %4472 = vmatprep.subr.bf16.mxu1 %v1407_v50  ;;  %v1239_v50 = vunpack.c.h.s8.bf16 %v371_v39  ;;  %v1602_v39 = vunpack.c.l.s8.bf16 %v566_v25 }
 0x508   : > { %4430 = vmatpush1.bf16.msra.mxu0 %v958_v53  ;;  %v594_v53 = vld [vmem:[%s8436_s29 + $0xc20] sm:$0xff] }
 0x509   : > { %4473 = vmatpush1.bf16.msra.mxu1 %v1406_v48  ;;  %4431 = vmatprep.subr.bf16.mxu0 %v931_v51  ;;  %v9464_v48 = vpop.f32.mrf.mxu0  ;;  %v9466_v51 = vpop.f32.mrf.mxu1  ;;  %v1686_v57 = vunpack.c.h.s8.bf16 %v594_v53 }
 0x50a   : > { %4474 = vmatprep.subr.bf16.mxu1 %v1379_v55  ;;  %10433 = vst [vmem:[#allocation5_spill] sm:$0xff] %v9464_v48  ;;  %v1238_v55 = vunpack.c.h.s8.bf16 %v370_v56 }
 0x50b   : > { %v9472_v3 = vpop.f32.mrf.mxu1 }
 0x50c   : > { %4432 = vmatpush1.bf16.msra.mxu0 %v930_v59  ;;  %v1659_v59 = vunpack.c.l.s8.bf16 %v595_v41 }
 0x50d   : > { %4475 = vmatpush1.bf16.msra.mxu1 %v1378_v61  ;;  %4433 = vmatprep.subr.bf16.mxu0 %v1351_v1  ;;  %v343_v61 = vld [vmem:[%s8436_s29 + $0x448] sm:$0xff] }
 0x50e   : > { %4476 = vmatprep.subr.bf16.mxu1 %v1799_v2  ;;  %v567_v1 = vld [vmem:[%s8436_s29 + $0xb48] sm:$0xff]  ;;  %v9470_v2 = vpop.f32.mrf.mxu0 }
 0x50f   : > { %v1603_v23 = vunpack.c.l.s8.bf16 %v567_v1 }
 0x510   : > { %4434 = vmatpush2.bf16.msra.mxu0 %v1350_v17  ;;  %v1658_v17 = vunpack.c.l.s8.bf16 %v594_v53  ;;  %v9476_v20 = vpop.f32.mrf.mxu0 }
 0x511   : > { %4477 = vmatpush2.bf16.msra.mxu1 %v1798_v8  ;;  %4435 = vmatprep.subr.bf16.mxu0 %v1323_v15  ;;  %v1183_v8 = vunpack.c.h.s8.bf16 %v343_v61  ;;  %v1631_v15 = vunpack.c.h.s8.bf16 %v567_v1  ;;  %v735_v1 = vld [vmem:[%s8436_s29 + $0x1088] sm:$0xff] }
 0x512   : > { %4478 = vmatprep.subr.bf16.mxu1 %v1771_v10  ;;  %v342_v10 = vld [vmem:[%s8436_s29 + $0x440] sm:$0xff] }
 0x514   : > { %4436 = vmatpush2.bf16.msra.mxu0 %v1322_v16  ;;  %v9478_v16 = vpop.f32.mrf.mxu1 }
 0x515   : > { %4479 = vmatpush2.bf16.msra.mxu1 %v1770_v19  ;;  %4437 = vmatprep.subr.bf16.mxu0 %v1295_v24  ;;  %v1182_v19 = vunpack.c.h.s8.bf16 %v342_v10  ;;  %v1630_v24 = vunpack.c.h.s8.bf16 %v566_v25  ;;  %v1967_v25 = vunpack.c.h.s8.bf16 %v735_v1 }
 0x516   : > { %4480 = vmatprep.subr.bf16.mxu1 %v1743_v21  ;;  %v1155_v21 = vunpack.c.l.s8.bf16 %v343_v61  ;;  %v9480_v29 = vpop.f32.mrf.mxu1 }
 0x517   : > { %10434 = vst [vmem:[#allocation6_spill] sm:$0xff] %v9480_v29 }
 0x518   : > { %4438 = vmatpush2.bf16.msra.mxu0 %v1294_v30  ;;  %v763_v30 = vld [vmem:[%s8436_s29 + $0x1168] sm:$0xff]  ;;  %v9490_v56 = vpop.f32.mrf.mxu1 }
 0x519   : > { %4481 = vmatpush2.bf16.msra.mxu1 %v1742_v32  ;;  %4439 = vmatprep.subr.bf16.mxu0 %v1267_v35  ;;  %v903_v32 = vld [vmem:[%s8436_s29 + $0x15c8] sm:$0xff]  ;;  %v9484_v35 = vpop.f32.mrf.mxu0 }
 0x51a   : > { %4482 = vmatprep.subr.bf16.mxu1 %v1715_v36  ;;  %v1154_v36 = vunpack.c.l.s8.bf16 %v342_v10  ;;  %v9494_v61 = vpop.f32.mrf.mxu1 }
 0x51b   : > { %v9486_v41 = vpop.f32.mrf.mxu0  ;;  %10436 = vst [vmem:[#allocation8_spill] sm:$0xff] %v9494_v61 }
 0x51c   : > { %4440 = vmatpush2.bf16.msra.mxu0 %v1266_v43  ;;  %10435 = vst [vmem:[#allocation7_spill] sm:$0xff] %v9486_v41  ;;  %v2023_v43 = vunpack.c.h.s8.bf16 %v763_v30 }
 0x51d   : > { %4483 = vmatpush2.bf16.msra.mxu1 %v1714_v47  ;;  %4441 = vmatprep.subr.bf16.mxu0 %v1239_v50  ;;  %v2303_v47 = vunpack.c.h.s8.bf16 %v903_v32  ;;  %v762_v50 = vld [vmem:[%s8436_s29 + $0x1160] sm:$0xff] }
 0x51e   : > { %4484 = vmatprep.subr.bf16.mxu1 %v1687_v49  ;;  %v902_v49 = vld [vmem:[%s8436_s29 + $0x15c0] sm:$0xff]  ;;  %v2022_v53 = vunpack.c.h.s8.bf16 %v762_v50 }
 0x520   : > { %4442 = vmatpush2.bf16.msra.mxu0 %v1238_v55  ;;  %v2302_v55 = vunpack.c.h.s8.bf16 %v902_v49 }
 0x521   : > { %4485 = vmatpush2.bf16.msra.mxu1 %v1686_v57  ;;  %4443 = vmatprep.subr.bf16.mxu0 %v1211_v60  ;;  %v9492_v57 = vpop.f32.mrf.mxu0  ;;  %v1995_v60 = vunpack.c.l.s8.bf16 %v763_v30 }
 0x522   : > { %4486 = vmatprep.subr.bf16.mxu1 %v1659_v59  ;;  %v2275_v59 = vunpack.c.l.s8.bf16 %v903_v32 }
 0x523   : > { %v9505_v10 = vpop.f32.mrf.mxu0 }
 0x524   : > { %4444 = vmatpush2.bf16.msra.mxu0 %v1210_v11  ;;  %v317_v11 = vld [vmem:[%s8436_s29 + $0x378] sm:$0xff]  ;;  %10437 = vst [vmem:[#allocation9_spill] sm:$0xff] %v9505_v10 }
 0x525   : > { %4487 = vmatpush2.bf16.msra.mxu1 %v1658_v17  ;;  %4445 = vmatprep.subr.bf16.mxu0 %v1183_v8  ;;  %v9501_v17 = vld [vmem:[%s10423_s0] ss:$28 sps:$4 sm:$0xff]   ;;  %v1994_v8 = vunpack.c.l.s8.bf16 %v762_v50  ;;  %v707_v50 = vld [vmem:[%s8436_s29 + $0xfa8] sm:$0xff] }
 0x526   : > { %4488 = vmatprep.subr.bf16.mxu1 %v1631_v15  ;;  %v2274_v15 = vunpack.c.l.s8.bf16 %v902_v49  ;;  %v289_v49 = vld [vmem:[%s8436_s29 + $0x298] sm:$0xff] }
 0x528   : > { %4446 = vmatpush2.bf16.msra.mxu0 %v1182_v19  ;;  %v1129_v19 = vunpack.c.h.s8.bf16 %v317_v11 }
 0x529   : > { %4489 = vmatpush2.bf16.msra.mxu1 %v1630_v24  ;;  %4447 = vmatprep.subr.bf16.mxu0 %v1155_v21  ;;  %v734_v24 = vld [vmem:[%s8436_s29 + $0x1080] sm:$0xff]  ;;  %v316_v21 = vld [vmem:[%s8436_s29 + $0x370] sm:$0xff] }
 0x52a   : > { %4490 = vmatprep.subr.bf16.mxu1 %v1603_v23  ;;  %v9509_v23 = vpop.f32.mrf.mxu1  ;;  %v1966_v30 = vunpack.c.h.s8.bf16 %v734_v24  ;;  %v1128_v32 = vunpack.c.h.s8.bf16 %v316_v21 }
 0x52c   : > { %4448 = vmatpush2.bf16.msra.mxu0 %v1154_v36  ;;  %v9518_v36 = vpop.f32.mrf.mxu0 }
 0x52d   : > { %4491 = vmatpush2.bf16.msra.mxu1 %v1602_v39  ;;  %4503 = vmatprep.subr.bf16.mxu0 %v2023_v43  ;;  %v1939_v39 = vunpack.c.l.s8.bf16 %v735_v1  ;;  %v1101_v43 = vunpack.c.l.s8.bf16 %v317_v11  ;;  %v1073_v1 = vunpack.c.h.s8.bf16 %v289_v49  ;;  %v706_v11 = vld [vmem:[%s8436_s29 + $0xfa0] sm:$0xff] }
 0x52e   : > { %4558 = vmatprep.subr.bf16.mxu1 %v2303_v47  ;;  %v9520_v47 = vpop.f32.mrf.mxu1 }
 0x52f   : > { %4450 = vmatmul.mubr.bf16.vlgmr.msra.gmra.mxu0 %v9501_v17  ;;  %10438 = vst [vmem:[#allocation10_spill] sm:$0xff] %v9520_v47 }
 0x530   : > { %4493 = vmatmul.mubr.bf16.vlgmr.msra.gmra.mxu1 %v9369_v52  ;;  %4504 = vmatpush1.bf16.msra.mxu0 %v2022_v53  ;;  %v9515_v52 = vld [vmem:[%s10423_s0 + $0x14] ss:$28 sps:$4 sm:$0xff]   ;;  %v9524_v53 = vpop.f32.mrf.mxu0 }
 0x531   : > { %4559 = vmatpush1.bf16.msra.mxu1 %v2302_v55  ;;  %4505 = vmatprep.subr.bf16.mxu0 %v1995_v60  ;;  %10439 = vst [vmem:[#allocation11_spill] sm:$0xff] %v9524_v53  ;;  %v1938_v55 = vunpack.c.l.s8.bf16 %v734_v24  ;;  %v1100_v60 = vunpack.c.l.s8.bf16 %v316_v21  ;;  %v1883_v24 = vunpack.c.l.s8.bf16 %v707_v50  ;;  %v1045_v21 = vunpack.c.l.s8.bf16 %v289_v49 }
 0x532   : > { %4560 = vmatprep.subr.bf16.mxu1 %v2275_v59  ;;  %4578 = vmatprep.mubr.bf16.mxu1 %v10428_v58  ;;  %v1911_v59 = vunpack.c.h.s8.bf16 %v707_v50 }
 0x533   : > { %4535 = vmatprep.mubr.bf16.mxu0 %v9515_v52 }
 0x534   : > { %4506 = vmatpush1.bf16.msra.mxu0 %v1994_v8  ;;  %v288_v8 = vld [vmem:[%s8436_s29 + $0x290] sm:$0xff] }
 0x535   : > { %4561 = vmatpush1.bf16.msra.mxu1 %v2274_v15  ;;  %4507 = vmatprep.subr.bf16.mxu0 %v1967_v25  ;;  %v9530_v15 = vpop.f32.mrf.mxu1  ;;  %v9533_v25 = vpop.f32.mrf.mxu0  ;;  %v1044_v58 = vunpack.c.l.s8.bf16 %v288_v8 }
 0x536   : > { %4589 = vmatprep.subr.bf16.mxu1 %v1129_v19  ;;  %10440 = vst [vmem:[#allocation12_spill] sm:$0xff] %v9530_v15  ;;  %v1072_v19 = vunpack.c.h.s8.bf16 %v288_v8 }
 0x538   : > { %7407 = vmatmul.mubr.msk.bf16.vlgmr.msra.gmra.mxu1 %vm2349_vm1, %v9385_v6  ;;  %4508 = vmatpush1.bf16.msra.mxu0 %v1966_v30  ;;  %v1910_v6 = vunpack.c.h.s8.bf16 %v706_v11  ;;  %v9535_v30 = vpop.f32.mrf.mxu1 }
 0x539   : > { %4590 = vmatpush1.bf16.msra.mxu1 %v1128_v32  ;;  %4509 = vmatprep.subr.bf16.mxu0 %v1939_v39  ;;  %10441 = vst [vmem:[#allocation13_spill] sm:$0xff] %v9535_v30  ;;  %v679_v32 = vld [vmem:[%s8436_s29 + $0xec8] sm:$0xff]  ;;  %v261_v39 = vld [vmem:[%s8436_s29 + $0x1b8] sm:$0xff] }
 0x53a   : > { %4591 = vmatprep.subr.bf16.mxu1 %v1101_v43  ;;  %4621 = vmatprep.mubr.bf16.mxu1 %v9396_v12  ;;  %v9539_v43 = vpop.f32.mrf.mxu0  ;;  %v1882_v12 = vunpack.c.l.s8.bf16 %v706_v11  ;;  %v9543_v50 = vpop.f32.mrf.mxu1  ;;  %v1827_v8 = vunpack.c.l.s8.bf16 %v679_v32  ;;  %v233_v30 = vld [vmem:[%s8436_s29 + $0xd8] sm:$0xff] }
 0x53b   : > { %10442 = vst [vmem:[#allocation14_spill] sm:$0xff] %v9539_v43  ;;  %10443 = vst [vmem:[#allocation15_spill] sm:$0xff] %v9543_v50 }
 0x53c   : > { %4510 = vmatpush1.bf16.msra.mxu0 %v1938_v55  ;;  %v1855_v55 = vunpack.c.h.s8.bf16 %v679_v32  ;;  %v9545_v49 = vpop.f32.mrf.mxu0  ;;  %v9547_v47 = vpop.f32.mrf.mxu1 }
 0x53d   : > { %4592 = vmatpush1.bf16.msra.mxu1 %v1100_v60  ;;  %4511 = vmatprep.subr.bf16.mxu0 %v1911_v59  ;;  %v1017_v60 = vunpack.c.h.s8.bf16 %v261_v39  ;;  %v678_v59 = vld [vmem:[%s8436_s29 + $0xec0] sm:$0xff]  ;;  %10444 = vst [vmem:[#allocation16_spill] sm:$0xff] %v9547_v47 }
 0x53e   : > { %4593 = vmatprep.subr.bf16.mxu1 %v1073_v1  ;;  %v260_v1 = vld [vmem:[%s8436_s29 + $0x1b0] sm:$0xff]  ;;  %v9549_v11 = vpop.f32.mrf.mxu0  ;;  %v9553_v53 = vpop.f32.mrf.mxu1  ;;  %v1826_v43 = vunpack.c.l.s8.bf16 %v678_v59 }
 0x53f   : > { %10445 = vst [vmem:[#allocation17_spill] sm:$0xff] %v9549_v11  ;;  %v988_v47 = vunpack.c.l.s8.bf16 %v260_v1  ;;  %v232_v11 = vld [vmem:[%s8436_s29 + $0xd0] sm:$0xff] }
 0x540   : > { %4512 = vmatpush1.bf16.msra.mxu0 %v1910_v6  ;;  %v1854_v6 = vunpack.c.h.s8.bf16 %v678_v59  ;;  %v9559_v32 = vpop.f32.mrf.mxu1  ;;  %v960_v29 = vunpack.c.h.s8.bf16 %v232_v11 }
 0x541   : > { %4594 = vmatpush1.bf16.msra.mxu1 %v1072_v19  ;;  %4513 = vmatprep.subr.bf16.mxu0 %v1883_v24  ;;  %v1016_v19 = vunpack.c.h.s8.bf16 %v260_v1  ;;  %v989_v24 = vunpack.c.l.s8.bf16 %v261_v39  ;;  %10446 = vst [vmem:[#allocation18_spill] sm:$0xff] %v9559_v32  ;;  %v933_v1 = vunpack.c.l.s8.bf16 %v233_v30  ;;  %v932_v32 = vunpack.c.l.s8.bf16 %v232_v11 }
 0x542   : > { %4595 = vmatprep.subr.bf16.mxu1 %v1045_v21  ;;  %v875_v21 = vld [vmem:[%s8436_s29 + $0x14e8] sm:$0xff] }
 0x543   : > { %v2219_v59 = vunpack.c.l.s8.bf16 %v875_v21 }
 0x544   : > { %4514 = vmatpush1.bf16.msra.mxu0 %v1882_v12  ;;  %v9555_v12 = vpop.f32.mrf.mxu0 }
 0x545   : > { %4596 = vmatpush1.bf16.msra.mxu1 %v1044_v58  ;;  %4515 = vmatprep.subr.bf16.mxu0 %v1855_v55  ;;  %v2247_v58 = vunpack.c.h.s8.bf16 %v875_v21  ;;  %v961_v55 = vunpack.c.h.s8.bf16 %v233_v30 }
 0x546   : > { %4597 = vmatprep.subr.bf16.mxu1 %v1017_v60  ;;  %v874_v60 = vld [vmem:[%s8436_s29 + $0x14e0] sm:$0xff] }
 0x547   : > { %v2246_v39 = vunpack.c.h.s8.bf16 %v874_v60  ;;  %v2218_v41 = vunpack.c.l.s8.bf16 %v874_v60 }
 0x548   : > { %4516 = vmatpush1.bf16.msra.mxu0 %v1854_v6  ;;  %v9561_v6 = vpop.f32.mrf.mxu0 }
 0x549   : > { %4598 = vmatpush1.bf16.msra.mxu1 %v1016_v19  ;;  %4517 = vmatprep.subr.bf16.mxu0 %v1827_v8  ;;  %10447 = vst [vmem:[#allocation19_spill] sm:$0xff] %v9561_v6  ;;  %v847_v19 = vld [vmem:[%s8436_s29 + $0x1408] sm:$0xff]  ;;  %v429_v8 = vld [vmem:[%s8436_s29 + $0x6f8] sm:$0xff]  ;;  %v428_v6 = vld [vmem:[%s8436_s29 + $0x6f0] sm:$0xff] }
 0x54a   : > { %4599 = vmatprep.subr.bf16.mxu1 %v989_v24  ;;  %v9565_v24 = vpop.f32.mrf.mxu1  ;;  %v1352_v61 = vunpack.c.h.s8.bf16 %v428_v6  ;;  %v1325_v11 = vunpack.c.l.s8.bf16 %v429_v8 }
 0x54c   : > { %4518 = vmatpush1.bf16.msra.mxu0 %v1826_v43  ;;  %v9567_v43 = vpop.f32.mrf.mxu0  ;;  %v9571_v21 = vpop.f32.mrf.mxu1 }
 0x54d   : > { %4600 = vmatpush1.bf16.msra.mxu1 %v988_v47  ;;  %4519 = vmatprep.subr.bf16.mxu0 %v2247_v58  ;;  %v2191_v47 = vunpack.c.h.s8.bf16 %v847_v19  ;;  %v1353_v58 = vunpack.c.h.s8.bf16 %v429_v8  ;;  %10448 = vst [vmem:[#allocation20_spill] sm:$0xff] %v9571_v21  ;;  %v1324_v21 = vunpack.c.l.s8.bf16 %v428_v6 }
 0x54e   : > { %4601 = vmatprep.subr.bf16.mxu1 %v961_v55  ;;  %v846_v55 = vld [vmem:[%s8436_s29 + $0x1400] sm:$0xff]  ;;  %v9575_v60 = vpop.f32.mrf.mxu1 }
 0x54f   : > { %v2190_v30 = vunpack.c.h.s8.bf16 %v846_v55  ;;  %v2162_v10 = vunpack.c.l.s8.bf16 %v846_v55 }
 0x550   : > { %4520 = vmatpush2.bf16.msra.mxu0 %v2246_v39  ;;  %v9573_v39 = vpop.f32.mrf.mxu0 }
 0x551   : > { %4602 = vmatpush1.bf16.msra.mxu1 %v960_v29  ;;  %4521 = vmatprep.subr.bf16.mxu0 %v2219_v59  ;;  %10449 = vst [vmem:[#allocation21_spill] sm:$0xff] %v9573_v39  ;;  %v2163_v29 = vunpack.c.l.s8.bf16 %v847_v19  ;;  %v819_v59 = vld [vmem:[%s8436_s29 + $0x1328] sm:$0xff]  ;;  %v400_v39 = vld [vmem:[%s8436_s29 + $0x610] sm:$0xff]  ;;  %v9583_v19 = vpop.f32.mrf.mxu1 }
 0x552   : > { %4603 = vmatprep.subr.bf16.mxu1 %v933_v1  ;;  %v401_v1 = vld [vmem:[%s8436_s29 + $0x618] sm:$0xff]  ;;  %10451 = vst [vmem:[#allocation23_spill] sm:$0xff] %v9583_v19  ;;  %v1296_v15 = vunpack.c.h.s8.bf16 %v400_v39 }
 0x553   : > { %v1269_v6 = vunpack.c.l.s8.bf16 %v401_v1  ;;  %v9587_v55 = vpop.f32.mrf.mxu1 }
 0x554   : > { %4522 = vmatpush2.bf16.msra.mxu0 %v2218_v41  ;;  %v9579_v41 = vpop.f32.mrf.mxu0 }
 0x555   : > { %4604 = vmatpush1.bf16.msra.mxu1 %v932_v32  ;;  %4523 = vmatprep.subr.bf16.mxu0 %v2191_v47  ;;  %10450 = vst [vmem:[#allocation22_spill] sm:$0xff] %v9579_v41  ;;  %v2135_v32 = vunpack.c.h.s8.bf16 %v819_v59  ;;  %v1297_v47 = vunpack.c.h.s8.bf16 %v401_v1  ;;  %v9591_v41 = vpop.f32.mrf.mxu1  ;;  %v372_v1 = vld [vmem:[%s8436_s29 + $0x530] sm:$0xff] }
 0x556   : > { %4605 = vmatprep.subr.bf16.mxu1 %v1353_v58  ;;  %v818_v58 = vld [vmem:[%s8436_s29 + $0x1320] sm:$0xff]  ;;  %10453 = vst [vmem:[#allocation25_spill] sm:$0xff] %v9591_v41 }
 0x557   : > { %v2134_v8 = vunpack.c.h.s8.bf16 %v818_v58  ;;  %v9599_v50 = vpop.f32.mrf.mxu1 }
 0x558   : > { %4524 = vmatpush2.bf16.msra.mxu0 %v2190_v30  ;;  %v9585_v30 = vpop.f32.mrf.mxu0  ;;  %10456 = vst [vmem:[#allocation28_spill] sm:$0xff] %v9599_v50  ;;  %v1212_v50 = vunpack.c.l.s8.bf16 %v372_v1 }
 0x559   : > { %4606 = vmatpush2.bf16.msra.mxu1 %v1352_v61  ;;  %4525 = vmatprep.subr.bf16.mxu0 %v2163_v29  ;;  %10452 = vst [vmem:[#allocation24_spill] sm:$0xff] %v9585_v30  ;;  %v2107_v61 = vunpack.c.l.s8.bf16 %v819_v59  ;;  %v791_v29 = vld [vmem:[%s8436_s29 + $0x1248] sm:$0xff] }
 0x55a   : > { %4607 = vmatprep.subr.bf16.mxu1 %v1325_v11  ;;  %v373_v11 = vld [vmem:[%s8436_s29 + $0x538] sm:$0xff]  ;;  %v9593_v19 = vpop.f32.mrf.mxu0 }
 0x55b   : > { %10454 = vst [vmem:[#allocation26_spill] sm:$0xff] %v9593_v19  ;;  %v1241_v59 = vunpack.c.h.s8.bf16 %v373_v11  ;;  %v9605_v19 = vpop.f32.mrf.mxu1 }
 0x55c   : > { %4526 = vmatpush2.bf16.msra.mxu0 %v2162_v10  ;;  %v2106_v10 = vunpack.c.l.s8.bf16 %v818_v58  ;;  %v9597_v30 = vpop.f32.mrf.mxu0  ;;  %v1213_v58 = vunpack.c.l.s8.bf16 %v373_v11  ;;  %10458 = vst [vmem:[#allocation30_spill] sm:$0xff] %v9605_v19 }
 0x55d   : > { %4608 = vmatpush2.bf16.msra.mxu1 %v1324_v21  ;;  %4527 = vmatprep.subr.bf16.mxu0 %v2135_v32  ;;  %v1268_v21 = vunpack.c.l.s8.bf16 %v400_v39  ;;  %v2079_v32 = vunpack.c.h.s8.bf16 %v791_v29  ;;  %10455 = vst [vmem:[#allocation27_spill] sm:$0xff] %v9597_v30  ;;  %v2051_v39 = vunpack.c.l.s8.bf16 %v791_v29  ;;  %v9611_v11 = vpop.f32.mrf.mxu1 }
 0x55e   : > { %4609 = vmatprep.subr.bf16.mxu1 %v1297_v47  ;;  %v790_v47 = vld [vmem:[%s8436_s29 + $0x1240] sm:$0xff]  ;;  %v9603_v41 = vpop.f32.mrf.mxu0  ;;  %10460 = vst [vmem:[#allocation32_spill] sm:$0xff] %v9611_v11  ;;  %v764_v11 = vld [vmem:[%s8436_s29 + $0x1170] sm:$0xff] }
 0x55f   : > { %10457 = vst [vmem:[#allocation29_spill] sm:$0xff] %v9603_v41  ;;  %v2050_v30 = vunpack.c.l.s8.bf16 %v790_v47 }
 0x560   : > { %4528 = vmatpush2.bf16.msra.mxu0 %v2134_v8  ;;  %v2078_v8 = vunpack.c.h.s8.bf16 %v790_v47  ;;  %v9609_v29 = vpop.f32.mrf.mxu0 }
 0x561   : > { %4610 = vmatpush2.bf16.msra.mxu1 %v1296_v15  ;;  %4529 = vmatprep.subr.bf16.mxu0 %v2107_v61  ;;  %v1240_v15 = vunpack.c.h.s8.bf16 %v372_v1  ;;  %v345_v61 = vld [vmem:[%s8436_s29 + $0x458] sm:$0xff]  ;;  %10459 = vst [vmem:[#allocation31_spill] sm:$0xff] %v9609_v29  ;;  %v512_v29 = vld [vmem:[%s8436_s29 + $0x990] sm:$0xff] }
 0x562   : > { %4611 = vmatprep.subr.bf16.mxu1 %v1269_v6  ;;  %v541_v6 = vld [vmem:[%s8436_s29 + $0xa78] sm:$0xff]  ;;  %v1157_v47 = vunpack.c.l.s8.bf16 %v345_v61 }
 0x563   : > { %v1549_v1 = vunpack.c.l.s8.bf16 %v541_v6 }
 0x564   : > { %4530 = vmatpush2.bf16.msra.mxu0 %v2106_v10  ;;  %v1185_v10 = vunpack.c.h.s8.bf16 %v345_v61 }
 0x565   : > { %4612 = vmatpush2.bf16.msra.mxu1 %v1268_v21  ;;  %4531 = vmatprep.subr.bf16.mxu0 %v2079_v32  ;;  %v1577_v21 = vunpack.c.h.s8.bf16 %v541_v6  ;;  %v344_v32 = vld [vmem:[%s8436_s29 + $0x450] sm:$0xff] }
 0x566   : > { %4613 = vmatprep.subr.bf16.mxu1 %v1241_v59  ;;  %v540_v59 = vld [vmem:[%s8436_s29 + $0xa70] sm:$0xff]  ;;  %v1184_v41 = vunpack.c.h.s8.bf16 %v344_v32 }
 0x567   : > { %v1576_v19 = vunpack.c.h.s8.bf16 %v540_v59  ;;  %v1548_v61 = vunpack.c.l.s8.bf16 %v540_v59 }
 0x568   : > { %4532 = vmatpush2.bf16.msra.mxu0 %v2078_v8  ;;  %v513_v8 = vld [vmem:[%s8436_s29 + $0x998] sm:$0xff] }
 0x569   : > { %4614 = vmatpush2.bf16.msra.mxu1 %v1240_v15  ;;  %4533 = vmatprep.subr.bf16.mxu0 %v2051_v39  ;;  %v765_v15 = vld [vmem:[%s8436_s29 + $0x1178] sm:$0xff]  ;;  %v9615_v39 = vpop.f32.mrf.mxu0  ;;  %v1493_v59 = vunpack.c.l.s8.bf16 %v513_v8 }
 0x56a   : > { %4615 = vmatprep.subr.bf16.mxu1 %v1213_v58  ;;  %10461 = vst [vmem:[#allocation33_spill] sm:$0xff] %v9615_v39  ;;  %v9620_v58 = vld [vmem:[%s10423_s0 + $0x10] ss:$28 sps:$4 sm:$0xff]  }
 0x56b   : > { %v9625_v6 = vpop.f32.mrf.mxu0  ;;  %v8265_v39 = vld [vmem:[%s10423_s0 + $0xc] ss:$28 sps:$4 sm:$0xff]  }
 0x56c   : > { %4534 = vmatpush2.bf16.msra.mxu0 %v2050_v30  ;;  %v1156_v30 = vunpack.c.l.s8.bf16 %v344_v32  ;;  %10463 = vst [vmem:[#allocation35_spill] sm:$0xff] %v9625_v6  ;;  %v737_v6 = vld [vmem:[%s8436_s29 + $0x1098] sm:$0xff] }
 0x56d   : > { %4616 = vmatpush2.bf16.msra.mxu1 %v1212_v50  ;;  %4632 = vmatprep.subr.bf16.mxu0 %v1577_v21  ;;  %v9623_v50 = vpop.f32.mrf.mxu1  ;;  %v2025_v21 = vunpack.c.h.s8.bf16 %v765_v15  ;;  %v9634_v32 = vpop.f32.mrf.mxu0 }
 0x56e   : > { %4617 = vmatprep.subr.bf16.mxu1 %v1185_v10  ;;  %10462 = vst [vmem:[#allocation34_spill] sm:$0xff] %v9623_v50  ;;  %v1521_v10 = vunpack.c.h.s8.bf16 %v513_v8  ;;  %10465 = vst [vmem:[#allocation37_spill] sm:$0xff] %v9634_v32  ;;  %v484_v8 = vld [vmem:[%s8436_s29 + $0x8b0] sm:$0xff] }
 0x56f   : > { %4536 = vmatmul.mubr.bf16.vlgmr.msra.gmra.mxu0 %v9620_v58  ;;  %v9632_v50 = vpop.f32.mrf.mxu1 }
 0x570   : > { %4633 = vmatpush1.bf16.msra.mxu0 %v1576_v19  ;;  %4664 = vmatprep.mubr.bf16.mxu0 %v8265_v39  ;;  %10464 = vst [vmem:[#allocation36_spill] sm:$0xff] %v9632_v50  ;;  %v2024_v19 = vunpack.c.h.s8.bf16 %v764_v11  ;;  %v1492_v39 = vunpack.c.l.s8.bf16 %v512_v29 }
 0x571   : > { %4618 = vmatpush2.bf16.msra.mxu1 %v1184_v41  ;;  %4634 = vmatprep.subr.bf16.mxu0 %v1549_v1  ;;  %v1520_v41 = vunpack.c.h.s8.bf16 %v512_v29  ;;  %v485_v1 = vld [vmem:[%s8436_s29 + $0x8b8] sm:$0xff]  ;;  %v9639_v48 = vpop.f32.mrf.mxu1 }
 0x572   : > { %4619 = vmatprep.subr.bf16.mxu1 %v1157_v47  ;;  %v1997_v47 = vunpack.c.l.s8.bf16 %v765_v15  ;;  %10466 = vst [vmem:[#allocation38_spill] sm:$0xff] %v9639_v48  ;;  %v736_v15 = vld [vmem:[%s8436_s29 + $0x1090] sm:$0xff]  ;;  %v709_v48 = vld [vmem:[%s8436_s29 + $0xfb8] sm:$0xff] }
 0x573   : > { %v9646_v50 = vpop.f32.mrf.mxu1 }
 0x574   : > { %4635 = vmatpush1.bf16.msra.mxu0 %v1548_v61  ;;  %v9641_v61 = vpop.f32.mrf.mxu0  ;;  %10468 = vst [vmem:[#allocation40_spill] sm:$0xff] %v9646_v50  ;;  %v708_v50 = vld [vmem:[%s8436_s29 + $0xfb0] sm:$0xff] }
 0x575   : > { %4620 = vmatpush2.bf16.msra.mxu1 %v1156_v30  ;;  %4636 = vmatprep.subr.bf16.mxu0 %v1521_v10  ;;  %v1996_v30 = vunpack.c.l.s8.bf16 %v764_v11  ;;  %10467 = vst [vmem:[#allocation39_spill] sm:$0xff] %v9641_v61  ;;  %v1465_v10 = vunpack.c.h.s8.bf16 %v485_v1  ;;  %v1437_v11 = vunpack.c.l.s8.bf16 %v485_v1 }
 0x576   : > { %4675 = vmatprep.subr.bf16.mxu1 %v2025_v21  ;;  %v1969_v21 = vunpack.c.h.s8.bf16 %v737_v6  ;;  %v9648_v29 = vpop.f32.mrf.mxu0 }
 0x577   : > { %10469 = vst [vmem:[#allocation41_spill] sm:$0xff] %v9648_v29 }
 0x578   : > { %4622 = vmatmul.mubr.bf16.vlgmr.msra.gmra.mxu1 %v9501_v17  ;;  %4637 = vmatpush1.bf16.msra.mxu0 %v1520_v41  ;;  %v1464_v17 = vunpack.c.h.s8.bf16 %v484_v8  ;;  %v1968_v41 = vunpack.c.h.s8.bf16 %v736_v15  ;;  %v9654_v61 = vpop.f32.mrf.mxu0 }
 0x579   : > { %4676 = vmatpush1.bf16.msra.mxu1 %v2024_v19  ;;  %4638 = vmatprep.subr.bf16.mxu0 %v1493_v59  ;;  %v1941_v19 = vunpack.c.l.s8.bf16 %v737_v6  ;;  %v9650_v59 = vpop.f32.mrf.mxu1  ;;  %10471 = vst [vmem:[#allocation43_spill] sm:$0xff] %v9654_v61  ;;  %v1912_v61 = vunpack.c.h.s8.bf16 %v708_v50 }
 0x57a   : > { %4677 = vmatprep.subr.bf16.mxu1 %v1997_v47  ;;  %4707 = vmatprep.mubr.bf16.mxu1 %v9515_v52  ;;  %10470 = vst [vmem:[#allocation42_spill] sm:$0xff] %v9650_v59  ;;  %v457_v47 = vld [vmem:[%s8436_s29 + $0x7d8] sm:$0xff]  ;;  %v1436_v52 = vunpack.c.l.s8.bf16 %v484_v8  ;;  %v9660_v6 = vpop.f32.mrf.mxu0 }
 0x57b   : > { %v9658_v1 = vpop.f32.mrf.mxu1  ;;  %10473 = vst [vmem:[#allocation45_spill] sm:$0xff] %v9660_v6  ;;  %v1381_v8 = vunpack.c.l.s8.bf16 %v457_v47  ;;  %v1884_v6 = vunpack.c.l.s8.bf16 %v708_v50 }
 0x57c   : > { %4639 = vmatpush1.bf16.msra.mxu0 %v1492_v39  ;;  %v1940_v39 = vunpack.c.l.s8.bf16 %v736_v15  ;;  %10472 = vst [vmem:[#allocation44_spill] sm:$0xff] %v9658_v1  ;;  %v1885_v15 = vunpack.c.l.s8.bf16 %v709_v48 }
 0x57d   : > { %4678 = vmatpush1.bf16.msra.mxu1 %v1996_v30  ;;  %4640 = vmatprep.subr.bf16.mxu0 %v1465_v10  ;;  %v1409_v30 = vunpack.c.h.s8.bf16 %v457_v47  ;;  %v1913_v10 = vunpack.c.h.s8.bf16 %v709_v48 }
 0x57e   : > { %4679 = vmatprep.subr.bf16.mxu1 %v1969_v21  ;;  %v456_v21 = vld [vmem:[%s8436_s29 + $0x7d0] sm:$0xff] }
 0x57f   : > { %v1408_v59 = vunpack.c.h.s8.bf16 %v456_v21  ;;  %v1380_v32 = vunpack.c.l.s8.bf16 %v456_v21 }
 0x580   : > { %4641 = vmatpush1.bf16.msra.mxu0 %v1464_v17  ;;  %v9662_v17 = vpop.f32.mrf.mxu1 }
 0x581   : > { %4680 = vmatpush1.bf16.msra.mxu1 %v1968_v41  ;;  %4642 = vmatprep.subr.bf16.mxu0 %v1437_v11  ;;  %10474 = vst [vmem:[#allocation46_spill] sm:$0xff] %v9662_v17  ;;  %v653_v41 = vld [vmem:[%s8436_s29 + $0xdf8] sm:$0xff] }
 0x582   : > { %4681 = vmatprep.subr.bf16.mxu1 %v1941_v19  ;;  %v681_v11 = vld [vmem:[%s8436_s29 + $0xed8] sm:$0xff]  ;;  %v9666_v19 = vpop.f32.mrf.mxu0  ;;  %v9670_v47 = vpop.f32.mrf.mxu1  ;;  %v1773_v50 = vunpack.c.l.s8.bf16 %v653_v41 }
 0x583   : > { %10475 = vst [vmem:[#allocation47_spill] sm:$0xff] %v9666_v19  ;;  %v1829_v21 = vunpack.c.l.s8.bf16 %v681_v11 }
 0x584   : > { %4643 = vmatpush1.bf16.msra.mxu0 %v1436_v52  ;;  %v1801_v52 = vunpack.c.h.s8.bf16 %v653_v41  ;;  %v9672_v48 = vpop.f32.mrf.mxu0  ;;  %v9674_v17 = vpop.f32.mrf.mxu1 }
 0x585   : > { %4682 = vmatpush1.bf16.msra.mxu1 %v1940_v39  ;;  %4644 = vmatprep.subr.bf16.mxu0 %v1409_v30  ;;  %v1857_v39 = vunpack.c.h.s8.bf16 %v681_v11  ;;  %v652_v30 = vld [vmem:[%s8436_s29 + $0xdf0] sm:$0xff]  ;;  %10476 = vst [vmem:[#allocation48_spill] sm:$0xff] %v9674_v17 }
 0x586   : > { %4683 = vmatprep.subr.bf16.mxu1 %v1913_v10  ;;  %v680_v10 = vld [vmem:[%s8436_s29 + $0xed0] sm:$0xff]  ;;  %v9678_v19 = vpop.f32.mrf.mxu0  ;;  %v9680_v1 = vpop.f32.mrf.mxu1  ;;  %v1772_v29 = vunpack.c.l.s8.bf16 %v652_v30 }
 0x587   : > { %10477 = vst [vmem:[#allocation49_spill] sm:$0xff] %v9678_v19  ;;  %10478 = vst [vmem:[#allocation50_spill] sm:$0xff] %v9680_v1  ;;  %v1828_v17 = vunpack.c.l.s8.bf16 %v680_v10 }
 0x588   : > { %4645 = vmatpush1.bf16.msra.mxu0 %v1408_v59  ;;  %v1800_v59 = vunpack.c.h.s8.bf16 %v652_v30  ;;  %v9684_v41 = vpop.f32.mrf.mxu0  ;;  %v9686_v11 = vpop.f32.mrf.mxu1 }
 0x589   : > { %4684 = vmatpush1.bf16.msra.mxu1 %v1912_v61  ;;  %4646 = vmatprep.subr.bf16.mxu0 %v1381_v8  ;;  %v1856_v61 = vunpack.c.h.s8.bf16 %v680_v10  ;;  %v625_v8 = vld [vmem:[%s8436_s29 + $0xd18] sm:$0xff]  ;;  %10479 = vst [vmem:[#allocation51_spill] sm:$0xff] %v9684_v41  ;;  %10480 = vst [vmem:[#allocation52_spill] sm:$0xff] %v9686_v11 }
 0x58a   : > { %4685 = vmatprep.subr.bf16.mxu1 %v1885_v15  ;;  %v877_v15 = vld [vmem:[%s8436_s29 + $0x14f8] sm:$0xff]  ;;  %v1717_v30 = vunpack.c.l.s8.bf16 %v625_v8 }
 0x58b   : > { %v2221_v10 = vunpack.c.l.s8.bf16 %v877_v15 }
 0x58c   : > { %4647 = vmatpush1.bf16.msra.mxu0 %v1380_v32  ;;  %v1745_v32 = vunpack.c.h.s8.bf16 %v625_v8 }
 0x58d   : > { %4686 = vmatpush1.bf16.msra.mxu1 %v1884_v6  ;;  %4648 = vmatprep.subr.bf16.mxu0 %v1801_v52  ;;  %v2249_v6 = vunpack.c.h.s8.bf16 %v877_v15  ;;  %v624_v52 = vld [vmem:[%s8436_s29 + $0xd10] sm:$0xff] }
 0x58e   : > { %4687 = vmatprep.subr.bf16.mxu1 %v1857_v39  ;;  %v876_v39 = vld [vmem:[%s8436_s29 + $0x14f0] sm:$0xff]  ;;  %v1744_v19 = vunpack.c.h.s8.bf16 %v624_v52  ;;  %v1716_v41 = vunpack.c.l.s8.bf16 %v624_v52 }
 0x58f   : > { %v2248_v1 = vunpack.c.h.s8.bf16 %v876_v39  ;;  %v2220_v11 = vunpack.c.l.s8.bf16 %v876_v39 }
 0x590   : > { %4649 = vmatpush2.bf16.msra.mxu0 %v1800_v59  ;;  %v597_v59 = vld [vmem:[%s8436_s29 + $0xc38] sm:$0xff] }
 0x591   : > { %4688 = vmatpush1.bf16.msra.mxu1 %v1856_v61  ;;  %4650 = vmatprep.subr.bf16.mxu0 %v1773_v50  ;;  %v849_v61 = vld [vmem:[%s8436_s29 + $0x1418] sm:$0xff]  ;;  %v9690_v50 = vpop.f32.mrf.mxu0 }
 0x592   : > { %4689 = vmatprep.subr.bf16.mxu1 %v1829_v21  ;;  %10481 = vst [vmem:[#allocation53_spill] sm:$0xff] %v9690_v50  ;;  %v9692_v21 = vpop.f32.mrf.mxu1  ;;  %v2165_v52 = vunpack.c.l.s8.bf16 %v849_v61 }
 0x593   : > { %10482 = vst [vmem:[#allocation54_spill] sm:$0xff] %v9692_v21  ;;  %v9698_v15 = vpop.f32.mrf.mxu0 }
 0x594   : > { %4651 = vmatpush2.bf16.msra.mxu0 %v1772_v29  ;;  %v1689_v29 = vunpack.c.h.s8.bf16 %v597_v59  ;;  %v9696_v8 = vpop.f32.mrf.mxu1  ;;  %10484 = vst [vmem:[#allocation56_spill] sm:$0xff] %v9698_v15 }
 0x595   : > { %4690 = vmatpush1.bf16.msra.mxu1 %v1828_v17  ;;  %4652 = vmatprep.subr.bf16.mxu0 %v1745_v32  ;;  %v2193_v17 = vunpack.c.h.s8.bf16 %v849_v61  ;;  %v596_v32 = vld [vmem:[%s8436_s29 + $0xc30] sm:$0xff]  ;;  %10483 = vst [vmem:[#allocation55_spill] sm:$0xff] %v9696_v8 }
 0x596   : > { %4691 = vmatprep.subr.bf16.mxu1 %v2249_v6  ;;  %v848_v6 = vld [vmem:[%s8436_s29 + $0x1410] sm:$0xff]  ;;  %v1688_v50 = vunpack.c.h.s8.bf16 %v596_v32  ;;  %v9702_v39 = vpop.f32.mrf.mxu1  ;;  %v1660_v8 = vunpack.c.l.s8.bf16 %v596_v32 }
 0x597   : > { %v2192_v21 = vunpack.c.h.s8.bf16 %v848_v6  ;;  %10486 = vst [vmem:[#allocation58_spill] sm:$0xff] %v9702_v39  ;;  %v2164_v15 = vunpack.c.l.s8.bf16 %v848_v6 }
 0x598   : > { %4653 = vmatpush2.bf16.msra.mxu0 %v1744_v19  ;;  %v9700_v19 = vpop.f32.mrf.mxu0 }
 0x599   : > { %4692 = vmatpush2.bf16.msra.mxu1 %v2248_v1  ;;  %4654 = vmatprep.subr.bf16.mxu0 %v1717_v30  ;;  %10485 = vst [vmem:[#allocation57_spill] sm:$0xff] %v9700_v19  ;;  %v1661_v1 = vunpack.c.l.s8.bf16 %v597_v59  ;;  %v569_v30 = vld [vmem:[%s8436_s29 + $0xb58] sm:$0xff]  ;;  %v9710_v59 = vpop.f32.mrf.mxu1 }
 0x59a   : > { %4693 = vmatprep.subr.bf16.mxu1 %v2221_v10  ;;  %v821_v10 = vld [vmem:[%s8436_s29 + $0x1338] sm:$0xff]  ;;  %10488 = vst [vmem:[#allocation60_spill] sm:$0xff] %v9710_v59  ;;  %v1605_v32 = vunpack.c.l.s8.bf16 %v569_v30 }
 0x59b   : > { %v2137_v19 = vunpack.c.h.s8.bf16 %v821_v10  ;;  %v2109_v6 = vunpack.c.l.s8.bf16 %v821_v10 }
 0x59c   : > { %4655 = vmatpush2.bf16.msra.mxu0 %v1716_v41  ;;  %v9706_v41 = vpop.f32.mrf.mxu0 }
 0x59d   : > { %4694 = vmatpush2.bf16.msra.mxu1 %v2220_v11  ;;  %4656 = vmatprep.subr.bf16.mxu0 %v1689_v29  ;;  %10487 = vst [vmem:[#allocation59_spill] sm:$0xff] %v9706_v41  ;;  %v1633_v11 = vunpack.c.h.s8.bf16 %v569_v30  ;;  %v568_v29 = vld [vmem:[%s8436_s29 + $0xb50] sm:$0xff]  ;;  %v793_v41 = vld [vmem:[%s8436_s29 + $0x1258] sm:$0xff] }
 0x59e   : > { %4695 = vmatprep.subr.bf16.mxu1 %v2193_v17  ;;  %v820_v17 = vld [vmem:[%s8436_s29 + $0x1330] sm:$0xff]  ;;  %v1632_v61 = vunpack.c.h.s8.bf16 %v568_v29  ;;  %v1604_v30 = vunpack.c.l.s8.bf16 %v568_v29 }
 0x59f   : > { %v2136_v39 = vunpack.c.h.s8.bf16 %v820_v17 }
 0x5a0   : > { %4657 = vmatpush2.bf16.msra.mxu0 %v1688_v50  ;;  %v2437_v50 = vadd.f32 %v9408_v27, %v9412_v33  ;;  %v2605_v33 = vadd.f32 %v9446_v22, %v9442_v14 }
 0x5a1   : > { %4696 = vmatpush2.bf16.msra.mxu1 %v2192_v21  ;;  %4658 = vmatprep.subr.bf16.mxu0 %v1661_v1  ;;  %v9714_v21 = vpop.f32.mrf.mxu0  ;;  %v2609_v1 = vadd.f32 %v9458_v44, %v9454_v38  ;;  %v2108_v38 = vunpack.c.l.s8.bf16 %v820_v17  ;;  %v2053_v17 = vunpack.c.l.s8.bf16 %v793_v41 }
 0x5a2   : > { %4697 = vmatprep.subr.bf16.mxu1 %v2165_v52  ;;  %v9718_v52 = vpop.f32.mrf.mxu1  ;;  %v2480_v27 = vadd.f32 %v9434_v63, %v2437_v50  ;;  %v2648_v63 = vadd.f32 %v9466_v51, %v2605_v33  ;;  %v10489_v33 = vmov 0  }
 0x5a3   : > { %v9729_v10 = vpop.f32.mrf.mxu0 }
 0x5a4   : > { %4659 = vmatpush2.bf16.msra.mxu0 %v1660_v8  ;;  %v905_v8 = vld [vmem:[%s8436_s29 + $0x15d8] sm:$0xff]  ;;  %v9734_v50 = vpop.f32.mrf.mxu1  ;;  %v2523_v14 = vadd.f32 %v9432_v62, %v2480_v27  ;;  %v2691_v51 = vadd.f32 %v9470_v2, %v2648_v63 }
 0x5a5   : > { %4698 = vmatpush2.bf16.msra.mxu1 %v2164_v15  ;;  %4660 = vmatprep.subr.bf16.mxu0 %v1633_v11  ;;  %v2433_v15 = vadd.f32 %v9389_v7, %v9400_v18  ;;  %v2081_v11 = vunpack.c.h.s8.bf16 %v793_v41  ;;  %v2305_v59 = vunpack.c.h.s8.bf16 %v905_v8  ;;  %v792_v7 = vld [vmem:[%s8436_s29 + $0x1250] sm:$0xff]  ;;  %v9737_v22 = vpop.f32.mrf.mxu0 }
 0x5a6   : > { %4699 = vmatprep.subr.bf16.mxu1 %v2137_v19  ;;  %v2652_v19 = vadd.f32 %v9478_v16, %v2609_v1  ;;  %v904_v18 = vld [vmem:[%s8436_s29 + $0x15d0] sm:$0xff]  ;;  %v4846_v62 = vmul.f32 0.01, %v2523_v14  ;;  %vm4790_vm2 = vcmp.gt.f32.partialorder %v2523_v14, 0.0  ;;  %vm4764_vm5 = vcmp.gt.f32.partialorder %v2691_v51, 0.0 }
 0x5a7   : > { %v2476_v44 = vadd.f32 %v9422_v40, %v2433_v15  ;;  %v2080_v40 = vunpack.c.h.s8.bf16 %v792_v7  ;;  %v2276_v41 = vunpack.c.l.s8.bf16 %v904_v18  ;;  %v4820_v15 = vmul.f32 0.01, %v2691_v51 }
 0x5a8   : > { %4661 = vmatpush2.bf16.msra.mxu0 %v1632_v61  ;;  %v2695_v16 = vadd.f32 %v9484_v35, %v2652_v19  ;;  %v2277_v61 = vunpack.c.l.s8.bf16 %v905_v8  ;;  %v8266_v35 = vld [vmem:[%s10423_s0 + $0x8] ss:$28 sps:$4 sm:$0xff]   ;;  %v8000_v8 = vld [vmem:[%s8446_s30 + $0xf8] sm:$0xff]  }
 0x5a9   : > { %4700 = vmatpush2.bf16.msra.mxu1 %v2136_v39  ;;  %4662 = vmatprep.subr.bf16.mxu0 %v1605_v32  ;;  %v2304_v39 = vunpack.c.h.s8.bf16 %v904_v18  ;;  %v2519_v29 = vadd.f32 %v9420_v42, %v2476_v44  ;;  %v9742_v32 = vpop.f32.mrf.mxu1  ;;  %v2052_v42 = vunpack.c.l.s8.bf16 %v792_v7  ;;  %v8002_v7 = vld [vmem:[%s8446_s30 + $0xb8] sm:$0xff]  }
 0x5aa   : > { %4701 = vmatprep.subr.bf16.mxu1 %v2109_v6  ;;  %v9744_v6 = vpop.f32.mrf.mxu0  ;;  %v4848_v1 = vmul.f32 0.01, %v2695_v16  ;;  %vm4792_vm3 = vcmp.gt.f32.partialorder %v2695_v16, 0.0 }
 0x5ab   : > { %v4818_v2 = vmul.f32 0.01, %v2519_v29  ;;  %vm4762_vm4 = vcmp.gt.f32.partialorder %v2519_v29, 0.0  ;;  %v9751_v27 = vpop.f32.mrf.mxu1 }
 0x5ac   : > { %4663 = vmatpush2.bf16.msra.mxu0 %v1604_v30  ;;  %v9754_v19 = vpop.f32.mrf.mxu0  ;;  %v4902_v30 = vsel %vm4790_vm2, %v2523_v14, %v4846_v62  ;;  %v4904_v44 = vsel %vm4792_vm3, %v2695_v16, %v4848_v1  ;;  %v8267_v14 = vld [vmem:[%s10423_s0 + $0x18] ss:$28 sps:$4 sm:$0xff]   ;;  %v8008_v1 = vld [vmem:[%s8446_s30 + $0xe8] sm:$0xff]  }
 0x5ad   : > { %4702 = vmatpush2.bf16.msra.mxu1 %v2108_v38  ;;  %4730 = vmatprep.subr.bf16.mxu0 %v2305_v59  ;;  %v7999_v59 = vld [vmem:[%s8446_s30 + $0x78] sm:$0xff]   ;;  %v9758_v18 = vpop.f32.mrf.mxu1 }
 0x5ae   : > { %4703 = vmatprep.subr.bf16.mxu1 %v2081_v11  ;;  %v8001_v38 = vld [vmem:[%s8446_s30 + $0x38] sm:$0xff]   ;;  %v4874_v11 = vsel %vm4762_vm4, %v2519_v29, %v4818_v2 }
 0x5af   : > { %4665 = vmatmul.mubr.bf16.vlgmr.msra.gmra.mxu0 %v8266_v35  ;;  %v4930_v63 = vpack.c.bf16 %v4902_v30, %v4874_v11  ;;  %v9769_v29 = vpop.f32.mrf.mxu1  ;;  %v8007_v35 = vld [vmem:[%s8446_s30 + $0x68] sm:$0xff]   ;;  %v8013_v30 = vld [vmem:[%s8446_s30 + $0x20] sm:$0xff]   ;;  %v8015_v11 = vld [vmem:[%s8446_s30 + $0x58] sm:$0xff]  }
 0x5b0   : > { %4731 = vmatpush1.bf16.msra.mxu0 %v2304_v39  ;;  %4750 = vmatprep.mubr.bf16.mxu0 %v10489_v33  ;;  %v8003_v39 = vld [vmem:[%s8446_s30 + $0x70] sm:$0xff]  }
 0x5b1   : > { %4704 = vmatpush2.bf16.msra.mxu1 %v2080_v40  ;;  %4732 = vmatprep.subr.bf16.mxu0 %v2277_v61  ;;  %v4876_v40 = vsel %vm4764_vm5, %v2691_v51, %v4820_v15  ;;  %v9762_v61 = vpop.f32.mrf.mxu0  ;;  %v8005_v51 = vld [vmem:[%s8446_s30 + $0x30] sm:$0xff]   ;;  %v8012_v15 = vld [vmem:[%s8446_s30 + $0xe0] sm:$0xff]  }
 0x5b2   : > { %4705 = vmatprep.subr.bf16.mxu1 %v2053_v17  ;;  %v8004_v17 = vld [vmem:[%s8446_s30 + $0xf0] sm:$0xff]   ;;  %v4932_v16 = vpack.c.bf16 %v4904_v44, %v4876_v40  ;;  %v8014_v44 = vld [vmem:[%s8446_s30 + $0xa0] sm:$0xff]  }
 0x5b3   : > { %v9772_v62 = vpop.f32.mrf.mxu0 }
 0x5b4   : > { %4733 = vmatpush1.bf16.msra.mxu0 %v2276_v41  ;;  %v8009_v41 = vld [vmem:[%s8446_s30 + $0x28] sm:$0xff]  }
 0x5b5   : > { %4706 = vmatpush2.bf16.msra.mxu1 %v2052_v42  ;;  %7635 = vmatprep.subr.bf16.mxu0 %v7999_v59  ;;  %v9777_v42 = vpop.f32.mrf.mxu1  ;;  %v9780_v2 = vpop.f32.mrf.mxu0  ;;  %v8010_v59 = vld [vmem:[%s8446_s30 + $0xa8] sm:$0xff]  }
 0x5b6   : > { %7657 = vmatprep.subr.bf16.mxu1 %v8000_v8  ;;  %v8011_v8 = vld [vmem:[%s8446_s30 + $0x60] sm:$0xff]  }
 0x5b7   : > { %7408 = vmatmul.mubr.msk.bf16.vlgmr.msra.gmra.mxu0 %vm2349_vm1, %v8267_v14  ;;  %v9785_v33 = vpop.f32.mrf.mxu1  ;;  %v2607_v14 = vadd.f32 %v9452_v28, %v9450_v31  ;;  %v2953_v28 = vadd.f32 %v9567_v43, %v9565_v24 }
 0x5b8   : > { %4708 = vmatmul.mubr.bf16.vlgmr.msra.gmra.mxu1 %v9620_v58  ;;  %7636 = vmatpush3.bf16.msra.mxu0 %v8001_v38  ;;  %v8006_v58 = vld [vmem:[%s8446_s30 + $0xb0] sm:$0xff]   ;;  %v9788_v38 = vpop.f32.mrf.mxu0 }
 0x5b9   : > { %6783 = vmatprep.mubr.bf16.mxu0 %v4930_v63  ;;  %7658 = vmatpush3.bf16.msra.mxu1 %v8002_v7  ;;  %v8016_v7 = vld [vmem:[%s8446_s30 + $0xd8] sm:$0xff]   ;;  %v2435_v63 = vadd.f32 %v9402_v13, %v9406_v26  ;;  %v9795_v40 = vpop.f32.mrf.mxu1  ;;  %v2603_v26 = vadd.f32 %v9440_v9, %v9438_v4  ;;  %v2650_v31 = vadd.f32 %v9472_v3, %v2607_v14  ;;  %v8022_v3 = vld [vmem:[%s8446_s30 + $0x90] sm:$0xff]  }
 0x5ba   : > { %6824 = vmatprep.mubr.bf16.mxu1 %v4932_v16  ;;  %7637 = vmatprep.subr.bf16.mxu0 %v8003_v39  ;;  %v8017_v39 = vld [vmem:[%s8446_s30 + $0x18] sm:$0xff]   ;;  %v9802_v16 = vpop.f32.mrf.mxu0  ;;  %v2777_v4 = vadd.f32 %v9490_v56, %v9492_v57 }
 0x5bb   : > { %7659 = vmatprep.subr.bf16.mxu1 %v8004_v17  ;;  %v2431_v17 = vadd.f32 %v9375_v0, %v9379_v5  ;;  %v2478_v13 = vadd.f32 %v9428_v54, %v2435_v63  ;;  %v8020_v0 = vld [vmem:[%s8446_s30 + $0xd0] sm:$0xff]   ;;  %v2646_v54 = vadd.f32 %v9460_v45, %v2603_v26  ;;  %v8023_v45 = vld [vmem:[%s8446_s30 + $0x48] sm:$0xff]  }
 0x5bc   : > { %7638 = vmatpush3.bf16.msra.mxu0 %v8005_v51  ;;  %v8018_v51 = vld [vmem:[%s8446_s30 + $0x98] sm:$0xff]   ;;  %v2820_v56 = vadd.f32 %v9533_v25, %v2777_v4 }
 0x5bd   : > { %7660 = vmatpush3.bf16.msra.mxu1 %v8006_v58  ;;  %7639 = vmatprep.subr.bf16.mxu0 %v8007_v35  ;;  %v8019_v58 = vld [vmem:[%s8446_s30 + $0x50] sm:$0xff]   ;;  %v2781_v35 = vadd.f32 %v9509_v23, %v9518_v36  ;;  %v2474_v5 = vadd.f32 %v9416_v37, %v2431_v17  ;;  %v2949_v36 = vadd.f32 %v9555_v12, %v9553_v53 }
 0x5be   : > { %7661 = vmatprep.subr.bf16.mxu1 %v8008_v1  ;;  %v9811_v1 = vpop.f32.mrf.mxu1  ;;  %v8021_v23 = vld [vmem:[%s8446_s30 + $0x10] sm:$0xff]   ;;  %v2996_v37 = vadd.f32 %v9587_v55, %v2953_v28  ;;  %v2521_v24 = vadd.f32 %v9426_v46, %v2478_v13  ;;  %v2693_v12 = vadd.f32 %v9476_v20, %v2650_v31  ;;  %v10490_v55 = vld [vmem:[#allocation5_spill] sm:$0xff]  ;;  %v8025_v46 = vld [vmem:[%s8446_s30 + $0x8] sm:$0xff]  }
 0x5bf   : > { %v2824_v9 = vadd.f32 %v9545_v49, %v2781_v35  ;;  %v8024_v49 = vld [vmem:[%s8446_s30 + $0xc8] sm:$0xff]   ;;  %v2517_v53 = vadd.f32 %v9414_v34, %v2474_v5  ;;  %v2992_v43 = vadd.f32 %v9575_v60, %v2949_v36  ;;  %v8027_v34 = vld [vmem:[%s8446_s30 + $0x40] sm:$0xff]   ;;  %v10493_v20 = vld [vmem:[#allocation12_spill] sm:$0xff] }
 0x5c0   : > { %7640 = vmatpush3.bf16.msra.mxu0 %v8009_v41  ;;  %v9826_v41 = vpop.f32.mrf.mxu0  ;;  %v9832_v57 = vpop.f32.mrf.mxu1  ;;  %v2863_v63 = vadd.f32 %v10493_v20, %v2820_v56  ;;  %v8028_v60 = vld [vmem:[%s8446_s30 + $0xc0] sm:$0xff]   ;;  %vm4789_vm6 = vcmp.gt.f32.partialorder %v2521_v24, 0.0  ;;  %v4847_v14 = vmul.f32 0.01, %v2693_v12  ;;  %vm4791_vm7 = vcmp.gt.f32.partialorder %v2693_v12, 0.0  ;;  %v8031_v28 = vld [vmem:[%s8446_s30 + $0x178] sm:$0xff]  }
 0x5c1   : > { %7662 = vmatpush3.bf16.msra.mxu1 %v8010_v59  ;;  %7641 = vmatprep.subr.bf16.mxu0 %v8011_v8  ;;  %v2689_v59 = vadd.f32 %v10490_v55, %v2646_v54  ;;  %v10491_v8 = vld [vmem:[#allocation15_spill] sm:$0xff]  ;;  %v4817_v17 = vmul.f32 0.01, %v2517_v53  ;;  %v8029_v35 = vld [vmem:[%s8446_s30] sm:$0xff]   ;;  %vm4761_vm8 = vcmp.gt.f32.partialorder %v2517_v53, 0.0 }
 0x5c2   : > { %7663 = vmatprep.subr.bf16.mxu1 %v8012_v15  ;;  %v2867_v15 = vadd.f32 %v10491_v8, %v2824_v9  ;;  %v8030_v31 = vld [vmem:[%s8446_s30 + $0x80] sm:$0xff]   ;;  %v4822_v4 = vmul.f32 0.01, %v2863_v63  ;;  %v4903_v36 = vsel %vm4791_vm7, %v2693_v12, %v4847_v14  ;;  %vm4766_vm12 = vcmp.gt.f32.partialorder %v2863_v63, 0.0  ;;  %v8034_v12 = vld [vmem:[%s8446_s30 + $0x1b8] sm:$0xff]   ;;  %v8037_v20 = vld [vmem:[%s8446_s30 + $0x130] sm:$0xff]  }
 0x5c3   : > { %v4819_v13 = vmul.f32 0.01, %v2689_v59  ;;  %vm4763_vm10 = vcmp.gt.f32.partialorder %v2689_v59, 0.0 }
 0x5c4   : > { %7642 = vmatpush3.bf16.msra.mxu0 %v8013_v30  ;;  %v10492_v30 = vld [vmem:[#allocation26_spill] sm:$0xff]  ;;  %v4850_v26 = vmul.f32 0.01, %v2867_v15  ;;  %vm4794_vm9 = vcmp.gt.f32.partialorder %v2867_v15, 0.0 }
 0x5c5   : > { %7664 = vmatpush3.bf16.msra.mxu1 %v8014_v44  ;;  %7643 = vmatprep.subr.bf16.mxu0 %v8015_v11  ;;  %v3039_v25 = vadd.f32 %v10492_v30, %v2996_v37  ;;  %v9842_v44 = vpop.f32.mrf.mxu0  ;;  %v8026_v11 = vld [vmem:[%s8446_s30 + $0x88] sm:$0xff]   ;;  %v8035_v30 = vld [vmem:[%s8446_s30 + $0x170] sm:$0xff]  }
 0x5c6   : > { %7665 = vmatprep.subr.bf16.mxu1 %v8016_v7  ;;  %v4845_v7 = vmul.f32 0.01, %v2521_v24  ;;  %v4906_v56 = vsel %vm4794_vm9, %v2867_v15, %v4850_v26  ;;  %v8043_v26 = vld [vmem:[%s8446_s30 + $0x160] sm:$0xff]  }
 0x5c7   : > { %v9852_v5 = vpop.f32.mrf.mxu0  ;;  %vm4796_vm11 = vcmp.gt.f32.partialorder %v3039_v25, 0.0 }
 0x5c8   : > { %7644 = vmatpush3.bf16.msra.mxu0 %v8017_v39  ;;  %v9847_v39 = vpop.f32.mrf.mxu1  ;;  %v4901_v54 = vsel %vm4789_vm6, %v2521_v24, %v4845_v7  ;;  %v8033_v24 = vld [vmem:[%s8446_s30 + $0x138] sm:$0xff]  }
 0x5c9   : > { %7666 = vmatpush3.bf16.msra.mxu1 %v8018_v51  ;;  %7645 = vmatprep.subr.bf16.mxu0 %v8019_v58  ;;  %v10494_v51 = vld [vmem:[#allocation22_spill] sm:$0xff]  ;;  %v9867_v55 = vpop.f32.mrf.mxu0 }
 0x5ca   : > { %7667 = vmatprep.subr.bf16.mxu1 %v8020_v0  ;;  %v3035_v58 = vadd.f32 %v10494_v51, %v2992_v43  ;;  %v4852_v0 = vmul.f32 0.01, %v3039_v25  ;;  %v9857_v9 = vpop.f32.mrf.mxu1  ;;  %v4875_v43 = vsel %vm4763_vm10, %v2689_v59, %v4819_v13  ;;  %v8042_v13 = vld [vmem:[%s8446_s30 + $0x1a8] sm:$0xff]  }
 0x5cb   : > { %v4931_v8 = vpack.c.bf16 %v4903_v36, %v4875_v43  ;;  %v9873_v15 = vpop.f32.mrf.mxu0  ;;  %v10500_v43 = vld [vmem:[#allocation7_spill] sm:$0xff] }
 0x5cc   : > { %7646 = vmatpush3.bf16.msra.mxu0 %v8021_v23  ;;  %v8032_v23 = vld [vmem:[%s8446_s30 + $0x1f8] sm:$0xff]   ;;  %v4824_v37 = vmul.f32 0.01, %v3035_v58  ;;  %vm4768_vm13 = vcmp.gt.f32.partialorder %v3035_v58, 0.0  ;;  %10496 = vst [vmem:[#allocation15_spill] sm:$0xff] %v9873_v15 }
 0x5cd   : > { %7668 = vmatpush3.bf16.msra.mxu1 %v8022_v3  ;;  %7647 = vmatprep.subr.bf16.mxu0 %v8023_v45  ;;  %v4873_v3 = vsel %vm4761_vm8, %v2517_v53, %v4817_v17  ;;  %v9862_v45 = vpop.f32.mrf.mxu1  ;;  %v4908_v53 = vsel %vm4796_vm11, %v3039_v25, %v4852_v0  ;;  %v8040_v17 = vld [vmem:[%s8446_s30 + $0x1e8] sm:$0xff]   ;;  %v9883_v14 = vpop.f32.mrf.mxu0 }
 0x5ce   : > { %7669 = vmatprep.subr.bf16.mxu1 %v8024_v49  ;;  %10495 = vst [vmem:[#allocation5_spill] sm:$0xff] %v9862_v45  ;;  %v4929_v49 = vpack.c.bf16 %v4901_v54, %v4873_v3  ;;  %v8046_v54 = vld [vmem:[%s8446_s30 + $0x1a0] sm:$0xff]   ;;  %v10498_v3 = vld [vmem:[#allocation8_spill] sm:$0xff] }
 0x5cf   : > { %v9877_v7 = vpop.f32.mrf.mxu1  ;;  %v9891_v0 = vpop.f32.mrf.mxu0 }
 0x5d0   : > { %7648 = vmatpush3.bf16.msra.mxu0 %v8025_v46  ;;  %v4878_v46 = vsel %vm4766_vm12, %v2863_v63, %v4822_v4  ;;  %v8038_v63 = vld [vmem:[%s8446_s30 + $0x1b0] sm:$0xff]   ;;  %v8047_v4 = vld [vmem:[%s8446_s30 + $0x158] sm:$0xff]  }
 0x5d1   : > { %7670 = vmatpush3.bf16.msra.mxu1 %v8026_v11  ;;  %7649 = vmatprep.subr.bf16.mxu0 %v8027_v34  ;;  %v4934_v59 = vpack.c.bf16 %v4906_v56, %v4878_v46  ;;  %v4880_v11 = vsel %vm4768_vm13, %v3035_v58, %v4824_v37  ;;  %v8036_v34 = vld [vmem:[%s8446_s30 + $0x1f0] sm:$0xff]   ;;  %v9885_v51 = vpop.f32.mrf.mxu1  ;;  %v8041_v58 = vld [vmem:[%s8446_s30 + $0x128] sm:$0xff]   ;;  %v9899_v36 = vpop.f32.mrf.mxu0  ;;  %v10497_v37 = vld [vmem:[#allocation9_spill] sm:$0xff] }
 0x5d2   : > { %7671 = vmatprep.subr.bf16.mxu1 %v8028_v60  ;;  %v4936_v25 = vpack.c.bf16 %v4908_v53, %v4880_v11  ;;  %v8039_v60 = vld [vmem:[%s8446_s30 + $0x168] sm:$0xff]   ;;  %v10503_v46 = vld [vmem:[#allocation19_spill] sm:$0xff]  ;;  %v8050_v11 = vld [vmem:[%s8446_s30 + $0x198] sm:$0xff]  }
 0x5d4   : > { %7650 = vmatpush3.bf16.msra.mxu0 %v8029_v35  ;;  %v8044_v35 = vld [vmem:[%s8446_s30 + $0x1e0] sm:$0xff]  }
 0x5d5   : > { %7672 = vmatpush3.bf16.msra.mxu1 %v8030_v31  ;;  %7679 = vmatprep.subr.bf16.mxu0 %v8031_v28  ;;  %v9893_v31 = vpop.f32.mrf.mxu1  ;;  %v8045_v28 = vld [vmem:[%s8446_s30 + $0x120] sm:$0xff]  }
 0x5d6   : > { %7701 = vmatprep.subr.bf16.mxu1 %v8032_v23  ;;  %v8048_v23 = vld [vmem:[%s8446_s30 + $0x1d8] sm:$0xff]  }
 0x5d7   : > { %6784 = vmatmul.mubr.bf16.vlgmr.msra.gmra.mxu0 %v4929_v49  ;;  %v9903_v56 = vpop.f32.mrf.mxu1  ;;  %v8049_v49 = vld [vmem:[%s8446_s30 + $0x118] sm:$0xff]  }
 0x5d8   : > { %6825 = vmatmul.mubr.bf16.vlgmr.msra.gmra.mxu1 %v4931_v8  ;;  %7680 = vmatpush3.bf16.msra.mxu0 %v8033_v24  ;;  %v2779_v24 = vadd.f32 %v10498_v3, %v10497_v37  ;;  %10499 = vst [vmem:[#allocation26_spill] sm:$0xff] %v9903_v56  ;;  %v10502_v8 = vld [vmem:[#allocation18_spill] sm:$0xff]  ;;  %v10511_v3 = vld [vmem:[#allocation23_spill] sm:$0xff]  ;;  %v10524_v56 = vld [vmem:[#allocation21_spill] sm:$0xff] }
 0x5d9   : > { %6865 = vmatprep.mubr.bf16.mxu0 %v4934_v59  ;;  %7702 = vmatpush3.bf16.msra.mxu1 %v8034_v12  ;;  %v10501_v12 = vld [vmem:[#allocation6_spill] sm:$0xff]  ;;  %v9910_v59 = vpop.f32.mrf.mxu0 }
 0x5da   : > { %6906 = vmatprep.mubr.bf16.mxu1 %v4936_v25  ;;  %7681 = vmatprep.subr.bf16.mxu0 %v8035_v30  ;;  %v2775_v53 = vadd.f32 %v10501_v12, %v10500_v43  ;;  %v2951_v30 = vadd.f32 %v10503_v46, %v10502_v8  ;;  %10504 = vst [vmem:[#allocation12_spill] sm:$0xff] %v9910_v59  ;;  %v10505_v25 = vld [vmem:[#allocation14_spill] sm:$0xff]  ;;  %v10512_v43 = vld [vmem:[#allocation20_spill] sm:$0xff] }
 0x5db   : > { %7703 = vmatprep.subr.bf16.mxu1 %v8036_v34  ;;  %v8051_v34 = vld [vmem:[%s8446_s30 + $0x150] sm:$0xff]   ;;  %v10514_v8 = vld [vmem:[#allocation28_spill] sm:$0xff] }
 0x5dc   : > { %7682 = vmatpush3.bf16.msra.mxu0 %v8037_v20  ;;  %v2822_v20 = vadd.f32 %v10505_v25, %v2779_v24  ;;  %v10513_v24 = vld [vmem:[#allocation29_spill] sm:$0xff] }
 0x5dd   : > { %7704 = vmatpush3.bf16.msra.mxu1 %v8038_v63  ;;  %7683 = vmatprep.subr.bf16.mxu0 %v8039_v60  ;;  %v10506_v63 = vld [vmem:[#allocation16_spill] sm:$0xff]  ;;  %v10507_v60 = vld [vmem:[#allocation17_spill] sm:$0xff]  ;;  %v3121_v46 = vadd.f32 %v10514_v8, %v10513_v24  ;;  %v10521_v8 = vld [vmem:[#allocation10_spill] sm:$0xff] }
 0x5de   : > { %7705 = vmatprep.subr.bf16.mxu1 %v8040_v17  ;;  %v2947_v17 = vadd.f32 %v10507_v60, %v10506_v63  ;;  %v10515_v25 = vld [vmem:[#allocation41_spill] sm:$0xff]  ;;  %v9928_v60 = vpop.f32.mrf.mxu1 }
 0x5df   : > { %v10520_v24 = vld [vmem:[#allocation37_spill] sm:$0xff] }
 0x5e0   : > { %7684 = vmatpush3.bf16.msra.mxu0 %v8041_v58  ;;  %v10508_v58 = vld [vmem:[#allocation33_spill] sm:$0xff]  ;;  %v2990_v12 = vadd.f32 %v10512_v43, %v2947_v17  ;;  %v9946_v45 = vpop.f32.mrf.mxu1 }
 0x5e1   : > { %7706 = vmatpush3.bf16.msra.mxu1 %v8042_v13  ;;  %7685 = vmatprep.subr.bf16.mxu0 %v8043_v26  ;;  %v10509_v13 = vld [vmem:[#allocation32_spill] sm:$0xff]  ;;  %v10519_v17 = vld [vmem:[#allocation13_spill] sm:$0xff]  ;;  %10526 = vst [vmem:[#allocation22_spill] sm:$0xff] %v9946_v45 }
 0x5e2   : > { %7707 = vmatprep.subr.bf16.mxu1 %v8044_v35  ;;  %v3125_v26 = vadd.f32 %v10509_v13, %v10508_v58  ;;  %v8052_v35 = vld [vmem:[%s8446_s30 + $0x1d0] sm:$0xff]   ;;  %v10516_v58 = vld [vmem:[#allocation44_spill] sm:$0xff]  ;;  %v10517_v13 = vld [vmem:[#allocation45_spill] sm:$0xff]  ;;  %v2865_v43 = vadd.f32 %v10519_v17, %v2822_v20 }
 0x5e3   : > { %v8057_v20 = vld [vmem:[%s8446_s30 + $0x108] sm:$0xff]   ;;  %v10527_v17 = vld [vmem:[#allocation56_spill] sm:$0xff] }
 0x5e4   : > { %7686 = vmatpush3.bf16.msra.mxu0 %v8045_v28  ;;  %v10510_v28 = vld [vmem:[#allocation11_spill] sm:$0xff]  ;;  %v3168_v63 = vadd.f32 %v10515_v25, %v3125_v26  ;;  %v3164_v26 = vadd.f32 %v10520_v24, %v3121_v46  ;;  %vm4793_vm14 = vcmp.gt.f32.partialorder %v2865_v43, 0.0 }
 0x5e5   : > { %7708 = vmatpush3.bf16.msra.mxu1 %v8046_v54  ;;  %7687 = vmatprep.subr.bf16.mxu0 %v8047_v4  ;;  %v2818_v37 = vadd.f32 %v10510_v28, %v2775_v53  ;;  %v2994_v54 = vadd.f32 %v10511_v3, %v2951_v30  ;;  %v3297_v4 = vadd.f32 %v9672_v48, %v9670_v47  ;;  %v10518_v28 = vld [vmem:[#allocation54_spill] sm:$0xff]  ;;  %v9934_v3 = vpop.f32.mrf.mxu0  ;;  %v8054_v47 = vld [vmem:[%s8446_s30 + $0x190] sm:$0xff]  }
 0x5e6   : > { %7709 = vmatprep.subr.bf16.mxu1 %v8048_v23  ;;  %v8053_v23 = vld [vmem:[%s8446_s30 + $0x110] sm:$0xff]   ;;  %v3293_v53 = vadd.f32 %v10517_v13, %v10516_v58  ;;  %v8055_v48 = vld [vmem:[%s8446_s30 + $0x148] sm:$0xff]   ;;  %v10522_v58 = vld [vmem:[#allocation24_spill] sm:$0xff] }
 0x5e7   : > { %v3340_v30 = vadd.f32 %v10518_v28, %v3297_v4  ;;  %v2861_v25 = vadd.f32 %v10521_v8, %v2818_v37  ;;  %v3037_v13 = vadd.f32 %v10522_v58, %v2994_v54  ;;  %v10523_v4 = vld [vmem:[#allocation50_spill] sm:$0xff]  ;;  %v9950_v24 = vpop.f32.mrf.mxu0  ;;  %v8059_v37 = vld [vmem:[%s8446_s30 + $0x140] sm:$0xff]   ;;  %v4849_v54 = vmul.f32 0.01, %v2865_v43  ;;  %v10529_v8 = vld [vmem:[#allocation36_spill] sm:$0xff] }
 0x5e8   : > { %7688 = vmatpush3.bf16.msra.mxu0 %v8049_v49  ;;  %v8056_v49 = vld [vmem:[%s8446_s30 + $0x1c8] sm:$0xff]   ;;  %v3336_v28 = vadd.f32 %v10523_v4, %v3293_v53  ;;  %10528 = vst [vmem:[#allocation9_spill] sm:$0xff] %v9950_v24  ;;  %v3207_v53 = vadd.f32 %v10529_v8, %v3164_v26 }
 0x5e9   : > { %7710 = vmatpush3.bf16.msra.mxu1 %v8050_v11  ;;  %7689 = vmatprep.subr.bf16.mxu0 %v8051_v34  ;;  %v3033_v11 = vadd.f32 %v10524_v56, %v2990_v12  ;;  %v10525_v34 = vld [vmem:[#allocation40_spill] sm:$0xff]  ;;  %v3383_v46 = vadd.f32 %v10527_v17, %v3340_v30  ;;  %v8060_v56 = vld [vmem:[%s8446_s30 + $0x1c0] sm:$0xff]   ;;  %v4821_v12 = vmul.f32 0.01, %v2861_v25  ;;  %vm4795_vm15 = vcmp.gt.f32.partialorder %v3037_v13, 0.0 }
 0x5ea   : > { %7711 = vmatprep.subr.bf16.mxu1 %v8052_v35  ;;  %v3211_v59 = vadd.f32 %v10525_v34, %v3168_v63  ;;  %v8058_v35 = vld [vmem:[%s8446_s30 + $0x188] sm:$0xff]   ;;  %v4851_v63 = vmul.f32 0.01, %v3037_v13  ;;  %vm4765_vm0 = vcmp.gt.f32.partialorder %v2861_v25, 0.0  ;;  %v8062_v34 = vld [vmem:[%s8446_s30 + $0x180] sm:$0xff]   ;;  %v8063_v17 = vld [vmem:[%s8446_s30 + $0x278] sm:$0xff]  }
 0x5eb   : > { %v4823_v30 = vmul.f32 0.01, %v3033_v11  ;;  %v4856_v26 = vmul.f32 0.01, %v3383_v46  ;;  %vm4767_vm2 = vcmp.gt.f32.partialorder %v3033_v11, 0.0  ;;  %vm4800_vm3 = vcmp.gt.f32.partialorder %v3383_v46, 0.0 }
 0x5ec   : > { %7690 = vmatpush3.bf16.msra.mxu0 %v8053_v23  ;;  %v10530_v23 = vld [vmem:[#allocation51_spill] sm:$0xff]  ;;  %v4854_v4 = vmul.f32 0.01, %v3211_v59  ;;  %vm4798_vm1 = vcmp.gt.f32.partialorder %v3211_v59, 0.0  ;;  %v4826_v8 = vmul.f32 0.01, %v3207_v53  ;;  %v4907_v45 = vsel %vm4795_vm15, %v3037_v13, %v4851_v63 }
 0x5ed   : > { %7712 = vmatpush3.bf16.msra.mxu1 %v8054_v47  ;;  %7691 = vmatprep.subr.bf16.mxu0 %v8055_v48  ;;  %v3379_v58 = vadd.f32 %v10530_v23, %v3336_v28  ;;  %v9957_v47 = vpop.f32.mrf.mxu1  ;;  %v8061_v48 = vld [vmem:[%s8446_s30 + $0x100] sm:$0xff]   ;;  %v4905_v28 = vsel %vm4793_vm14, %v2865_v43, %v4849_v54  ;;  %vm4770_vm4 = vcmp.gt.f32.partialorder %v3207_v53, 0.0  ;;  %v8065_v43 = vld [vmem:[%s8446_s30 + $0x238] sm:$0xff]  }
 0x5ee   : > { %7713 = vmatprep.subr.bf16.mxu1 %v8056_v49  ;;  %v9960_v49 = vpop.f32.mrf.mxu0  ;;  %v8066_v13 = vld [vmem:[%s8446_s30 + $0x2b8] sm:$0xff]  }
 0x5ef   : > { %v9965_v23 = vpop.f32.mrf.mxu1  ;;  %v4828_v24 = vmul.f32 0.01, %v3379_v58  ;;  %vm4772_vm5 = vcmp.gt.f32.partialorder %v3379_v58, 0.0 }
 0x5f0   : > { %7692 = vmatpush3.bf16.msra.mxu0 %v8057_v20  ;;  %10531 = vst [vmem:[#allocation8_spill] sm:$0xff] %v9965_v23  ;;  %v8064_v20 = vld [vmem:[%s8446_s30 + $0x2f8] sm:$0xff]   ;;  %v9969_v15 = vpop.f32.mrf.mxu0  ;;  %v4879_v23 = vsel %vm4767_vm2, %v3033_v11, %v4823_v30 }
 0x5f1   : > { %7714 = vmatpush3.bf16.msra.mxu1 %v8058_v35  ;;  %7693 = vmatprep.subr.bf16.mxu0 %v8059_v37  ;;  %10532 = vst [vmem:[#allocation7_spill] sm:$0xff] %v9969_v15  ;;  %v4877_v35 = vsel %vm4765_vm0, %v2861_v25, %v4821_v12  ;;  %v4910_v37 = vsel %vm4798_vm1, %v3211_v59, %v4854_v4  ;;  %v9977_v15 = vpop.f32.mrf.mxu1  ;;  %v8067_v12 = vld [vmem:[%s8446_s30 + $0x270] sm:$0xff]  }
 0x5f2   : > { %7715 = vmatprep.subr.bf16.mxu1 %v8060_v56  ;;  %v4933_v54 = vpack.c.bf16 %v4905_v28, %v4877_v35  ;;  %v4912_v56 = vsel %vm4800_vm3, %v3383_v46, %v4856_v26  ;;  %v4935_v63 = vpack.c.bf16 %v4907_v45, %v4879_v23  ;;  %v4882_v25 = vsel %vm4770_vm4, %v3207_v53, %v4826_v8  ;;  %v9981_v59 = vpop.f32.mrf.mxu0  ;;  %v8068_v4 = vld [vmem:[%s8446_s30 + $0x2f0] sm:$0xff]   ;;  %v8071_v53 = vld [vmem:[%s8446_s30 + $0x268] sm:$0xff]   ;;  %v8075_v28 = vld [vmem:[%s8446_s30 + $0x260] sm:$0xff]  }
 0x5f3   : > { %v4938_v11 = vpack.c.bf16 %v4910_v37, %v4882_v25  ;;  %v4884_v30 = vsel %vm4772_vm5, %v3379_v58, %v4828_v24  ;;  %v8069_v46 = vld [vmem:[%s8446_s30 + $0x230] sm:$0xff]   ;;  %v9988_v26 = vpop.f32.mrf.mxu1  ;;  %v8073_v58 = vld [vmem:[%s8446_s30 + $0x228] sm:$0xff]   ;;  %v8076_v23 = vld [vmem:[%s8446_s30 + $0x2e0] sm:$0xff]  }
 0x5f4   : > { %7694 = vmatpush3.bf16.msra.mxu0 %v8061_v48  ;;  %v4940_v45 = vpack.c.bf16 %v4912_v56, %v4884_v30  ;;  %v8070_v48 = vld [vmem:[%s8446_s30 + $0x2b0] sm:$0xff]   ;;  %v9991_v24 = vpop.f32.mrf.mxu0  ;;  %v8078_v37 = vld [vmem:[%s8446_s30 + $0x2a0] sm:$0xff]   ;;  %v10537_v25 = vld [vmem:[#allocation30_spill] sm:$0xff] }
 0x5f5   : > { %7716 = vmatpush3.bf16.msra.mxu1 %v8062_v34  ;;  %7723 = vmatprep.subr.bf16.mxu0 %v8063_v17  ;;  %v8072_v34 = vld [vmem:[%s8446_s30 + $0x2e8] sm:$0xff]   ;;  %10533 = vst [vmem:[#allocation6_spill] sm:$0xff] %v9991_v24  ;;  %v9996_v8 = vpop.f32.mrf.mxu1  ;;  %v8081_v30 = vld [vmem:[%s8446_s30 + $0x218] sm:$0xff]  }
 0x5f6   : > { %7745 = vmatprep.subr.bf16.mxu1 %v8064_v20  ;;  %v8074_v17 = vld [vmem:[%s8446_s30 + $0x2a8] sm:$0xff]   ;;  %v9999_v20 = vpop.f32.mrf.mxu0 }
 0x5f7   : > { %6866 = vmatmul.mubr.bf16.vlgmr.msra.gmra.mxu0 %v4933_v54  ;;  %v10001_v35 = vpop.f32.mrf.mxu1  ;;  %v8079_v54 = vld [vmem:[%s8446_s30 + $0x258] sm:$0xff]  }
 0x5f8   : > { %6907 = vmatmul.mubr.bf16.vlgmr.msra.gmra.mxu1 %v4935_v63  ;;  %7724 = vmatpush3.bf16.msra.mxu0 %v8065_v43  ;;  %10534 = vst [vmem:[#allocation18_spill] sm:$0xff] %v10001_v35  ;;  %v8077_v43 = vld [vmem:[%s8446_s30 + $0x220] sm:$0xff]   ;;  %v10007_v56 = vpop.f32.mrf.mxu0  ;;  %v10536_v63 = vld [vmem:[#allocation31_spill] sm:$0xff] }
 0x5f9   : > { %6947 = vmatprep.mubr.bf16.mxu0 %v4938_v11  ;;  %7746 = vmatpush3.bf16.msra.mxu1 %v8066_v13  ;;  %v8080_v13 = vld [vmem:[%s8446_s30 + $0x2d8] sm:$0xff]   ;;  %10535 = vst [vmem:[#allocation19_spill] sm:$0xff] %v10007_v56  ;;  %v10011_v11 = vpop.f32.mrf.mxu1  ;;  %v10543_v56 = vld [vmem:[#allocation42_spill] sm:$0xff]  ;;  %v10544_v35 = vld [vmem:[#allocation43_spill] sm:$0xff] }
 0x5fa   : > { %6988 = vmatprep.mubr.bf16.mxu1 %v4940_v45  ;;  %7725 = vmatprep.subr.bf16.mxu0 %v8067_v12  ;;  %v3123_v12 = vadd.f32 %v10537_v25, %v10536_v63  ;;  %v10539_v45 = vld [vmem:[#allocation25_spill] sm:$0xff]  ;;  %v3291_v63 = vadd.f32 %v10544_v35, %v10543_v56  ;;  %v8084_v25 = vld [vmem:[%s8446_s30 + $0x2d0] sm:$0xff]   ;;  %v10549_v56 = vld [vmem:[#allocation58_spill] sm:$0xff] }
 0x5fb   : > { %7747 = vmatprep.subr.bf16.mxu1 %v8068_v4  ;;  %v10538_v4 = vld [vmem:[#allocation27_spill] sm:$0xff] }
 0x5fc   : > { %7726 = vmatpush3.bf16.msra.mxu0 %v8069_v46  ;;  %v3119_v46 = vadd.f32 %v10539_v45, %v10538_v4  ;;  %v10545_v4 = vld [vmem:[#allocation35_spill] sm:$0xff] }
 0x5fd   : > { %7748 = vmatpush3.bf16.msra.mxu1 %v8070_v48  ;;  %7727 = vmatprep.subr.bf16.mxu0 %v8071_v53  ;;  %v10540_v48 = vld [vmem:[#allocation46_spill] sm:$0xff]  ;;  %v10541_v53 = vld [vmem:[#allocation47_spill] sm:$0xff] }
 0x5fe   : > { %7749 = vmatprep.subr.bf16.mxu1 %v8072_v34  ;;  %v3295_v34 = vadd.f32 %v10541_v53, %v10540_v48  ;;  %v3162_v45 = vadd.f32 %v10545_v4, %v3119_v46  ;;  %v10546_v48 = vld [vmem:[#allocation52_spill] sm:$0xff]  ;;  %v10030_v53 = vpop.f32.mrf.mxu0  ;;  %v10548_v35 = vld [vmem:[#allocation59_spill] sm:$0xff]  ;;  %v3637_v46 = vadd.f32 %v9780_v2, %v9777_v42 }
 0x5ff   : > { %v3465_v24 = vadd.f32 %v10549_v56, %v10548_v35 }
 0x600   : > { %7728 = vmatpush3.bf16.msra.mxu0 %v8073_v58  ;;  %v8082_v58 = vld [vmem:[%s8446_s30 + $0x298] sm:$0xff]   ;;  %v3680_v42 = vadd.f32 %v9832_v57, %v3637_v46  ;;  %v10050_v2 = vpop.f32.mrf.mxu0 }
 0x601   : > { %7750 = vmatpush3.bf16.msra.mxu1 %v8074_v17  ;;  %7729 = vmatprep.subr.bf16.mxu0 %v8075_v28  ;;  %v8083_v17 = vld [vmem:[%s8446_s30 + $0x250] sm:$0xff]  }
 0x602   : > { %7751 = vmatprep.subr.bf16.mxu1 %v8076_v23  ;;  %v10542_v28 = vld [vmem:[#allocation39_spill] sm:$0xff] }
 0x603   : > { %v3166_v23 = vadd.f32 %v10542_v28, %v3123_v12  ;;  %v10547_v12 = vld [vmem:[#allocation48_spill] sm:$0xff] }
 0x604   : > { %7730 = vmatpush3.bf16.msra.mxu0 %v8077_v43  ;;  %v3469_v43 = vadd.f32 %v9718_v52, %v9729_v10  ;;  %v3334_v28 = vadd.f32 %v10547_v12, %v3291_v63  ;;  %v10036_v10 = vpop.f32.mrf.mxu1  ;;  %v10550_v63 = vld [vmem:[#allocation38_spill] sm:$0xff]  ;;  %v10552_v12 = vld [vmem:[#allocation53_spill] sm:$0xff] }
 0x605   : > { %7752 = vmatpush3.bf16.msra.mxu1 %v8078_v37  ;;  %7731 = vmatprep.subr.bf16.mxu0 %v8079_v54  ;;  %v3338_v37 = vadd.f32 %v10546_v48, %v3295_v34  ;;  %v3641_v54 = vadd.f32 %v9802_v16, %v9795_v40  ;;  %v8086_v40 = vld [vmem:[%s8446_s30 + $0x290] sm:$0xff]   ;;  %v8087_v16 = vld [vmem:[%s8446_s30 + $0x248] sm:$0xff]   ;;  %v3209_v4 = vadd.f32 %v10550_v63, %v3166_v23  ;;  %v8095_v63 = vld [vmem:[%s8446_s30 + $0x378] sm:$0xff]  }
 0x606   : > { %7753 = vmatprep.subr.bf16.mxu1 %v8080_v13  ;;  %v3512_v52 = vadd.f32 %v9762_v61, %v3469_v43  ;;  %v8085_v13 = vld [vmem:[%s8446_s30 + $0x210] sm:$0xff]   ;;  %v3508_v48 = vadd.f32 %v9744_v6, %v3465_v24  ;;  %v8088_v61 = vld [vmem:[%s8446_s30 + $0x2c8] sm:$0xff]   ;;  %v10054_v23 = vpop.f32.mrf.mxu1 }
 0x607   : > { %v3684_v34 = vadd.f32 %v9857_v9, %v3641_v54  ;;  %v3381_v35 = vadd.f32 %v10552_v12, %v3338_v37  ;;  %v10553_v9 = vld [vmem:[#allocation49_spill] sm:$0xff]  ;;  %v8089_v6 = vld [vmem:[%s8446_s30 + $0x208] sm:$0xff]   ;;  %v4853_v37 = vmul.f32 0.01, %v3209_v4  ;;  %vm4797_vm6 = vcmp.gt.f32.partialorder %v3209_v4, 0.0 }
 0x608   : > { %7732 = vmatpush3.bf16.msra.mxu0 %v8081_v30  ;;  %v10551_v30 = vld [vmem:[#allocation34_spill] sm:$0xff]  ;;  %v3551_v57 = vadd.f32 %v9742_v32, %v3508_v48  ;;  %v10061_v54 = vpop.f32.mrf.mxu1 }
 0x609   : > { %7754 = vmatpush3.bf16.msra.mxu1 %v8082_v58  ;;  %7733 = vmatprep.subr.bf16.mxu0 %v8083_v17  ;;  %v3205_v43 = vadd.f32 %v10551_v30, %v3162_v45  ;;  %v3377_v58 = vadd.f32 %v10553_v9, %v3334_v28  ;;  %v3555_v17 = vadd.f32 %v9758_v18, %v3512_v52  ;;  %v8091_v45 = vld [vmem:[%s8446_s30 + $0x240] sm:$0xff]   ;;  %v4855_v18 = vmul.f32 0.01, %v3381_v35  ;;  %v8096_v30 = vld [vmem:[%s8446_s30 + $0x3f8] sm:$0xff]  }
 0x60a   : > { %7755 = vmatprep.subr.bf16.mxu1 %v8084_v25  ;;  %v3727_v24 = vadd.f32 %v9867_v55, %v3684_v34  ;;  %v8090_v25 = vld [vmem:[%s8446_s30 + $0x288] sm:$0xff]   ;;  %v8092_v28 = vld [vmem:[%s8446_s30 + $0x2c0] sm:$0xff]   ;;  %v3723_v52 = vadd.f32 %v9842_v44, %v3680_v42  ;;  %v10065_v55 = vpop.f32.mrf.mxu0  ;;  %vm4799_vm7 = vcmp.gt.f32.partialorder %v3381_v35, 0.0  ;;  %v4909_v44 = vsel %vm4797_vm6, %v3209_v4, %v4853_v37 }
 0x60b   : > { %v4825_v56 = vmul.f32 0.01, %v3205_v43  ;;  %v4858_v46 = vmul.f32 0.01, %v3555_v17  ;;  %v8093_v34 = vld [vmem:[%s8446_s30 + $0x200] sm:$0xff]   ;;  %vm4769_vm8 = vcmp.gt.f32.partialorder %v3205_v43, 0.0  ;;  %v4911_v12 = vsel %vm4799_vm7, %v3381_v35, %v4855_v18 }
 0x60c   : > { %7734 = vmatpush3.bf16.msra.mxu0 %v8085_v13  ;;  %v4827_v13 = vmul.f32 0.01, %v3377_v58  ;;  %vm4802_vm9 = vcmp.gt.f32.partialorder %v3555_v17, 0.0  ;;  %v4860_v32 = vmul.f32 0.01, %v3727_v24  ;;  %vm4771_vm10 = vcmp.gt.f32.partialorder %v3377_v58, 0.0 }
 0x60d   : > { %7756 = vmatpush3.bf16.msra.mxu1 %v8086_v40  ;;  %7735 = vmatprep.subr.bf16.mxu0 %v8087_v16  ;;  %v10068_v40 = vpop.f32.mrf.mxu0  ;;  %v8094_v16 = vld [vmem:[%s8446_s30 + $0x280] sm:$0xff]   ;;  %v4830_v48 = vmul.f32 0.01, %v3551_v57  ;;  %vm4804_vm11 = vcmp.gt.f32.partialorder %v3727_v24, 0.0  ;;  %vm4774_vm12 = vcmp.gt.f32.partialorder %v3551_v57, 0.0  ;;  %v4881_v9 = vsel %vm4769_vm8, %v3205_v43, %v4825_v56 }
 0x60e   : > { %7757 = vmatprep.subr.bf16.mxu1 %v8088_v61  ;;  %v10073_v61 = vpop.f32.mrf.mxu1  ;;  %v4832_v42 = vmul.f32 0.01, %v3723_v52  ;;  %vm4776_vm13 = vcmp.gt.f32.partialorder %v3723_v52, 0.0  ;;  %v4914_v4 = vsel %vm4802_vm9, %v3555_v17, %v4858_v46  ;;  %v4916_v35 = vsel %vm4804_vm11, %v3727_v24, %v4860_v32  ;;  %v8099_v17 = vld [vmem:[%s8446_s30 + $0x370] sm:$0xff]  }
 0x60f   : > { %v10080_v37 = vpop.f32.mrf.mxu0  ;;  %v4886_v56 = vsel %vm4774_vm12, %v3551_v57, %v4830_v48  ;;  %v8100_v46 = vld [vmem:[%s8446_s30 + $0x3f0] sm:$0xff]   ;;  %v8103_v57 = vld [vmem:[%s8446_s30 + $0x368] sm:$0xff]  }
 0x610   : > { %7736 = vmatpush3.bf16.msra.mxu0 %v8089_v6  ;;  %v8097_v6 = vld [vmem:[%s8446_s30 + $0x338] sm:$0xff]   ;;  %v10084_v43 = vpop.f32.mrf.mxu1  ;;  %v8101_v24 = vld [vmem:[%s8446_s30 + $0x330] sm:$0xff]  }
 0x611   : > { %7758 = vmatpush3.bf16.msra.mxu1 %v8090_v25  ;;  %7737 = vmatprep.subr.bf16.mxu0 %v8091_v45  ;;  %v4937_v25 = vpack.c.bf16 %v4909_v44, %v4881_v9  ;;  %v4883_v45 = vsel %vm4771_vm10, %v3377_v58, %v4827_v13  ;;  %v4942_v58 = vpack.c.bf16 %v4914_v4, %v4886_v56  ;;  %v10091_v32 = vpop.f32.mrf.mxu0  ;;  %v8105_v44 = vld [vmem:[%s8446_s30 + $0x328] sm:$0xff]   ;;  %v8108_v9 = vld [vmem:[%s8446_s30 + $0x3e0] sm:$0xff]   ;;  %v10554_v56 = vld [vmem:[#allocation60_spill] sm:$0xff] }
 0x612   : > { %7759 = vmatprep.subr.bf16.mxu1 %v8092_v28  ;;  %v8098_v28 = vld [vmem:[%s8446_s30 + $0x3b8] sm:$0xff]   ;;  %v4939_v18 = vpack.c.bf16 %v4911_v12, %v4883_v45  ;;  %v4888_v13 = vsel %vm4776_vm13, %v3723_v52, %v4832_v42  ;;  %v8104_v52 = vld [vmem:[%s8446_s30 + $0x3e8] sm:$0xff]   ;;  %v8107_v12 = vld [vmem:[%s8446_s30 + $0x360] sm:$0xff]  }
 0x613   : > { %v10099_v48 = vpop.f32.mrf.mxu0  ;;  %v8109_v4 = vld [vmem:[%s8446_s30 + $0x320] sm:$0xff]   ;;  %v8111_v45 = vld [vmem:[%s8446_s30 + $0x358] sm:$0xff]  }
 0x614   : > { %7738 = vmatpush3.bf16.msra.mxu0 %v8093_v34  ;;  %v4944_v34 = vpack.c.bf16 %v4916_v35, %v4888_v13  ;;  %v8112_v35 = vld [vmem:[%s8446_s30 + $0x3d8] sm:$0xff]   ;;  %v10555_v13 = vld [vmem:[#allocation57_spill] sm:$0xff] }
 0x615   : > { %7760 = vmatpush3.bf16.msra.mxu1 %v8094_v16  ;;  %7767 = vmatprep.subr.bf16.mxu0 %v8095_v63  ;;  %v8102_v16 = vld [vmem:[%s8446_s30 + $0x3b0] sm:$0xff]   ;;  %v10095_v63 = vpop.f32.mrf.mxu1 }
 0x616   : > { %7789 = vmatprep.subr.bf16.mxu1 %v8096_v30  ;;  %v8106_v30 = vld [vmem:[%s8446_s30 + $0x3a8] sm:$0xff]  }
 0x617   : > { %6948 = vmatmul.mubr.bf16.vlgmr.msra.gmra.mxu0 %v4937_v25  ;;  %v10103_v42 = vpop.f32.mrf.mxu1  ;;  %v8110_v25 = vld [vmem:[%s8446_s30 + $0x3a0] sm:$0xff]  }
 0x618   : > { %6989 = vmatmul.mubr.bf16.vlgmr.msra.gmra.mxu1 %v4939_v18  ;;  %7768 = vmatpush3.bf16.msra.mxu0 %v8097_v6  ;;  %v10106_v6 = vpop.f32.mrf.mxu0 }
 0x619   : > { %7029 = vmatprep.mubr.bf16.mxu0 %v4942_v58  ;;  %7790 = vmatpush3.bf16.msra.mxu1 %v8098_v28  ;;  %v10111_v28 = vpop.f32.mrf.mxu1  ;;  %v8113_v58 = vld [vmem:[%s8446_s30 + $0x318] sm:$0xff]  }
 0x61a   : > { %7070 = vmatprep.mubr.bf16.mxu1 %v4944_v34  ;;  %7769 = vmatprep.subr.bf16.mxu0 %v8099_v17  ;;  %v10114_v18 = vpop.f32.mrf.mxu0  ;;  %v3467_v17 = vadd.f32 %v10554_v56, %v9714_v21  ;;  %v3813_v21 = vadd.f32 %v9893_v31, %v9899_v36  ;;  %v8117_v36 = vld [vmem:[%s8446_s30 + $0x310] sm:$0xff]  }
 0x61b   : > { %7791 = vmatprep.subr.bf16.mxu1 %v8100_v46  ;;  %v10556_v46 = vld [vmem:[#allocation55_spill] sm:$0xff] }
 0x61c   : > { %7770 = vmatpush3.bf16.msra.mxu0 %v8101_v24  ;;  %v3463_v34 = vadd.f32 %v10556_v46, %v10555_v13  ;;  %v3639_v24 = vadd.f32 %v9788_v38, %v9785_v33  ;;  %v3856_v31 = vadd.f32 %v9960_v49, %v3813_v21  ;;  %v8128_v21 = vld [vmem:[%s8446_s30 + $0x4f8] sm:$0xff]  }
 0x61d   : > { %7792 = vmatpush3.bf16.msra.mxu1 %v8102_v16  ;;  %7771 = vmatprep.subr.bf16.mxu0 %v8103_v57  ;;  %v8114_v16 = vld [vmem:[%s8446_s30 + $0x398] sm:$0xff]   ;;  %v8115_v57 = vld [vmem:[%s8446_s30 + $0x350] sm:$0xff]  }
 0x61e   : > { %7793 = vmatprep.subr.bf16.mxu1 %v8104_v52  ;;  %v3510_v52 = vadd.f32 %v9754_v19, %v3467_v17  ;;  %v3506_v33 = vadd.f32 %v9737_v22, %v3463_v34  ;;  %v3682_v38 = vadd.f32 %v9847_v39, %v3639_v24  ;;  %v10137_v19 = vpop.f32.mrf.mxu0  ;;  %v3981_v22 = vadd.f32 %v9981_v59, %v9977_v15  ;;  %v8125_v24 = vld [vmem:[%s8446_s30 + $0x300] sm:$0xff]  }
 0x620   : > { %7772 = vmatpush3.bf16.msra.mxu0 %v8105_v44  ;;  %v3635_v44 = vadd.f32 %v9772_v62, %v9769_v29  ;;  %v3809_v62 = vadd.f32 %v9877_v7, %v9883_v14  ;;  %v8120_v7 = vld [vmem:[%s8446_s30 + $0x3c8] sm:$0xff]   ;;  %v3549_v14 = vadd.f32 %v9734_v50, %v3506_v33  ;;  %v3725_v15 = vadd.f32 %v9852_v5, %v3682_v38  ;;  %v10157_v59 = vpop.f32.mrf.mxu0  ;;  %v8123_v5 = vld [vmem:[%s8446_s30 + $0x340] sm:$0xff]  }
 0x621   : > { %7794 = vmatpush3.bf16.msra.mxu1 %v8106_v30  ;;  %7773 = vmatprep.subr.bf16.mxu0 %v8107_v12  ;;  %v10130_v30 = vpop.f32.mrf.mxu1  ;;  %v8116_v12 = vld [vmem:[%s8446_s30 + $0x3d0] sm:$0xff]   ;;  %v4024_v49 = vadd.f32 %v10011_v11, %v3981_v22  ;;  %v8122_v50 = vld [vmem:[%s8446_s30 + $0x388] sm:$0xff]  }
 0x622   : > { %7795 = vmatprep.subr.bf16.mxu1 %v8108_v9  ;;  %v3985_v9 = vadd.f32 %v9999_v20, %v9996_v8  ;;  %v3678_v29 = vadd.f32 %v9811_v1, %v3635_v44  ;;  %v8118_v8 = vld [vmem:[%s8446_s30 + $0x390] sm:$0xff]   ;;  %v8119_v20 = vld [vmem:[%s8446_s30 + $0x348] sm:$0xff]   ;;  %v3852_v1 = vadd.f32 %v9934_v3, %v3809_v62  ;;  %v10165_v56 = vpop.f32.mrf.mxu0  ;;  %vm4803_vm15 = vcmp.gt.f32.partialorder %v3725_v15, 0.0 }
 0x623   : > { %v4067_v13 = vadd.f32 %v10030_v53, %v4024_v49  ;;  %vm4773_vm0 = vcmp.gt.f32.partialorder %v3549_v14, 0.0 }
 0x624   : > { %7774 = vmatpush3.bf16.msra.mxu0 %v8109_v4  ;;  %v4028_v39 = vadd.f32 %v10054_v23, %v3985_v9  ;;  %v3553_v4 = vadd.f32 %v9751_v27, %v3510_v52  ;;  %v3721_v23 = vadd.f32 %v9826_v41, %v3678_v29  ;;  %v3899_v27 = vadd.f32 %v9957_v47, %v3856_v31  ;;  %v8124_v41 = vld [vmem:[%s8446_s30 + $0x3c0] sm:$0xff]   ;;  %v8127_v52 = vld [vmem:[%s8446_s30 + $0x478] sm:$0xff]  }
 0x625   : > { %7796 = vmatpush3.bf16.msra.mxu1 %v8110_v25  ;;  %7775 = vmatprep.subr.bf16.mxu0 %v8111_v45  ;;  %v10151_v25 = vpop.f32.mrf.mxu1  ;;  %v8121_v45 = vld [vmem:[%s8446_s30 + $0x308] sm:$0xff]   ;;  %v3895_v17 = vadd.f32 %v9928_v60, %v3852_v1  ;;  %v4859_v47 = vmul.f32 0.01, %v3725_v15  ;;  %v4836_v33 = vmul.f32 0.01, %v4067_v13  ;;  %vm4780_vm5 = vcmp.gt.f32.partialorder %v4067_v13, 0.0 }
 0x626   : > { %7797 = vmatprep.subr.bf16.mxu1 %v8112_v35  ;;  %v4071_v35 = vadd.f32 %v10065_v55, %v4028_v39  ;;  %v4857_v11 = vmul.f32 0.01, %v3553_v4  ;;  %vm4801_vm14 = vcmp.gt.f32.partialorder %v3553_v4, 0.0  ;;  %v4831_v55 = vmul.f32 0.01, %v3721_v23  ;;  %v8129_v29 = vld [vmem:[%s8446_s30 + $0x438] sm:$0xff]  }
 0x627   : > { %v10161_v3 = vpop.f32.mrf.mxu1  ;;  %v4862_v46 = vmul.f32 0.01, %v3899_v27  ;;  %vm4806_vm1 = vcmp.gt.f32.partialorder %v3899_v27, 0.0  ;;  %vm4775_vm2 = vcmp.gt.f32.partialorder %v3721_v23, 0.0  ;;  %v4834_v44 = vmul.f32 0.01, %v3895_v17 }
 0x628   : > { %7776 = vmatpush3.bf16.msra.mxu0 %v8113_v58  ;;  %v4829_v58 = vmul.f32 0.01, %v3549_v14  ;;  %v4864_v60 = vmul.f32 0.01, %v4071_v35  ;;  %v4913_v53 = vsel %vm4801_vm14, %v3553_v4, %v4857_v11  ;;  %vm4808_vm3 = vcmp.gt.f32.partialorder %v4071_v35, 0.0  ;;  %v8130_v39 = vld [vmem:[%s8446_s30 + $0x4b8] sm:$0xff]  }
 0x629   : > { %7798 = vmatpush3.bf16.msra.mxu1 %v8114_v16  ;;  %7777 = vmatprep.subr.bf16.mxu0 %v8115_v57  ;;  %v10172_v34 = vpop.f32.mrf.mxu1  ;;  %v10175_v16 = vpop.f32.mrf.mxu0  ;;  %v8126_v57 = vld [vmem:[%s8446_s30 + $0x380] sm:$0xff]   ;;  %vm4778_vm4 = vcmp.gt.f32.partialorder %v3895_v17, 0.0  ;;  %v4918_v62 = vsel %vm4806_vm1, %v3899_v27, %v4862_v46  ;;  %v8131_v1 = vld [vmem:[%s8446_s30 + $0x470] sm:$0xff]   ;;  %v8136_v11 = vld [vmem:[%s8446_s30 + $0x4e8] sm:$0xff]  }
 0x62a   : > { %7799 = vmatprep.subr.bf16.mxu1 %v8116_v12  ;;  %v4915_v12 = vsel %vm4803_vm15, %v3725_v15, %v4859_v47  ;;  %v4885_v38 = vsel %vm4773_vm0, %v3549_v14, %v4829_v58  ;;  %v4890_v4 = vsel %vm4778_vm4, %v3895_v17, %v4834_v44  ;;  %v4892_v14 = vsel %vm4780_vm5, %v4067_v13, %v4836_v33  ;;  %v8132_v15 = vld [vmem:[%s8446_s30 + $0x4f0] sm:$0xff]   ;;  %v8137_v17 = vld [vmem:[%s8446_s30 + $0x428] sm:$0xff]   ;;  %v8139_v47 = vld [vmem:[%s8446_s30 + $0x460] sm:$0xff]  }
 0x62b   : > { %v10183_v9 = vpop.f32.mrf.mxu1  ;;  %v4941_v31 = vpack.c.bf16 %v4913_v53, %v4885_v38  ;;  %v10187_v22 = vpop.f32.mrf.mxu0  ;;  %v8133_v27 = vld [vmem:[%s8446_s30 + $0x430] sm:$0xff]   ;;  %v8138_v58 = vld [vmem:[%s8446_s30 + $0x4a8] sm:$0xff]   ;;  %v8141_v46 = vld [vmem:[%s8446_s30 + $0x420] sm:$0xff]   ;;  %v3811_v44 = vadd.f32 %v9885_v51, %v9891_v0  ;;  %v4157_v0 = vadd.f32 %v10095_v63, %v10099_v48  ;;  %v4325_v48 = vadd.f32 %v10175_v16, %v10172_v34 }
 0x62c   : > { %7778 = vmatpush3.bf16.msra.mxu0 %v8117_v36  ;;  %v4887_v36 = vsel %vm4775_vm2, %v3721_v23, %v4831_v55  ;;  %v8140_v55 = vld [vmem:[%s8446_s30 + $0x4e0] sm:$0xff]   ;;  %v8144_v53 = vld [vmem:[%s8446_s30 + $0x4d8] sm:$0xff]   ;;  %v8149_v63 = vld [vmem:[%s8446_s30 + $0x410] sm:$0xff]  }
 0x62d   : > { %7800 = vmatpush3.bf16.msra.mxu1 %v8118_v8  ;;  %7779 = vmatprep.subr.bf16.mxu0 %v8119_v20  ;;  %v4920_v8 = vsel %vm4808_vm3, %v4071_v35, %v4864_v60  ;;  %v4943_v20 = vpack.c.bf16 %v4915_v12, %v4887_v36  ;;  %v4285_v49 = vpop.f32.mrf.mxu1  ;;  %v8134_v35 = vld [vmem:[%s8446_s30 + $0x4b0] sm:$0xff]   ;;  %v8142_v60 = vld [vmem:[%s8446_s30 + $0x4a0] sm:$0xff]   ;;  %v8146_v36 = vld [vmem:[%s8446_s30 + $0x498] sm:$0xff]  }
 0x62e   : > { %7801 = vmatprep.subr.bf16.mxu1 %v8120_v7  ;;  %v4946_v7 = vpack.c.bf16 %v4918_v62, %v4890_v4  ;;  %v4948_v23 = vpack.c.bf16 %v4920_v8, %v4892_v14  ;;  %v10557_v12 = vld [vmem:[#allocation15_spill] sm:$0xff]  ;;  %v10558_v33 = vld [vmem:[#allocation5_spill] sm:$0xff]  ;;  %v10561_v4 = vld [vmem:[#allocation8_spill] sm:$0xff] }
 0x62f   : > { %v3807_v38 = vadd.f32 %v10558_v33, %v10557_v12  ;;  %v10560_v8 = vld [vmem:[#allocation9_spill] sm:$0xff]  ;;  %v10563_v14 = vld [vmem:[#allocation12_spill] sm:$0xff]  ;;  %v8153_v12 = vld [vmem:[%s8446_s30 + $0x408] sm:$0xff]  }
 0x630   : > { %7780 = vmatpush3.bf16.msra.mxu0 %v8121_v45  ;;  %v4328_v45 = vpop.f32.mrf.mxu0  ;;  %v8154_v33 = vld [vmem:[%s8446_s30 + $0x488] sm:$0xff]  }
 0x631   : > { %7802 = vmatpush3.bf16.msra.mxu1 %v8122_v50  ;;  %7781 = vmatprep.subr.bf16.mxu0 %v8123_v5  ;;  %v8135_v50 = vld [vmem:[%s8446_s30 + $0x468] sm:$0xff]   ;;  %v10198_v5 = vpop.f32.mrf.mxu1 }
 0x632   : > { %7803 = vmatprep.subr.bf16.mxu1 %v8124_v41  ;;  %v10202_v41 = vpop.f32.mrf.mxu0 }
 0x633   : > { %v4367_v13 = vpop.f32.mrf.mxu1 }
 0x634   : > { %7782 = vmatpush3.bf16.msra.mxu0 %v8125_v24  ;;  %v10208_v24 = vpop.f32.mrf.mxu0  ;;  %v4368_v34 = vadd.f32 %v4367_v13, %v4325_v48  ;;  %v8156_v13 = vld [vmem:[%s8446_s30 + $0x4c0] sm:$0xff]   ;;  %v8162_v48 = vld [vmem:[%s8446_s30 + $0x5b8] sm:$0xff]  }
 0x635   : > { %7804 = vmatpush3.bf16.msra.mxu1 %v8126_v57  ;;  %7811 = vmatprep.subr.bf16.mxu0 %v8127_v52  ;;  %v8143_v57 = vld [vmem:[%s8446_s30 + $0x458] sm:$0xff]   ;;  %v10212_v52 = vpop.f32.mrf.mxu1 }
 0x636   : > { %7833 = vmatprep.subr.bf16.mxu1 %v8128_v21  ;;  %v8145_v21 = vld [vmem:[%s8446_s30 + $0x418] sm:$0xff]  }
 0x637   : > { %7030 = vmatmul.mubr.bf16.vlgmr.msra.gmra.mxu0 %v4941_v31  ;;  %v10222_v31 = vpop.f32.mrf.mxu0 }
 0x638   : > { %7071 = vmatmul.mubr.bf16.vlgmr.msra.gmra.mxu1 %v4943_v20  ;;  %7812 = vmatpush3.bf16.msra.mxu0 %v8129_v29  ;;  %v10559_v29 = vld [vmem:[#allocation6_spill] sm:$0xff]  ;;  %v3854_v20 = vadd.f32 %v10560_v8, %v3811_v44 }
 0x639   : > { %7111 = vmatprep.mubr.bf16.mxu0 %v4946_v7  ;;  %7834 = vmatpush3.bf16.msra.mxu1 %v8130_v39  ;;  %v3983_v62 = vadd.f32 %v10559_v29, %v9988_v26  ;;  %v8147_v39 = vld [vmem:[%s8446_s30 + $0x450] sm:$0xff]   ;;  %v4371_v7 = vpop.f32.mrf.mxu1 }
 0x63a   : > { %7152 = vmatprep.mubr.bf16.mxu1 %v4948_v23  ;;  %7813 = vmatprep.subr.bf16.mxu0 %v8131_v1  ;;  %v10562_v1 = vld [vmem:[#allocation7_spill] sm:$0xff] }
 0x63b   : > { %7835 = vmatprep.subr.bf16.mxu1 %v8132_v15  ;;  %v3979_v51 = vadd.f32 %v10562_v1, %v10561_v4  ;;  %v8148_v26 = vld [vmem:[%s8446_s30 + $0x4d0] sm:$0xff]   ;;  %v3850_v15 = vadd.f32 %v10563_v14, %v3807_v38  ;;  %v4026_v23 = vadd.f32 %v10036_v10, %v3983_v62  ;;  %v8155_v38 = vld [vmem:[%s8446_s30 + $0x440] sm:$0xff]  }
 0x63c   : > { %7814 = vmatpush3.bf16.msra.mxu0 %v8133_v27  ;;  %v4329_v27 = vadd.f32 %v4328_v45, %v4285_v49  ;;  %v8150_v10 = vld [vmem:[%s8446_s30 + $0x490] sm:$0xff]   ;;  %v8151_v49 = vld [vmem:[%s8446_s30 + $0x448] sm:$0xff]   ;;  %v8157_v1 = vld [vmem:[%s8446_s30 + $0x400] sm:$0xff]  }
 0x63d   : > { %7836 = vmatpush3.bf16.msra.mxu1 %v8134_v35  ;;  %7815 = vmatprep.subr.bf16.mxu0 %v8135_v50  ;;  %v10564_v35 = vld [vmem:[#allocation18_spill] sm:$0xff] }
 0x63e   : > { %7837 = vmatprep.subr.bf16.mxu1 %v8136_v11  ;;  %v4022_v50 = vadd.f32 %v10564_v35, %v3979_v51  ;;  %v4153_v11 = vadd.f32 %v10073_v61, %v10080_v37  ;;  %v10565_v45 = vld [vmem:[#allocation22_spill] sm:$0xff]  ;;  %v8158_v51 = vld [vmem:[%s8446_s30 + $0x480] sm:$0xff]  }
 0x63f   : > { %v8152_v61 = vld [vmem:[%s8446_s30 + $0x4c8] sm:$0xff]  }
 0x640   : > { %7816 = vmatpush3.bf16.msra.mxu0 %v8137_v17  ;;  %v4200_v17 = vadd.f32 %v10157_v59, %v4157_v0  ;;  %v10566_v37 = vld [vmem:[#allocation26_spill] sm:$0xff]  ;;  %v8159_v0 = vld [vmem:[%s8446_s30 + $0x578] sm:$0xff]  }
 0x641   : > { %7838 = vmatpush3.bf16.msra.mxu1 %v8138_v58  ;;  %7817 = vmatprep.subr.bf16.mxu0 %v8139_v47  ;;  %v4372_v58 = vadd.f32 %v4371_v7, %v4329_v27  ;;  %v4414_v47 = vpop.f32.mrf.mxu0  ;;  %v3893_v59 = vadd.f32 %v10566_v37, %v3850_v15  ;;  %v8164_v37 = vld [vmem:[%s8446_s30 + $0x5f0] sm:$0xff]  }
 0x642   : > { %7839 = vmatprep.subr.bf16.mxu1 %v8140_v55  ;;  %v3897_v55 = vadd.f32 %v10565_v45, %v3854_v20 }
 0x643   : > { %v10248_v16 = vpop.f32.mrf.mxu0  ;;  %v4833_v62 = vmul.f32 0.01, %v3893_v59  ;;  %vm4777_vm8 = vcmp.gt.f32.partialorder %v3893_v59, 0.0 }
 0x644   : > { %7818 = vmatpush3.bf16.msra.mxu0 %v8141_v46  ;;  %v4196_v46 = vadd.f32 %v10114_v18, %v4153_v11  ;;  %v4415_v18 = vadd.f32 %v4414_v47, %v4372_v58  ;;  %v4861_v29 = vmul.f32 0.01, %v3897_v55  ;;  %vm4805_vm6 = vcmp.gt.f32.partialorder %v3897_v55, 0.0 }
 0x645   : > { %7840 = vmatpush3.bf16.msra.mxu1 %v8142_v60  ;;  %7819 = vmatprep.subr.bf16.mxu0 %v8143_v57  ;;  %v4069_v60 = vadd.f32 %v10050_v2, %v4026_v23  ;;  %v10250_v57 = vpop.f32.mrf.mxu1  ;;  %v4889_v35 = vsel %vm4777_vm8, %v3893_v59, %v4833_v62  ;;  %v8173_v62 = vld [vmem:[%s8446_s30 + $0x520] sm:$0xff]  }
 0x646   : > { %7841 = vmatprep.subr.bf16.mxu1 %v8144_v53  ;;  %v10567_v53 = vld [vmem:[#allocation19_spill] sm:$0xff]  ;;  %v4239_v2 = vadd.f32 %v10111_v28, %v4196_v46  ;;  %v4868_v28 = vmul.f32 0.01, %v4415_v18  ;;  %vm4812_vm11 = vcmp.gt.f32.partialorder %v4415_v18, 0.0 }
 0x647   : > { %v4065_v44 = vadd.f32 %v10567_v53, %v4022_v50  ;;  %v10262_v8 = vpop.f32.mrf.mxu1  ;;  %vm4807_vm7 = vcmp.gt.f32.partialorder %v4069_v60, 0.0  ;;  %v8161_v50 = vld [vmem:[%s8446_s30 + $0x538] sm:$0xff]   ;;  %v8166_v53 = vld [vmem:[%s8446_s30 + $0x5b0] sm:$0xff]  }
 0x648   : > { %7820 = vmatpush3.bf16.msra.mxu0 %v8145_v21  ;;  %v4243_v21 = vadd.f32 %v10151_v25, %v4200_v17  ;;  %v4411_v25 = vadd.f32 %v10208_v24, %v4368_v34  ;;  %v4917_v24 = vsel %vm4805_vm6, %v3897_v55, %v4861_v29  ;;  %v4838_v7 = vmul.f32 0.01, %v4239_v2  ;;  %v8171_v29 = vld [vmem:[%s8446_s30 + $0x560] sm:$0xff]  }
 0x649   : > { %7842 = vmatpush3.bf16.msra.mxu1 %v8146_v36  ;;  %7821 = vmatprep.subr.bf16.mxu0 %v8147_v39  ;;  %v4863_v36 = vmul.f32 0.01, %v4069_v60  ;;  %v10260_v39 = vpop.f32.mrf.mxu0  ;;  %v4835_v20 = vmul.f32 0.01, %v4065_v44  ;;  %vm4779_vm10 = vcmp.gt.f32.partialorder %v4065_v44, 0.0  ;;  %vm4782_vm12 = vcmp.gt.f32.partialorder %v4239_v2, 0.0  ;;  %v10272_v27 = vpop.f32.mrf.mxu1 }
 0x64a   : > { %7843 = vmatprep.subr.bf16.mxu1 %v8148_v26  ;;  %v4866_v4 = vmul.f32 0.01, %v4243_v21  ;;  %vm4810_vm9 = vcmp.gt.f32.partialorder %v4243_v21, 0.0  ;;  %v8160_v26 = vld [vmem:[%s8446_s30 + $0x5f8] sm:$0xff]   ;;  %v4840_v15 = vmul.f32 0.01, %v4411_v25  ;;  %v4945_v17 = vpack.c.bf16 %v4917_v24, %v4889_v35 }
 0x64b   : > { %v4919_v14 = vsel %vm4807_vm7, %v4069_v60, %v4863_v36  ;;  %v10270_v23 = vpop.f32.mrf.mxu0  ;;  %vm4784_vm13 = vcmp.gt.f32.partialorder %v4411_v25, 0.0  ;;  %v4924_v58 = vsel %vm4812_vm11, %v4415_v18, %v4868_v28  ;;  %v4500_v55 = vpop.f32.mrf.mxu1  ;;  %v8165_v60 = vld [vmem:[%s8446_s30 + $0x530] sm:$0xff]   ;;  %v8169_v18 = vld [vmem:[%s8446_s30 + $0x528] sm:$0xff]   ;;  %v4155_v28 = vadd.f32 %v10084_v43, %v10091_v32 }
 0x64c   : > { %7822 = vmatpush3.bf16.msra.mxu0 %v8149_v63  ;;  %v4922_v11 = vsel %vm4810_vm9, %v4243_v21, %v4866_v4  ;;  %v4891_v63 = vsel %vm4779_vm10, %v4065_v44, %v4835_v20  ;;  %v8167_v44 = vld [vmem:[%s8446_s30 + $0x568] sm:$0xff]   ;;  %v8175_v20 = vld [vmem:[%s8446_s30 + $0x558] sm:$0xff]   ;;  %v8180_v43 = vld [vmem:[%s8446_s30 + $0x5d0] sm:$0xff]   ;;  %v4323_v32 = vadd.f32 %v10165_v56, %v10161_v3  ;;  %vm7327_vm10 = vcmask 130048  }
 0x64d   : > { %7844 = vmatpush3.bf16.msra.mxu1 %v8150_v10  ;;  %7823 = vmatprep.subr.bf16.mxu0 %v8151_v49  ;;  %v4947_v47 = vpack.c.bf16 %v4919_v14, %v4891_v63  ;;  %v4894_v10 = vsel %vm4782_vm12, %v4239_v2, %v4838_v7  ;;  %v8163_v49 = vld [vmem:[%s8446_s30 + $0x570] sm:$0xff]   ;;  %v4457_v45 = vpop.f32.mrf.mxu0  ;;  %v8168_v21 = vld [vmem:[%s8446_s30 + $0x5e8] sm:$0xff]   ;;  %v8172_v2 = vld [vmem:[%s8446_s30 + $0x5e0] sm:$0xff]   ;;  %v4151_v14 = vadd.f32 %v10061_v54, %v10068_v40 }
 0x64e   : > { %7845 = vmatprep.subr.bf16.mxu1 %v8152_v61  ;;  %v4950_v46 = vpack.c.bf16 %v4922_v11, %v4894_v10  ;;  %v4896_v61 = vsel %vm4784_vm13, %v4411_v25, %v4840_v15  ;;  %v8174_v25 = vld [vmem:[%s8446_s30 + $0x5a0] sm:$0xff]   ;;  %v8176_v4 = vld [vmem:[%s8446_s30 + $0x5d8] sm:$0xff]   ;;  %v4198_v15 = vadd.f32 %v10137_v19, %v4155_v28  ;;  %v4501_v35 = vadd.f32 %v4500_v55, %v4457_v45  ;;  %v8181_v40 = vld [vmem:[%s8446_s30 + $0x510] sm:$0xff]  }
 0x64f   : > { %v4952_v59 = vpack.c.bf16 %v4924_v58, %v4896_v61  ;;  %v10285_v34 = vpop.f32.mrf.mxu0  ;;  %v8178_v7 = vld [vmem:[%s8446_s30 + $0x598] sm:$0xff]   ;;  %v4497_v11 = vadd.f32 %v10262_v8, %v10260_v39  ;;  %v4366_v19 = vadd.f32 %v10198_v5, %v4323_v32  ;;  %v8182_v3 = vld [vmem:[%s8446_s30 + $0x590] sm:$0xff]   ;;  %v8183_v56 = vld [vmem:[%s8446_s30 + $0x548] sm:$0xff]  }
 0x650   : > { %7824 = vmatpush3.bf16.msra.mxu0 %v8153_v12  ;;  %v10290_v12 = vpop.f32.mrf.mxu1  ;;  %v8184_v39 = vld [vmem:[%s8446_s30 + $0x5c8] sm:$0xff]   ;;  %v8188_v55 = vld [vmem:[%s8446_s30 + $0x5c0] sm:$0xff]   ;;  %v8197_v32 = vld [vmem:[%s8446_s30 + $0x630] sm:$0xff]  }
 0x651   : > { %7846 = vmatpush3.bf16.msra.mxu1 %v8154_v33  ;;  %7825 = vmatprep.subr.bf16.mxu0 %v8155_v38  ;;  %v4539_v33 = vpop.f32.mrf.mxu0  ;;  %v8170_v38 = vld [vmem:[%s8446_s30 + $0x5a8] sm:$0xff]   ;;  %v4409_v58 = vadd.f32 %v10202_v41, %v4366_v19  ;;  %v8189_v41 = vld [vmem:[%s8446_s30 + $0x500] sm:$0xff]  }
 0x652   : > { %7847 = vmatprep.subr.bf16.mxu1 %v8156_v13  ;;  %v4582_v13 = vpop.f32.mrf.mxu1  ;;  %v8185_v5 = vld [vmem:[%s8446_s30 + $0x508] sm:$0xff]  }
 0x653   : > { %v10297_v36 = vpop.f32.mrf.mxu0  ;;  %v8186_v10 = vld [vmem:[%s8446_s30 + $0x588] sm:$0xff]   ;;  %vm4783_vm2 = vcmp.gt.f32.partialorder %v4409_v58, 0.0 }
 0x654   : > { %7826 = vmatpush3.bf16.msra.mxu0 %v8157_v1  ;;  %v10302_v1 = vpop.f32.mrf.mxu1 }
 0x655   : > { %7848 = vmatpush3.bf16.msra.mxu1 %v8158_v51  ;;  %7855 = vmatprep.subr.bf16.mxu0 %v8159_v0  ;;  %v8177_v51 = vld [vmem:[%s8446_s30 + $0x518] sm:$0xff]   ;;  %v4327_v0 = vadd.f32 %v10187_v22, %v10183_v9  ;;  %v4543_v24 = vpop.f32.mrf.mxu0 }
 0x656   : > { %7877 = vmatprep.subr.bf16.mxu1 %v8160_v26  ;;  %v8179_v26 = vld [vmem:[%s8446_s30 + $0x550] sm:$0xff]   ;;  %v4586_v22 = vpop.f32.mrf.mxu1  ;;  %v4544_v54 = vadd.f32 %v4543_v24, %v4501_v35 }
 0x657   : > { %7112 = vmatmul.mubr.bf16.vlgmr.msra.gmra.mxu0 %v4945_v17  ;;  %v4370_v9 = vadd.f32 %v10212_v52, %v4327_v0  ;;  %v4241_v52 = vadd.f32 %v10130_v30, %v4198_v15 }
 0x658   : > { %7153 = vmatmul.mubr.bf16.vlgmr.msra.gmra.mxu1 %v4947_v47  ;;  %7856 = vmatpush3.bf16.msra.mxu0 %v8161_v50  ;;  %v4194_v50 = vadd.f32 %v10106_v6, %v4151_v14  ;;  %v10323_v17 = vpop.f32.mrf.mxu1  ;;  %v4540_v6 = vadd.f32 %v4539_v33, %v4497_v11  ;;  %v8192_v33 = vld [vmem:[%s8446_s30 + $0x6f8] sm:$0xff]   ;;  %v8199_v11 = vld [vmem:[%s8446_s30 + $0x668] sm:$0xff]  }
 0x659   : > { %7193 = vmatprep.mubr.bf16.mxu0 %v4950_v46  ;;  %7878 = vmatpush3.bf16.msra.mxu1 %v8162_v48  ;;  %v4413_v8 = vadd.f32 %v10222_v31, %v4370_v9  ;;  %v4587_v48 = vadd.f32 %v4586_v22, %v4544_v54  ;;  %v4865_v30 = vmul.f32 0.01, %v4241_v52  ;;  %vm4809_vm14 = vcmp.gt.f32.partialorder %v4241_v52, 0.0 }
 0x65a   : > { %7234 = vmatprep.mubr.bf16.mxu1 %v4952_v59  ;;  %7857 = vmatprep.subr.bf16.mxu0 %v8163_v49  ;;  %v4237_v63 = vadd.f32 %v10103_v42, %v4194_v50  ;;  %v4625_v47 = vpop.f32.mrf.mxu1  ;;  %v8187_v49 = vld [vmem:[%s8446_s30 + $0x540] sm:$0xff]   ;;  %v4583_v45 = vadd.f32 %v4582_v13, %v4540_v6  ;;  %v8193_v13 = vld [vmem:[%s8446_s30 + $0x638] sm:$0xff]   ;;  %v8198_v50 = vld [vmem:[%s8446_s30 + $0x6b0] sm:$0xff]  }
 0x65b   : > { %7879 = vmatprep.subr.bf16.mxu1 %v8164_v37  ;;  %v4867_v31 = vmul.f32 0.01, %v4413_v8  ;;  %vm4811_vm15 = vcmp.gt.f32.partialorder %v4413_v8, 0.0  ;;  %v4870_v61 = vmul.f32 0.01, %v4587_v48  ;;  %vm4814_vm1 = vcmp.gt.f32.partialorder %v4587_v48, 0.0 }
 0x65c   : > { %7858 = vmatpush3.bf16.msra.mxu0 %v8165_v60  ;;  %v4837_v46 = vmul.f32 0.01, %v4237_v63  ;;  %vm4781_vm0 = vcmp.gt.f32.partialorder %v4237_v63, 0.0  ;;  %v4839_v37 = vmul.f32 0.01, %v4409_v58  ;;  %v10339_v59 = vpop.f32.mrf.mxu1  ;;  %vm4786_vm3 = vcmp.gt.f32.partialorder %v4583_v45, 0.0 }
 0x65d   : > { %7880 = vmatpush3.bf16.msra.mxu1 %v8166_v53  ;;  %7859 = vmatprep.subr.bf16.mxu0 %v8167_v44  ;;  %v8190_v53 = vld [vmem:[%s8446_s30 + $0x580] sm:$0xff]   ;;  %v8191_v44 = vld [vmem:[%s8446_s30 + $0x678] sm:$0xff]  }
 0x65e   : > { %7881 = vmatprep.subr.bf16.mxu1 %v8168_v21  ;;  %v4921_v21 = vsel %vm4809_vm14, %v4241_v52, %v4865_v30  ;;  %v8206_v30 = vld [vmem:[%s8446_s30 + $0x6a0] sm:$0xff]  }
 0x660   : > { %7860 = vmatpush3.bf16.msra.mxu0 %v8169_v18  ;;  %v4842_v18 = vmul.f32 0.01, %v4583_v45 }
 0x661   : > { %7882 = vmatpush3.bf16.msra.mxu1 %v8170_v38  ;;  %7861 = vmatprep.subr.bf16.mxu0 %v8171_v29  ;;  %v4923_v38 = vsel %vm4811_vm15, %v4413_v8, %v4867_v31  ;;  %v8202_v8 = vld [vmem:[%s8446_s30 + $0x6a8] sm:$0xff]  }
 0x662   : > { %7883 = vmatprep.subr.bf16.mxu1 %v8172_v2  ;;  %v4893_v2 = vsel %vm4781_vm0, %v4237_v63, %v4837_v46  ;;  %v4898_v24 = vsel %vm4786_vm3, %v4583_v45, %v4842_v18  ;;  %v8203_v63 = vld [vmem:[%s8446_s30 + $0x660] sm:$0xff]   ;;  %v8207_v45 = vld [vmem:[%s8446_s30 + $0x658] sm:$0xff]   ;;  %v4499_v46 = vadd.f32 %v10272_v27, %v10270_v23  ;;  %v8212_v27 = vld [vmem:[%s8446_s30 + $0x6d0] sm:$0xff]  }
 0x664   : > { %7862 = vmatpush3.bf16.msra.mxu0 %v8173_v62  ;;  %v4926_v62 = vsel %vm4814_vm1, %v4587_v48, %v4870_v61  ;;  %v8204_v48 = vld [vmem:[%s8446_s30 + $0x6e0] sm:$0xff]   ;;  %v8209_v61 = vld [vmem:[%s8446_s30 + $0x618] sm:$0xff]   ;;  %v4542_v18 = vadd.f32 %v10297_v36, %v4499_v46 }
 0x665   : > { %7884 = vmatpush3.bf16.msra.mxu1 %v8174_v25  ;;  %7863 = vmatprep.subr.bf16.mxu0 %v8175_v20  ;;  %v4949_v25 = vpack.c.bf16 %v4921_v21, %v4893_v2  ;;  %v4895_v20 = vsel %vm4783_vm2, %v4409_v58, %v4839_v37  ;;  %v4954_v35 = vpack.c.bf16 %v4926_v62, %v4898_v24  ;;  %v8222_v24 = vld [vmem:[%s8446_s30 + $0x680] sm:$0xff]  }
 0x666   : > { %7885 = vmatprep.subr.bf16.mxu1 %v8176_v4  ;;  %v4629_v4 = vpop.f32.mrf.mxu1  ;;  %v4951_v0 = vpack.c.bf16 %v4923_v38, %v4895_v20  ;;  %v4495_v21 = vadd.f32 %v10250_v57, %v10248_v16  ;;  %v8214_v16 = vld [vmem:[%s8446_s30 + $0x690] sm:$0xff]   ;;  %v8215_v57 = vld [vmem:[%s8446_s30 + $0x648] sm:$0xff]   ;;  %v4585_v36 = vadd.f32 %v10302_v1, %v4542_v18  ;;  %v8219_v20 = vld [vmem:[%s8446_s30 + $0x640] sm:$0xff]  }
 0x668   : > { %7864 = vmatpush3.bf16.msra.mxu0 %v8177_v51  ;;  %v8194_v51 = vld [vmem:[%s8446_s30 + $0x6b8] sm:$0xff]   ;;  %v4538_v38 = vadd.f32 %v10285_v34, %v4495_v21  ;;  %v8217_v34 = vld [vmem:[%s8446_s30 + $0x608] sm:$0xff]   ;;  %vm4813_vm6 = vcmp.gt.f32.partialorder %v4585_v36, 0.0 }
 0x669   : > { %7886 = vmatpush3.bf16.msra.mxu1 %v8178_v7  ;;  %7865 = vmatprep.subr.bf16.mxu0 %v8179_v26  ;;  %v8195_v7 = vld [vmem:[%s8446_s30 + $0x670] sm:$0xff]  }
 0x66a   : > { %7887 = vmatprep.subr.bf16.mxu1 %v8180_v43  ;;  %v8196_v26 = vld [vmem:[%s8446_s30 + $0x6f0] sm:$0xff]  }
 0x66c   : > { %7866 = vmatpush3.bf16.msra.mxu0 %v8181_v40  ;;  %v8200_v40 = vld [vmem:[%s8446_s30 + $0x6e8] sm:$0xff]  }
 0x66d   : > { %7888 = vmatpush3.bf16.msra.mxu1 %v8182_v3  ;;  %7867 = vmatprep.subr.bf16.mxu0 %v8183_v56  ;;  %v8201_v56 = vld [vmem:[%s8446_s30 + $0x628] sm:$0xff]  }
 0x66e   : > { %7889 = vmatprep.subr.bf16.mxu1 %v8184_v39 }
 0x66f   : > { %v10336_v42 = vpop.f32.mrf.mxu0 }
 0x670   : > { %7868 = vmatpush3.bf16.msra.mxu0 %v8185_v5 }
 0x671   : > { %7890 = vmatpush3.bf16.msra.mxu1 %v8186_v10  ;;  %v4668_v60 = vpop.f32.mrf.mxu0  ;;  %7869 = vmatprep.subr.bf16.mxu0 %v8187_v49 }
 0x672   : > { %7891 = vmatprep.subr.bf16.mxu1 %v8188_v55  ;;  %v4669_v43 = vadd.f32 %v4668_v60, %v4625_v47  ;;  %v8205_v47 = vld [vmem:[%s8446_s30 + $0x620] sm:$0xff]   ;;  %v8208_v55 = vld [vmem:[%s8446_s30 + $0x6d8] sm:$0xff]  }
 0x673   : > { %v10346_v29 = vpop.f32.mrf.mxu0 }
 0x674   : > { %7870 = vmatpush3.bf16.msra.mxu0 %v8189_v41  ;;  %v4671_v41 = vadd.f32 %v10346_v29, %v10339_v59  ;;  %v4667_v59 = vadd.f32 %v10336_v42, %v10323_v17  ;;  %v8213_v29 = vld [vmem:[%s8446_s30 + $0x610] sm:$0xff]   ;;  %v8216_v17 = vld [vmem:[%s8446_s30 + $0x6c8] sm:$0xff]  }
 0x675   : > { %7892 = vmatpush3.bf16.msra.mxu1 %v8190_v53  ;;  %v4672_v28 = vpop.f32.mrf.mxu0  ;;  %7899 = vmatprep.subr.bf16.mxu0 %v8191_v44  ;;  %v8210_v53 = vld [vmem:[%s8446_s30 + $0x698] sm:$0xff]   ;;  %v8211_v44 = vld [vmem:[%s8446_s30 + $0x650] sm:$0xff]  }
 0x676   : > { %7921 = vmatprep.subr.bf16.mxu1 %v8192_v33  ;;  %v4673_v52 = vadd.f32 %v4672_v28, %v4629_v4  ;;  %v4869_v4 = vmul.f32 0.01, %v4585_v36  ;;  %v8220_v28 = vld [vmem:[%s8446_s30 + $0x6c0] sm:$0xff]  }
 0x677   : > { %v10356_v15 = vpop.f32.mrf.mxu0  ;;  %7194 = vmatmul.mubr.bf16.vlgmr.msra.gmra.mxu0 %v4949_v25  ;;  %v8218_v25 = vld [vmem:[%s8446_s30 + $0x688] sm:$0xff]  }
 0x678   : > { %v10354_v14 = vpop.f32.mrf.mxu1  ;;  %7235 = vmatmul.mubr.bf16.vlgmr.msra.gmra.mxu1 %v4951_v0  ;;  %7900 = vmatpush3.bf16.msra.mxu0 %v8193_v13  ;;  %v4581_v13 = vadd.f32 %v10290_v12, %v4538_v38  ;;  %v8221_v0 = vld [vmem:[%s8446_s30 + $0x600] sm:$0xff]  }
 0x679   : > { %7275 = vmatprep.mubr.bf16.mxu0 %v4954_v35  ;;  %7922 = vmatpush3.bf16.msra.mxu1 %v8194_v51  ;;  %v4754_v22 = vpop.f32.mrf.mxu0  ;;  %v4710_v2 = vadd.f32 %v10354_v14, %v4667_v59 }
 0x67a   : > { %v4711_v9 = vpop.f32.mrf.mxu1  ;;  %7901 = vmatprep.subr.bf16.mxu0 %v8195_v7  ;;  %7923 = vmatprep.subr.bf16.mxu1 %v8196_v26  ;;  %v4841_v51 = vmul.f32 0.01, %v4581_v13  ;;  %vm4785_vm8 = vcmp.gt.f32.partialorder %v4581_v13, 0.0  ;;  %v4925_v7 = vsel %vm4813_vm6, %v4585_v36, %v4869_v4 }
 0x67b   : > { %v4712_v54 = vadd.f32 %v4711_v9, %v4669_v43  ;;  %v4756_v3 = vpop.f32.mrf.mxu0  ;;  %v4753_v62 = vadd.f32 %v10356_v15, %v4710_v2 }
 0x67c   : > { %v4713_v19 = vpop.f32.mrf.mxu1  ;;  %7902 = vmatpush3.bf16.msra.mxu0 %v8197_v32  ;;  %v4897_v14 = vsel %vm4785_vm8, %v4581_v13, %v4841_v51 }
 0x67d   : > { %v4755_v6 = vadd.f32 %v4754_v22, %v4712_v54  ;;  %7924 = vmatpush3.bf16.msra.mxu1 %v8198_v50  ;;  %7903 = vmatprep.subr.bf16.mxu0 %v8199_v11  ;;  %v4758_v58 = vpop.f32.mrf.mxu0  ;;  %v4714_v33 = vadd.f32 %v4713_v19, %v4671_v41  ;;  %v4843_v12 = vmul.f32 0.01, %v4753_v62  ;;  %vm4787_vm9 = vcmp.gt.f32.partialorder %v4753_v62, 0.0 }
 0x67e   : > { %v4715_v39 = vpop.f32.mrf.mxu1  ;;  %7925 = vmatprep.subr.bf16.mxu1 %v8200_v40  ;;  %v4953_v15 = vpack.c.bf16 %v4925_v7, %v4897_v14 }
 0x67f   : > { %v4716_v5 = vadd.f32 %v4715_v39, %v4673_v52  ;;  %v4844_v10 = vmul.f32 0.01, %v4755_v6  ;;  %vm4788_vm4 = vcmp.gt.f32.partialorder %v4755_v6, 0.0  ;;  %v4757_v42 = vadd.f32 %v4756_v3, %v4714_v33 }
 0x680   : > { %7904 = vmatpush3.bf16.msra.mxu0 %v8201_v56  ;;  %v4899_v35 = vsel %vm4787_vm9, %v4753_v62, %v4843_v12 }
 0x681   : > { %v4759_v49 = vadd.f32 %v4758_v58, %v4716_v5  ;;  %7926 = vmatpush3.bf16.msra.mxu1 %v8202_v8  ;;  %7905 = vmatprep.subr.bf16.mxu0 %v8203_v63  ;;  %v4900_v37 = vsel %vm4788_vm4, %v4755_v6, %v4844_v10  ;;  %v4871_v1 = vmul.f32 0.01, %v4757_v42  ;;  %vm4815_vm7 = vcmp.gt.f32.partialorder %v4757_v42, 0.0 }
 0x682   : > { %7927 = vmatprep.subr.bf16.mxu1 %v8204_v48 }
 0x683   : > { %vm4816_vm5 = vcmp.gt.f32.partialorder %v4759_v49, 0.0  ;;  %v4872_v31 = vmul.f32 0.01, %v4759_v49  ;;  %v4927_v26 = vsel %vm4815_vm7, %v4757_v42, %v4871_v1 }
 0x684   : > { %7906 = vmatpush3.bf16.msra.mxu0 %v8205_v47  ;;  %v4955_v43 = vpack.c.bf16 %v4927_v26, %v4899_v35 }
 0x685   : > { %7928 = vmatpush3.bf16.msra.mxu1 %v8206_v30  ;;  %7907 = vmatprep.subr.bf16.mxu0 %v8207_v45  ;;  %v4928_v60 = vsel %vm4816_vm5, %v4759_v49, %v4872_v31 }
 0x686   : > { %7929 = vmatprep.subr.bf16.mxu1 %v8208_v55  ;;  %v4956_v23 = vpack.c.bf16 %v4928_v60, %v4900_v37 }
 0x688   : > { %7316 = vmatprep.mubr.bf16.mxu1 %v4956_v23  ;;  %7908 = vmatpush3.bf16.msra.mxu0 %v8209_v61 }
 0x689   : > { %7930 = vmatpush3.bf16.msra.mxu1 %v8210_v53  ;;  %7909 = vmatprep.subr.bf16.mxu0 %v8211_v44 }
 0x68a   : > { %7931 = vmatprep.subr.bf16.mxu1 %v8212_v27 }
 0x68c   : > { %7910 = vmatpush3.bf16.msra.mxu0 %v8213_v29 }
 0x68d   : > { %7932 = vmatpush3.bf16.msra.mxu1 %v8214_v16  ;;  %7911 = vmatprep.subr.bf16.mxu0 %v8215_v57 }
 0x68e   : > { %7933 = vmatprep.subr.bf16.mxu1 %v8216_v17 }
 0x690   : > { %7912 = vmatpush3.bf16.msra.mxu0 %v8217_v34 }
 0x691   : > { %7934 = vmatpush3.bf16.msra.mxu1 %v8218_v25  ;;  %7913 = vmatprep.subr.bf16.mxu0 %v8219_v20 }
 0x692   : > { %7935 = vmatprep.subr.bf16.mxu1 %v8220_v28 }
 0x694   : > { %7914 = vmatpush3.bf16.msra.mxu0 %v8221_v0 }
 0x695   : > { %7936 = vmatpush3.bf16.msra.mxu1 %v8222_v24 }
 0x697   : > { %7276 = vmatmul.mubr.bf16.vlgmr.msra.gmra.mxu0 %v4953_v15  ;;  %v7651_v32 = vpop.f32.mrf.mxu0 }
 0x698   : > { %7317 = vmatmul.mubr.bf16.vlgmr.msra.gmra.mxu1 %v4955_v43  ;;  %v7673_v9 = vpop.f32.mrf.mxu1 }
 0x699   : > { %v7652_v22 = vpop.f32.mrf.mxu0 }
 0x69a   : > { %v7674_v50 = vpop.f32.mrf.mxu1  ;;  %v7653_v44 = vadd.f32 %v7652_v22, %v7651_v32 }
 0x69b   : > { %v7654_v11 = vpop.f32.mrf.mxu0  ;;  %v7675_v21 = vadd.f32 %v7674_v50, %v7673_v9 }
 0x69c   : > { %v7676_v54 = vpop.f32.mrf.mxu1 }
 0x69d   : > { %v7655_v40 = vpop.f32.mrf.mxu0  ;;  %v6827_v59 = vadd.f32 %v7675_v21, %v7653_v44 }
 0x69e   : > { %v7677_v3 = vpop.f32.mrf.mxu1  ;;  %v7656_v33 = vadd.f32 %v7655_v40, %v7654_v11 }
 0x69f   : > { %v7678_v38 = vadd.f32 %v7677_v3, %v7676_v54 }
 0x6a1   : > { %v6830_v36 = vadd.f32 %v7678_v38, %v7656_v33  ;;  %v4957_v38 = vld [vmem:[%s10426_s3] sm:$0xff] }
 0x6b7   : > { %v7695_v19 = vpop.f32.mrf.mxu0 }
 0x6b8   : > { %v7717_v56 = vpop.f32.mrf.mxu1 }
 0x6b9   : > { %v7696_v52 = vpop.f32.mrf.mxu0 }
 0x6ba   : > { %v7718_v6 = vpop.f32.mrf.mxu1  ;;  %v7697_v23 = vadd.f32 %v7696_v52, %v7695_v19 }
 0x6bb   : > { %v7698_v39 = vpop.f32.mrf.mxu0  ;;  %v7719_v17 = vadd.f32 %v7718_v6, %v7717_v56 }
 0x6bc   : > { %v7720_v8 = vpop.f32.mrf.mxu1  ;;  %v6868_v16 = vadd.f32 %v7697_v23, %v6827_v59 }
 0x6bd   : > { %v7699_v63 = vpop.f32.mrf.mxu0 }
 0x6be   : > { %v7721_v5 = vpop.f32.mrf.mxu1  ;;  %v7700_v57 = vadd.f32 %v7699_v63, %v7698_v39  ;;  %v6909_v62 = vadd.f32 %v7719_v17, %v6868_v16 }
 0x6bf   : > { %v7722_v20 = vadd.f32 %v7721_v5, %v7720_v8 }
 0x6c0   : > { %v6871_v25 = vadd.f32 %v7700_v57, %v6830_v36 }
 0x6c2   : > { %v6912_v0 = vadd.f32 %v7722_v20, %v6871_v25 }
 0x6d7   : > { %v7739_v48 = vpop.f32.mrf.mxu0 }
 0x6d8   : > { %v7761_v58 = vpop.f32.mrf.mxu1 }
 0x6d9   : > { %v7740_v47 = vpop.f32.mrf.mxu0 }
 0x6da   : > { %v7762_v10 = vpop.f32.mrf.mxu1  ;;  %v7741_v42 = vadd.f32 %v7740_v47, %v7739_v48 }
 0x6db   : > { %v7742_v49 = vpop.f32.mrf.mxu0  ;;  %v7763_v12 = vadd.f32 %v7762_v10, %v7761_v58 }
 0x6dc   : > { %v7764_v30 = vpop.f32.mrf.mxu1  ;;  %v6950_v4 = vadd.f32 %v7741_v42, %v6909_v62 }
 0x6dd   : > { %v7743_v45 = vpop.f32.mrf.mxu0 }
 0x6de   : > { %v7765_v31 = vpop.f32.mrf.mxu1  ;;  %v7744_v28 = vadd.f32 %v7743_v45, %v7742_v49  ;;  %v6991_v26 = vadd.f32 %v7763_v12, %v6950_v4 }
 0x6df   : > { %v7766_v35 = vadd.f32 %v7765_v31, %v7764_v30 }
 0x6e0   : > { %v6953_v14 = vadd.f32 %v7744_v28, %v6912_v0 }
 0x6e2   : > { %v6994_v50 = vadd.f32 %v7766_v35, %v6953_v14 }
 0x6f7   : > { %v7783_v55 = vpop.f32.mrf.mxu0 }
 0x6f8   : > { %v7805_v46 = vpop.f32.mrf.mxu1 }
 0x6f9   : > { %v7784_v61 = vpop.f32.mrf.mxu0 }
 0x6fa   : > { %v7806_v41 = vpop.f32.mrf.mxu1  ;;  %v7785_v24 = vadd.f32 %v7784_v61, %v7783_v55 }
 0x6fb   : > { %v7786_v37 = vpop.f32.mrf.mxu0  ;;  %v7807_v11 = vadd.f32 %v7806_v41, %v7805_v46 }
 0x6fc   : > { %v7808_v60 = vpop.f32.mrf.mxu1  ;;  %v7032_v43 = vadd.f32 %v7785_v24, %v6991_v26 }
 0x6fd   : > { %v7787_v53 = vpop.f32.mrf.mxu0 }
 0x6fe   : > { %v7809_v27 = vpop.f32.mrf.mxu1  ;;  %v7788_v32 = vadd.f32 %v7787_v53, %v7786_v37  ;;  %v7073_v40 = vadd.f32 %v7807_v11, %v7032_v43 }
 0x6ff   : > { %v7810_v52 = vadd.f32 %v7809_v27, %v7808_v60 }
 0x700   : > { %v7035_v19 = vadd.f32 %v7788_v32, %v6994_v50 }
 0x702   : > { %v7076_v8 = vadd.f32 %v7810_v52, %v7035_v19 }
 0x717   : > { %v7827_v18 = vpop.f32.mrf.mxu0 }
 0x718   : > { %v7849_v29 = vpop.f32.mrf.mxu1 }
 0x719   : > { %v7828_v2 = vpop.f32.mrf.mxu0 }
 0x71a   : > { %v7850_v13 = vpop.f32.mrf.mxu1  ;;  %v7829_v54 = vadd.f32 %v7828_v2, %v7827_v18 }
 0x71b   : > { %v7830_v34 = vpop.f32.mrf.mxu0  ;;  %v7851_v63 = vadd.f32 %v7850_v13, %v7849_v29 }
 0x71c   : > { %v7852_v1 = vpop.f32.mrf.mxu1  ;;  %v7114_v6 = vadd.f32 %v7829_v54, %v7073_v40 }
 0x71d   : > { %v7831_v51 = vpop.f32.mrf.mxu0 }
 0x71e   : > { %v7853_v15 = vpop.f32.mrf.mxu1  ;;  %v7832_v39 = vadd.f32 %v7831_v51, %v7830_v34  ;;  %v7155_v47 = vadd.f32 %v7851_v63, %v7114_v6  ;;  %v4958_v34 = vld [vmem:[%s10426_s3 + $0x8] sm:$0xff] }
 0x71f   : > { %v7854_v49 = vadd.f32 %v7853_v15, %v7852_v1 }
 0x720   : > { %v7117_v10 = vadd.f32 %v7832_v39, %v7076_v8 }
 0x722   : > { %v7158_v46 = vadd.f32 %v7854_v49, %v7117_v10 }
 0x737   : > { %v7871_v7 = vpop.f32.mrf.mxu0 }
 0x738   : > { %v7893_v9 = vpop.f32.mrf.mxu1 }
 0x739   : > { %v7872_v22 = vpop.f32.mrf.mxu0 }
 0x73a   : > { %v7894_v3 = vpop.f32.mrf.mxu1  ;;  %v7873_v48 = vadd.f32 %v7872_v22, %v7871_v7 }
 0x73b   : > { %v7874_v56 = vpop.f32.mrf.mxu0  ;;  %v7895_v61 = vadd.f32 %v7894_v3, %v7893_v9 }
 0x73c   : > { %v7896_v5 = vpop.f32.mrf.mxu1  ;;  %v7196_v30 = vadd.f32 %v7873_v48, %v7155_v47 }
 0x73d   : > { %v7875_v58 = vpop.f32.mrf.mxu0 }
 0x73e   : > { %v7876_v45 = vadd.f32 %v7875_v58, %v7874_v56  ;;  %v7897_v55 = vpop.f32.mrf.mxu1  ;;  %v7237_v53 = vadd.f32 %v7895_v61, %v7196_v30 }
 0x73f   : > { %v7898_v23 = vadd.f32 %v7897_v55, %v7896_v5 }
 0x740   : > { %v7199_v60 = vadd.f32 %v7876_v45, %v7158_v46 }
 0x742   : > { %v7240_v2 = vadd.f32 %v7898_v23, %v7199_v60 }
 0x757   : > { %v7915_v31 = vpop.f32.mrf.mxu0 }
 0x758   : > { %v7937_v41 = vpop.f32.mrf.mxu1 }
 0x759   : > { %v7916_v37 = vpop.f32.mrf.mxu0 }
 0x75a   : > { %v7917_v44 = vadd.f32 %v7916_v37, %v7915_v31  ;;  %v7938_v21 = vpop.f32.mrf.mxu1 }
 0x75b   : > { %v7918_v18 = vpop.f32.mrf.mxu0  ;;  %v7939_v59 = vadd.f32 %v7938_v21, %v7937_v41 }
 0x75c   : > { %v7278_v27 = vadd.f32 %v7917_v44, %v7237_v53  ;;  %v7940_v33 = vpop.f32.mrf.mxu1 }
 0x75d   : > { %v7919_v29 = vpop.f32.mrf.mxu0 }
 0x75e   : > { %v7319_v16 = vadd.f32 %v7939_v59, %v7278_v27  ;;  %v7920_v57 = vadd.f32 %v7919_v29, %v7918_v18  ;;  %v7941_v36 = vpop.f32.mrf.mxu1 }
 0x75f   : > { %v7942_v13 = vadd.f32 %v7941_v36, %v7940_v33 }
 0x760   : > { %v7325_v17 = vadd.f32 %v7319_v16, %v4957_v38  ;;  %v7281_v42 = vadd.f32 %v7920_v57, %v7240_v2 }
 0x762   : > { %7328 = vst.msk [vmem:[%s10426_s3] sm:$0xff] %vm7327_vm10, %v7325_v17  ;;  %v7322_v62 = vadd.f32 %v7942_v13, %v7281_v42 }
 0x764   : > { %v7326_v25 = vadd.f32 %v7322_v62, %v4958_v34 }
 0x766   : > { %7329 = vst.msk [vmem:[%s10426_s3 + $0x8] sm:$0xff] %vm7327_vm10, %v7326_v25 }
 0x767 PF: > { %p13_p1 = scmp.ge.s32.totalorder %s8379_s17, 4   ;;  %s10568_s12 = smov %s8322_s13 }
 0x768   : > { %s10569_s13 = smov %s8326_s14  ;;  %s10570_s14 = smov %s8389_s20 }
 0x769   : > { %s10571_s15 = smov %s8379_s17  ;;  %15 = sbr.rel (!%p13_p1) target bundleno = 3 (0x3), region = 75 }
 0x76e   :  { %7341 = vsyncpa [#allocation3], 1 }
 0x76f   :  { %7343 = vsyncpa [#allocation3 + $0x1], 1 }

</bundles_post_ra>
